<compile_context>
chip_gen: v5e
topology: v5e:2x2
jax: 0.10.0
libtpu: 0.0.40
codegen_flags: <defaults>
</compile_context>

<pallas_src>
import functools

import jax
import jax.numpy as jnp
from jax.experimental import pallas as pl
from jax.experimental.pallas import tpu as pltpu

GRID_SIZE = 5
SPLINE_ORDER = 3
GRID_RANGE = (-1.0, 1.0)
NUM_KNOTS = GRID_SIZE + 2 * SPLINE_ORDER + 1   # 12 knots per feature
NUM_BASES = GRID_SIZE + SPLINE_ORDER           # 8 spline bases per feature
NUM_BLOCKS = NUM_BASES + 1                     # silu block + spline blocks

# Uniform knots are identical for every feature -> compile-time constants.
H = (GRID_RANGE[1] - GRID_RANGE[0]) / GRID_SIZE
KNOTS = tuple(GRID_RANGE[0] + (j - SPLINE_ORDER) * H for j in range(NUM_KNOTS))


def _round_up(x, m):
    return ((x + m - 1) // m) * m


def _pick_out_tile(out_p):
    for t in (512, 256, 128):
        if out_p % t == 0:
            return t
    return out_p


def kan_linear_kernel(x_ref, w_ref, out_ref, b_ref, *, in_p, use_bf16):
    # Build the fused activation matrix B only once per batch tile (the out_f
    # grid axis is the innermost loop; scratch persists across it).
    @pl.when(pl.program_id(1) == 0)
    def _build_bases():
        x = x_ref[...].astype(jnp.float32)                     # (TN, in_p)

        # block 0: SiLU base path
        b_ref[:, 0:in_p] = x * jax.nn.sigmoid(x)

        # order-0 bases: indicator of [knot_j, knot_{j+1})   (constants!)
        bases = [((x >= KNOTS[j]) & (x < KNOTS[j + 1])).astype(jnp.float32)
                 for j in range(NUM_KNOTS - 1)]

        # Cox-de Boor recursion (unrolled). Uniform grid -> denominators are
        # p*h, precomputed reciprocals; no vector divides.
        for p in range(1, SPLINE_ORDER + 1):
            inv = 1.0 / (p * H)
            bases = [(x - KNOTS[j]) * inv * bases[j]
                     + (KNOTS[j + p + 1] - x) * inv * bases[j + 1]
                     for j in range(len(bases) - 1)]

        # blocks 1..NUM_BASES: stream each finished basis into its lane-dense
        # slice of the scratch slab (bounds live vregs).
        for j in range(NUM_BASES):
            b_ref[:, (j + 1) * in_p:(j + 2) * in_p] = bases[j]

    b = b_ref[...]
    w = w_ref[...]
    if use_bf16:
        b = b.astype(jnp.bfloat16)
        w = w.astype(jnp.bfloat16)
    # Single fused MXU contraction: (TN, 9*in_p) @ (9*in_p, tile_out)
    out_ref[...] = jnp.dot(b, w, preferred_element_type=jnp.float32
                           ).astype(out_ref.dtype)


def kan_linear_pallas(x2d, w_fused, in_f, out_f, in_p, out_p, *,
                      tn=128, use_bf16_mxu=False):
    n = x2d.shape[0]
    n_pad = max(_round_up(n, tn), tn)
    fused_k = NUM_BLOCKS * in_p
    tile_out = _pick_out_tile(out_p)

    # zero-pad batch rows + in-features (padded weight rows are zero, so the
    # padded features' nonzero spline bases contribute nothing).
    xp = jnp.pad(x2d, ((0, n_pad - n), (0, in_p - in_f)))

    flops = 2 * n_pad * fused_k * out_p
    transcendentals = n_pad * in_p
    bytes_accessed = 4 * (n_pad * in_p + fused_k * out_p + n_pad * out_p)

    kernel = functools.partial(kan_linear_kernel, in_p=in_p,
                               use_bf16=use_bf16_mxu)

    out = pl.pallas_call(
        kernel,
        out_shape=jax.ShapeDtypeStruct((n_pad, out_p), x2d.dtype),
        grid_spec=pltpu.PrefetchScalarGridSpec(
            num_scalar_prefetch=0,
            grid=(n_pad // tn, out_p // tile_out),
            in_specs=[
                pl.BlockSpec((tn, in_p), lambda i, j: (i, 0)),
                pl.BlockSpec((fused_k, tile_out), lambda i, j: (0, j)),
            ],
            out_specs=pl.BlockSpec((tn, tile_out), lambda i, j: (i, j)),
            scratch_shapes=[pltpu.VMEM((tn, fused_k), jnp.float32)],
        ),
        compiler_params=pltpu.CompilerParams(
            dimension_semantics=("parallel", "arbitrary"),
            vmem_limit_bytes=32 * 1024 * 1024,
        ),
        cost_estimate=pl.CostEstimate(
            flops=flops,
            transcendentals=transcendentals,
            bytes_accessed=bytes_accessed,
        ),
    )(xp, w_fused)

    return out[:n, :out_f]


def make_kan_params(layers, key):
    """Deterministic synthetic parameters (torch.nn.Parameter was uninitialized)."""
    params = []
    knots = (jnp.arange(-SPLINE_ORDER, GRID_SIZE + SPLINE_ORDER + 1,
                        dtype=jnp.float32) * H + GRID_RANGE[0])        # (12,)
    for in_f, out_f in zip(layers[:-1], layers[1:]):
        key, k1, k2 = jax.random.split(key, 3)
        base_w = jax.random.normal(k1, (out_f, in_f), jnp.float32) / jnp.sqrt(in_f)
        spline_w = jax.random.normal(k2, (out_f, in_f, NUM_BASES), jnp.float32) * 0.1
        grid = jnp.broadcast_to(knots, (in_f, NUM_KNOTS))              # (in, 12)

        in_p = _round_up(in_f, 128)
        out_p = _round_up(out_f, 128)

        # Fused, padded, kernel-layout weight: row-block 0 is the (in, out)
        # base weight, row-blocks 1..K are the per-basis spline weights.
        base_blk = jnp.zeros((in_p, out_p), jnp.float32
                             ).at[:in_f, :out_f].set(base_w.T)
        spl_t = jnp.transpose(spline_w, (2, 1, 0))                     # (K, in, out)
        spl_blk = jnp.zeros((NUM_BASES, in_p, out_p), jnp.float32
                            ).at[:, :in_f, :out_f].set(spl_t)
        w_fused = jnp.concatenate([base_blk[None], spl_blk], axis=0
                                  ).reshape(NUM_BLOCKS * in_p, out_p)

        params.append(dict(
            # torch-layout copies, used by the pure-JAX reference
            grid=grid, base_w=base_w, spline_w=spline_w,
            # kernel-layout fused/padded weight + dims
            w_fused=w_fused, in_f=in_f, out_f=out_f, in_p=in_p, out_p=out_p,
        ))
    return params


def kan_forward(x, params, *, tn=128, use_bf16_mxu=False):
    for p in params:
        lead = x.shape[:-1]
        x2d = x.reshape(-1, p["in_f"])
        out2d = kan_linear_pallas(x2d, p["w_fused"], p["in_f"], p["out_f"],
                                  p["in_p"], p["out_p"],
                                  tn=tn, use_bf16_mxu=use_bf16_mxu)
        x = out2d.reshape(*lead, p["out_f"])
    return x


# ---------------- pure-JAX reference (mirrors the torch code) ----------------
def kan_linear_ref(x2d, grid, base_w, spline_w):
    xe = x2d[:, :, None]
    bases = ((xe >= grid[None, :, :-1]) & (xe < grid[None, :, 1:])).astype(x2d.dtype)
    for p in range(1, SPLINE_ORDER + 1):
        bases = ((xe - grid[None, :, :-(p + 1)])
                 / (grid[None, :, p:-1] - grid[None, :, :-(p + 1)]) * bases[:, :, :-1]
                 + (grid[None, :, p + 1:] - xe)
                 / (grid[None, :, p + 1:] - grid[None, :, 1:-p]) * bases[:, :, 1:])
    base_out = jax.nn.silu(x2d) @ base_w.T
    spline_out = bases.reshape(x2d.shape[0], -1) @ spline_w.reshape(spline_w.shape[0], -1).T
    return base_out + spline_out


def kan_forward_ref(x, params):
    for p in params:
        in_f = p["base_w"].shape[1]
        out_f = p["base_w"].shape[0]
        lead = x.shape[:-1]
        x2d = x.reshape(-1, in_f)
        out2d = kan_linear_ref(x2d, p["grid"], p["base_w"], p["spline_w"])
        x = out2d.reshape(*lead, out_f)
    return x


if __name__ == "__main__":
    key = jax.random.PRNGKey(0)
    layers = [32, 64, 32]                       # KAN([32, 64, 32])
    k_params, k_x = jax.random.split(key)
    params = make_kan_params(layers, k_params)

    # input: (batch=2, seq=8, features=32) -> flattened to (16, 32) per layer
    x = jax.random.normal(k_x, (2, 8, 32), jnp.float32)

    out = kan_forward(x, params)
    out = jax.block_until_ready(out)

    ref = kan_forward_ref(x, params)
    assert out.shape == (2, 8, 32)
    assert jnp.allclose(out, ref, atol=1e-4, rtol=1e-4), "mismatch vs reference"

    print("KERNEL_OK")
</pallas_src>

<mosaic_0001>
module attributes {stable_mosaic.version = 11 : i64} {
  func.func @kan_linear_kernel(%arg0: i32, %arg1: i32, %arg2: memref<128x128xf32, #tpu.memory_space<vmem>>, %arg3: memref<1152x128xf32, #tpu.memory_space<vmem>>, %arg4: memref<128x128xf32, #tpu.memory_space<vmem>>, %arg5: memref<128x1152xf32, #tpu.memory_space<vmem>>) attributes {dimension_semantics = [#tpu.dimension_semantics<parallel>, #tpu.dimension_semantics<arbitrary>], iteration_bounds = array<i64: 1, 1>, scalar_prefetch = 0 : i64, scratch_operands = 1 : i64, tpu.core_type = #tpu.core_type<tc>, window_params = [{transform_indices = @transform_0, window_bounds = array<i64: 128, 128>}, {transform_indices = @transform_1, window_bounds = array<i64: 1152, 128>}, {transform_indices = @transform_2, window_bounds = array<i64: 128, 128>}]} {
    %c0_i32 = arith.constant 0 : i32
    %0 = arith.cmpi eq, %arg1, %c0_i32 : i32
    %1 = arith.extui %0 : i1 to i32
    %c0_i32_0 = arith.constant 0 : i32
    %2 = arith.cmpi ne, %1, %c0_i32_0 : i32
    scf.if %2 {
      %c0_6 = arith.constant 0 : index
      %c0_7 = arith.constant 0 : index
      %7 = vector.load %arg2[%c0_6, %c0_7] : memref<128x128xf32, #tpu.memory_space<vmem>>, vector<128x128xf32>
      %8 = arith.negf %7 : vector<128x128xf32>
      %9 = math.exp %8 : vector<128x128xf32>
      %cst_8 = arith.constant 1.000000e+00 : f32
      %10 = vector.broadcast %cst_8 : f32 to vector<128x128xf32>
      %11 = arith.addf %10, %9 : vector<128x128xf32>
      %12 = arith.divf %10, %11 : vector<128x128xf32>
      %13 = arith.mulf %7, %12 : vector<128x128xf32>
      %c0_9 = arith.constant 0 : index
      %c0_10 = arith.constant 0 : index
      %14 = vector.load %arg5[%c0_9, %c0_10] : memref<128x1152xf32, #tpu.memory_space<vmem>>, vector<128x128xf32>
      tpu.vector_store %arg5[%c0_9, %c0_10], %13 {strides = array<i32>} : memref<128x1152xf32, #tpu.memory_space<vmem>>, vector<128x128xf32>,
      %cst_11 = arith.constant -2.200000e+00 : f32
      %15 = vector.broadcast %cst_11 : f32 to vector<128x128xf32>
      %16 = arith.cmpf oge, %7, %15 : vector<128x128xf32>
      %cst_12 = arith.constant -1.800000e+00 : f32
      %17 = vector.broadcast %cst_12 : f32 to vector<128x128xf32>
      %18 = arith.cmpf olt, %7, %17 : vector<128x128xf32>
      %19 = arith.andi %16, %18 : vector<128x128xi1>
      %20 = arith.extui %19 : vector<128x128xi1> to vector<128x128xi32>
      %21 = arith.sitofp %20 : vector<128x128xi32> to vector<128x128xf32>
      %cst_13 = arith.constant -1.800000e+00 : f32
      %22 = vector.broadcast %cst_13 : f32 to vector<128x128xf32>
      %23 = arith.cmpf oge, %7, %22 : vector<128x128xf32>
      %cst_14 = arith.constant -1.400000e+00 : f32
      %24 = vector.broadcast %cst_14 : f32 to vector<128x128xf32>
      %25 = arith.cmpf olt, %7, %24 : vector<128x128xf32>
      %26 = arith.andi %23, %25 : vector<128x128xi1>
      %27 = arith.extui %26 : vector<128x128xi1> to vector<128x128xi32>
      %28 = arith.sitofp %27 : vector<128x128xi32> to vector<128x128xf32>
      %cst_15 = arith.constant -1.400000e+00 : f32
      %29 = vector.broadcast %cst_15 : f32 to vector<128x128xf32>
      %30 = arith.cmpf oge, %7, %29 : vector<128x128xf32>
      %cst_16 = arith.constant -1.000000e+00 : f32
      %31 = vector.broadcast %cst_16 : f32 to vector<128x128xf32>
      %32 = arith.cmpf olt, %7, %31 : vector<128x128xf32>
      %33 = arith.andi %30, %32 : vector<128x128xi1>
      %34 = arith.extui %33 : vector<128x128xi1> to vector<128x128xi32>
      %35 = arith.sitofp %34 : vector<128x128xi32> to vector<128x128xf32>
      %cst_17 = arith.constant -1.000000e+00 : f32
      %36 = vector.broadcast %cst_17 : f32 to vector<128x128xf32>
      %37 = arith.cmpf oge, %7, %36 : vector<128x128xf32>
      %cst_18 = arith.constant -6.000000e-01 : f32
      %38 = vector.broadcast %cst_18 : f32 to vector<128x128xf32>
      %39 = arith.cmpf olt, %7, %38 : vector<128x128xf32>
      %40 = arith.andi %37, %39 : vector<128x128xi1>
      %41 = arith.extui %40 : vector<128x128xi1> to vector<128x128xi32>
      %42 = arith.sitofp %41 : vector<128x128xi32> to vector<128x128xf32>
      %cst_19 = arith.constant -6.000000e-01 : f32
      %43 = vector.broadcast %cst_19 : f32 to vector<128x128xf32>
      %44 = arith.cmpf oge, %7, %43 : vector<128x128xf32>
      %cst_20 = arith.constant -2.000000e-01 : f32
      %45 = vector.broadcast %cst_20 : f32 to vector<128x128xf32>
      %46 = arith.cmpf olt, %7, %45 : vector<128x128xf32>
      %47 = arith.andi %44, %46 : vector<128x128xi1>
      %48 = arith.extui %47 : vector<128x128xi1> to vector<128x128xi32>
      %49 = arith.sitofp %48 : vector<128x128xi32> to vector<128x128xf32>
      %cst_21 = arith.constant -2.000000e-01 : f32
      %50 = vector.broadcast %cst_21 : f32 to vector<128x128xf32>
      %51 = arith.cmpf oge, %7, %50 : vector<128x128xf32>
      %cst_22 = arith.constant 2.000000e-01 : f32
      %52 = vector.broadcast %cst_22 : f32 to vector<128x128xf32>
      %53 = arith.cmpf olt, %7, %52 : vector<128x128xf32>
      %54 = arith.andi %51, %53 : vector<128x128xi1>
      %55 = arith.extui %54 : vector<128x128xi1> to vector<128x128xi32>
      %56 = arith.sitofp %55 : vector<128x128xi32> to vector<128x128xf32>
      %cst_23 = arith.constant 2.000000e-01 : f32
      %57 = vector.broadcast %cst_23 : f32 to vector<128x128xf32>
      %58 = arith.cmpf oge, %7, %57 : vector<128x128xf32>
      %cst_24 = arith.constant 6.000000e-01 : f32
      %59 = vector.broadcast %cst_24 : f32 to vector<128x128xf32>
      %60 = arith.cmpf olt, %7, %59 : vector<128x128xf32>
      %61 = arith.andi %58, %60 : vector<128x128xi1>
      %62 = arith.extui %61 : vector<128x128xi1> to vector<128x128xi32>
      %63 = arith.sitofp %62 : vector<128x128xi32> to vector<128x128xf32>
      %cst_25 = arith.constant 6.000000e-01 : f32
      %64 = vector.broadcast %cst_25 : f32 to vector<128x128xf32>
      %65 = arith.cmpf oge, %7, %64 : vector<128x128xf32>
      %cst_26 = arith.constant 1.000000e+00 : f32
      %66 = vector.broadcast %cst_26 : f32 to vector<128x128xf32>
      %67 = arith.cmpf olt, %7, %66 : vector<128x128xf32>
      %68 = arith.andi %65, %67 : vector<128x128xi1>
      %69 = arith.extui %68 : vector<128x128xi1> to vector<128x128xi32>
      %70 = arith.sitofp %69 : vector<128x128xi32> to vector<128x128xf32>
      %cst_27 = arith.constant 1.000000e+00 : f32
      %71 = vector.broadcast %cst_27 : f32 to vector<128x128xf32>
      %72 = arith.cmpf oge, %7, %71 : vector<128x128xf32>
      %cst_28 = arith.constant 1.400000e+00 : f32
      %73 = vector.broadcast %cst_28 : f32 to vector<128x128xf32>
      %74 = arith.cmpf olt, %7, %73 : vector<128x128xf32>
      %75 = arith.andi %72, %74 : vector<128x128xi1>
      %76 = arith.extui %75 : vector<128x128xi1> to vector<128x128xi32>
      %77 = arith.sitofp %76 : vector<128x128xi32> to vector<128x128xf32>
      %cst_29 = arith.constant 1.400000e+00 : f32
      %78 = vector.broadcast %cst_29 : f32 to vector<128x128xf32>
      %79 = arith.cmpf oge, %7, %78 : vector<128x128xf32>
      %cst_30 = arith.constant 1.800000e+00 : f32
      %80 = vector.broadcast %cst_30 : f32 to vector<128x128xf32>
      %81 = arith.cmpf olt, %7, %80 : vector<128x128xf32>
      %82 = arith.andi %79, %81 : vector<128x128xi1>
      %83 = arith.extui %82 : vector<128x128xi1> to vector<128x128xi32>
      %84 = arith.sitofp %83 : vector<128x128xi32> to vector<128x128xf32>
      %cst_31 = arith.constant 1.800000e+00 : f32
      %85 = vector.broadcast %cst_31 : f32 to vector<128x128xf32>
      %86 = arith.cmpf oge, %7, %85 : vector<128x128xf32>
      %cst_32 = arith.constant 2.200000e+00 : f32
      %87 = vector.broadcast %cst_32 : f32 to vector<128x128xf32>
      %88 = arith.cmpf olt, %7, %87 : vector<128x128xf32>
      %89 = arith.andi %86, %88 : vector<128x128xi1>
      %90 = arith.extui %89 : vector<128x128xi1> to vector<128x128xi32>
      %91 = arith.sitofp %90 : vector<128x128xi32> to vector<128x128xf32>
      %cst_33 = arith.constant -2.200000e+00 : f32
      %92 = vector.broadcast %cst_33 : f32 to vector<128x128xf32>
      %93 = arith.subf %7, %92 : vector<128x128xf32>
      %cst_34 = arith.constant 2.500000e+00 : f32
      %94 = vector.broadcast %cst_34 : f32 to vector<128x128xf32>
      %95 = arith.mulf %93, %94 : vector<128x128xf32>
      %96 = arith.mulf %95, %21 : vector<128x128xf32>
      %cst_35 = arith.constant -1.400000e+00 : f32
      %97 = vector.broadcast %cst_35 : f32 to vector<128x128xf32>
      %98 = arith.subf %97, %7 : vector<128x128xf32>
      %cst_36 = arith.constant 2.500000e+00 : f32
      %99 = vector.broadcast %cst_36 : f32 to vector<128x128xf32>
      %100 = arith.mulf %98, %99 : vector<128x128xf32>
      %101 = arith.mulf %100, %28 : vector<128x128xf32>
      %102 = arith.addf %96, %101 : vector<128x128xf32>
      %cst_37 = arith.constant -1.800000e+00 : f32
      %103 = vector.broadcast %cst_37 : f32 to vector<128x128xf32>
      %104 = arith.subf %7, %103 : vector<128x128xf32>
      %cst_38 = arith.constant 2.500000e+00 : f32
      %105 = vector.broadcast %cst_38 : f32 to vector<128x128xf32>
      %106 = arith.mulf %104, %105 : vector<128x128xf32>
      %107 = arith.mulf %106, %28 : vector<128x128xf32>
      %cst_39 = arith.constant -1.000000e+00 : f32
      %108 = vector.broadcast %cst_39 : f32 to vector<128x128xf32>
      %109 = arith.subf %108, %7 : vector<128x128xf32>
      %cst_40 = arith.constant 2.500000e+00 : f32
      %110 = vector.broadcast %cst_40 : f32 to vector<128x128xf32>
      %111 = arith.mulf %109, %110 : vector<128x128xf32>
      %112 = arith.mulf %111, %35 : vector<128x128xf32>
      %113 = arith.addf %107, %112 : vector<128x128xf32>
      %cst_41 = arith.constant -1.400000e+00 : f32
      %114 = vector.broadcast %cst_41 : f32 to vector<128x128xf32>
      %115 = arith.subf %7, %114 : vector<128x128xf32>
      %cst_42 = arith.constant 2.500000e+00 : f32
      %116 = vector.broadcast %cst_42 : f32 to vector<128x128xf32>
      %117 = arith.mulf %115, %116 : vector<128x128xf32>
      %118 = arith.mulf %117, %35 : vector<128x128xf32>
      %cst_43 = arith.constant -6.000000e-01 : f32
      %119 = vector.broadcast %cst_43 : f32 to vector<128x128xf32>
      %120 = arith.subf %119, %7 : vector<128x128xf32>
      %cst_44 = arith.constant 2.500000e+00 : f32
      %121 = vector.broadcast %cst_44 : f32 to vector<128x128xf32>
      %122 = arith.mulf %120, %121 : vector<128x128xf32>
      %123 = arith.mulf %122, %42 : vector<128x128xf32>
      %124 = arith.addf %118, %123 : vector<128x128xf32>
      %cst_45 = arith.constant -1.000000e+00 : f32
      %125 = vector.broadcast %cst_45 : f32 to vector<128x128xf32>
      %126 = arith.subf %7, %125 : vector<128x128xf32>
      %cst_46 = arith.constant 2.500000e+00 : f32
      %127 = vector.broadcast %cst_46 : f32 to vector<128x128xf32>
      %128 = arith.mulf %126, %127 : vector<128x128xf32>
      %129 = arith.mulf %128, %42 : vector<128x128xf32>
      %cst_47 = arith.constant -2.000000e-01 : f32
      %130 = vector.broadcast %cst_47 : f32 to vector<128x128xf32>
      %131 = arith.subf %130, %7 : vector<128x128xf32>
      %cst_48 = arith.constant 2.500000e+00 : f32
      %132 = vector.broadcast %cst_48 : f32 to vector<128x128xf32>
      %133 = arith.mulf %131, %132 : vector<128x128xf32>
      %134 = arith.mulf %133, %49 : vector<128x128xf32>
      %135 = arith.addf %129, %134 : vector<128x128xf32>
      %cst_49 = arith.constant -6.000000e-01 : f32
      %136 = vector.broadcast %cst_49 : f32 to vector<128x128xf32>
      %137 = arith.subf %7, %136 : vector<128x128xf32>
      %cst_50 = arith.constant 2.500000e+00 : f32
      %138 = vector.broadcast %cst_50 : f32 to vector<128x128xf32>
      %139 = arith.mulf %137, %138 : vector<128x128xf32>
      %140 = arith.mulf %139, %49 : vector<128x128xf32>
      %cst_51 = arith.constant 2.000000e-01 : f32
      %141 = vector.broadcast %cst_51 : f32 to vector<128x128xf32>
      %142 = arith.subf %141, %7 : vector<128x128xf32>
      %cst_52 = arith.constant 2.500000e+00 : f32
      %143 = vector.broadcast %cst_52 : f32 to vector<128x128xf32>
      %144 = arith.mulf %142, %143 : vector<128x128xf32>
      %145 = arith.mulf %144, %56 : vector<128x128xf32>
      %146 = arith.addf %140, %145 : vector<128x128xf32>
      %cst_53 = arith.constant -2.000000e-01 : f32
      %147 = vector.broadcast %cst_53 : f32 to vector<128x128xf32>
      %148 = arith.subf %7, %147 : vector<128x128xf32>
      %cst_54 = arith.constant 2.500000e+00 : f32
      %149 = vector.broadcast %cst_54 : f32 to vector<128x128xf32>
      %150 = arith.mulf %148, %149 : vector<128x128xf32>
      %151 = arith.mulf %150, %56 : vector<128x128xf32>
      %cst_55 = arith.constant 6.000000e-01 : f32
      %152 = vector.broadcast %cst_55 : f32 to vector<128x128xf32>
      %153 = arith.subf %152, %7 : vector<128x128xf32>
      %cst_56 = arith.constant 2.500000e+00 : f32
      %154 = vector.broadcast %cst_56 : f32 to vector<128x128xf32>
      %155 = arith.mulf %153, %154 : vector<128x128xf32>
      %156 = arith.mulf %155, %63 : vector<128x128xf32>
      %157 = arith.addf %151, %156 : vector<128x128xf32>
      %cst_57 = arith.constant 2.000000e-01 : f32
      %158 = vector.broadcast %cst_57 : f32 to vector<128x128xf32>
      %159 = arith.subf %7, %158 : vector<128x128xf32>
      %cst_58 = arith.constant 2.500000e+00 : f32
      %160 = vector.broadcast %cst_58 : f32 to vector<128x128xf32>
      %161 = arith.mulf %159, %160 : vector<128x128xf32>
      %162 = arith.mulf %161, %63 : vector<128x128xf32>
      %cst_59 = arith.constant 1.000000e+00 : f32
      %163 = vector.broadcast %cst_59 : f32 to vector<128x128xf32>
      %164 = arith.subf %163, %7 : vector<128x128xf32>
      %cst_60 = arith.constant 2.500000e+00 : f32
      %165 = vector.broadcast %cst_60 : f32 to vector<128x128xf32>
      %166 = arith.mulf %164, %165 : vector<128x128xf32>
      %167 = arith.mulf %166, %70 : vector<128x128xf32>
      %168 = arith.addf %162, %167 : vector<128x128xf32>
      %cst_61 = arith.constant 6.000000e-01 : f32
      %169 = vector.broadcast %cst_61 : f32 to vector<128x128xf32>
      %170 = arith.subf %7, %169 : vector<128x128xf32>
      %cst_62 = arith.constant 2.500000e+00 : f32
      %171 = vector.broadcast %cst_62 : f32 to vector<128x128xf32>
      %172 = arith.mulf %170, %171 : vector<128x128xf32>
      %173 = arith.mulf %172, %70 : vector<128x128xf32>
      %cst_63 = arith.constant 1.400000e+00 : f32
      %174 = vector.broadcast %cst_63 : f32 to vector<128x128xf32>
      %175 = arith.subf %174, %7 : vector<128x128xf32>
      %cst_64 = arith.constant 2.500000e+00 : f32
      %176 = vector.broadcast %cst_64 : f32 to vector<128x128xf32>
      %177 = arith.mulf %175, %176 : vector<128x128xf32>
      %178 = arith.mulf %177, %77 : vector<128x128xf32>
      %179 = arith.addf %173, %178 : vector<128x128xf32>
      %cst_65 = arith.constant 1.000000e+00 : f32
      %180 = vector.broadcast %cst_65 : f32 to vector<128x128xf32>
      %181 = arith.subf %7, %180 : vector<128x128xf32>
      %cst_66 = arith.constant 2.500000e+00 : f32
      %182 = vector.broadcast %cst_66 : f32 to vector<128x128xf32>
      %183 = arith.mulf %181, %182 : vector<128x128xf32>
      %184 = arith.mulf %183, %77 : vector<128x128xf32>
      %cst_67 = arith.constant 1.800000e+00 : f32
      %185 = vector.broadcast %cst_67 : f32 to vector<128x128xf32>
      %186 = arith.subf %185, %7 : vector<128x128xf32>
      %cst_68 = arith.constant 2.500000e+00 : f32
      %187 = vector.broadcast %cst_68 : f32 to vector<128x128xf32>
      %188 = arith.mulf %186, %187 : vector<128x128xf32>
      %189 = arith.mulf %188, %84 : vector<128x128xf32>
      %190 = arith.addf %184, %189 : vector<128x128xf32>
      %cst_69 = arith.constant 1.400000e+00 : f32
      %191 = vector.broadcast %cst_69 : f32 to vector<128x128xf32>
      %192 = arith.subf %7, %191 : vector<128x128xf32>
      %cst_70 = arith.constant 2.500000e+00 : f32
      %193 = vector.broadcast %cst_70 : f32 to vector<128x128xf32>
      %194 = arith.mulf %192, %193 : vector<128x128xf32>
      %195 = arith.mulf %194, %84 : vector<128x128xf32>
      %cst_71 = arith.constant 2.200000e+00 : f32
      %196 = vector.broadcast %cst_71 : f32 to vector<128x128xf32>
      %197 = arith.subf %196, %7 : vector<128x128xf32>
      %cst_72 = arith.constant 2.500000e+00 : f32
      %198 = vector.broadcast %cst_72 : f32 to vector<128x128xf32>
      %199 = arith.mulf %197, %198 : vector<128x128xf32>
      %200 = arith.mulf %199, %91 : vector<128x128xf32>
      %201 = arith.addf %195, %200 : vector<128x128xf32>
      %cst_73 = arith.constant -2.200000e+00 : f32
      %202 = vector.broadcast %cst_73 : f32 to vector<128x128xf32>
      %203 = arith.subf %7, %202 : vector<128x128xf32>
      %cst_74 = arith.constant 1.250000e+00 : f32
      %204 = vector.broadcast %cst_74 : f32 to vector<128x128xf32>
      %205 = arith.mulf %203, %204 : vector<128x128xf32>
      %206 = arith.mulf %205, %102 : vector<128x128xf32>
      %cst_75 = arith.constant -1.000000e+00 : f32
      %207 = vector.broadcast %cst_75 : f32 to vector<128x128xf32>
      %208 = arith.subf %207, %7 : vector<128x128xf32>
      %cst_76 = arith.constant 1.250000e+00 : f32
      %209 = vector.broadcast %cst_76 : f32 to vector<128x128xf32>
      %210 = arith.mulf %208, %209 : vector<128x128xf32>
      %211 = arith.mulf %210, %113 : vector<128x128xf32>
      %212 = arith.addf %206, %211 : vector<128x128xf32>
      %cst_77 = arith.constant -1.800000e+00 : f32
      %213 = vector.broadcast %cst_77 : f32 to vector<128x128xf32>
      %214 = arith.subf %7, %213 : vector<128x128xf32>
      %cst_78 = arith.constant 1.250000e+00 : f32
      %215 = vector.broadcast %cst_78 : f32 to vector<128x128xf32>
      %216 = arith.mulf %214, %215 : vector<128x128xf32>
      %217 = arith.mulf %216, %113 : vector<128x128xf32>
      %cst_79 = arith.constant -6.000000e-01 : f32
      %218 = vector.broadcast %cst_79 : f32 to vector<128x128xf32>
      %219 = arith.subf %218, %7 : vector<128x128xf32>
      %cst_80 = arith.constant 1.250000e+00 : f32
      %220 = vector.broadcast %cst_80 : f32 to vector<128x128xf32>
      %221 = arith.mulf %219, %220 : vector<128x128xf32>
      %222 = arith.mulf %221, %124 : vector<128x128xf32>
      %223 = arith.addf %217, %222 : vector<128x128xf32>
      %cst_81 = arith.constant -1.400000e+00 : f32
      %224 = vector.broadcast %cst_81 : f32 to vector<128x128xf32>
      %225 = arith.subf %7, %224 : vector<128x128xf32>
      %cst_82 = arith.constant 1.250000e+00 : f32
      %226 = vector.broadcast %cst_82 : f32 to vector<128x128xf32>
      %227 = arith.mulf %225, %226 : vector<128x128xf32>
      %228 = arith.mulf %227, %124 : vector<128x128xf32>
      %cst_83 = arith.constant -2.000000e-01 : f32
      %229 = vector.broadcast %cst_83 : f32 to vector<128x128xf32>
      %230 = arith.subf %229, %7 : vector<128x128xf32>
      %cst_84 = arith.constant 1.250000e+00 : f32
      %231 = vector.broadcast %cst_84 : f32 to vector<128x128xf32>
      %232 = arith.mulf %230, %231 : vector<128x128xf32>
      %233 = arith.mulf %232, %135 : vector<128x128xf32>
      %234 = arith.addf %228, %233 : vector<128x128xf32>
      %cst_85 = arith.constant -1.000000e+00 : f32
      %235 = vector.broadcast %cst_85 : f32 to vector<128x128xf32>
      %236 = arith.subf %7, %235 : vector<128x128xf32>
      %cst_86 = arith.constant 1.250000e+00 : f32
      %237 = vector.broadcast %cst_86 : f32 to vector<128x128xf32>
      %238 = arith.mulf %236, %237 : vector<128x128xf32>
      %239 = arith.mulf %238, %135 : vector<128x128xf32>
      %cst_87 = arith.constant 2.000000e-01 : f32
      %240 = vector.broadcast %cst_87 : f32 to vector<128x128xf32>
      %241 = arith.subf %240, %7 : vector<128x128xf32>
      %cst_88 = arith.constant 1.250000e+00 : f32
      %242 = vector.broadcast %cst_88 : f32 to vector<128x128xf32>
      %243 = arith.mulf %241, %242 : vector<128x128xf32>
      %244 = arith.mulf %243, %146 : vector<128x128xf32>
      %245 = arith.addf %239, %244 : vector<128x128xf32>
      %cst_89 = arith.constant -6.000000e-01 : f32
      %246 = vector.broadcast %cst_89 : f32 to vector<128x128xf32>
      %247 = arith.subf %7, %246 : vector<128x128xf32>
      %cst_90 = arith.constant 1.250000e+00 : f32
      %248 = vector.broadcast %cst_90 : f32 to vector<128x128xf32>
      %249 = arith.mulf %247, %248 : vector<128x128xf32>
      %250 = arith.mulf %249, %146 : vector<128x128xf32>
      %cst_91 = arith.constant 6.000000e-01 : f32
      %251 = vector.broadcast %cst_91 : f32 to vector<128x128xf32>
      %252 = arith.subf %251, %7 : vector<128x128xf32>
      %cst_92 = arith.constant 1.250000e+00 : f32
      %253 = vector.broadcast %cst_92 : f32 to vector<128x128xf32>
      %254 = arith.mulf %252, %253 : vector<128x128xf32>
      %255 = arith.mulf %254, %157 : vector<128x128xf32>
      %256 = arith.addf %250, %255 : vector<128x128xf32>
      %cst_93 = arith.constant -2.000000e-01 : f32
      %257 = vector.broadcast %cst_93 : f32 to vector<128x128xf32>
      %258 = arith.subf %7, %257 : vector<128x128xf32>
      %cst_94 = arith.constant 1.250000e+00 : f32
      %259 = vector.broadcast %cst_94 : f32 to vector<128x128xf32>
      %260 = arith.mulf %258, %259 : vector<128x128xf32>
      %261 = arith.mulf %260, %157 : vector<128x128xf32>
      %cst_95 = arith.constant 1.000000e+00 : f32
      %262 = vector.broadcast %cst_95 : f32 to vector<128x128xf32>
      %263 = arith.subf %262, %7 : vector<128x128xf32>
      %cst_96 = arith.constant 1.250000e+00 : f32
      %264 = vector.broadcast %cst_96 : f32 to vector<128x128xf32>
      %265 = arith.mulf %263, %264 : vector<128x128xf32>
      %266 = arith.mulf %265, %168 : vector<128x128xf32>
      %267 = arith.addf %261, %266 : vector<128x128xf32>
      %cst_97 = arith.constant 2.000000e-01 : f32
      %268 = vector.broadcast %cst_97 : f32 to vector<128x128xf32>
      %269 = arith.subf %7, %268 : vector<128x128xf32>
      %cst_98 = arith.constant 1.250000e+00 : f32
      %270 = vector.broadcast %cst_98 : f32 to vector<128x128xf32>
      %271 = arith.mulf %269, %270 : vector<128x128xf32>
      %272 = arith.mulf %271, %168 : vector<128x128xf32>
      %cst_99 = arith.constant 1.400000e+00 : f32
      %273 = vector.broadcast %cst_99 : f32 to vector<128x128xf32>
      %274 = arith.subf %273, %7 : vector<128x128xf32>
      %cst_100 = arith.constant 1.250000e+00 : f32
      %275 = vector.broadcast %cst_100 : f32 to vector<128x128xf32>
      %276 = arith.mulf %274, %275 : vector<128x128xf32>
      %277 = arith.mulf %276, %179 : vector<128x128xf32>
      %278 = arith.addf %272, %277 : vector<128x128xf32>
      %cst_101 = arith.constant 6.000000e-01 : f32
      %279 = vector.broadcast %cst_101 : f32 to vector<128x128xf32>
      %280 = arith.subf %7, %279 : vector<128x128xf32>
      %cst_102 = arith.constant 1.250000e+00 : f32
      %281 = vector.broadcast %cst_102 : f32 to vector<128x128xf32>
      %282 = arith.mulf %280, %281 : vector<128x128xf32>
      %283 = arith.mulf %282, %179 : vector<128x128xf32>
      %cst_103 = arith.constant 1.800000e+00 : f32
      %284 = vector.broadcast %cst_103 : f32 to vector<128x128xf32>
      %285 = arith.subf %284, %7 : vector<128x128xf32>
      %cst_104 = arith.constant 1.250000e+00 : f32
      %286 = vector.broadcast %cst_104 : f32 to vector<128x128xf32>
      %287 = arith.mulf %285, %286 : vector<128x128xf32>
      %288 = arith.mulf %287, %190 : vector<128x128xf32>
      %289 = arith.addf %283, %288 : vector<128x128xf32>
      %cst_105 = arith.constant 1.000000e+00 : f32
      %290 = vector.broadcast %cst_105 : f32 to vector<128x128xf32>
      %291 = arith.subf %7, %290 : vector<128x128xf32>
      %cst_106 = arith.constant 1.250000e+00 : f32
      %292 = vector.broadcast %cst_106 : f32 to vector<128x128xf32>
      %293 = arith.mulf %291, %292 : vector<128x128xf32>
      %294 = arith.mulf %293, %190 : vector<128x128xf32>
      %cst_107 = arith.constant 2.200000e+00 : f32
      %295 = vector.broadcast %cst_107 : f32 to vector<128x128xf32>
      %296 = arith.subf %295, %7 : vector<128x128xf32>
      %cst_108 = arith.constant 1.250000e+00 : f32
      %297 = vector.broadcast %cst_108 : f32 to vector<128x128xf32>
      %298 = arith.mulf %296, %297 : vector<128x128xf32>
      %299 = arith.mulf %298, %201 : vector<128x128xf32>
      %300 = arith.addf %294, %299 : vector<128x128xf32>
      %cst_109 = arith.constant -2.200000e+00 : f32
      %301 = vector.broadcast %cst_109 : f32 to vector<128x128xf32>
      %302 = arith.subf %7, %301 : vector<128x128xf32>
      %cst_110 = arith.constant 0.833333313 : f32
      %303 = vector.broadcast %cst_110 : f32 to vector<128x128xf32>
      %304 = arith.mulf %302, %303 : vector<128x128xf32>
      %305 = arith.mulf %304, %212 : vector<128x128xf32>
      %cst_111 = arith.constant -6.000000e-01 : f32
      %306 = vector.broadcast %cst_111 : f32 to vector<128x128xf32>
      %307 = arith.subf %306, %7 : vector<128x128xf32>
      %cst_112 = arith.constant 0.833333313 : f32
      %308 = vector.broadcast %cst_112 : f32 to vector<128x128xf32>
      %309 = arith.mulf %307, %308 : vector<128x128xf32>
      %310 = arith.mulf %309, %223 : vector<128x128xf32>
      %311 = arith.addf %305, %310 : vector<128x128xf32>
      %cst_113 = arith.constant -1.800000e+00 : f32
      %312 = vector.broadcast %cst_113 : f32 to vector<128x128xf32>
      %313 = arith.subf %7, %312 : vector<128x128xf32>
      %cst_114 = arith.constant 0.833333313 : f32
      %314 = vector.broadcast %cst_114 : f32 to vector<128x128xf32>
      %315 = arith.mulf %313, %314 : vector<128x128xf32>
      %316 = arith.mulf %315, %223 : vector<128x128xf32>
      %cst_115 = arith.constant -2.000000e-01 : f32
      %317 = vector.broadcast %cst_115 : f32 to vector<128x128xf32>
      %318 = arith.subf %317, %7 : vector<128x128xf32>
      %cst_116 = arith.constant 0.833333313 : f32
      %319 = vector.broadcast %cst_116 : f32 to vector<128x128xf32>
      %320 = arith.mulf %318, %319 : vector<128x128xf32>
      %321 = arith.mulf %320, %234 : vector<128x128xf32>
      %322 = arith.addf %316, %321 : vector<128x128xf32>
      %cst_117 = arith.constant -1.400000e+00 : f32
      %323 = vector.broadcast %cst_117 : f32 to vector<128x128xf32>
      %324 = arith.subf %7, %323 : vector<128x128xf32>
      %cst_118 = arith.constant 0.833333313 : f32
      %325 = vector.broadcast %cst_118 : f32 to vector<128x128xf32>
      %326 = arith.mulf %324, %325 : vector<128x128xf32>
      %327 = arith.mulf %326, %234 : vector<128x128xf32>
      %cst_119 = arith.constant 2.000000e-01 : f32
      %328 = vector.broadcast %cst_119 : f32 to vector<128x128xf32>
      %329 = arith.subf %328, %7 : vector<128x128xf32>
      %cst_120 = arith.constant 0.833333313 : f32
      %330 = vector.broadcast %cst_120 : f32 to vector<128x128xf32>
      %331 = arith.mulf %329, %330 : vector<128x128xf32>
      %332 = arith.mulf %331, %245 : vector<128x128xf32>
      %333 = arith.addf %327, %332 : vector<128x128xf32>
      %cst_121 = arith.constant -1.000000e+00 : f32
      %334 = vector.broadcast %cst_121 : f32 to vector<128x128xf32>
      %335 = arith.subf %7, %334 : vector<128x128xf32>
      %cst_122 = arith.constant 0.833333313 : f32
      %336 = vector.broadcast %cst_122 : f32 to vector<128x128xf32>
      %337 = arith.mulf %335, %336 : vector<128x128xf32>
      %338 = arith.mulf %337, %245 : vector<128x128xf32>
      %cst_123 = arith.constant 6.000000e-01 : f32
      %339 = vector.broadcast %cst_123 : f32 to vector<128x128xf32>
      %340 = arith.subf %339, %7 : vector<128x128xf32>
      %cst_124 = arith.constant 0.833333313 : f32
      %341 = vector.broadcast %cst_124 : f32 to vector<128x128xf32>
      %342 = arith.mulf %340, %341 : vector<128x128xf32>
      %343 = arith.mulf %342, %256 : vector<128x128xf32>
      %344 = arith.addf %338, %343 : vector<128x128xf32>
      %cst_125 = arith.constant -6.000000e-01 : f32
      %345 = vector.broadcast %cst_125 : f32 to vector<128x128xf32>
      %346 = arith.subf %7, %345 : vector<128x128xf32>
      %cst_126 = arith.constant 0.833333313 : f32
      %347 = vector.broadcast %cst_126 : f32 to vector<128x128xf32>
      %348 = arith.mulf %346, %347 : vector<128x128xf32>
      %349 = arith.mulf %348, %256 : vector<128x128xf32>
      %cst_127 = arith.constant 1.000000e+00 : f32
      %350 = vector.broadcast %cst_127 : f32 to vector<128x128xf32>
      %351 = arith.subf %350, %7 : vector<128x128xf32>
      %cst_128 = arith.constant 0.833333313 : f32
      %352 = vector.broadcast %cst_128 : f32 to vector<128x128xf32>
      %353 = arith.mulf %351, %352 : vector<128x128xf32>
      %354 = arith.mulf %353, %267 : vector<128x128xf32>
      %355 = arith.addf %349, %354 : vector<128x128xf32>
      %cst_129 = arith.constant -2.000000e-01 : f32
      %356 = vector.broadcast %cst_129 : f32 to vector<128x128xf32>
      %357 = arith.subf %7, %356 : vector<128x128xf32>
      %cst_130 = arith.constant 0.833333313 : f32
      %358 = vector.broadcast %cst_130 : f32 to vector<128x128xf32>
      %359 = arith.mulf %357, %358 : vector<128x128xf32>
      %360 = arith.mulf %359, %267 : vector<128x128xf32>
      %cst_131 = arith.constant 1.400000e+00 : f32
      %361 = vector.broadcast %cst_131 : f32 to vector<128x128xf32>
      %362 = arith.subf %361, %7 : vector<128x128xf32>
      %cst_132 = arith.constant 0.833333313 : f32
      %363 = vector.broadcast %cst_132 : f32 to vector<128x128xf32>
      %364 = arith.mulf %362, %363 : vector<128x128xf32>
      %365 = arith.mulf %364, %278 : vector<128x128xf32>
      %366 = arith.addf %360, %365 : vector<128x128xf32>
      %cst_133 = arith.constant 2.000000e-01 : f32
      %367 = vector.broadcast %cst_133 : f32 to vector<128x128xf32>
      %368 = arith.subf %7, %367 : vector<128x128xf32>
      %cst_134 = arith.constant 0.833333313 : f32
      %369 = vector.broadcast %cst_134 : f32 to vector<128x128xf32>
      %370 = arith.mulf %368, %369 : vector<128x128xf32>
      %371 = arith.mulf %370, %278 : vector<128x128xf32>
      %cst_135 = arith.constant 1.800000e+00 : f32
      %372 = vector.broadcast %cst_135 : f32 to vector<128x128xf32>
      %373 = arith.subf %372, %7 : vector<128x128xf32>
      %cst_136 = arith.constant 0.833333313 : f32
      %374 = vector.broadcast %cst_136 : f32 to vector<128x128xf32>
      %375 = arith.mulf %373, %374 : vector<128x128xf32>
      %376 = arith.mulf %375, %289 : vector<128x128xf32>
      %377 = arith.addf %371, %376 : vector<128x128xf32>
      %cst_137 = arith.constant 6.000000e-01 : f32
      %378 = vector.broadcast %cst_137 : f32 to vector<128x128xf32>
      %379 = arith.subf %7, %378 : vector<128x128xf32>
      %cst_138 = arith.constant 0.833333313 : f32
      %380 = vector.broadcast %cst_138 : f32 to vector<128x128xf32>
      %381 = arith.mulf %379, %380 : vector<128x128xf32>
      %382 = arith.mulf %381, %289 : vector<128x128xf32>
      %cst_139 = arith.constant 2.200000e+00 : f32
      %383 = vector.broadcast %cst_139 : f32 to vector<128x128xf32>
      %384 = arith.subf %383, %7 : vector<128x128xf32>
      %cst_140 = arith.constant 0.833333313 : f32
      %385 = vector.broadcast %cst_140 : f32 to vector<128x128xf32>
      %386 = arith.mulf %384, %385 : vector<128x128xf32>
      %387 = arith.mulf %386, %300 : vector<128x128xf32>
      %388 = arith.addf %382, %387 : vector<128x128xf32>
      %c0_141 = arith.constant 0 : index
      %c128 = arith.constant 128 : index
      %389 = vector.load %arg5[%c0_141, %c128] : memref<128x1152xf32, #tpu.memory_space<vmem>>, vector<128x128xf32>
      tpu.vector_store %arg5[%c0_141, %c128], %311 {strides = array<i32>} : memref<128x1152xf32, #tpu.memory_space<vmem>>, vector<128x128xf32>,
      %c0_142 = arith.constant 0 : index
      %c256 = arith.constant 256 : index
      %390 = vector.load %arg5[%c0_142, %c256] : memref<128x1152xf32, #tpu.memory_space<vmem>>, vector<128x128xf32>
      tpu.vector_store %arg5[%c0_142, %c256], %322 {strides = array<i32>} : memref<128x1152xf32, #tpu.memory_space<vmem>>, vector<128x128xf32>,
      %c0_143 = arith.constant 0 : index
      %c384 = arith.constant 384 : index
      %391 = vector.load %arg5[%c0_143, %c384] : memref<128x1152xf32, #tpu.memory_space<vmem>>, vector<128x128xf32>
      tpu.vector_store %arg5[%c0_143, %c384], %333 {strides = array<i32>} : memref<128x1152xf32, #tpu.memory_space<vmem>>, vector<128x128xf32>,
      %c0_144 = arith.constant 0 : index
      %c512 = arith.constant 512 : index
      %392 = vector.load %arg5[%c0_144, %c512] : memref<128x1152xf32, #tpu.memory_space<vmem>>, vector<128x128xf32>
      tpu.vector_store %arg5[%c0_144, %c512], %344 {strides = array<i32>} : memref<128x1152xf32, #tpu.memory_space<vmem>>, vector<128x128xf32>,
      %c0_145 = arith.constant 0 : index
      %c640 = arith.constant 640 : index
      %393 = vector.load %arg5[%c0_145, %c640] : memref<128x1152xf32, #tpu.memory_space<vmem>>, vector<128x128xf32>
      tpu.vector_store %arg5[%c0_145, %c640], %355 {strides = array<i32>} : memref<128x1152xf32, #tpu.memory_space<vmem>>, vector<128x128xf32>,
      %c0_146 = arith.constant 0 : index
      %c768 = arith.constant 768 : index
      %394 = vector.load %arg5[%c0_146, %c768] : memref<128x1152xf32, #tpu.memory_space<vmem>>, vector<128x128xf32>
      tpu.vector_store %arg5[%c0_146, %c768], %366 {strides = array<i32>} : memref<128x1152xf32, #tpu.memory_space<vmem>>, vector<128x128xf32>,
      %c0_147 = arith.constant 0 : index
      %c896 = arith.constant 896 : index
      %395 = vector.load %arg5[%c0_147, %c896] : memref<128x1152xf32, #tpu.memory_space<vmem>>, vector<128x128xf32>
      tpu.vector_store %arg5[%c0_147, %c896], %377 {strides = array<i32>} : memref<128x1152xf32, #tpu.memory_space<vmem>>, vector<128x128xf32>,
      %c0_148 = arith.constant 0 : index
      %c1024 = arith.constant 1024 : index
      %396 = vector.load %arg5[%c0_148, %c1024] : memref<128x1152xf32, #tpu.memory_space<vmem>>, vector<128x128xf32>
      tpu.vector_store %arg5[%c0_148, %c1024], %388 {strides = array<i32>} : memref<128x1152xf32, #tpu.memory_space<vmem>>, vector<128x128xf32>,
    } else {
    }
    %c0 = arith.constant 0 : index
    %c0_1 = arith.constant 0 : index
    %3 = vector.load %arg5[%c0, %c0_1] : memref<128x1152xf32, #tpu.memory_space<vmem>>, vector<128x1152xf32>
    %c0_2 = arith.constant 0 : index
    %c0_3 = arith.constant 0 : index
    %4 = vector.load %arg3[%c0_2, %c0_3] : memref<1152x128xf32, #tpu.memory_space<vmem>>, vector<1152x128xf32>
    %cst = arith.constant dense<0.000000e+00> : vector<128x128xf32>
    %5 = tpu.matmul %3, %4, %cst {dimension_numbers = #tpu.dot_dimension_numbers<[1], [0], [0], [1], [0, 0, 1, 1], [], []>} : vector<128x1152xf32>, vector<1152x128xf32>, vector<128x128xf32> -> vector<128x128xf32>
    %c0_4 = arith.constant 0 : index
    %c0_5 = arith.constant 0 : index
    %6 = vector.load %arg4[%c0_4, %c0_5] : memref<128x128xf32, #tpu.memory_space<vmem>>, vector<128x128xf32>
    tpu.vector_store %arg4[%c0_4, %c0_5], %5 {strides = array<i32>} : memref<128x128xf32, #tpu.memory_space<vmem>>, vector<128x128xf32>,
    return
  }
  func.func @transform_0(%arg0: i32, %arg1: i32) -> (i32, i32) {
    %c0_i32 = arith.constant 0 : i32
    %c0_i32_0 = arith.constant 0 : i32
    return %arg0, %c0_i32 : i32, i32
  }
  func.func @transform_1(%arg0: i32, %arg1: i32) -> (i32, i32) {
    %c0_i32 = arith.constant 0 : i32
    %c0_i32_0 = arith.constant 0 : i32
    return %c0_i32, %arg1 : i32, i32
  }
  func.func @transform_2(%arg0: i32, %arg1: i32) -> (i32, i32) {
    %c0_i32 = arith.constant 0 : i32
    return %arg0, %arg1 : i32, i32
  }
}

</mosaic_0001>

<bundles_post_ra>
// kernel: tpu_custom_call.1
= control target key start
LH: loop header
LB: loop body
LE: loop exit
PB: predicated region body
PF: predicated region fallthrough
CT: control target
= control target key end

     0   :  { %7 = vsyncpa [#allocation4], 0  ;;  %s8311_s0 = inlined_call_operand.hbm [shape: f32[128,128], index: 0, kind: input, shape index: {}]   ;;  %s8312_s1 = inlined_call_operand.hbm [shape: f32[1152,128], index: 1, kind: input, shape index: {}]   ;;  %s8313_s2 = inlined_call_operand.hbm [shape: f32[128,128], index: 2, kind: output, shape index: {}]  }
   0x1   :  { %8 = vsyncpa [#allocation7], 0 }
   0x2   :  { %9 = vsyncpa [#allocation5], 0  ;;  %s14_s11 = sshll.u32 %s8311_s0, 4  ;;  %s5389_s12 = smov [#allocation3]   ;;  %s15_s11 = int_to_ptr.hbm [resolvable:$true] %s14_s11 }
   0x3   :  { %s16_s13 = sshll.u32 %s5389_s12, 4  ;;  %s27_s16 = sshll.u32 %s8312_s1, 4  ;;  %s17_s13 = int_to_ptr.vmem [resolvable:$true] %s16_s13  ;;  %s28_s16 = int_to_ptr.hbm [resolvable:$true] %s27_s16 }
   0x4   :  { %s5390_s17 = smov 128   ;;  %s5391_s18 = smov 8  }
   0x5   :  { %22 = dma.hbm_to_vmem [thread:$0]  %s15_s11, 2048, %s17_s13, [#allocation4], %s5390_s17, %s5390_s17, %s5391_s18  }
   0x6   :  { %s5392_s19 = smov [#allocation6]  }
   0x7   :  { %s29_s20 = sshll.u32 %s5392_s19, 4  ;;  %s30_s20 = int_to_ptr.vmem [resolvable:$true] %s29_s20 }
   0x8   :  { %35 = dma.hbm_to_vmem [thread:$0]  %s28_s16, 18432, %s30_s20, [#allocation7], %s5390_s17, %s5390_s17, %s5391_s18  }
   0x9   :  { %5383 = dma.done.wait [#allocation4], 2048  }
   0xa   :  { %5384 = vsyncadd [#allocation4], 4294965248 }
   0xb   :  { %5385 = dma.done.wait [#allocation7], 18432  }
   0xc   :  { %5386 = vsyncadd [#allocation7], 4294948864  ;;  %v4047_v0 = vld [vmem:[#allocation6 + $0x78] sm:$0xff]  ;;  %v4046_v1 = vld [vmem:[#allocation6 + $0x70] sm:$0xff]  ;;  %s5394_s0 = smov [#allocation8]   ;;  %s4783_s23 = sshll.u32 %s8313_s2, 4  ;;  %s4784_s23 = int_to_ptr.hbm [resolvable:$true] %s4783_s23 }
   0xd   :  { %5149 = vmatpush.msra.mxu1 %v4047_v0  ;;  %5150 = vmatpush.msra.mxu2 %v4047_v0  ;;  %v4045_v2 = vld [vmem:[#allocation6 + $0x68] sm:$0xff]  ;;  %v4044_v3 = vld [vmem:[#allocation6 + $0x60] sm:$0xff]  ;;  %v4043_v6 = vld [vmem:[#allocation6 + $0x58] sm:$0xff]  ;;  %s4781_s1 = sshll.u32 %s5394_s0, 4  ;;  %s4782_s1 = int_to_ptr.vmem [resolvable:$true] %s4781_s1 }
   0xe   :  { %5151 = vmatpush.msra.mxu3 %v4047_v0  ;;  %4176 = vmatpush.msra.mxu0 %v4047_v0  ;;  %v5422_v4 = vld [vmem:[#allocation3 + $0x20] sm:$0xff]  ;;  %v5430_v10 = vld [vmem:[#allocation3 + $0x28] sm:$0xff]  ;;  %v4042_v12 = vld [vmem:[#allocation6 + $0x50] sm:$0xff] }
   0xf   :  { %5152 = vmatpush.msra.mxu1 %v4046_v1  ;;  %5153 = vmatpush.msra.mxu2 %v4046_v1  ;;  %v5424_v5 = vld [vmem:[#allocation3 + $0x40] sm:$0xff]  ;;  %v4801_v7 = vmul.f32 -1.442695, %v5422_v4  ;;  %v5432_v11 = vld [vmem:[#allocation3 + $0x48] sm:$0xff]  ;;  %v4802_v14 = vmul.f32 -1.442695, %v5430_v10 }
  0x10   :  { %5154 = vmatpush.msra.mxu3 %v4046_v1  ;;  %4177 = vmatpush.msra.mxu0 %v4046_v1  ;;  %v4805_v8 = vmul.f32 -1.442695, %v5424_v5  ;;  %v5428_v9 = vld [vmem:[#allocation3 + $0x60] sm:$0xff]  ;;  %v4041_v15 = vld [vmem:[#allocation6 + $0x48] sm:$0xff]  ;;  %v4806_v16 = vmul.f32 -1.442695, %v5432_v11 }
  0x11   :  { %5155 = vmatpush.msra.mxu1 %v4045_v2  ;;  %5156 = vmatpush.msra.mxu2 %v4045_v2  ;;  %5203 = vpow2.f32 %v4801_v7  ;;  %v4809_v13 = vmul.f32 -1.442695, %v5428_v9  ;;  %v5437_v17 = vld [vmem:[#allocation3] sm:$0xff]  ;;  %v5439_v18 = vld [vmem:[#allocation3 + $0x68] sm:$0xff]  ;;  %v5443_v22 = vld [vmem:[#allocation3 + $0x30] sm:$0xff] }
  0x12   :  { %5157 = vmatpush.msra.mxu3 %v4045_v2  ;;  %4178 = vmatpush.msra.mxu0 %v4045_v2  ;;  %5205 = vpow2.f32 %v4805_v8  ;;  %v4040_v19 = vld [vmem:[#allocation6 + $0x40] sm:$0xff]  ;;  %v4797_v20 = vmul.f32 -1.442695, %v5437_v17  ;;  %v4810_v21 = vmul.f32 -1.442695, %v5439_v18  ;;  %v4039_v24 = vld [vmem:[#allocation6 + $0x38] sm:$0xff] }
  0x13   :  { %5158 = vmatpush.msra.mxu1 %v4044_v3  ;;  %5159 = vmatpush.msra.mxu2 %v4044_v3  ;;  %5207 = vpow2.f32 %v4809_v13  ;;  %v4038_v28 = vld [vmem:[#allocation6 + $0x30] sm:$0xff]  ;;  %v4803_v30 = vmul.f32 -1.442695, %v5443_v22  ;;  %v5453_v33 = vld [vmem:[#allocation3 + $0x8] sm:$0xff]  ;;  %v4036_v42 = vld [vmem:[#allocation6 + $0x20] sm:$0xff] }
  0x14   :  { %5160 = vmatpush.msra.mxu3 %v4044_v3  ;;  %4179 = vmatpush.msra.mxu0 %v4044_v3  ;;  %5209 = vpow2.f32 %v4802_v14  ;;  %v5450_v31 = vld [vmem:[#allocation3 + $0x50] sm:$0xff]  ;;  %v4037_v35 = vld [vmem:[#allocation6 + $0x28] sm:$0xff]  ;;  %v5468_v45 = vmul.f32 -1.442695, %v5453_v33  ;;  %v4035_v49 = vld [vmem:[#allocation6 + $0x18] sm:$0xff] }
  0x15   :  { %5161 = vmatpush.msra.mxu1 %v4043_v6  ;;  %5162 = vmatpush.msra.mxu2 %v4043_v6  ;;  %5211 = vpow2.f32 %v4806_v16  ;;  %v4807_v41 = vmul.f32 -1.442695, %v5450_v31  ;;  %v4034_v58 = vld [vmem:[#allocation6 + $0x10] sm:$0xff]  ;;  %v4033_v1 = vld [vmem:[#allocation6 + $0x8] sm:$0xff]  ;;  %v5524_v16 = vld [vmem:[#allocation6] sm:$0xff] }
  0x16   :  { %5163 = vmatpush.msra.mxu3 %v4043_v6  ;;  %4180 = vmatpush.msra.mxu0 %v4043_v6  ;;  %5213 = vpow2.f32 %v4797_v20  ;;  %v4076_v54 = vld [vmem:[#allocation6 + $0x160] sm:$0xff] }
  0x17   :  { %5164 = vmatpush.msra.mxu1 %v4042_v12  ;;  %5165 = vmatpush.msra.mxu2 %v4042_v12  ;;  %v5204_v23 = vpop.eup %5203  ;;  %5215 = vpow2.f32 %v4810_v21 }
  0x18   :  { %5166 = vmatpush.msra.mxu3 %v4042_v12  ;;  %4181 = vmatpush.msra.mxu0 %v4042_v12  ;;  %v5206_v25 = vpop.eup %5205  ;;  %v5445_v26 = vadd.f32 1.0, %v5204_v23 }
  0x19   :  { %5167 = vmatpush.msra.mxu1 %v4041_v15  ;;  %5168 = vmatpush.msra.mxu2 %v4041_v15  ;;  %v5208_v27 = vpop.eup %5207  ;;  %v5447_v29 = vadd.f32 1.0, %v5206_v25 }
  0x1a   :  { %5169 = vmatpush.msra.mxu3 %v4041_v15  ;;  %4182 = vmatpush.msra.mxu0 %v4041_v15  ;;  %v5210_v32 = vpop.eup %5209  ;;  %5217 = vrcp.f32 %v5445_v26  ;;  %v197_v36 = vand.u32 2147483647, %v5445_v26  ;;  %v199_v37 = vand.u32 2147483648, %v5445_v26  ;;  %v5459_v39 = vadd.f32 1.0, %v5208_v27  ;;  %v4079_v27 = vld [vmem:[#allocation6 + $0x178] sm:$0xff] }
  0x1b   :  { %5170 = vmatpush.msra.mxu1 %v4040_v19  ;;  %5171 = vmatpush.msra.mxu2 %v4040_v19  ;;  %v5212_v34 = vpop.eup %5211  ;;  %5219 = vrcp.f32 %v5447_v29  ;;  %v257_v38 = vand.u32 2147483647, %v5447_v29  ;;  %v5461_v40 = vadd.f32 1.0, %v5210_v32  ;;  %v259_v43 = vand.u32 2147483648, %v5447_v29 }
  0x1c   :  { %5172 = vmatpush.msra.mxu3 %v4040_v19  ;;  %4183 = vmatpush.msra.mxu0 %v4040_v19  ;;  %v5465_v44 = vadd.f32 1.0, %v5212_v34  ;;  %5221 = vpow2.f32 %v4803_v30  ;;  %v5214_v46 = vpop.eup %5213  ;;  %vm193_vm0 = vweird.f32 %v5445_v26  ;;  %vm253_vm1 = vweird.f32 %v5447_v29 }
  0x1d   :  { %5173 = vmatpush.msra.mxu1 %v4039_v24  ;;  %5174 = vmatpush.msra.mxu2 %v4039_v24  ;;  %5223 = vrcp.f32 %v5459_v39  ;;  %v319_v47 = vand.u32 2147483648, %v5459_v39  ;;  %v5216_v48 = vpop.eup %5215  ;;  %vm5474_vm2 = vcmp.eq.f32.partialorder %v197_v36, 8.507059e+37  ;;  %v5478_v51 = vor.u32 1.1754944e-38, %v199_v37  ;;  %v4063_v36 = vld [vmem:[#allocation6 + $0xf8] sm:$0xff] }
  0x1e   :  { %5175 = vmatpush.msra.mxu3 %v4039_v24  ;;  %4184 = vmatpush.msra.mxu0 %v4039_v24  ;;  %v317_v52 = vand.u32 2147483647, %v5459_v39  ;;  %5225 = vrcp.f32 %v5461_v40  ;;  %vm5484_vm3 = vcmp.eq.f32.partialorder %v257_v38, 8.507059e+37  ;;  %v212_v55 = vand.u32 2147483647, %v5461_v40  ;;  %v4095_v38 = vld [vmem:[#allocation6 + $0x1f8] sm:$0xff] }
  0x1f   :  { %5176 = vmatpush.msra.mxu1 %v4038_v28  ;;  %5177 = vmatpush.msra.mxu2 %v4038_v28  ;;  %v214_v56 = vand.u32 2147483648, %v5461_v40  ;;  %5227 = vrcp.f32 %v5465_v44  ;;  %v5495_v60 = vor.u32 1.1754944e-38, %v259_v43  ;;  %vm313_vm4 = vweird.f32 %v5459_v39  ;;  %v5626_v24 = vld [vmem:[#allocation3 + $0x70] sm:$0xff] }
  0x20   :  { %5178 = vmatpush.msra.mxu3 %v4038_v28  ;;  %4185 = vmatpush.msra.mxu0 %v4038_v28  ;;  %v5482_v53 = vpop.eup %5217  ;;  %5229 = vpow2.f32 %v4807_v41  ;;  %v5500_v62 = vor.u32 1.1754944e-38, %v319_v47  ;;  %vm208_vm5 = vweird.f32 %v5461_v40  ;;  %v272_v63 = vand.u32 2147483647, %v5465_v44 }
  0x21   :  { %5179 = vmatpush.msra.mxu1 %v4037_v35  ;;  %5180 = vmatpush.msra.mxu2 %v4037_v35  ;;  %v5491_v57 = vpop.eup %5219  ;;  %v189_v59 = vmul.f32 %v5482_v53, %v5445_v26  ;;  %vm194_vm6 = vweird.f32 %v5482_v53  ;;  %vm5505_vm7 = vcmp.eq.f32.partialorder %v317_v52, 8.507059e+37  ;;  %vm268_vm8 = vweird.f32 %v5465_v44 }
  0x22   :  { %5181 = vmatpush.msra.mxu3 %v4037_v35  ;;  %4186 = vmatpush.msra.mxu0 %v4037_v35  ;;  %v249_v61 = vmul.f32 %v5491_v57, %v5447_v29  ;;  %v5222_v0 = vpop.eup %5221  ;;  %v5510_v6 = vadd.f32 1.0, %v5214_v46  ;;  %vm254_vm9 = vweird.f32 %v5491_v57  ;;  %vm5515_vm10 = vcmp.eq.f32.partialorder %v212_v55, 8.507059e+37  ;;  %vm5538_vm11 = vmor %vm193_vm0, %vm194_vm6  ;;  %v4078_v29 = vld [vmem:[#allocation6 + $0x170] sm:$0xff] }
  0x23   :  { %5182 = vmatpush.msra.mxu1 %v4036_v42  ;;  %5183 = vmatpush.msra.mxu2 %v4036_v42  ;;  %v190_v2 = vsub.f32 1.0, %v189_v59  ;;  %v5512_v7 = vpop.eup %5223  ;;  %v5519_v13 = vor.u32 1.1754944e-38, %v214_v56  ;;  %v274_v14 = vand.u32 2147483648, %v5465_v44  ;;  %v5530_v21 = vadd.f32 1.0, %v5216_v48  ;;  %vm5558_vm13 = vmor %vm253_vm1, %vm254_vm9  ;;  %v4062_v48 = vld [vmem:[#allocation6 + $0xf0] sm:$0xff] }
  0x24   :  { %5184 = vmatpush.msra.mxu3 %v4036_v42  ;;  %4187 = vmatpush.msra.mxu0 %v4036_v42  ;;  %v250_v8 = vsub.f32 1.0, %v249_v61  ;;  %v5522_v15 = vpop.eup %5225  ;;  %v309_v20 = vmul.f32 %v5512_v7, %v5459_v39  ;;  %5231 = vrcp.f32 %v5510_v6  ;;  %vm5545_vm12 = vcmp.eq.f32.partialorder %v272_v63, 8.507059e+37  ;;  %v4061_v39 = vld [vmem:[#allocation6 + $0xe8] sm:$0xff] }
  0x25   :  { %5185 = vmatpush.msra.mxu1 %v4035_v49  ;;  %5186 = vmatpush.msra.mxu2 %v4035_v49  ;;  %v191_v19 = vmul.f32 %v5482_v53, %v190_v2  ;;  %v5532_v23 = vpop.eup %5227  ;;  %v204_v28 = vmul.f32 %v5522_v15, %v5461_v40  ;;  %v5549_v32 = vadd.f32 1.0, %v5222_v0  ;;  %vm314_vm14 = vweird.f32 %v5512_v7  ;;  %v4089_v0 = vld [vmem:[#allocation6 + $0x1c8] sm:$0xff]  ;;  %v5703_v40 = vld [vmem:[#allocation3 + $0x78] sm:$0xff] }
  0x26   :  { %5187 = vmatpush.msra.mxu3 %v4035_v49  ;;  %4188 = vmatpush.msra.mxu0 %v4035_v49  ;;  %v251_v25 = vmul.f32 %v5491_v57, %v250_v8  ;;  %v5551_v34 = vpop.eup %5229  ;;  %v310_v37 = vsub.f32 1.0, %v309_v20  ;;  %v264_v41 = vmul.f32 %v5532_v23, %v5465_v44  ;;  %vm209_vm15 = vweird.f32 %v5522_v15  ;;  %v4094_v49 = vld [vmem:[#allocation6 + $0x1f0] sm:$0xff]  ;;  %vm5586_vm1 = vmor %vm313_vm4, %vm314_vm14 }
  0x27   :  { %5188 = vmatpush.msra.mxu1 %v4034_v58  ;;  %5189 = vmatpush.msra.mxu2 %v4034_v58  ;;  %v192_v26 = vadd.f32 %v5482_v53, %v191_v19  ;;  %v205_v43 = vsub.f32 1.0, %v204_v28  ;;  %vm269_vm0 = vweird.f32 %v5532_v23  ;;  %5233 = vrcp.f32 %v5530_v21  ;;  %v4060_v19 = vld [vmem:[#allocation6 + $0xe0] sm:$0xff] }
  0x28   :  { %5190 = vmatpush.msra.mxu3 %v4034_v58  ;;  %4189 = vmatpush.msra.mxu0 %v4034_v58  ;;  %v252_v42 = vadd.f32 %v5491_v57, %v251_v25  ;;  %v311_v47 = vmul.f32 %v5512_v7, %v310_v37  ;;  %v265_v52 = vsub.f32 1.0, %v264_v41  ;;  %v4077_v58 = vld [vmem:[#allocation6 + $0x168] sm:$0xff]  ;;  %v275_v61 = vor.u32 1.1754944e-38, %v274_v14  ;;  %v4111_v41 = vld [vmem:[#allocation6 + $0x278] sm:$0xff] }
  0x29   :  { %5191 = vmatpush.msra.mxu1 %v4033_v1  ;;  %5192 = vmatpush.msra.mxu2 %v4033_v1  ;;  %v196_v46 = vsel %vm5538_vm11, %v5482_v53, %v192_v26  ;;  %v206_v59 = vmul.f32 %v5522_v15, %v205_v43  ;;  %v137_v14 = vand.u32 2147483647, %v5510_v6  ;;  %vm133_vm4 = vweird.f32 %v5510_v6  ;;  %v4091_v43 = vld [vmem:[#allocation6 + $0x1d8] sm:$0xff] }
  0x2a   :  { %5193 = vmatpush.msra.mxu3 %v4033_v1  ;;  %4190 = vmatpush.msra.mxu0 %v4033_v1  ;;  %v201_v55 = vsel %vm5474_vm2, %v5478_v51, %v196_v46  ;;  %v256_v56 = vsel %vm5558_vm13, %v5491_v57, %v252_v42  ;;  %v5591_v50 = vpop.eup %5231  ;;  %v312_v63 = vadd.f32 %v5512_v7, %v311_v47  ;;  %vm5602_vm2 = vmor %vm208_vm5, %vm209_vm15  ;;  %v139_v44 = vand.u32 2147483648, %v5510_v6  ;;  %v4058_v46 = vld [vmem:[#allocation6 + $0xd0] sm:$0xff] }
  0x2b   :  { %5194 = vmatpush.msra.mxu1 %v5524_v16  ;;  %5195 = vmatpush.msra.mxu2 %v5524_v16  ;;  %v372_v51 = vmul.f32 %v201_v55, %v5422_v4  ;;  %v261_v57 = vsel %vm5484_vm3, %v5495_v60, %v256_v56  ;;  %v266_v1 = vmul.f32 %v5532_v23, %v265_v52  ;;  %v4093_v60 = vld [vmem:[#allocation6 + $0x1e8] sm:$0xff]  ;;  %vm5613_vm3 = vmor %vm268_vm8, %vm269_vm0  ;;  %vm134_vm5 = vweird.f32 %v5591_v50  ;;  %v4090_v55 = vld [vmem:[#allocation6 + $0x1d0] sm:$0xff] }
  0x2c   :  { %5196 = vmatpush.msra.mxu3 %v5524_v16  ;;  %v376_v4 = vmul.f32 %v261_v57, %v5424_v5  ;;  %v207_v2 = vadd.f32 %v5522_v15, %v206_v59  ;;  %v129_v8 = vmul.f32 %v5591_v50, %v5510_v6  ;;  %v316_v5 = vsel %vm5586_vm1, %v5512_v7, %v312_v63  ;;  %v5679_v56 = vld [vmem:[#allocation3 + $0x10] sm:$0xff]  ;;  %v4057_v59 = vld [vmem:[#allocation6 + $0xc8] sm:$0xff] }
  0x2d   :  { %4306 = vmatpush.msrb.mxu2 %v4079_v27  ;;  %4241 = vmatpush.msrb.mxu1 %v4063_v36  ;;  %v267_v20 = vadd.f32 %v5532_v23, %v266_v1  ;;  %v321_v25 = vsel %vm5505_vm7, %v5500_v62, %v316_v5  ;;  %v4075_v27 = vld [vmem:[#allocation6 + $0x158] sm:$0xff]  ;;  %v5635_v26 = vpop.eup %5233  ;;  %v4092_v36 = vld [vmem:[#allocation6 + $0x1e0] sm:$0xff]  ;;  %v5645_v37 = vadd.f32 1.0, %v5551_v34  ;;  %vm5651_vm6 = vcmp.eq.f32.partialorder %v137_v14, 8.507059e+37  ;;  %vm5661_vm7 = vmor %vm133_vm4, %vm134_vm5 }
  0x2e   :  { %4371 = vmatpush.msrb.mxu3 %v4095_v38  ;;  %4204 = vmatmul.f32.vlgmr.msra.gmra.mxu1 %v372_v51  ;;  %v211_v7 = vsel %vm5602_vm2, %v5522_v15, %v207_v2  ;;  %v130_v28 = vsub.f32 1.0, %v129_v8  ;;  %v380_v35 = vmul.f32 %v321_v25, %v5428_v9  ;;  %v4059_v15 = vld [vmem:[#allocation6 + $0xd8] sm:$0xff]  ;;  %v140_v30 = vor.u32 1.1754944e-38, %v139_v44  ;;  %v4056_v1 = vld [vmem:[#allocation6 + $0xc0] sm:$0xff] }
  0x2f   :  { %4307 = vmatpush.msrb.mxu2 %v4078_v29  ;;  %4242 = vmatpush.msrb.mxu1 %v4062_v48  ;;  %v216_v3 = vsel %vm5515_vm10, %v5519_v13, %v211_v7  ;;  %v271_v62 = vsel %vm5613_vm3, %v5532_v23, %v267_v20  ;;  %v4074_v13 = vld [vmem:[#allocation6 + $0x150] sm:$0xff]  ;;  %v4811_v23 = vmul.f32 -1.442695, %v5626_v24  ;;  %v324_v42 = vmul.f32 %v5635_v26, %v5530_v21  ;;  %v4073_v48 = vld [vmem:[#allocation6 + $0x148] sm:$0xff]  ;;  %v4071_v2 = vld [vmem:[#allocation6 + $0x138] sm:$0xff] }
  0x30   :  { %4372 = vmatpush.msrb.mxu3 %v4094_v49  ;;  %4216 = vmatmul.f32.vlgmr.msra.gmra.mxu2 %v376_v4  ;;  %v276_v38 = vsel %vm5545_vm12, %v275_v61, %v271_v62  ;;  %v131_v9 = vmul.f32 %v5591_v50, %v130_v28  ;;  %v373_v34 = vmul.f32 %v216_v3, %v5430_v10  ;;  %v332_v29 = vand.u32 2147483647, %v5530_v21  ;;  %v5672_v49 = vld [vmem:[#allocation3 + $0x38] sm:$0xff]  ;;  %v4072_v61 = vld [vmem:[#allocation6 + $0x140] sm:$0xff]  ;;  %v4070_v62 = vld [vmem:[#allocation6 + $0x130] sm:$0xff] }
  0x31   :  { %4308 = vmatpush.msrb.mxu2 %v4077_v58  ;;  %4243 = vmatpush.msrb.mxu1 %v4061_v39  ;;  %v377_v47 = vmul.f32 %v276_v38, %v5432_v11  ;;  %v334_v6 = vand.u32 2147483648, %v5530_v21  ;;  %5235 = vrcp.f32 %v5549_v32  ;;  %v325_v52 = vsub.f32 1.0, %v324_v42  ;;  %v5677_v11 = vld [vmem:[#allocation3 + $0x58] sm:$0xff]  ;;  %v4110_v58 = vld [vmem:[#allocation6 + $0x270] sm:$0xff]  ;;  %v4088_v14 = vld [vmem:[#allocation6 + $0x1c0] sm:$0xff] }
  0x32   :  { %4373 = vmatpush.msrb.mxu3 %v4093_v60  ;;  %4191 = vmatpush.msra.mxu0 %v5524_v16  ;;  %v132_v10 = vadd.f32 %v5591_v50, %v131_v9  ;;  %vm328_vm8 = vweird.f32 %v5530_v21  ;;  %vm329_vm9 = vweird.f32 %v5635_v26  ;;  %5237 = vrcp.f32 %v5645_v37  ;;  %v4108_v25 = vld [vmem:[#allocation6 + $0x260] sm:$0xff]  ;;  %v4055_v3 = vld [vmem:[#allocation6 + $0xb8] sm:$0xff]  ;;  %v4054_v16 = vld [vmem:[#allocation6 + $0xb0] sm:$0xff] }
  0x33   :  { %4309 = vmatpush.msrb.mxu2 %v4076_v54  ;;  %4244 = vmatpush.msrb.mxu1 %v4060_v19  ;;  %v227_v51 = vand.u32 2147483647, %v5549_v32  ;;  %v326_v63 = vmul.f32 %v5635_v26, %v325_v52  ;;  %vm5688_vm10 = vcmp.eq.f32.partialorder %v332_v29, 8.507059e+37  ;;  %5239 = vpow2.f32 %v5468_v45  ;;  %vm5698_vm11 = vmor %vm328_vm8, %vm329_vm9  ;;  %v4068_v52 = vld [vmem:[#allocation6 + $0x120] sm:$0xff] }
  0x34   :  { %4228 = vmatmul.f32.vlgmr.msra.gmra.mxu3 %v380_v35  ;;  %4436 = vmatpush.msrb.mxu0 %v4111_v41  ;;  %v136_v53 = vsel %vm5661_vm7, %v5591_v50, %v132_v10  ;;  %v4109_v50 = vld [vmem:[#allocation6 + $0x268] sm:$0xff]  ;;  %v335_v60 = vor.u32 1.1754944e-38, %v334_v6  ;;  %vm223_vm12 = vweird.f32 %v5549_v32  ;;  %5241 = vpow2.f32 %v4811_v23  ;;  %v4086_v6 = vld [vmem:[#allocation6 + $0x1b0] sm:$0xff] }
  0x35   :  { %4310 = vmatpush.msrb.mxu2 %v4075_v27  ;;  %4374 = vmatpush.msrb.mxu3 %v4092_v36  ;;  %v141_v57 = vsel %vm5651_vm6, %v140_v30, %v136_v53  ;;  %v327_v45 = vadd.f32 %v5635_v26, %v326_v63  ;;  %v229_v8 = vand.u32 2147483648, %v5549_v32  ;;  %v4804_v21 = vmul.f32 -1.442695, %v5672_v49 }
  0x36   :  { %4245 = vmatpush.msrb.mxu1 %v4059_v15  ;;  %v368_v4 = vmul.f32 %v141_v57, %v5437_v17  ;;  %4437 = vmatpush.msrb.mxu0 %v4110_v58  ;;  %v4808_v5 = vmul.f32 -1.442695, %v5677_v11  ;;  %vm5711_vm13 = vcmp.eq.f32.partialorder %v227_v51, 8.507059e+37  ;;  %vm283_vm14 = vweird.f32 %v5645_v37 }
  0x37   :  { %4311 = vmatpush.msrb.mxu2 %v4074_v13  ;;  %4375 = vmatpush.msrb.mxu3 %v4091_v43  ;;  %v5709_v19 = vpop.eup %5235  ;;  %v287_v44 = vand.u32 2147483647, %v5645_v37  ;;  %v4799_v7 = vmul.f32 -1.442695, %v5679_v56  ;;  %v331_v28 = vsel %vm5698_vm11, %v5635_v26, %v327_v45  ;;  %5243 = vpow2.f32 %v4804_v21  ;;  %v4107_v26 = vld [vmem:[#allocation6 + $0x258] sm:$0xff]  ;;  %v4069_v43 = vld [vmem:[#allocation6 + $0x128] sm:$0xff] }
  0x38   :  { %4246 = vmatpush.msrb.mxu1 %v4058_v46  ;;  %4219 = vmatmul.f32.gmra.mxu2 %v377_v47  ;;  %v5718_v27 = vpop.eup %5237  ;;  %v219_v35 = vmul.f32 %v5709_v19, %v5549_v32  ;;  %v4812_v36 = vmul.f32 -1.442695, %v5703_v40  ;;  %v336_v15 = vsel %vm5688_vm10, %v335_v60, %v331_v28  ;;  %v289_v9 = vand.u32 2147483648, %v5645_v37  ;;  %v4106_v46 = vld [vmem:[#allocation6 + $0x250] sm:$0xff]  ;;  %v4051_v21 = vld [vmem:[#allocation6 + $0x98] sm:$0xff] }
  0x39   :  { %4207 = vmatmul.f32.gmra.mxu1 %v373_v34  ;;  %4312 = vmatpush.msrb.mxu2 %v4073_v48  ;;  %v279_v38 = vmul.f32 %v5718_v27, %v5645_v37  ;;  %5245 = vpow2.f32 %v4808_v5  ;;  %v5240_v12 = vpop.eup %5239  ;;  %v381_v13 = vmul.f32 %v336_v15, %v5439_v18  ;;  %vm224_vm15 = vweird.f32 %v5709_v19  ;;  %v4087_v34 = vld [vmem:[#allocation6 + $0x1b8] sm:$0xff]  ;;  %v4053_v48 = vld [vmem:[#allocation6 + $0xa8] sm:$0xff]  ;;  %v4104_v37 = vld [vmem:[#allocation6 + $0x240] sm:$0xff] }
  0x3a   :  { %4376 = vmatpush.msrb.mxu3 %v4090_v55  ;;  %4247 = vmatpush.msrb.mxu1 %v4057_v59  ;;  %v220_v41 = vsub.f32 1.0, %v219_v35  ;;  %v230_v23 = vor.u32 1.1754944e-38, %v229_v8  ;;  %v5242_v30 = vpop.eup %5241  ;;  %vm284_vm0 = vweird.f32 %v5718_v27  ;;  %v5734_v29 = vadd.f32 1.0, %v5240_v12  ;;  %vm5747_vm2 = vmor %vm223_vm12, %vm224_vm15  ;;  %v4085_v59 = vld [vmem:[#allocation6 + $0x1a8] sm:$0xff] }
  0x3b   :  { %4192 = vmatmul.f32.vlgmr.msra.gmra.mxu0 %v368_v4  ;;  %4313 = vmatpush.msrb.mxu2 %v4072_v61  ;;  %v280_v42 = vsub.f32 1.0, %v279_v38  ;;  %5247 = vpow2.f32 %v4799_v7  ;;  %vm5737_vm1 = vcmp.eq.f32.partialorder %v287_v44, 8.507059e+37  ;;  %v5741_v10 = vadd.f32 1.0, %v5242_v30  ;;  %v4105_v61 = vld [vmem:[#allocation6 + $0x248] sm:$0xff]  ;;  %vm5759_vm4 = vmor %vm283_vm14, %vm284_vm0  ;;  %v4103_v38 = vld [vmem:[#allocation6 + $0x238] sm:$0xff] }
  0x3c   :  { %4377 = vmatpush.msrb.mxu3 %v4089_v0  ;;  %4438 = vmatpush.msrb.mxu0 %v4109_v50  ;;  %v221_v18 = vmul.f32 %v5709_v19, %v220_v41  ;;  %5249 = vpow2.f32 %v4812_v36  ;;  %v290_v58 = vor.u32 1.1754944e-38, %v289_v9  ;;  %vm400_vm3 = vcmp.ge.f32.partialorder %v5437_v17, -2.2  ;;  %v4052_v0 = vld [vmem:[#allocation6 + $0xa0] sm:$0xff]  ;;  %v4067_v50 = vld [vmem:[#allocation6 + $0x118] sm:$0xff]  ;;  %v4050_v9 = vld [vmem:[#allocation6 + $0x90] sm:$0xff] }
  0x3d   :  { %4248 = vmatpush.msrb.mxu1 %v4056_v1  ;;  %4314 = vmatpush.msrb.mxu2 %v4071_v2  ;;  %v281_v53 = vmul.f32 %v5718_v27, %v280_v42  ;;  %5251 = vrcp.f32 %v5734_v29  ;;  %v5244_v51 = vpop.eup %5243  ;;  %v152_v63 = vand.u32 2147483647, %v5734_v29  ;;  %v154_v39 = vand.u32 2147483648, %v5734_v29  ;;  %v4102_v42 = vld [vmem:[#allocation6 + $0x230] sm:$0xff] }
  0x3e   :  { %4378 = vmatpush.msrb.mxu3 %v4088_v14  ;;  %4439 = vmatpush.msrb.mxu0 %v4108_v25  ;;  %v222_v57 = vadd.f32 %v5709_v19, %v221_v18  ;;  %5253 = vrcp.f32 %v5741_v10  ;;  %v347_v54 = vand.u32 2147483647, %v5741_v10  ;;  %vm416_vm5 = vcmp.lt.f32.partialorder %v5437_v17, -1.8  ;;  %v4084_v14 = vld [vmem:[#allocation6 + $0x1a0] sm:$0xff] }
  0x3f   :  { %4249 = vmatpush.msrb.mxu1 %v4055_v3  ;;  %4315 = vmatpush.msrb.mxu2 %v4070_v62  ;;  %v5246_v1 = vpop.eup %5245  ;;  %v282_v4 = vadd.f32 %v5718_v27, %v281_v53  ;;  %v349_v2 = vand.u32 2147483648, %v5741_v10  ;;  %v5773_v45 = vadd.f32 1.0, %v5244_v51  ;;  %vm148_vm6 = vweird.f32 %v5734_v29  ;;  %v4083_v3 = vld [vmem:[#allocation6 + $0x198] sm:$0xff]  ;;  %vm5816_vm11 = vmand %vm400_vm3, %vm416_vm5 }
  0x40   :  { %4231 = vmatmul.f32.gmra.mxu3 %v381_v13  ;;  %4440 = vmatpush.msrb.mxu0 %v4107_v26  ;;  %v226_v60 = vsel %vm5747_vm2, %v5709_v19, %v222_v57  ;;  %v5775_v8 = vadd.f32 1.0, %v5246_v1  ;;  %vm343_vm7 = vweird.f32 %v5741_v10  ;;  %v4066_v19 = vld [vmem:[#allocation6 + $0x110] sm:$0xff]  ;;  %vm480_vm8 = vcmp.ge.f32.partialorder %v5437_v17, -1.8  ;;  %v4100_v13 = vld [vmem:[#allocation6 + $0x220] sm:$0xff] }
  0x41   :  { %4379 = vmatpush.msrb.mxu3 %v4087_v34  ;;  %4250 = vmatpush.msrb.mxu1 %v4054_v16  ;;  %v5248_v5 = vpop.eup %5247  ;;  %v231_v44 = vsel %vm5711_vm13, %v230_v23, %v226_v60  ;;  %v286_v25 = vsel %vm5759_vm4, %v5718_v27, %v282_v4  ;;  %vm5788_vm9 = vcmp.eq.f32.partialorder %v152_v63, 8.507059e+37  ;;  %v5792_v27 = vor.u32 1.1754944e-38, %v154_v39  ;;  %v4065_v23 = vld [vmem:[#allocation6 + $0x108] sm:$0xff]  ;;  %v4082_v34 = vld [vmem:[#allocation6 + $0x190] sm:$0xff] }
  0x42   :  { %4316 = vmatpush.msrb.mxu2 %v4069_v43  ;;  %4441 = vmatpush.msrb.mxu0 %v4106_v46  ;;  %v5250_v7 = vpop.eup %5249  ;;  %v374_v28 = vmul.f32 %v231_v44, %v5443_v22  ;;  %v291_v20 = vsel %vm5737_vm1, %v290_v58, %v286_v25  ;;  %5255 = vrcp.f32 %v5773_v45  ;;  %v242_v22 = vand.u32 2147483647, %v5773_v45  ;;  %v4049_v43 = vld [vmem:[#allocation6 + $0x88] sm:$0xff] }
  0x43   :  { %4380 = vmatpush.msrb.mxu3 %v4086_v6  ;;  %4251 = vmatpush.msrb.mxu1 %v4053_v48  ;;  %v5795_v62 = vpop.eup %5251  ;;  %v378_v36 = vmul.f32 %v291_v20, %v5450_v31  ;;  %v244_v15 = vand.u32 2147483648, %v5773_v45  ;;  %5257 = vrcp.f32 %v5775_v8  ;;  %vm5805_vm10 = vcmp.eq.f32.partialorder %v347_v54, 8.507059e+37  ;;  %v4064_v6 = vld [vmem:[#allocation6 + $0x100] sm:$0xff]  ;;  %v4081_v48 = vld [vmem:[#allocation6 + $0x188] sm:$0xff] }
  0x44   :  { %4317 = vmatpush.msrb.mxu2 %v4068_v52  ;;  %4442 = vmatpush.msrb.mxu0 %v4105_v61  ;;  %v5801_v26 = vpop.eup %5253  ;;  %v144_v12 = vmul.f32 %v5795_v62, %v5734_v29  ;;  %v5809_v31 = vor.u32 1.1754944e-38, %v349_v2  ;;  %v302_v41 = vand.u32 2147483647, %v5775_v8  ;;  %vm149_vm12 = vweird.f32 %v5795_v62  ;;  %v4048_v61 = vld [vmem:[#allocation6 + $0x80] sm:$0xff] }
  0x45   :  { %4381 = vmatpush.msrb.mxu3 %v4085_v59  ;;  %4252 = vmatpush.msrb.mxu1 %v4052_v0  ;;  %v339_v30 = vmul.f32 %v5801_v26, %v5741_v10  ;;  %vm238_vm13 = vweird.f32 %v5773_v45  ;;  %vm298_vm14 = vweird.f32 %v5775_v8  ;;  %vm344_vm15 = vweird.f32 %v5801_v26  ;;  %v4101_v59 = vld [vmem:[#allocation6 + $0x228] sm:$0xff]  ;;  %vm5859_vm3 = vmor %vm148_vm6, %vm149_vm12 }
  0x46   :  { %4318 = vmatpush.msrb.mxu2 %v4067_v50  ;;  %4443 = vmatpush.msrb.mxu0 %v4104_v37  ;;  %v145_v46 = vsub.f32 1.0, %v144_v12  ;;  %v304_v18 = vand.u32 2147483648, %v5775_v8  ;;  %v5827_v47 = vadd.f32 1.0, %v5248_v5  ;;  %vm5829_vm0 = vcmp.eq.f32.partialorder %v242_v22, 8.507059e+37  ;;  %vm5873_vm5 = vmor %vm343_vm7, %vm344_vm15  ;;  %v4080_v12 = vld [vmem:[#allocation6 + $0x180] sm:$0xff] }
  0x47   :  { %4382 = vmatpush.msrb.mxu3 %v4084_v14  ;;  %4253 = vmatpush.msrb.mxu1 %v4051_v21  ;;  %v340_v52 = vsub.f32 1.0, %v339_v30  ;;  %v5833_v53 = vor.u32 1.1754944e-38, %v244_v15  ;;  %v5835_v58 = vadd.f32 1.0, %v5250_v7  ;;  %v8314_v51 = vmov 0.0  }
  0x48   :  { %4210 = vmatmul.f32.gmra.mxu1 %v374_v28  ;;  %4319 = vmatpush.msrb.mxu2 %v4066_v19  ;;  %v5840_v57 = vsel %vm5816_vm11, 1.0, %v8314_v51  ;;  %v5842_v32 = vpop.eup %5255  ;;  %v146_v63 = vmul.f32 %v5795_v62, %v145_v46  ;;  %vm5845_vm1 = vcmp.eq.f32.partialorder %v302_v41, 8.507059e+37  ;;  %v5849_v0 = vor.u32 1.1754944e-38, %v304_v18 }
  0x49   :  { %4222 = vmatmul.f32.gmra.mxu2 %v378_v36  ;;  %4383 = vmatpush.msrb.mxu3 %v4083_v3  ;;  %5259 = vrcp.f32 %v5827_v47  ;;  %vm496_vm2 = vcmp.lt.f32.partialorder %v5437_v17, -1.4  ;;  %v5853_v50 = vpop.eup %5257  ;;  %v341_v4 = vmul.f32 %v5801_v26, %v340_v52  ;;  %v234_v54 = vmul.f32 %v5842_v32, %v5773_v45 }
  0x4a   :  { %4444 = vmatpush.msrb.mxu0 %v4103_v38  ;;  %4254 = vmatpush.msrb.mxu1 %v4050_v9  ;;  %vm163_vm4 = vweird.f32 %v5827_v47  ;;  %v167_v37 = vand.u32 2147483647, %v5827_v47  ;;  %v147_v60 = vadd.f32 %v5795_v62, %v146_v63  ;;  %vm239_vm6 = vweird.f32 %v5842_v32  ;;  %vm5894_vm12 = vmand %vm480_vm8, %vm496_vm2 }
  0x4b   :  { %4320 = vmatpush.msrb.mxu2 %v4065_v23  ;;  %4384 = vmatpush.msrb.mxu3 %v4082_v34  ;;  %v294_v2 = vmul.f32 %v5853_v50, %v5775_v8  ;;  %v169_v14 = vand.u32 2147483648, %v5827_v47  ;;  %v342_v21 = vadd.f32 %v5801_v26, %v341_v4  ;;  %v235_v5 = vsub.f32 1.0, %v234_v54  ;;  %vm5909_vm15 = vmor %vm238_vm13, %vm239_vm6 }
  0x4c   :  { %4445 = vmatpush.msrb.mxu0 %v4102_v42  ;;  %4255 = vmatpush.msrb.mxu1 %v4049_v43  ;;  %vm299_vm11 = vweird.f32 %v5853_v50  ;;  %5261 = vrcp.f32 %v5835_v58  ;;  %v151_v10 = vsel %vm5859_vm3, %v5795_v62, %v147_v60  ;;  %vm358_vm7 = vweird.f32 %v5835_v58 }
  0x4d   :  { %4321 = vmatpush.msrb.mxu2 %v4064_v6  ;;  %4385 = vmatpush.msrb.mxu3 %v4081_v48  ;;  %v295_v44 = vsub.f32 1.0, %v294_v2  ;;  %v5887_v25 = vor.u32 1.1754944e-38, %v169_v14  ;;  %v156_v7 = vsel %vm5788_vm9, %v5792_v27, %v151_v10  ;;  %v346_v28 = vsel %vm5873_vm5, %v5801_v26, %v342_v21  ;;  %vm5927_vm9 = vmor %vm298_vm14, %vm299_vm11 }
  0x4e   :  { %4446 = vmatpush.msrb.mxu0 %v4101_v59  ;;  %4256 = vmatpush.msrb.mxu1 %v4048_v61  ;;  %v236_v20 = vmul.f32 %v5842_v32, %v235_v5  ;;  %vm5913_vm8 = vcmp.eq.f32.partialorder %v167_v37, 8.507059e+37  ;;  %v362_v35 = vand.u32 2147483647, %v5835_v58  ;;  %v369_v36 = vmul.f32 %v156_v7, %v5453_v33  ;;  %v5997_v7 = vld [vmem:[#allocation3] sm:$0xff] }
  0x4f   :  { %v5260_v27 = vpop.eup %5259  ;;  %v351_v22 = vsel %vm5805_vm10, %v5809_v31, %v346_v28  ;;  %v296_v15 = vmul.f32 %v5853_v50, %v295_v44  ;;  %v364_v38 = vand.u32 2147483648, %v5835_v58  ;;  %v4143_v31 = vld [vmem:[#allocation6 + $0x378] sm:$0xff]  ;;  %4386 = vmatpush.msrb.mxu3 %v4080_v12  ;;  %vm560_vm14 = vcmp.ge.f32.partialorder %v5437_v17, -1.4 }
  0x50   :  { %v382_v9 = vmul.f32 %v351_v22, %v5626_v24  ;;  %v237_v33 = vadd.f32 %v5842_v32, %v236_v20  ;;  %v159_v26 = vmul.f32 %v5260_v27, %v5827_v47  ;;  %vm164_vm13 = vweird.f32 %v5260_v27  ;;  %4195 = vmatmul.f32.gmra.mxu0 %v369_v36  ;;  %4566 = vmatpush.msra.mxu2 %v4143_v31 }
  0x51   :  { %v297_v41 = vadd.f32 %v5853_v50, %v296_v15  ;;  %vm5936_vm10 = vcmp.eq.f32.partialorder %v362_v35, 8.507059e+37  ;;  %v365_v23 = vor.u32 1.1754944e-38, %v364_v38  ;;  %v4829_v24 = vsel %vm5894_vm12, 1.0, %v8314_v51  ;;  %4447 = vmatpush.msrb.mxu0 %v4100_v13  ;;  %v6003_v38 = vld [vmem:[#allocation3 + $0x18] sm:$0xff] }
  0x52   :  { %v5262_v34 = vpop.eup %5261  ;;  %4234 = vmatmul.f32.gmra.mxu3 %v382_v9  ;;  %v241_v16 = vsel %vm5909_vm15, %v5842_v32, %v237_v33  ;;  %v160_v30 = vsub.f32 1.0, %v159_v26  ;;  %vm576_vm2 = vcmp.lt.f32.partialorder %v5437_v17, -1.0  ;;  %vm640_vm6 = vcmp.ge.f32.partialorder %v5437_v17, -1.0 }
  0x53   :  { %v246_v42 = vsel %vm5829_vm0, %v5833_v53, %v241_v16  ;;  %v301_v43 = vsel %vm5927_vm9, %v5853_v50, %v297_v41  ;;  %v354_v46 = vmul.f32 %v5262_v34, %v5835_v58  ;;  %vm359_vm3 = vweird.f32 %v5262_v34  ;;  %vm592_vm5 = vmand %vm560_vm14, %vm576_vm2 }
  0x54   :  { %v375_v18 = vmul.f32 %v246_v42, %v5672_v49  ;;  %v306_v6 = vsel %vm5845_vm1, %v5849_v0, %v301_v43  ;;  %v161_v48 = vmul.f32 %v5260_v27, %v160_v30  ;;  %v4845_v52 = vsel %vm592_vm5, 1.0, %v8314_v51  ;;  %vm5964_vm0 = vmor %vm163_vm4, %vm164_vm13  ;;  %v4098_v43 = vld [vmem:[#allocation6 + $0x210] sm:$0xff] }
  0x55   :  { %v379_v55 = vmul.f32 %v306_v6, %v5677_v11  ;;  %v355_v59 = vsub.f32 1.0, %v354_v46  ;;  %vm656_vm11 = vcmp.lt.f32.partialorder %v5437_v17, -0.6  ;;  %v4989_v61 = vadd.f32 2.2, %v5437_v17  ;;  %vm5985_vm4 = vmor %vm358_vm7, %vm359_vm3  ;;  %v4127_v46 = vld [vmem:[#allocation6 + $0x2f8] sm:$0xff] }
  0x56   :  { %4213 = vmatmul.f32.gmra.mxu1 %v375_v18  ;;  %v162_v49 = vadd.f32 %v5260_v27, %v161_v48  ;;  %vm672_vm1 = vmand %vm640_vm6, %vm656_vm11  ;;  %v1328_v32 = vsub.f32 -1.4, %v5437_v17  ;;  %v5005_v11 = vadd.f32 1.8, %v5437_v17  ;;  %v1440_v39 = vsub.f32 -1.0, %v5437_v17 }
  0x57   :  { %4225 = vmatmul.f32.gmra.mxu2 %v379_v55  ;;  %v356_v47 = vmul.f32 %v5262_v34, %v355_v59  ;;  %v5974_v63 = vsel %vm672_vm1, 1.0, %v8314_v51  ;;  %v5978_v0 = vadd.f32 1.4, %v5437_v17  ;;  %v1296_v4 = vmul.f32 2.5, %v4989_v61  ;;  %4501 = vmatpush.msra.mxu1 %v4127_v46  ;;  %v4097_v55 = vld [vmem:[#allocation6 + $0x208] sm:$0xff] }
  0x58   :  { %v166_v50 = vsel %vm5964_vm0, %v5260_v27, %v162_v49  ;;  %v1344_v54 = vmul.f32 2.5, %v1328_v32  ;;  %v1408_v37 = vmul.f32 2.5, %v5005_v11  ;;  %v1456_v17 = vmul.f32 2.5, %v1440_v39 }
  0x59   :  { %v171_v60 = vsel %vm5913_vm8, %v5887_v25, %v166_v50  ;;  %v357_v29 = vadd.f32 %v5262_v34, %v356_v47  ;;  %v1520_v2 = vmul.f32 2.5, %v5978_v0  ;;  %v1312_v21 = vmul.f32 %v5840_v57, %v1296_v4 }
  0x5a   :  { %v370_v14 = vmul.f32 %v171_v60, %v5679_v56  ;;  %v1360_v58 = vmul.f32 %v4829_v24, %v1344_v54  ;;  %v1424_v5 = vmul.f32 %v4829_v24, %v1408_v37  ;;  %v1472_v44 = vmul.f32 %v4845_v52, %v1456_v17  ;;  %v4159_v24 = vld [vmem:[#allocation6 + $0x3f8] sm:$0xff]  ;;  %v6028_v54 = vld [vmem:[#allocation3 + $0x8] sm:$0xff] }
  0x5b   :  { %v361_v10 = vsel %vm5985_vm4, %v5262_v34, %v357_v29  ;;  %v1536_v19 = vmul.f32 %v4845_v52, %v1520_v2  ;;  %v1552_v28 = vsub.f32 -0.6, %v5997_v7  ;;  %v2400_v3 = vmul.f32 1.25, %v4989_v61  ;;  %4631 = vmatpush.msra.mxu3 %v4159_v24 }
  0x5c   :  { %4198 = vmatmul.f32.gmra.mxu0 %v370_v14  ;;  %v366_v25 = vsel %vm5936_vm10, %v365_v23, %v361_v10  ;;  %v1376_v20 = vadd.f32 %v1360_v58, %v1312_v21  ;;  %v2432_v62 = vmul.f32 1.25, %v1440_v39  ;;  %v1488_v35 = vadd.f32 %v1472_v44, %v1424_v5  ;;  %v4099_v23 = vld [vmem:[#allocation6 + $0x218] sm:$0xff]  ;;  %v4096_v44 = vld [vmem:[#allocation6 + $0x200] sm:$0xff] }
  0x5d   :  { %v383_v57 = vmul.f32 %v366_v25, %v5703_v40  ;;  %v1568_v27 = vmul.f32 2.5, %v1552_v28  ;;  %v2480_v36 = vmul.f32 1.25, %v5005_v11  ;;  %v2512_v15 = vmul.f32 1.25, %v1552_v28  ;;  %4448 = vmatpush.msrb.mxu0 %v4099_v23 }
  0x5e   :  { %v2416_v22 = vmul.f32 %v2400_v3, %v1376_v20  ;;  %v3120_v45 = vmul.f32 0.8333333, %v4989_v61  ;;  %v2448_v33 = vmul.f32 %v2432_v62, %v1488_v35  ;;  %v3152_v26 = vmul.f32 0.8333333, %v1552_v28 }
  0x5f   :  { %4237 = vmatmul.f32.gmra.mxu3 %v383_v57  ;;  %v1584_v9 = vmul.f32 %v5974_v63, %v1568_v27  ;;  %vm720_vm7 = vcmp.ge.f32.partialorder %v5997_v7, -0.6  ;;  %vm736_vm12 = vcmp.lt.f32.partialorder %v5997_v7, -0.2  ;;  %v6009_v12 = vadd.f32 1.0, %v5997_v7  ;;  %4449 = vmatpush.msrb.mxu0 %v4098_v43 }
  0x60   :  { %v1664_v40 = vsub.f32 -0.2, %v5997_v7  ;;  %v2464_v31 = vadd.f32 %v2448_v33, %v2416_v22  ;;  %v2496_v41 = vmul.f32 %v2480_v36, %v1488_v35  ;;  %vm752_vm15 = vmand %vm720_vm7, %vm736_vm12  ;;  %v4800_v8 = vmul.f32 -1.442695, %v6003_v38 }
  0x61   :  { %v1600_v13 = vadd.f32 %v1584_v9, %v1536_v19  ;;  %v4877_v34 = vsel %vm752_vm15, 1.0, %v8314_v51  ;;  %v1632_v16 = vmul.f32 2.5, %v6009_v12  ;;  %v2560_v42 = vmul.f32 1.25, %v5978_v0  ;;  %4450 = vmatpush.msrb.mxu0 %v4097_v55  ;;  %v4142_v19 = vld [vmem:[#allocation6 + $0x370] sm:$0xff] }
  0x62   :  { %v1680_v30 = vmul.f32 2.5, %v1664_v40  ;;  %v3136_v6 = vmul.f32 %v3120_v45, %v2464_v31  ;;  %v2592_v48 = vmul.f32 1.25, %v1664_v40  ;;  %v3200_v52 = vmul.f32 0.8333333, %v5005_v11  ;;  %4567 = vmatpush.msra.mxu2 %v4142_v19 }
  0x63   :  { %v2528_v18 = vmul.f32 %v2512_v15, %v1600_v13  ;;  %v1648_v53 = vmul.f32 %v5974_v63, %v1632_v16  ;;  %5263 = vpow2.f32 %v4800_v8  ;;  %vm800_vm8 = vcmp.ge.f32.partialorder %v5997_v7, -0.2  ;;  %4451 = vmatpush.msrb.mxu0 %v4096_v44 }
  0x64   :  { %v1696_v59 = vmul.f32 %v4877_v34, %v1680_v30  ;;  %vm816_vm9 = vcmp.lt.f32.partialorder %v5997_v7, 0.2  ;;  %v6020_v61 = vadd.f32 0.6, %v5997_v7  ;;  %v1776_v32 = vsub.f32 0.2, %v5997_v7 }
  0x65   :  { %v2544_v49 = vadd.f32 %v2528_v18, %v2496_v41  ;;  %v2576_v39 = vmul.f32 %v2560_v42, %v1600_v13  ;;  %v3232_v11 = vmul.f32 0.8333333, %v1664_v40  ;;  %vm832_vm13 = vmand %vm800_vm8, %vm816_vm9  ;;  %v2640_v50 = vmul.f32 1.25, %v6009_v12 }
  0x66   :  { %v1712_v47 = vadd.f32 %v1696_v59, %v1648_v53  ;;  %v6025_v1 = vsel %vm832_vm13, 1.0, %v8314_v51  ;;  %v1744_v4 = vmul.f32 2.5, %v6020_v61  ;;  %vm401_vm10 = vcmp.ge.f32.partialorder %v6028_v54, -2.2 }
  0x67   :  { %v3168_v63 = vmul.f32 %v3152_v26, %v2544_v49  ;;  %v3216_v60 = vmul.f32 %v3200_v52, %v2544_v49  ;;  %v1792_v29 = vmul.f32 2.5, %v1776_v32  ;;  %v3280_v17 = vmul.f32 0.8333333, %v5978_v0 }
  0x68   :  { %v2608_v37 = vmul.f32 %v2592_v48, %v1712_v47  ;;  %v1760_v14 = vmul.f32 %v4877_v34, %v1744_v4  ;;  %v2672_v21 = vmul.f32 1.25, %v1776_v32  ;;  %vm417_vm14 = vcmp.lt.f32.partialorder %v6028_v54, -1.8 }
  0x69   :  { %v3184_v2 = vadd.f32 %v3168_v63, %v3136_v6  ;;  %v5264_v58 = vpop.eup %5263  ;;  %v1808_v10 = vmul.f32 %v6025_v1, %v1792_v29  ;;  %vm433_vm2 = vmand %vm401_vm10, %vm417_vm14  ;;  %vm481_vm3 = vcmp.ge.f32.partialorder %v6028_v54, -1.8  ;;  %vm497_vm5 = vcmp.lt.f32.partialorder %v6028_v54, -1.4 }
  0x6a   :  { %v2624_v5 = vadd.f32 %v2608_v37, %v2576_v39  ;;  %v6036_v28 = vadd.f32 1.0, %v5264_v58  ;;  %v2656_v0 = vmul.f32 %v2640_v50, %v1712_v47  ;;  %vm513_vm0 = vmand %vm481_vm3, %vm497_vm5  ;;  %vm561_vm6 = vcmp.ge.f32.partialorder %v6028_v54, -1.4  ;;  %v4158_v39 = vld [vmem:[#allocation6 + $0x3f0] sm:$0xff] }
  0x6b   :  { %4257 = vmatmul.f32.vlgmr.msrb.gmra.mxu1 %v3184_v2  ;;  %vm577_vm11 = vcmp.lt.f32.partialorder %v6028_v54, -1.0  ;;  %v6040_v20 = vadd.f32 %v1808_v10, %v1760_v14  ;;  %v3312_v3 = vmul.f32 0.8333333, %v1776_v32  ;;  %v4814_v62 = vsel %vm433_vm2, 1.0, %v8314_v51  ;;  %4632 = vmatpush.msra.mxu3 %v4158_v39 }
  0x6c   :  { %v3248_v25 = vmul.f32 %v3232_v11, %v2624_v5  ;;  %vm593_vm1 = vmand %vm561_vm6, %vm577_vm11  ;;  %5265 = vrcp.f32 %v6036_v28  ;;  %v184_v57 = vand.u32 2147483648, %v6036_v28  ;;  %v3296_v35 = vmul.f32 %v3280_v17, %v2624_v5  ;;  %v4175_v11 = vld [vmem:[#allocation6 + $0x478] sm:$0xff] }
  0x6d   :  { %v4830_v27 = vsel %vm513_vm0, 1.0, %v8314_v51  ;;  %vm178_vm4 = vweird.f32 %v6036_v28  ;;  %v182_v22 = vand.u32 2147483647, %v6036_v28  ;;  %v2688_v15 = vmul.f32 %v2672_v21, %v6040_v20  ;;  %4696 = vmatpush.msra.mxu0 %v4175_v11 }
  0x6e   :  { %v3264_v36 = vadd.f32 %v3248_v25, %v3216_v60  ;;  %vm641_vm7 = vcmp.ge.f32.partialorder %v6028_v54, -1.0  ;;  %v6050_v45 = vor.u32 1.1754944e-38, %v184_v57  ;;  %v4846_v9 = vsel %vm593_vm1, 1.0, %v8314_v51  ;;  %v4126_v60 = vld [vmem:[#allocation6 + $0x2f0] sm:$0xff] }
  0x6f   :  { %vm657_vm12 = vcmp.lt.f32.partialorder %v6028_v54, -0.6  ;;  %v4990_v33 = vadd.f32 2.2, %v6028_v54  ;;  %v6055_v26 = vadd.f32 %v2688_v15, %v2656_v0  ;;  %v1329_v40 = vsub.f32 -1.4, %v6028_v54  ;;  %4502 = vmatpush.msra.mxu1 %v4126_v60 }
  0x70   :  { %4322 = vmatmul.f32.vlgmr.msrb.gmra.mxu2 %v3264_v36  ;;  %vm673_vm15 = vmand %vm641_vm7, %vm657_vm12  ;;  %v6059_v13 = vadd.f32 1.8, %v6028_v54  ;;  %v1441_v31 = vsub.f32 -1.0, %v6028_v54  ;;  %v6064_v23 = vadd.f32 1.4, %v6028_v54  ;;  %vm183_vm14 = vcmp.eq.f32.partialorder %v182_v22, 8.507059e+37 }
  0x71   :  { %v4862_v41 = vsel %vm673_vm15, 1.0, %v8314_v51  ;;  %v1297_v8 = vmul.f32 2.5, %v4990_v33  ;;  %v1553_v24 = vsub.f32 -0.6, %v6028_v54  ;;  %v3328_v34 = vmul.f32 %v3312_v3, %v6055_v26 }
  0x72   :  { %v1345_v16 = vmul.f32 2.5, %v1329_v40  ;;  %v1409_v30 = vmul.f32 2.5, %v6059_v13  ;;  %v1457_v42 = vmul.f32 2.5, %v1441_v31  ;;  %v5266_v43 = vpop.eup %5265  ;;  %v1521_v18 = vmul.f32 2.5, %v6064_v23 }
  0x73   :  { %v1313_v46 = vmul.f32 %v4814_v62, %v1297_v8  ;;  %v1569_v6 = vmul.f32 2.5, %v1553_v24  ;;  %v2401_v48 = vmul.f32 1.25, %v4990_v33  ;;  %v174_v52 = vmul.f32 %v5266_v43, %v6036_v28 }
  0x74   :  { %vm179_vm8 = vweird.f32 %v5266_v43  ;;  %v3344_v55 = vadd.f32 %v3328_v34, %v3296_v35  ;;  %v1361_v53 = vmul.f32 %v4830_v27, %v1345_v16  ;;  %v1425_v59 = vmul.f32 %v4830_v27, %v1409_v30 }
  0x75   :  { %v1473_v49 = vmul.f32 %v4846_v9, %v1457_v42  ;;  %v1537_v32 = vmul.f32 %v4846_v9, %v1521_v18  ;;  %v1585_v47 = vmul.f32 %v4862_v41, %v1569_v6  ;;  %v175_v50 = vsub.f32 1.0, %v174_v52  ;;  %vm6076_vm13 = vmor %vm178_vm4, %vm179_vm8 }
  0x76   :  { %4387 = vmatmul.f32.vlgmr.msrb.gmra.mxu3 %v3344_v55  ;;  %v1377_v63 = vadd.f32 %v1361_v53, %v1313_v46  ;;  %v2433_v4 = vmul.f32 1.25, %v1441_v31  ;;  %v2481_v37 = vmul.f32 1.25, %v6059_v13  ;;  %v2513_v2 = vmul.f32 1.25, %v1553_v24 }
  0x77   :  { %v1489_v29 = vadd.f32 %v1473_v49, %v1425_v59  ;;  %v1601_v17 = vadd.f32 %v1585_v47, %v1537_v32  ;;  %v3121_v14 = vmul.f32 0.8333333, %v4990_v33  ;;  %v176_v21 = vmul.f32 %v5266_v43, %v175_v50 }
  0x78   :  { %v2417_v58 = vmul.f32 %v2401_v48, %v1377_v63  ;;  %v3153_v5 = vmul.f32 0.8333333, %v1553_v24  ;;  %vm721_vm9 = vcmp.ge.f32.partialorder %v6028_v54, -0.6  ;;  %vm737_vm10 = vcmp.lt.f32.partialorder %v6028_v54, -0.2 }
  0x79   :  { %v2449_v44 = vmul.f32 %v2433_v4, %v1489_v29  ;;  %v2497_v19 = vmul.f32 %v2481_v37, %v1489_v29  ;;  %v2529_v0 = vmul.f32 %v2513_v2, %v1601_v17  ;;  %v177_v25 = vadd.f32 %v5266_v43, %v176_v21  ;;  %vm753_vm2 = vmand %vm721_vm9, %vm737_vm10  ;;  %v4141_v2 = vld [vmem:[#allocation6 + $0x368] sm:$0xff] }
  0x7a   :  { %v6082_v3 = vadd.f32 1.0, %v6028_v54  ;;  %v1665_v62 = vsub.f32 -0.2, %v6028_v54  ;;  %v4878_v28 = vsel %vm753_vm2, 1.0, %v8314_v51  ;;  %v2561_v9 = vmul.f32 1.25, %v6064_v23  ;;  %4568 = vmatpush.msra.mxu2 %v4141_v2 }
  0x7b   :  { %v2465_v57 = vadd.f32 %v2449_v44, %v2417_v58  ;;  %v2545_v35 = vadd.f32 %v2529_v0, %v2497_v19  ;;  %v181_v27 = vsel %vm6076_vm13, %v5266_v43, %v177_v25  ;;  %v3201_v30 = vmul.f32 0.8333333, %v6059_v13 }
  0x7c   :  { %v1633_v36 = vmul.f32 2.5, %v6082_v3  ;;  %v1681_v15 = vmul.f32 2.5, %v1665_v62  ;;  %v186_v22 = vsel %vm183_vm14, %v6050_v45, %v181_v27  ;;  %v2593_v34 = vmul.f32 1.25, %v1665_v62 }
  0x7d   :  { %v3137_v33 = vmul.f32 %v3121_v14, %v2465_v57  ;;  %v3169_v40 = vmul.f32 %v3153_v5, %v2545_v35  ;;  %v371_v31 = vmul.f32 %v186_v22, %v6003_v38  ;;  %vm801_vm3 = vcmp.ge.f32.partialorder %v6028_v54, -0.2 }
  0x7e   :  { %v1649_v8 = vmul.f32 %v4862_v41, %v1633_v36  ;;  %v1697_v24 = vmul.f32 %v4878_v28, %v1681_v15  ;;  %vm817_vm5 = vcmp.lt.f32.partialorder %v6028_v54, 0.2  ;;  %v2577_v43 = vmul.f32 %v2561_v9, %v1601_v17 }
  0x7f   :  { %v3185_v16 = vadd.f32 %v3169_v40, %v3137_v33  ;;  %4201 = vmatmul.f32.gmra.mxu0 %v371_v31  ;;  %vm833_vm0 = vmand %vm801_vm3, %vm817_vm5  ;;  %v6096_v45 = vadd.f32 0.6, %v6028_v54  ;;  %v1777_v46 = vsub.f32 0.2, %v6028_v54  ;;  %v2641_v18 = vmul.f32 1.25, %v6082_v3 }
  0x80   :  { %v1713_v42 = vadd.f32 %v1697_v24, %v1649_v8  ;;  %v6100_v41 = vsel %vm833_vm0, 1.0, %v8314_v51  ;;  %vm880_vm6 = vcmp.ge.f32.partialorder %v5997_v7, 0.2  ;;  %v2720_v13 = vmul.f32 1.25, %v6020_v61 }
  0x81   :  { %4260 = vmatmul.f32.gmra.mxu1 %v3185_v16  ;;  %v3233_v48 = vmul.f32 0.8333333, %v1665_v62  ;;  %v1745_v52 = vmul.f32 2.5, %v6096_v45  ;;  %v1793_v55 = vmul.f32 2.5, %v1777_v46  ;;  %v3217_v53 = vmul.f32 %v3201_v30, %v2545_v35 }
  0x82   :  { %v2609_v6 = vmul.f32 %v2593_v34, %v1713_v42  ;;  %v2673_v59 = vmul.f32 1.25, %v1777_v46  ;;  %v3281_v49 = vmul.f32 0.8333333, %v6064_v23  ;;  %vm896_vm11 = vcmp.lt.f32.partialorder %v5997_v7, 0.6 }
  0x83   :  { %v1761_v47 = vmul.f32 %v4878_v28, %v1745_v52  ;;  %v1809_v39 = vmul.f32 %v6100_v41, %v1793_v55  ;;  %vm912_vm1 = vmand %vm880_vm6, %vm896_vm11  ;;  %v6110_v11 = vadd.f32 0.2, %v5997_v7  ;;  %v2657_v50 = vmul.f32 %v2641_v18, %v1713_v42  ;;  %v4125_v52 = vld [vmem:[#allocation6 + $0x2e8] sm:$0xff] }
  0x84   :  { %v2625_v32 = vadd.f32 %v2609_v6, %v2577_v43  ;;  %v3313_v63 = vmul.f32 0.8333333, %v1777_v46  ;;  %v1888_v4 = vsub.f32 0.6, %v5997_v7  ;;  %v2736_v37 = vmul.f32 %v2720_v13, %v6040_v20  ;;  %v4157_v43 = vld [vmem:[#allocation6 + $0x3e8] sm:$0xff]  ;;  %v4174_v46 = vld [vmem:[#allocation6 + $0x470] sm:$0xff]  ;;  %4503 = vmatpush.msra.mxu1 %v4125_v52 }
  0x85   :  { %v6114_v29 = vadd.f32 %v1809_v39, %v1761_v47  ;;  %v6117_v23 = vsel %vm912_vm1, 1.0, %v8314_v51  ;;  %v1856_v17 = vmul.f32 2.5, %v6110_v11  ;;  %v3360_v58 = vmul.f32 0.8333333, %v6009_v12  ;;  %v6129_v12 = vld [vmem:[#allocation3 + $0x10] sm:$0xff]  ;;  %4633 = vmatpush.msra.mxu3 %v4157_v43  ;;  %4697 = vmatpush.msra.mxu0 %v4174_v46 }
  0x86   :  { %v3249_v60 = vmul.f32 %v3233_v48, %v2625_v32  ;;  %v3297_v14 = vmul.f32 %v3281_v49, %v2625_v32  ;;  %v1904_v21 = vmul.f32 2.5, %v1888_v4  ;;  %vm578_vm4 = vcmp.lt.f32.partialorder %v5679_v56, -1.0 }
  0x87   :  { %v2689_v7 = vmul.f32 %v2673_v59, %v6114_v29  ;;  %v1872_v20 = vmul.f32 %v6025_v1, %v1856_v17  ;;  %v2752_v10 = vmul.f32 1.25, %v1888_v4  ;;  %v3376_v19 = vmul.f32 %v3360_v58, %v6055_v26 }
  0x88   :  { %v3265_v5 = vadd.f32 %v3249_v60, %v3217_v53  ;;  %v1920_v44 = vmul.f32 %v6117_v23, %v1904_v21  ;;  %v3392_v0 = vmul.f32 0.8333333, %v1888_v4  ;;  %vm402_vm7 = vcmp.ge.f32.partialorder %v5679_v56, -2.2 }
  0x89   :  { %v6127_v25 = vadd.f32 %v2689_v7, %v2657_v50  ;;  %vm418_vm12 = vcmp.lt.f32.partialorder %v6129_v12, -1.8  ;;  %vm482_vm15 = vcmp.ge.f32.partialorder %v6129_v12, -1.8  ;;  %vm498_vm8 = vcmp.lt.f32.partialorder %v6129_v12, -1.4 }
  0x8a   :  { %4325 = vmatmul.f32.gmra.mxu2 %v3265_v5  ;;  %v6134_v1 = vadd.f32 %v1920_v44, %v1872_v20  ;;  %vm434_vm9 = vmand %vm402_vm7, %vm418_vm12  ;;  %vm562_vm13 = vcmp.ge.f32.partialorder %v6129_v12, -1.4  ;;  %vm642_vm10 = vcmp.ge.f32.partialorder %v6129_v12, -1.0  ;;  %vm658_vm14 = vcmp.lt.f32.partialorder %v6129_v12, -0.6 }
  0x8b   :  { %v3329_v26 = vmul.f32 %v3313_v63, %v6127_v25  ;;  %v4815_v62 = vsel %vm434_vm9, 1.0, %v8314_v51  ;;  %vm514_vm2 = vmand %vm482_vm15, %vm498_vm8  ;;  %v4991_v57 = vadd.f32 2.2, %v6129_v12  ;;  %v1330_v35 = vsub.f32 -1.4, %v6129_v12 }
  0x8c   :  { %v2768_v28 = vmul.f32 %v2752_v10, %v6134_v1  ;;  %v4831_v27 = vsel %vm514_vm2, 1.0, %v8314_v51  ;;  %vm594_vm3 = vmand %vm562_vm13, %vm578_vm4  ;;  %v5007_v36 = vadd.f32 1.8, %v6129_v12  ;;  %v1442_v15 = vsub.f32 -1.0, %v6129_v12 }
  0x8d   :  { %v3345_v9 = vadd.f32 %v3329_v26, %v3297_v14  ;;  %v4847_v22 = vsel %vm594_vm3, 1.0, %v8314_v51  ;;  %vm674_vm5 = vmand %vm642_vm10, %vm658_vm14  ;;  %v1298_v33 = vmul.f32 2.5, %v4991_v57  ;;  %v1346_v40 = vmul.f32 2.5, %v1330_v35 }
  0x8e   :  { %v6150_v31 = vadd.f32 %v2768_v28, %v2736_v37  ;;  %v4863_v8 = vsel %vm674_vm5, 1.0, %v8314_v51  ;;  %v1410_v24 = vmul.f32 2.5, %v5007_v36  ;;  %v1458_v34 = vmul.f32 2.5, %v1442_v15 }
  0x8f   :  { %4390 = vmatmul.f32.gmra.mxu3 %v3345_v9  ;;  %v1314_v16 = vmul.f32 %v4815_v62, %v1298_v33  ;;  %v1362_v56 = vmul.f32 %v4831_v27, %v1346_v40  ;;  %v5023_v30 = vadd.f32 1.4, %v6129_v12  ;;  %v1554_v42 = vsub.f32 -0.6, %v6129_v12 }
  0x90   :  { %v3408_v18 = vmul.f32 %v3392_v0, %v6150_v31  ;;  %v1426_v13 = vmul.f32 %v4831_v27, %v1410_v24  ;;  %v1474_v6 = vmul.f32 %v4847_v22, %v1458_v34  ;;  %v2402_v48 = vmul.f32 1.25, %v4991_v57 }
  0x91   :  { %v1378_v55 = vadd.f32 %v1362_v56, %v1314_v16  ;;  %v1522_v53 = vmul.f32 2.5, %v5023_v30  ;;  %v1570_v59 = vmul.f32 2.5, %v1554_v42  ;;  %v2434_v49 = vmul.f32 1.25, %v1442_v15 }
  0x92   :  { %v3424_v32 = vadd.f32 %v3408_v18, %v3376_v19  ;;  %v1490_v47 = vadd.f32 %v1474_v6, %v1426_v13  ;;  %v2482_v39 = vmul.f32 1.25, %v5007_v36  ;;  %v2514_v50 = vmul.f32 1.25, %v1554_v42 }
  0x93   :  { %v1538_v63 = vmul.f32 %v4847_v22, %v1522_v53  ;;  %v1586_v4 = vmul.f32 %v4863_v8, %v1570_v59  ;;  %v2418_v37 = vmul.f32 %v2402_v48, %v1378_v55  ;;  %v3122_v60 = vmul.f32 0.8333333, %v4991_v57 }
  0x94   :  { %4452 = vmatmul.f32.vlgmr.msrb.gmra.mxu0 %v3424_v32  ;;  %v2450_v17 = vmul.f32 %v2434_v49, %v1490_v47  ;;  %v2498_v2 = vmul.f32 %v2482_v39, %v1490_v47  ;;  %v3154_v14 = vmul.f32 0.8333333, %v1554_v42  ;;  %vm722_vm0 = vcmp.ge.f32.partialorder %v6129_v12, -0.6 }
  0x95   :  { %v1602_v21 = vadd.f32 %v1586_v4, %v1538_v63  ;;  %vm738_vm6 = vcmp.lt.f32.partialorder %v6129_v12, -0.2  ;;  %v6159_v58 = vadd.f32 1.0, %v6129_v12  ;;  %v1666_v5 = vsub.f32 -0.2, %v6129_v12 }
  0x96   :  { %v2466_v7 = vadd.f32 %v2450_v17, %v2418_v37  ;;  %vm754_vm11 = vmand %vm722_vm0, %vm738_vm6  ;;  %v2562_v20 = vmul.f32 1.25, %v5023_v30  ;;  %v3202_v10 = vmul.f32 0.8333333, %v5007_v36  ;;  %vm802_vm1 = vcmp.ge.f32.partialorder %v6129_v12, -0.2 }
  0x97   :  { %v2530_v44 = vmul.f32 %v2514_v50, %v1602_v21  ;;  %v4879_v19 = vsel %vm754_vm11, 1.0, %v8314_v51  ;;  %v1634_v0 = vmul.f32 2.5, %v6159_v58  ;;  %v1682_v26 = vmul.f32 2.5, %v1666_v5  ;;  %v4140_v50 = vld [vmem:[#allocation6 + $0x360] sm:$0xff] }
  0x98   :  { %v3138_v62 = vmul.f32 %v3122_v60, %v2466_v7  ;;  %v2578_v57 = vmul.f32 %v2562_v20, %v1602_v21  ;;  %v2594_v35 = vmul.f32 1.25, %v1666_v5  ;;  %v3234_v28 = vmul.f32 0.8333333, %v1666_v5  ;;  %4569 = vmatpush.msra.mxu2 %v4140_v50 }
  0x99   :  { %v2546_v27 = vadd.f32 %v2530_v44, %v2498_v2  ;;  %v1650_v15 = vmul.f32 %v4863_v8, %v1634_v0  ;;  %v1698_v9 = vmul.f32 %v4879_v19, %v1682_v26  ;;  %vm818_vm4 = vcmp.lt.f32.partialorder %v6129_v12, 0.2 }
  0x9a   :  { %vm834_vm7 = vmand %vm802_vm1, %vm818_vm4  ;;  %v6167_v36 = vadd.f32 0.6, %v6129_v12  ;;  %v1778_v22 = vsub.f32 0.2, %v6129_v12  ;;  %v2642_v33 = vmul.f32 1.25, %v6159_v58  ;;  %v2721_v40 = vmul.f32 1.25, %v6096_v45 }
  0x9b   :  { %v3170_v24 = vmul.f32 %v3154_v14, %v2546_v27  ;;  %v1714_v34 = vadd.f32 %v1698_v9, %v1650_v15  ;;  %v3218_v16 = vmul.f32 %v3202_v10, %v2546_v27  ;;  %v6173_v56 = vsel %vm834_vm7, 1.0, %v8314_v51 }
  0x9c   :  { %v1746_v8 = vmul.f32 2.5, %v6167_v36  ;;  %v1794_v42 = vmul.f32 2.5, %v1778_v22  ;;  %v2674_v43 = vmul.f32 1.25, %v1778_v22  ;;  %v3282_v46 = vmul.f32 0.8333333, %v5023_v30 }
  0x9d   :  { %v3186_v18 = vadd.f32 %v3170_v24, %v3138_v62  ;;  %v2610_v13 = vmul.f32 %v2594_v35, %v1714_v34  ;;  %v2658_v6 = vmul.f32 %v2642_v33, %v1714_v34  ;;  %v3314_v48 = vmul.f32 0.8333333, %v1778_v22 }
  0x9e   :  { %v1762_v52 = vmul.f32 %v4879_v19, %v1746_v8  ;;  %v1810_v55 = vmul.f32 %v6173_v56, %v1794_v42  ;;  %vm881_vm12 = vcmp.ge.f32.partialorder %v6028_v54, 0.2  ;;  %vm897_vm15 = vcmp.lt.f32.partialorder %v6028_v54, 0.6  ;;  %v4173_v8 = vld [vmem:[#allocation6 + $0x468] sm:$0xff] }
  0x9f   :  { %4263 = vmatmul.f32.gmra.mxu1 %v3186_v18  ;;  %v2626_v53 = vadd.f32 %v2610_v13, %v2578_v57  ;;  %vm913_vm8 = vmand %vm881_vm12, %vm897_vm15  ;;  %v6180_v59 = vadd.f32 0.2, %v6028_v54  ;;  %v1889_v49 = vsub.f32 0.6, %v6028_v54  ;;  %v2737_v30 = vmul.f32 %v2721_v40, %v6114_v29  ;;  %4698 = vmatpush.msra.mxu0 %v4173_v8  ;;  %v4124_v13 = vld [vmem:[#allocation6 + $0x2e0] sm:$0xff] }
  0xa0   :  { %v6184_v32 = vadd.f32 %v1810_v55, %v1762_v52  ;;  %v6187_v47 = vsel %vm913_vm8, 1.0, %v8314_v51  ;;  %v3361_v39 = vmul.f32 0.8333333, %v6082_v3  ;;  %vm403_vm9 = vcmp.ge.f32.partialorder %v6003_v38, -2.2  ;;  %4504 = vmatpush.msra.mxu1 %v4124_v13 }
  0xa1   :  { %v3250_v63 = vmul.f32 %v3234_v28, %v2626_v53  ;;  %v3298_v4 = vmul.f32 %v3282_v46, %v2626_v53  ;;  %v1857_v37 = vmul.f32 2.5, %v6180_v59  ;;  %v1905_v60 = vmul.f32 2.5, %v1889_v49 }
  0xa2   :  { %v2690_v54 = vmul.f32 %v2674_v43, %v6184_v32  ;;  %v2753_v17 = vmul.f32 1.25, %v1889_v49  ;;  %v3377_v29 = vmul.f32 %v3361_v39, %v6127_v25  ;;  %v3393_v2 = vmul.f32 0.8333333, %v1889_v49 }
  0xa3   :  { %v3266_v14 = vadd.f32 %v3250_v63, %v3218_v16  ;;  %v1873_v21 = vmul.f32 %v6100_v41, %v1857_v37  ;;  %v1921_v3 = vmul.f32 %v6187_v47, %v1905_v60  ;;  %vm419_vm13 = vcmp.lt.f32.partialorder %v6003_v38, -1.8  ;;  %v4156_v16 = vld [vmem:[#allocation6 + $0x3e0] sm:$0xff] }
  0xa4   :  { %v6197_v5 = vadd.f32 %v2690_v54, %v2658_v6  ;;  %vm435_vm10 = vmand %vm403_vm9, %vm419_vm13  ;;  %vm483_vm14 = vcmp.ge.f32.partialorder %v6003_v38, -1.8  ;;  %vm499_vm2 = vcmp.lt.f32.partialorder %v6003_v38, -1.4  ;;  %vm563_vm3 = vcmp.ge.f32.partialorder %v6003_v38, -1.4  ;;  %4634 = vmatpush.msra.mxu3 %v4156_v16 }
  0xa5   :  { %4328 = vmatmul.f32.gmra.mxu2 %v3266_v14  ;;  %v6204_v25 = vadd.f32 %v1921_v3, %v1873_v21  ;;  %v4816_v41 = vsel %vm435_vm10, 1.0, %v8314_v51  ;;  %vm515_vm5 = vmand %vm483_vm14, %vm499_vm2  ;;  %vm579_vm0 = vcmp.lt.f32.partialorder %v6003_v38, -1.0  ;;  %vm643_vm6 = vcmp.ge.f32.partialorder %v6003_v38, -1.0 }
  0xa6   :  { %v3330_v7 = vmul.f32 %v3314_v48, %v6197_v5  ;;  %v4832_v20 = vsel %vm515_vm5, 1.0, %v8314_v51  ;;  %vm595_vm11 = vmand %vm563_vm3, %vm579_vm0  ;;  %vm659_vm1 = vcmp.lt.f32.partialorder %v6003_v38, -0.6  ;;  %v4992_v10 = vadd.f32 2.2, %v6003_v38 }
  0xa7   :  { %v2769_v44 = vmul.f32 %v2753_v17, %v6204_v25  ;;  %v4848_v19 = vsel %vm595_vm11, 1.0, %v8314_v51  ;;  %vm675_vm4 = vmand %vm643_vm6, %vm659_vm1  ;;  %v1331_v0 = vsub.f32 -1.4, %v6003_v38  ;;  %v5008_v26 = vadd.f32 1.8, %v6003_v38 }
  0xa8   :  { %v3346_v62 = vadd.f32 %v3330_v7, %v3298_v4  ;;  %v4864_v57 = vsel %vm675_vm4, 1.0, %v8314_v51  ;;  %v1299_v35 = vmul.f32 2.5, %v4992_v10  ;;  %v1443_v28 = vsub.f32 -1.0, %v6003_v38 }
  0xa9   :  { %v6219_v27 = vadd.f32 %v2769_v44, %v2737_v30  ;;  %v1347_v15 = vmul.f32 2.5, %v1331_v0  ;;  %v1411_v9 = vmul.f32 2.5, %v5008_v26  ;;  %v6222_v22 = vadd.f32 1.4, %v6003_v38 }
  0xaa   :  { %4393 = vmatmul.f32.gmra.mxu3 %v3346_v62  ;;  %v1315_v33 = vmul.f32 %v4816_v41, %v1299_v35  ;;  %v1459_v40 = vmul.f32 2.5, %v1443_v28  ;;  %v1555_v24 = vsub.f32 -0.6, %v6003_v38  ;;  %v2403_v34 = vmul.f32 1.25, %v4992_v10 }
  0xab   :  { %v3409_v42 = vmul.f32 %v3393_v2, %v6219_v27  ;;  %v1363_v43 = vmul.f32 %v4832_v20, %v1347_v15  ;;  %v1427_v46 = vmul.f32 %v4832_v20, %v1411_v9  ;;  %v1523_v18 = vmul.f32 2.5, %v6222_v22 }
  0xac   :  { %v1475_v6 = vmul.f32 %v4848_v19, %v1459_v40  ;;  %v1571_v48 = vmul.f32 2.5, %v1555_v24  ;;  %v2435_v52 = vmul.f32 1.25, %v1443_v28  ;;  %v2483_v55 = vmul.f32 1.25, %v5008_v26 }
  0xad   :  { %v3425_v53 = vadd.f32 %v3409_v42, %v3377_v29  ;;  %v1379_v49 = vadd.f32 %v1363_v43, %v1315_v33  ;;  %v1539_v30 = vmul.f32 %v4848_v19, %v1523_v18  ;;  %v2515_v39 = vmul.f32 1.25, %v1555_v24 }
  0xae   :  { %v1491_v50 = vadd.f32 %v1475_v6, %v1427_v46  ;;  %v1587_v63 = vmul.f32 %v4864_v57, %v1571_v48  ;;  %v3123_v4 = vmul.f32 0.8333333, %v4992_v10  ;;  %v3155_v37 = vmul.f32 0.8333333, %v1555_v24 }
  0xaf   :  { %4455 = vmatmul.f32.gmra.mxu0 %v3425_v53  ;;  %v2419_v60 = vmul.f32 %v2403_v34, %v1379_v49  ;;  %vm723_vm7 = vcmp.ge.f32.partialorder %v6003_v38, -0.6  ;;  %vm739_vm12 = vcmp.lt.f32.partialorder %v6003_v38, -0.2  ;;  %v6230_v54 = vadd.f32 1.0, %v6003_v38 }
  0xb0   :  { %v1603_v17 = vadd.f32 %v1587_v63, %v1539_v30  ;;  %v2451_v2 = vmul.f32 %v2435_v52, %v1491_v50  ;;  %v2499_v14 = vmul.f32 %v2483_v55, %v1491_v50  ;;  %vm755_vm15 = vmand %vm723_vm7, %vm739_vm12  ;;  %v1667_v29 = vsub.f32 -0.2, %v6003_v38 }
  0xb1   :  { %v4880_v21 = vsel %vm755_vm15, 1.0, %v8314_v51  ;;  %v1635_v3 = vmul.f32 2.5, %v6230_v54  ;;  %v2563_v41 = vmul.f32 1.25, %v6222_v22  ;;  %v3203_v7 = vmul.f32 0.8333333, %v5008_v26 }
  0xb2   :  { %v2467_v20 = vadd.f32 %v2451_v2, %v2419_v60  ;;  %v2531_v10 = vmul.f32 %v2515_v39, %v1603_v17  ;;  %v1683_v44 = vmul.f32 2.5, %v1667_v29  ;;  %v2595_v19 = vmul.f32 1.25, %v1667_v29 }
  0xb3   :  { %v1651_v0 = vmul.f32 %v4864_v57, %v1635_v3  ;;  %v2579_v62 = vmul.f32 %v2563_v41, %v1603_v17  ;;  %v3235_v35 = vmul.f32 0.8333333, %v1667_v29  ;;  %vm803_vm8 = vcmp.ge.f32.partialorder %v6003_v38, -0.2 }
  0xb4   :  { %v2547_v28 = vadd.f32 %v2531_v10, %v2499_v14  ;;  %v3139_v15 = vmul.f32 %v3123_v4, %v2467_v20  ;;  %v1699_v9 = vmul.f32 %v4880_v21, %v1683_v44  ;;  %vm819_vm9 = vcmp.lt.f32.partialorder %v6003_v38, 0.2  ;;  %v6263_v4 = vld [vmem:[#allocation3 + $0x20] sm:$0xff] }
  0xb5   :  { %vm835_vm13 = vmand %vm803_vm8, %vm819_vm9  ;;  %v6239_v33 = vadd.f32 0.6, %v6003_v38  ;;  %v1779_v26 = vsub.f32 0.2, %v6003_v38  ;;  %v2643_v40 = vmul.f32 1.25, %v6230_v54  ;;  %v2722_v24 = vmul.f32 1.25, %v6167_v36 }
  0xb6   :  { %v3171_v57 = vmul.f32 %v3155_v37, %v2547_v28  ;;  %v1715_v34 = vadd.f32 %v1699_v9, %v1651_v0  ;;  %v3219_v16 = vmul.f32 %v3203_v7, %v2547_v28  ;;  %v6245_v8 = vsel %vm835_vm13, 1.0, %v8314_v51  ;;  %v4139_v37 = vld [vmem:[#allocation6 + $0x358] sm:$0xff] }
  0xb7   :  { %8464 = vst [vmem:[#allocation12_spill] sm:$0xff] %v6239_v33  ;;  %v1747_v42 = vmul.f32 2.5, %v6239_v33  ;;  %v1795_v43 = vmul.f32 2.5, %v1779_v26  ;;  %v2675_v46 = vmul.f32 1.25, %v1779_v26  ;;  %v3283_v18 = vmul.f32 0.8333333, %v6222_v22  ;;  %4570 = vmatpush.msra.mxu2 %v4139_v37 }
  0xb8   :  { %v3187_v13 = vadd.f32 %v3171_v57, %v3139_v15  ;;  %v2611_v6 = vmul.f32 %v2595_v19, %v1715_v34  ;;  %v2659_v48 = vmul.f32 %v2643_v40, %v1715_v34  ;;  %v3315_v38 = vmul.f32 0.8333333, %v1779_v26 }
  0xb9   :  { %v1763_v52 = vmul.f32 %v4880_v21, %v1747_v42  ;;  %v1811_v55 = vmul.f32 %v6245_v8, %v1795_v43  ;;  %vm882_vm10 = vcmp.ge.f32.partialorder %v6129_v12, 0.2  ;;  %vm898_vm14 = vcmp.lt.f32.partialorder %v6129_v12, 0.6 }
  0xba   :  { %4266 = vmatmul.f32.gmra.mxu1 %v3187_v13  ;;  %v2627_v53 = vadd.f32 %v2611_v6, %v2579_v62  ;;  %vm914_vm2 = vmand %vm882_vm10, %vm898_vm14  ;;  %v6253_v49 = vadd.f32 0.2, %v6129_v12  ;;  %v1890_v30 = vsub.f32 0.6, %v6129_v12  ;;  %v2738_v22 = vmul.f32 %v2722_v24, %v6184_v32  ;;  %v4172_v13 = vld [vmem:[#allocation6 + $0x460] sm:$0xff] }
  0xbb   :  { %v6257_v39 = vadd.f32 %v1811_v55, %v1763_v52  ;;  %v6260_v50 = vsel %vm914_vm2, 1.0, %v8314_v51  ;;  %v3362_v63 = vmul.f32 0.8333333, %v6159_v58  ;;  %vm404_vm3 = vcmp.ge.f32.partialorder %v6263_v4, -2.2  ;;  %4699 = vmatpush.msra.mxu0 %v4172_v13  ;;  %v4123_v55 = vld [vmem:[#allocation6 + $0x2d8] sm:$0xff] }
  0xbc   :  { %v3251_v60 = vmul.f32 %v3235_v35, %v2627_v53  ;;  %v3299_v17 = vmul.f32 %v3283_v18, %v2627_v53  ;;  %v1858_v2 = vmul.f32 2.5, %v6253_v49  ;;  %v1906_v14 = vmul.f32 2.5, %v1890_v30  ;;  %v4155_v18 = vld [vmem:[#allocation6 + $0x3d8] sm:$0xff]  ;;  %4505 = vmatpush.msra.mxu1 %v4123_v55 }
  0xbd   :  { %v2691_v12 = vmul.f32 %v2675_v46, %v6257_v39  ;;  %v2754_v32 = vmul.f32 1.25, %v1890_v30  ;;  %v3378_v29 = vmul.f32 %v3362_v63, %v6197_v5  ;;  %v3394_v21 = vmul.f32 0.8333333, %v1890_v30  ;;  %4635 = vmatpush.msra.mxu3 %v4155_v18 }
  0xbe   :  { %v3267_v3 = vadd.f32 %v3251_v60, %v3219_v16  ;;  %v1874_v58 = vmul.f32 %v6173_v56, %v1858_v2  ;;  %v1922_v41 = vmul.f32 %v6260_v50, %v1906_v14  ;;  %vm420_vm5 = vcmp.lt.f32.partialorder %v6263_v4, -1.8 }
  0xbf   :  { %v6272_v7 = vadd.f32 %v2691_v12, %v2659_v48  ;;  %vm436_vm0 = vmand %vm404_vm3, %vm420_vm5  ;;  %vm484_vm6 = vcmp.ge.f32.partialorder %v6263_v4, -1.8  ;;  %vm500_vm11 = vcmp.lt.f32.partialorder %v6263_v4, -1.4  ;;  %vm564_vm1 = vcmp.ge.f32.partialorder %v6263_v4, -1.4 }
  0xc0   :  { %4331 = vmatmul.f32.gmra.mxu2 %v3267_v3  ;;  %v6279_v5 = vadd.f32 %v1922_v41, %v1874_v58  ;;  %v4817_v56 = vsel %vm436_vm0, 1.0, %v8314_v51  ;;  %vm516_vm4 = vmand %vm484_vm6, %vm500_vm11  ;;  %vm580_vm7 = vcmp.lt.f32.partialorder %v6263_v4, -1.0  ;;  %vm644_vm12 = vcmp.ge.f32.partialorder %v6263_v4, -1.0 }
  0xc1   :  { %v3331_v20 = vmul.f32 %v3315_v38, %v6272_v7  ;;  %v4833_v10 = vsel %vm516_vm4, 1.0, %v8314_v51  ;;  %vm596_vm15 = vmand %vm564_vm1, %vm580_vm7  ;;  %vm660_vm8 = vcmp.lt.f32.partialorder %v6263_v4, -0.6  ;;  %v4993_v44 = vadd.f32 2.2, %v6263_v4 }
  0xc2   :  { %v2770_v19 = vmul.f32 %v2754_v32, %v6279_v5  ;;  %v4849_v0 = vsel %vm596_vm15, 1.0, %v8314_v51  ;;  %vm676_vm9 = vmand %vm644_vm12, %vm660_vm8  ;;  %v1332_v62 = vsub.f32 -1.4, %v6263_v4  ;;  %v5009_v35 = vadd.f32 1.8, %v6263_v4 }
  0xc3   :  { %v3347_v28 = vadd.f32 %v3331_v20, %v3299_v17  ;;  %v4865_v15 = vsel %vm676_vm9, 1.0, %v8314_v51  ;;  %v1300_v9 = vmul.f32 2.5, %v4993_v44  ;;  %v1444_v26 = vsub.f32 -1.0, %v6263_v4 }
  0xc4   :  { %v6294_v40 = vadd.f32 %v2770_v19, %v2738_v22  ;;  %v1348_v24 = vmul.f32 2.5, %v1332_v62  ;;  %v1412_v57 = vmul.f32 2.5, %v5009_v35  ;;  %v6297_v34 = vadd.f32 1.4, %v6263_v4 }
  0xc5   :  { %4396 = vmatmul.f32.gmra.mxu3 %v3347_v28  ;;  %v1316_v16 = vmul.f32 %v4817_v56, %v1300_v9  ;;  %v1460_v42 = vmul.f32 2.5, %v1444_v26  ;;  %v1556_v43 = vsub.f32 -0.6, %v6263_v4  ;;  %v2404_v46 = vmul.f32 1.25, %v4993_v44 }
  0xc6   :  { %v3410_v6 = vmul.f32 %v3394_v21, %v6294_v40  ;;  %v1364_v48 = vmul.f32 %v4833_v10, %v1348_v24  ;;  %v1428_v38 = vmul.f32 %v4833_v10, %v1412_v57  ;;  %v1524_v52 = vmul.f32 2.5, %v6297_v34 }
  0xc7   :  { %v1476_v53 = vmul.f32 %v4849_v0, %v1460_v42  ;;  %v1572_v30 = vmul.f32 2.5, %v1556_v43  ;;  %v2436_v22 = vmul.f32 1.25, %v1444_v26  ;;  %v2484_v63 = vmul.f32 1.25, %v5009_v35 }
  0xc8   :  { %v3426_v37 = vadd.f32 %v3410_v6, %v3378_v29  ;;  %v1380_v60 = vadd.f32 %v1364_v48, %v1316_v16  ;;  %v1540_v17 = vmul.f32 %v4849_v0, %v1524_v52  ;;  %v2516_v2 = vmul.f32 1.25, %v1556_v43 }
  0xc9   :  { %v1492_v14 = vadd.f32 %v1476_v53, %v1428_v38  ;;  %v1588_v12 = vmul.f32 %v4865_v15, %v1572_v30  ;;  %v3124_v32 = vmul.f32 0.8333333, %v4993_v44  ;;  %v3156_v21 = vmul.f32 0.8333333, %v1556_v43 }
  0xca   :  { %4458 = vmatmul.f32.gmra.mxu0 %v3426_v37  ;;  %v2420_v3 = vmul.f32 %v2404_v46, %v1380_v60  ;;  %vm724_vm13 = vcmp.ge.f32.partialorder %v6263_v4, -0.6  ;;  %vm740_vm10 = vcmp.lt.f32.partialorder %v6263_v4, -0.2  ;;  %v6305_v58 = vadd.f32 1.0, %v6263_v4 }
  0xcb   :  { %v1604_v41 = vadd.f32 %v1588_v12, %v1540_v17  ;;  %v2452_v56 = vmul.f32 %v2436_v22, %v1492_v14  ;;  %v2500_v20 = vmul.f32 %v2484_v63, %v1492_v14  ;;  %vm756_vm14 = vmand %vm724_vm13, %vm740_vm10  ;;  %v1668_v29 = vsub.f32 -0.2, %v6263_v4  ;;  %v5271_v12 = vld [vmem:[#allocation3 + $0x18] sm:$0xff] }
  0xcc   :  { %v4881_v10 = vsel %vm756_vm14, 1.0, %v8314_v51  ;;  %v1636_v44 = vmul.f32 2.5, %v6305_v58  ;;  %v2564_v19 = vmul.f32 1.25, %v6297_v34  ;;  %v3204_v0 = vmul.f32 0.8333333, %v5009_v35 }
  0xcd   :  { %v2468_v62 = vadd.f32 %v2452_v56, %v2420_v3  ;;  %v2532_v28 = vmul.f32 %v2516_v2, %v1604_v41  ;;  %v1684_v9 = vmul.f32 2.5, %v1668_v29  ;;  %v2596_v26 = vmul.f32 1.25, %v1668_v29 }
  0xce   :  { %v1652_v24 = vmul.f32 %v4865_v15, %v1636_v44  ;;  %v2580_v57 = vmul.f32 %v2564_v19, %v1604_v41  ;;  %v3236_v16 = vmul.f32 0.8333333, %v1668_v29  ;;  %vm804_vm2 = vcmp.ge.f32.partialorder %v6263_v4, -0.2  ;;  %v6334_v29 = vld [vmem:[#allocation3 + $0x28] sm:$0xff] }
  0xcf   :  { %v2548_v42 = vadd.f32 %v2532_v28, %v2500_v20  ;;  %v3140_v43 = vmul.f32 %v3124_v32, %v2468_v62  ;;  %v1700_v46 = vmul.f32 %v4881_v10, %v1684_v9  ;;  %vm820_vm3 = vcmp.lt.f32.partialorder %v6263_v4, 0.2 }
  0xd0   :  { %vm836_vm5 = vmand %vm804_vm2, %vm820_vm3  ;;  %v6314_v18 = vadd.f32 0.6, %v6263_v4  ;;  %v1780_v35 = vsub.f32 0.2, %v6263_v4  ;;  %v2644_v13 = vmul.f32 1.25, %v6305_v58  ;;  %v2723_v6 = vmul.f32 1.25, %v6239_v33 }
  0xd1   :  { %v3172_v15 = vmul.f32 %v3156_v21, %v2548_v42  ;;  %v1716_v48 = vadd.f32 %v1700_v46, %v1652_v24  ;;  %v3220_v38 = vmul.f32 %v3204_v0, %v2548_v42  ;;  %v6320_v52 = vsel %vm836_vm5, 1.0, %v8314_v51  ;;  %v5281_v33 = vld [vmem:[#allocation3 + $0x20] sm:$0xff] }
  0xd2   :  { %8465 = vst [vmem:[#allocation13_spill] sm:$0xff] %v6314_v18  ;;  %v1748_v55 = vmul.f32 2.5, %v6314_v18  ;;  %v1796_v53 = vmul.f32 2.5, %v1780_v35  ;;  %v2676_v30 = vmul.f32 1.25, %v1780_v35  ;;  %v3284_v22 = vmul.f32 0.8333333, %v6297_v34 }
  0xd3   :  { %v3188_v63 = vadd.f32 %v3172_v15, %v3140_v43  ;;  %v2612_v37 = vmul.f32 %v2596_v26, %v1716_v48  ;;  %v2660_v60 = vmul.f32 %v2644_v13, %v1716_v48  ;;  %v3316_v17 = vmul.f32 0.8333333, %v1780_v35 }
  0xd4   :  { %v1764_v2 = vmul.f32 %v4881_v10, %v1748_v55  ;;  %v1812_v14 = vmul.f32 %v6320_v52, %v1796_v53  ;;  %vm883_vm0 = vcmp.ge.f32.partialorder %v5271_v12, 0.2  ;;  %vm899_vm6 = vcmp.lt.f32.partialorder %v5271_v12, 0.6  ;;  %v4138_v10 = vld [vmem:[#allocation6 + $0x350] sm:$0xff] }
  0xd5   :  { %4269 = vmatmul.f32.gmra.mxu1 %v3188_v63  ;;  %v2628_v32 = vadd.f32 %v2612_v37, %v2580_v57  ;;  %vm915_vm11 = vmand %vm883_vm0, %vm899_vm6  ;;  %v6325_v21 = vadd.f32 0.2, %v5271_v12  ;;  %v1891_v3 = vsub.f32 0.6, %v5271_v12  ;;  %v2739_v41 = vmul.f32 %v2723_v6, %v6257_v39  ;;  %4571 = vmatpush.msra.mxu2 %v4138_v10  ;;  %v4154_v12 = vld [vmem:[#allocation6 + $0x3d0] sm:$0xff] }
  0xd6   :  { %v6328_v56 = vadd.f32 %v1812_v14, %v1764_v2  ;;  %v6331_v34 = vsel %vm915_vm11, 1.0, %v8314_v51  ;;  %v3363_v20 = vmul.f32 0.8333333, %v6230_v54  ;;  %vm405_vm1 = vcmp.ge.f32.partialorder %v6334_v29, -2.2  ;;  %4636 = vmatpush.msra.mxu3 %v4154_v12 }
  0xd7   :  { %8466 = vst [vmem:[#allocation14_spill] sm:$0xff] %v6325_v21  ;;  %v3252_v44 = vmul.f32 %v3236_v16, %v2628_v32  ;;  %v3300_v19 = vmul.f32 %v3284_v22, %v2628_v32  ;;  %v1859_v0 = vmul.f32 2.5, %v6325_v21  ;;  %v1907_v62 = vmul.f32 2.5, %v1891_v3  ;;  %v4171_v32 = vld [vmem:[#allocation6 + $0x458] sm:$0xff] }
  0xd8   :  { %8467 = vst [vmem:[#allocation15_spill] sm:$0xff] %v6331_v34  ;;  %v2692_v39 = vmul.f32 %v2676_v30, %v6328_v56  ;;  %v2755_v28 = vmul.f32 1.25, %v1891_v3  ;;  %v3379_v9 = vmul.f32 %v3363_v20, %v6272_v7  ;;  %v3395_v26 = vmul.f32 0.8333333, %v1891_v3  ;;  %4700 = vmatpush.msra.mxu0 %v4171_v32 }
  0xd9   :  { %v3268_v24 = vadd.f32 %v3252_v44, %v3220_v38  ;;  %v1875_v54 = vmul.f32 %v6245_v8, %v1859_v0  ;;  %v1923_v57 = vmul.f32 %v6331_v34, %v1907_v62  ;;  %vm421_vm4 = vcmp.lt.f32.partialorder %v6334_v29, -1.8  ;;  %v4122_v44 = vld [vmem:[#allocation6 + $0x2d0] sm:$0xff] }
  0xda   :  { %v6343_v42 = vadd.f32 %v2692_v39, %v2660_v60  ;;  %vm437_vm7 = vmand %vm405_vm1, %vm421_vm4  ;;  %vm485_vm12 = vcmp.ge.f32.partialorder %v6334_v29, -1.8  ;;  %vm501_vm15 = vcmp.lt.f32.partialorder %v6334_v29, -1.4  ;;  %vm565_vm8 = vcmp.ge.f32.partialorder %v6334_v29, -1.4  ;;  %4506 = vmatpush.msra.mxu1 %v4122_v44 }
  0xdb   :  { %4334 = vmatmul.f32.gmra.mxu2 %v3268_v24  ;;  %v6350_v7 = vadd.f32 %v1923_v57, %v1875_v54  ;;  %v4818_v8 = vsel %vm437_vm7, 1.0, %v8314_v51  ;;  %vm517_vm9 = vmand %vm485_vm12, %vm501_vm15  ;;  %vm581_vm13 = vcmp.lt.f32.partialorder %v6334_v29, -1.0  ;;  %vm645_vm10 = vcmp.ge.f32.partialorder %v6334_v29, -1.0 }
  0xdc   :  { %v3332_v16 = vmul.f32 %v3316_v17, %v6343_v42  ;;  %v4834_v43 = vsel %vm517_vm9, 1.0, %v8314_v51  ;;  %vm597_vm14 = vmand %vm565_vm8, %vm581_vm13  ;;  %vm661_vm2 = vcmp.lt.f32.partialorder %v6334_v29, -0.6  ;;  %v4994_v46 = vadd.f32 2.2, %v6334_v29 }
  0xdd   :  { %8468 = vst [vmem:[#allocation16_spill] sm:$0xff] %v6350_v7  ;;  %v2771_v35 = vmul.f32 %v2755_v28, %v6350_v7  ;;  %v4850_v13 = vsel %vm597_vm14, 1.0, %v8314_v51  ;;  %vm677_vm3 = vmand %vm645_vm10, %vm661_vm2  ;;  %v1333_v6 = vsub.f32 -1.4, %v6334_v29  ;;  %v5010_v15 = vadd.f32 1.8, %v6334_v29 }
  0xde   :  { %v3348_v48 = vadd.f32 %v3332_v16, %v3300_v19  ;;  %v4866_v38 = vsel %vm677_vm3, 1.0, %v8314_v51  ;;  %v1301_v55 = vmul.f32 2.5, %v4994_v46  ;;  %v1445_v53 = vsub.f32 -1.0, %v6334_v29 }
  0xdf   :  { %v6365_v30 = vadd.f32 %v2771_v35, %v2739_v41  ;;  %v1349_v22 = vmul.f32 2.5, %v1333_v6  ;;  %v1413_v63 = vmul.f32 2.5, %v5010_v15  ;;  %v6368_v37 = vadd.f32 1.4, %v6334_v29 }
  0xe0   :  { %4399 = vmatmul.f32.gmra.mxu3 %v3348_v48  ;;  %v1317_v60 = vmul.f32 %v4818_v8, %v1301_v55  ;;  %v1461_v17 = vmul.f32 2.5, %v1445_v53  ;;  %v1557_v2 = vsub.f32 -0.6, %v6334_v29  ;;  %v2405_v14 = vmul.f32 1.25, %v4994_v46 }
  0xe1   :  { %8469 = vst [vmem:[#allocation17_spill] sm:$0xff] %v6365_v30  ;;  %v3411_v3 = vmul.f32 %v3395_v26, %v6365_v30  ;;  %v1365_v20 = vmul.f32 %v4834_v43, %v1349_v22  ;;  %v1429_v10 = vmul.f32 %v4834_v43, %v1413_v63  ;;  %v1525_v41 = vmul.f32 2.5, %v6368_v37 }
  0xe2   :  { %v1477_v19 = vmul.f32 %v4850_v13, %v1461_v17  ;;  %v1573_v0 = vmul.f32 2.5, %v1557_v2  ;;  %v2437_v62 = vmul.f32 1.25, %v1445_v53  ;;  %v2485_v39 = vmul.f32 1.25, %v5010_v15 }
  0xe3   :  { %v3427_v28 = vadd.f32 %v3411_v3, %v3379_v9  ;;  %v1381_v24 = vadd.f32 %v1365_v20, %v1317_v60  ;;  %v1541_v54 = vmul.f32 %v4850_v13, %v1525_v41  ;;  %v2517_v16 = vmul.f32 1.25, %v1557_v2 }
  0xe4   :  { %v1493_v57 = vadd.f32 %v1477_v19, %v1429_v10  ;;  %v1589_v8 = vmul.f32 %v4866_v38, %v1573_v0  ;;  %v3125_v35 = vmul.f32 0.8333333, %v4994_v46  ;;  %vm725_vm5 = vcmp.ge.f32.partialorder %v6334_v29, -0.6 }
  0xe5   :  { %4461 = vmatmul.f32.gmra.mxu0 %v3427_v28  ;;  %v2421_v26 = vmul.f32 %v2405_v14, %v1381_v24  ;;  %vm741_vm0 = vcmp.lt.f32.partialorder %v6334_v29, -0.2  ;;  %v6376_v43 = vadd.f32 1.0, %v6334_v29  ;;  %v1669_v9 = vsub.f32 -0.2, %v6334_v29 }
  0xe6   :  { %v1605_v6 = vadd.f32 %v1589_v8, %v1541_v54  ;;  %v2453_v48 = vmul.f32 %v2437_v62, %v1493_v57  ;;  %v2501_v55 = vmul.f32 %v2485_v39, %v1493_v57  ;;  %vm757_vm6 = vmand %vm725_vm5, %vm741_vm0  ;;  %v2565_v46 = vmul.f32 1.25, %v6368_v37 }
  0xe7   :  { %v4882_v13 = vsel %vm757_vm6, 1.0, %v8314_v51  ;;  %v1637_v53 = vmul.f32 2.5, %v6376_v43  ;;  %v3157_v60 = vmul.f32 0.8333333, %v1557_v2  ;;  %v1685_v17 = vmul.f32 2.5, %v1669_v9 }
  0xe8   :  { %v2469_v22 = vadd.f32 %v2453_v48, %v2421_v26  ;;  %v2533_v63 = vmul.f32 %v2517_v16, %v1605_v6  ;;  %v2597_v12 = vmul.f32 1.25, %v1669_v9  ;;  %vm805_vm11 = vcmp.ge.f32.partialorder %v6334_v29, -0.2 }
  0xe9   :  { %v1653_v14 = vmul.f32 %v4866_v38, %v1637_v53  ;;  %v1701_v20 = vmul.f32 %v4882_v13, %v1685_v17  ;;  %vm821_vm1 = vcmp.lt.f32.partialorder %v6334_v29, 0.2  ;;  %v2581_v10 = vmul.f32 %v2565_v46, %v1605_v6 }
  0xea   :  { %v2549_v32 = vadd.f32 %v2533_v63, %v2501_v55  ;;  %v3141_v3 = vmul.f32 %v3125_v35, %v2469_v22  ;;  %v3205_v41 = vmul.f32 0.8333333, %v5010_v15  ;;  %vm837_vm4 = vmand %vm805_vm11, %vm821_vm1  ;;  %v6385_v44 = vadd.f32 0.6, %v6334_v29 }
  0xeb   :  { %v1781_v19 = vsub.f32 0.2, %v6334_v29  ;;  %v1717_v2 = vadd.f32 %v1701_v20, %v1653_v14  ;;  %v3237_v62 = vmul.f32 0.8333333, %v1669_v9  ;;  %v6389_v38 = vsel %vm837_vm4, 1.0, %v8314_v51  ;;  %v4137_v14 = vld [vmem:[#allocation6 + $0x348] sm:$0xff] }
  0xec   :  { %8470 = vst [vmem:[#allocation18_spill] sm:$0xff] %v6385_v44  ;;  %v3173_v0 = vmul.f32 %v3157_v60, %v2549_v32  ;;  %v1749_v39 = vmul.f32 2.5, %v6385_v44  ;;  %v2645_v24 = vmul.f32 1.25, %v6376_v43  ;;  %v2724_v54 = vmul.f32 1.25, %v6314_v18  ;;  %4572 = vmatpush.msra.mxu2 %v4137_v14  ;;  %v4170_v14 = vld [vmem:[#allocation6 + $0x450] sm:$0xff] }
  0xed   :  { %v1797_v28 = vmul.f32 2.5, %v1781_v19  ;;  %v2613_v57 = vmul.f32 %v2597_v12, %v1717_v2  ;;  %v2677_v8 = vmul.f32 1.25, %v1781_v19  ;;  %v3285_v16 = vmul.f32 0.8333333, %v6368_v37  ;;  %4701 = vmatpush.msra.mxu0 %v4170_v14 }
  0xee   :  { %v3189_v15 = vadd.f32 %v3173_v0, %v3141_v3  ;;  %v1765_v35 = vmul.f32 %v4882_v13, %v1749_v39  ;;  %vm884_vm7 = vcmp.ge.f32.partialorder %v6263_v4, 0.2  ;;  %vm900_vm12 = vcmp.lt.f32.partialorder %v6263_v4, 0.6 }
  0xef   :  { %v1813_v26 = vmul.f32 %v6389_v38, %v1797_v28  ;;  %v2629_v6 = vadd.f32 %v2613_v57, %v2581_v10  ;;  %v3221_v48 = vmul.f32 %v3205_v41, %v2549_v32  ;;  %vm916_vm15 = vmand %vm884_vm7, %vm900_vm12  ;;  %v6399_v55 = vadd.f32 0.2, %v6263_v4 }
  0xf0   :  { %4272 = vmatmul.f32.gmra.mxu1 %v3189_v15  ;;  %v1892_v9 = vsub.f32 0.6, %v6263_v4  ;;  %v2661_v46 = vmul.f32 %v2645_v24, %v1717_v2  ;;  %v6405_v37 = vsel %vm916_vm15, 1.0, %v8314_v51  ;;  %v3364_v13 = vmul.f32 0.8333333, %v6305_v58  ;;  %v6416_v2 = vld [vmem:[#allocation3 + $0x30] sm:$0xff] }
  0xf1   :  { %8471 = vst [vmem:[#allocation19_spill] sm:$0xff] %v6399_v55  ;;  %v6402_v53 = vadd.f32 %v1813_v26, %v1765_v35  ;;  %v3253_v22 = vmul.f32 %v3237_v62, %v2629_v6  ;;  %v3317_v63 = vmul.f32 0.8333333, %v1781_v19  ;;  %v1860_v60 = vmul.f32 2.5, %v6399_v55 }
  0xf2   :  { %v1908_v17 = vmul.f32 2.5, %v1892_v9  ;;  %v3301_v32 = vmul.f32 %v3285_v16, %v2629_v6  ;;  %v2740_v3 = vmul.f32 %v2724_v54, %v6328_v56  ;;  %v2756_v4 = vmul.f32 1.25, %v1892_v9 }
  0xf3   :  { %v2693_v12 = vmul.f32 %v2677_v8, %v6402_v53  ;;  %v3269_v20 = vadd.f32 %v3253_v22, %v3221_v48  ;;  %v1876_v10 = vmul.f32 %v6320_v52, %v1860_v60  ;;  %v3380_v58 = vmul.f32 %v3364_v13, %v6343_v42 }
  0xf4   :  { %v1924_v41 = vmul.f32 %v6405_v37, %v1908_v17  ;;  %v3396_v19 = vmul.f32 0.8333333, %v1892_v9  ;;  %vm406_vm8 = vcmp.ge.f32.partialorder %v6416_v2, -2.2  ;;  %vm422_vm9 = vcmp.lt.f32.partialorder %v6416_v2, -1.8 }
  0xf5   :  { %v6414_v0 = vadd.f32 %v2693_v12, %v2661_v46  ;;  %4337 = vmatmul.f32.gmra.mxu2 %v3269_v20  ;;  %vm438_vm13 = vmand %vm406_vm8, %vm422_vm9  ;;  %vm486_vm10 = vcmp.ge.f32.partialorder %v6416_v2, -1.8  ;;  %vm502_vm14 = vcmp.lt.f32.partialorder %v6416_v2, -1.4  ;;  %vm566_vm2 = vcmp.ge.f32.partialorder %v6416_v2, -1.4 }
  0xf6   :  { %v6420_v56 = vadd.f32 %v1924_v41, %v1876_v10  ;;  %v4819_v42 = vsel %vm438_vm13, 1.0, %v8314_v51  ;;  %vm518_vm3 = vmand %vm486_vm10, %vm502_vm14  ;;  %vm582_vm5 = vcmp.lt.f32.partialorder %v6416_v2, -1.0  ;;  %vm646_vm0 = vcmp.ge.f32.partialorder %v6416_v2, -1.0  ;;  %v4153_v17 = vld [vmem:[#allocation6 + $0x3c8] sm:$0xff] }
  0xf7   :  { %v3333_v52 = vmul.f32 %v3317_v63, %v6414_v0  ;;  %v4835_v39 = vsel %vm518_vm3, 1.0, %v8314_v51  ;;  %vm598_vm6 = vmand %vm566_vm2, %vm582_vm5  ;;  %vm662_vm11 = vcmp.lt.f32.partialorder %v6416_v2, -0.6  ;;  %v4995_v28 = vadd.f32 2.2, %v6416_v2  ;;  %v4121_v12 = vld [vmem:[#allocation6 + $0x2c8] sm:$0xff]  ;;  %4637 = vmatpush.msra.mxu3 %v4153_v17 }
  0xf8   :  { %8472 = vst [vmem:[#allocation20_spill] sm:$0xff] %v6420_v56  ;;  %v2772_v62 = vmul.f32 %v2756_v4, %v6420_v56  ;;  %v4851_v54 = vsel %vm598_vm6, 1.0, %v8314_v51  ;;  %vm678_vm1 = vmand %vm646_vm0, %vm662_vm11  ;;  %v1334_v15 = vsub.f32 -1.4, %v6416_v2  ;;  %v5011_v57 = vadd.f32 1.8, %v6416_v2  ;;  %4507 = vmatpush.msra.mxu1 %v4121_v12 }
  0xf9   :  { %v3349_v24 = vadd.f32 %v3333_v52, %v3301_v32  ;;  %v4867_v16 = vsel %vm678_vm1, 1.0, %v8314_v51  ;;  %v1302_v35 = vmul.f32 2.5, %v4995_v28  ;;  %v1446_v26 = vsub.f32 -1.0, %v6416_v2 }
  0xfa   :  { %v6436_v8 = vadd.f32 %v2772_v62, %v2740_v3  ;;  %v1350_v6 = vmul.f32 2.5, %v1334_v15  ;;  %v1414_v48 = vmul.f32 2.5, %v5011_v57  ;;  %v6441_v9 = vadd.f32 1.4, %v6416_v2 }
  0xfb   :  { %4402 = vmatmul.f32.gmra.mxu3 %v3349_v24  ;;  %v1558_v46 = vsub.f32 -0.6, %v6416_v2  ;;  %v1318_v22 = vmul.f32 %v4819_v42, %v1302_v35  ;;  %v1462_v63 = vmul.f32 2.5, %v1446_v26  ;;  %v2406_v60 = vmul.f32 1.25, %v4995_v28 }
  0xfc   :  { %8473 = vst [vmem:[#allocation21_spill] sm:$0xff] %v6436_v8  ;;  %v3412_v13 = vmul.f32 %v3396_v19, %v6436_v8  ;;  %v1366_v32 = vmul.f32 %v4835_v39, %v1350_v6  ;;  %v1430_v3 = vmul.f32 %v4835_v39, %v1414_v48  ;;  %v1526_v4 = vmul.f32 2.5, %v6441_v9 }
  0xfd   :  { %v1574_v20 = vmul.f32 2.5, %v1558_v46  ;;  %v1478_v41 = vmul.f32 %v4851_v54, %v1462_v63  ;;  %v2438_v52 = vmul.f32 1.25, %v1446_v26  ;;  %v2486_v62 = vmul.f32 1.25, %v5011_v57 }
  0xfe   :  { %v3428_v10 = vadd.f32 %v3412_v13, %v3380_v58  ;;  %v1382_v24 = vadd.f32 %v1366_v32, %v1318_v22  ;;  %v1542_v19 = vmul.f32 %v4851_v54, %v1526_v4  ;;  %v2518_v15 = vmul.f32 1.25, %v1558_v46 }
  0xff   :  { %v1590_v42 = vmul.f32 %v4867_v16, %v1574_v20  ;;  %v1494_v35 = vadd.f32 %v1478_v41, %v1430_v3  ;;  %v3126_v51 = vmul.f32 0.8333333, %v4995_v28  ;;  %vm726_vm4 = vcmp.ge.f32.partialorder %v6416_v2, -0.6 }
 0x100   :  { %4464 = vmatmul.f32.gmra.mxu0 %v3428_v10  ;;  %v2422_v6 = vmul.f32 %v2406_v60, %v1382_v24  ;;  %vm742_vm7 = vcmp.lt.f32.partialorder %v6416_v2, -0.2  ;;  %v6449_v48 = vadd.f32 1.0, %v6416_v2  ;;  %v3158_v13 = vmul.f32 0.8333333, %v1558_v46 }
 0x101   :  { %v1606_v39 = vadd.f32 %v1590_v42, %v1542_v19  ;;  %v2454_v58 = vmul.f32 %v2438_v52, %v1494_v35  ;;  %v2502_v26 = vmul.f32 %v2486_v62, %v1494_v35  ;;  %vm758_vm12 = vmand %vm726_vm4, %vm742_vm7  ;;  %v1670_v54 = vsub.f32 -0.2, %v6416_v2 }
 0x102   :  { %v8474_v63 = vmov 0.0   ;;  %v1638_v28 = vmul.f32 2.5, %v6449_v48  ;;  %v2566_v14 = vmul.f32 1.25, %v6441_v9  ;;  %v3206_v32 = vmul.f32 0.8333333, %v5011_v57 }
 0x103   :  { %v2534_v22 = vmul.f32 %v2518_v15, %v1606_v39  ;;  %v4883_v17 = vsel %vm758_vm12, 1.0, %v8474_v63  ;;  %v2470_v12 = vadd.f32 %v2454_v58, %v2422_v6  ;;  %v1686_v60 = vmul.f32 2.5, %v1670_v54 }
 0x104   :  { %v1654_v4 = vmul.f32 %v4867_v16, %v1638_v28  ;;  %v2598_v20 = vmul.f32 1.25, %v1670_v54  ;;  %vm806_vm15 = vcmp.ge.f32.partialorder %v6416_v2, -0.2  ;;  %vm822_vm8 = vcmp.lt.f32.partialorder %v6416_v2, 0.2 }
 0x105   :  { %v2550_v3 = vadd.f32 %v2534_v22, %v2502_v26  ;;  %v3142_v10 = vmul.f32 %v3126_v51, %v2470_v12  ;;  %v1702_v46 = vmul.f32 %v4883_v17, %v1686_v60  ;;  %v6458_v41 = vadd.f32 0.6, %v6416_v2  ;;  %vm838_vm9 = vmand %vm806_vm15, %vm822_vm8 }
 0x106   :  { %v2582_v62 = vmul.f32 %v2566_v14, %v1606_v39  ;;  %v1782_v24 = vsub.f32 0.2, %v6416_v2  ;;  %v6462_v57 = vsel %vm838_vm9, 1.0, %v8474_v63  ;;  %v2646_v42 = vmul.f32 1.25, %v6449_v48 }
 0x107   :  { %8475 = vst [vmem:[#allocation22_spill] sm:$0xff] %v6458_v41  ;;  %v3174_v52 = vmul.f32 %v3158_v13, %v2550_v3  ;;  %v1718_v19 = vadd.f32 %v1702_v46, %v1654_v4  ;;  %v1750_v16 = vmul.f32 2.5, %v6458_v41  ;;  %v3222_v15 = vmul.f32 %v3206_v32, %v2550_v3 }
 0x108   :  { %v3238_v35 = vmul.f32 0.8333333, %v1670_v54  ;;  %v1798_v6 = vmul.f32 2.5, %v1782_v24  ;;  %v2678_v22 = vmul.f32 1.25, %v1782_v24  ;;  %vm885_vm13 = vcmp.ge.f32.partialorder %v6334_v29, 0.2 }
 0x109   :  { %v3190_v51 = vadd.f32 %v3174_v52, %v3142_v10  ;;  %v2614_v58 = vmul.f32 %v2598_v20, %v1718_v19  ;;  %v1766_v26 = vmul.f32 %v4883_v17, %v1750_v16  ;;  %vm901_vm10 = vcmp.lt.f32.partialorder %v6334_v29, 0.6 }
 0x10a   :  { %v1814_v39 = vmul.f32 %v6462_v57, %v1798_v6  ;;  %v6470_v13 = vadd.f32 0.2, %v6334_v29  ;;  %v1893_v28 = vsub.f32 0.6, %v6334_v29  ;;  %v2662_v12 = vmul.f32 %v2646_v42, %v1718_v19  ;;  %vm917_vm14 = vmand %vm885_vm13, %vm901_vm10  ;;  %v4136_v29 = vld [vmem:[#allocation6 + $0x340] sm:$0xff] }
 0x10b   :  { %4275 = vmatmul.f32.gmra.mxu1 %v3190_v51  ;;  %v2630_v14 = vadd.f32 %v2614_v58, %v2582_v62  ;;  %v3286_v54 = vmul.f32 0.8333333, %v6441_v9  ;;  %v2725_v17 = vmul.f32 1.25, %v6385_v44  ;;  %v6478_v32 = vsel %vm917_vm14, 1.0, %v8474_v63  ;;  %4573 = vmatpush.msra.mxu2 %v4136_v29  ;;  %v4152_v29 = vld [vmem:[#allocation6 + $0x3c0] sm:$0xff] }
 0x10c   :  { %8476 = vst [vmem:[#allocation23_spill] sm:$0xff] %v6470_v13  ;;  %v6475_v60 = vadd.f32 %v1814_v39, %v1766_v26  ;;  %v1861_v3 = vmul.f32 2.5, %v6470_v13  ;;  %v1909_v4 = vmul.f32 2.5, %v1893_v28  ;;  %v3318_v10 = vmul.f32 0.8333333, %v1782_v24  ;;  %v6490_v24 = vld [vmem:[#allocation3 + $0x38] sm:$0xff]  ;;  %4638 = vmatpush.msra.mxu3 %v4152_v29 }
 0x10d   :  { %v3254_v20 = vmul.f32 %v3238_v35, %v2630_v14  ;;  %v3365_v46 = vmul.f32 0.8333333, %v6376_v43  ;;  %v2757_v19 = vmul.f32 1.25, %v1893_v28  ;;  %v3302_v42 = vmul.f32 %v3286_v54, %v2630_v14 }
 0x10e   :  { %v2694_v52 = vmul.f32 %v2678_v22, %v6475_v60  ;;  %v1877_v9 = vmul.f32 %v6389_v38, %v1861_v3  ;;  %v1925_v62 = vmul.f32 %v6478_v32, %v1909_v4  ;;  %v2741_v51 = vmul.f32 %v2725_v17, %v6402_v53 }
 0x10f   :  { %v3270_v16 = vadd.f32 %v3254_v20, %v3222_v15  ;;  %v3397_v6 = vmul.f32 0.8333333, %v1893_v28  ;;  %vm407_vm2 = vcmp.ge.f32.partialorder %v6490_v24, -2.2  ;;  %vm423_vm3 = vcmp.lt.f32.partialorder %v6490_v24, -1.8 }
 0x110   :  { %v6486_v58 = vadd.f32 %v2694_v52, %v2662_v12  ;;  %v6488_v35 = vadd.f32 %v1925_v62, %v1877_v9  ;;  %v3381_v43 = vmul.f32 %v3365_v46, %v6414_v0  ;;  %vm439_vm5 = vmand %vm407_vm2, %vm423_vm3  ;;  %vm487_vm0 = vcmp.ge.f32.partialorder %v6490_v24, -1.8 }
 0x111   :  { %4340 = vmatmul.f32.gmra.mxu2 %v3270_v16  ;;  %vm503_vm6 = vcmp.lt.f32.partialorder %v6490_v24, -1.4  ;;  %vm567_vm11 = vcmp.ge.f32.partialorder %v6490_v24, -1.4  ;;  %v4820_v15 = vsel %vm439_vm5, 1.0, %v8474_v63  ;;  %vm583_vm4 = vcmp.lt.f32.partialorder %v6490_v24, -1.0 }
 0x112   :  { %8477 = vst [vmem:[#allocation24_spill] sm:$0xff] %v6488_v35  ;;  %v3334_v38 = vmul.f32 %v3318_v10, %v6486_v58  ;;  %v2773_v53 = vmul.f32 %v2757_v19, %v6488_v35  ;;  %vm519_vm1 = vmand %vm487_vm0, %vm503_vm6  ;;  %vm647_vm12 = vcmp.ge.f32.partialorder %v6490_v24, -1.0  ;;  %vm663_vm15 = vcmp.lt.f32.partialorder %v6490_v24, -0.6  ;;  %v4169_v16 = vld [vmem:[#allocation6 + $0x448] sm:$0xff] }
 0x113   :  { %v4836_v26 = vsel %vm519_vm1, 1.0, %v8474_v63  ;;  %vm599_vm7 = vmand %vm567_vm11, %vm583_vm4  ;;  %v4996_v0 = vadd.f32 2.2, %v6490_v24  ;;  %v1335_v14 = vsub.f32 -1.4, %v6490_v24  ;;  %v1447_v3 = vsub.f32 -1.0, %v6490_v24  ;;  %4702 = vmatpush.msra.mxu0 %v4169_v16 }
 0x114   :  { %v3350_v22 = vadd.f32 %v3334_v38, %v3302_v42  ;;  %v6506_v39 = vadd.f32 %v2773_v53, %v2741_v51  ;;  %v4852_v28 = vsel %vm599_vm7, 1.0, %v8474_v63  ;;  %vm679_vm8 = vmand %vm647_vm12, %vm663_vm15  ;;  %v5012_v17 = vadd.f32 1.8, %v6490_v24  ;;  %v4120_v42 = vld [vmem:[#allocation6 + $0x2c0] sm:$0xff] }
 0x115   :  { %v4868_v12 = vsel %vm679_vm8, 1.0, %v8474_v63  ;;  %v1303_v54 = vmul.f32 2.5, %v4996_v0  ;;  %v1351_v20 = vmul.f32 2.5, %v1335_v14  ;;  %v6515_v10 = vadd.f32 1.4, %v6490_v24  ;;  %4508 = vmatpush.msra.mxu1 %v4120_v42 }
 0x116   :  { %8478 = vst [vmem:[#allocation25_spill] sm:$0xff] %v6506_v39  ;;  %4405 = vmatmul.f32.gmra.mxu3 %v3350_v22  ;;  %v3413_v4 = vmul.f32 %v3397_v6, %v6506_v39  ;;  %v1559_v46 = vsub.f32 -0.6, %v6490_v24  ;;  %v1415_v9 = vmul.f32 2.5, %v5012_v17  ;;  %v1463_v62 = vmul.f32 2.5, %v1447_v3 }
 0x117   :  { %v1319_v52 = vmul.f32 %v4820_v15, %v1303_v54  ;;  %v2407_v19 = vmul.f32 1.25, %v4996_v0  ;;  %v1367_v38 = vmul.f32 %v4836_v26, %v1351_v20  ;;  %v1527_v53 = vmul.f32 2.5, %v6515_v10 }
 0x118   :  { %v3429_v51 = vadd.f32 %v3413_v4, %v3381_v43  ;;  %v1575_v22 = vmul.f32 2.5, %v1559_v46  ;;  %v1431_v6 = vmul.f32 %v4836_v26, %v1415_v9  ;;  %v1479_v14 = vmul.f32 %v4852_v28, %v1463_v62 }
 0x119   :  { %v2439_v39 = vmul.f32 1.25, %v1447_v3  ;;  %v2487_v35 = vmul.f32 1.25, %v5012_v17  ;;  %v1383_v44 = vadd.f32 %v1367_v38, %v1319_v52  ;;  %v1543_v15 = vmul.f32 %v4852_v28, %v1527_v53 }
 0x11a   :  { %4467 = vmatmul.f32.gmra.mxu0 %v3429_v51  ;;  %v1591_v54 = vmul.f32 %v4868_v12, %v1575_v22  ;;  %v2519_v13 = vmul.f32 1.25, %v1559_v46  ;;  %v1495_v8 = vadd.f32 %v1479_v14, %v1431_v6  ;;  %v3127_v29 = vmul.f32 0.8333333, %v4996_v0 }
 0x11b   :  { %vm727_vm9 = vcmp.ge.f32.partialorder %v6490_v24, -0.6  ;;  %v2423_v4 = vmul.f32 %v2407_v19, %v1383_v44  ;;  %vm743_vm13 = vcmp.lt.f32.partialorder %v6490_v24, -0.2  ;;  %v6522_v20 = vadd.f32 1.0, %v6490_v24 }
 0x11c   :  { %v1607_v43 = vadd.f32 %v1591_v54, %v1543_v15  ;;  %v2455_v26 = vmul.f32 %v2439_v39, %v1495_v8  ;;  %v2503_v9 = vmul.f32 %v2487_v35, %v1495_v8  ;;  %v3159_v3 = vmul.f32 0.8333333, %v1559_v46  ;;  %vm759_vm10 = vmand %vm727_vm9, %vm743_vm13 }
 0x11d   :  { %v1671_v52 = vsub.f32 -0.2, %v6490_v24  ;;  %v4884_v62 = vsel %vm759_vm10, 1.0, %v8474_v63  ;;  %v1639_v0 = vmul.f32 2.5, %v6522_v20  ;;  %v2567_v16 = vmul.f32 1.25, %v6515_v10 }
 0x11e   :  { %v2535_v28 = vmul.f32 %v2519_v13, %v1607_v43  ;;  %v2471_v42 = vadd.f32 %v2455_v26, %v2423_v4  ;;  %v3207_v19 = vmul.f32 0.8333333, %v5012_v17  ;;  %vm807_vm14 = vcmp.ge.f32.partialorder %v6490_v24, -0.2 }
 0x11f   :  { %v1687_v44 = vmul.f32 2.5, %v1671_v52  ;;  %v1655_v38 = vmul.f32 %v4868_v12, %v1639_v0  ;;  %v2599_v53 = vmul.f32 1.25, %v1671_v52  ;;  %vm823_vm2 = vcmp.lt.f32.partialorder %v6490_v24, 0.2 }
 0x120   :  { %v2551_v51 = vadd.f32 %v2535_v28, %v2503_v9  ;;  %v3143_v8 = vmul.f32 %v3127_v29, %v2471_v42  ;;  %v6531_v13 = vadd.f32 0.6, %v6490_v24  ;;  %v2583_v46 = vmul.f32 %v2567_v16, %v1607_v43  ;;  %vm839_vm3 = vmand %vm807_vm14, %vm823_vm2 }
 0x121   :  { %v1703_v35 = vmul.f32 %v4884_v62, %v1687_v44  ;;  %v1783_v22 = vsub.f32 0.2, %v6490_v24  ;;  %v6535_v17 = vsel %vm839_vm3, 1.0, %v8474_v63  ;;  %v2647_v14 = vmul.f32 1.25, %v6522_v20 }
 0x122   :  { %8479 = vst [vmem:[#allocation26_spill] sm:$0xff] %v6531_v13  ;;  %v3175_v39 = vmul.f32 %v3159_v3, %v2551_v51  ;;  %v1751_v12 = vmul.f32 2.5, %v6531_v13  ;;  %v3223_v54 = vmul.f32 %v3207_v19, %v2551_v51  ;;  %v3239_v29 = vmul.f32 0.8333333, %v1671_v52 }
 0x123   :  { %v1719_v6 = vadd.f32 %v1703_v35, %v1655_v38  ;;  %v1799_v4 = vmul.f32 2.5, %v1783_v22  ;;  %v2679_v28 = vmul.f32 1.25, %v1783_v22  ;;  %vm886_vm5 = vcmp.ge.f32.partialorder %v6416_v2, 0.2 }
 0x124   :  { %v3191_v15 = vadd.f32 %v3175_v39, %v3143_v8  ;;  %v1767_v9 = vmul.f32 %v4884_v62, %v1751_v12  ;;  %vm902_vm0 = vcmp.lt.f32.partialorder %v6416_v2, 0.6  ;;  %v6543_v3 = vadd.f32 0.2, %v6416_v2 }
 0x125   :  { %v2615_v26 = vmul.f32 %v2599_v53, %v1719_v6  ;;  %v1815_v43 = vmul.f32 %v6535_v17, %v1799_v4  ;;  %v1894_v0 = vsub.f32 0.6, %v6416_v2  ;;  %v2663_v42 = vmul.f32 %v2647_v14, %v1719_v6  ;;  %vm918_vm6 = vmand %vm886_vm5, %vm902_vm0  ;;  %v4135_v2 = vld [vmem:[#allocation6 + $0x338] sm:$0xff] }
 0x126   :  { %4278 = vmatmul.f32.gmra.mxu1 %v3191_v15  ;;  %8480 = vst [vmem:[#allocation27_spill] sm:$0xff] %v6543_v3  ;;  %v3287_v52 = vmul.f32 0.8333333, %v6515_v10  ;;  %v2726_v62 = vmul.f32 1.25, %v6458_v41  ;;  %v6551_v19 = vsel %vm918_vm6, 1.0, %v8474_v63  ;;  %v1862_v51 = vmul.f32 2.5, %v6543_v3  ;;  %4574 = vmatpush.msra.mxu2 %v4135_v2 }
 0x127   :  { %v2631_v16 = vadd.f32 %v2615_v26, %v2583_v46  ;;  %v6548_v44 = vadd.f32 %v1815_v43, %v1767_v9  ;;  %v1910_v38 = vmul.f32 2.5, %v1894_v0  ;;  %v3319_v8 = vmul.f32 0.8333333, %v1783_v22  ;;  %v6563_v22 = vld [vmem:[#allocation3 + $0x40] sm:$0xff]  ;;  %v4151_v2 = vld [vmem:[#allocation6 + $0x3b8] sm:$0xff] }
 0x128   :  { %v3366_v35 = vmul.f32 0.8333333, %v6449_v48  ;;  %v1878_v10 = vmul.f32 %v6462_v57, %v1862_v51  ;;  %v2758_v6 = vmul.f32 1.25, %v1894_v0  ;;  %v2742_v15 = vmul.f32 %v2726_v62, %v6475_v60  ;;  %4639 = vmatpush.msra.mxu3 %v4151_v2 }
 0x129   :  { %v3255_v53 = vmul.f32 %v3239_v29, %v2631_v16  ;;  %v2695_v39 = vmul.f32 %v2679_v28, %v6548_v44  ;;  %v1926_v46 = vmul.f32 %v6551_v19, %v1910_v38  ;;  %v3303_v14 = vmul.f32 %v3287_v52, %v2631_v16 }
 0x12a   :  { %v3398_v4 = vmul.f32 0.8333333, %v1894_v0  ;;  %vm408_vm11 = vcmp.ge.f32.partialorder %v6563_v22, -2.2  ;;  %vm424_vm1 = vcmp.lt.f32.partialorder %v6563_v22, -1.8  ;;  %v3382_v48 = vmul.f32 %v3366_v35, %v6486_v58 }
 0x12b   :  { %v3271_v12 = vadd.f32 %v3255_v53, %v3223_v54  ;;  %v6559_v26 = vadd.f32 %v2695_v39, %v2663_v42  ;;  %v6561_v29 = vadd.f32 %v1926_v46, %v1878_v10  ;;  %vm440_vm4 = vmand %vm408_vm11, %vm424_vm1  ;;  %vm488_vm7 = vcmp.ge.f32.partialorder %v6563_v22, -1.8 }
 0x12c   :  { %vm504_vm12 = vcmp.lt.f32.partialorder %v6563_v22, -1.4  ;;  %vm568_vm15 = vcmp.ge.f32.partialorder %v6563_v22, -1.4  ;;  %v4821_v54 = vsel %vm440_vm4, 1.0, %v8474_v63  ;;  %vm584_vm9 = vcmp.lt.f32.partialorder %v6563_v22, -1.0 }
 0x12d   :  { %8481 = vst [vmem:[#allocation28_spill] sm:$0xff] %v6561_v29  ;;  %4343 = vmatmul.f32.gmra.mxu2 %v3271_v12  ;;  %v3335_v57 = vmul.f32 %v3319_v8, %v6559_v26  ;;  %v2774_v60 = vmul.f32 %v2758_v6, %v6561_v29  ;;  %vm520_vm8 = vmand %vm488_vm7, %vm504_vm12  ;;  %vm648_vm10 = vcmp.ge.f32.partialorder %v6563_v22, -1.0  ;;  %vm664_vm14 = vcmp.lt.f32.partialorder %v6563_v22, -0.6  ;;  %v4168_v12 = vld [vmem:[#allocation6 + $0x440] sm:$0xff] }
 0x12e   :  { %v4837_v9 = vsel %vm520_vm8, 1.0, %v8474_v63  ;;  %vm600_vm13 = vmand %vm568_vm15, %vm584_vm9  ;;  %v4997_v58 = vadd.f32 2.2, %v6563_v22  ;;  %v1336_v16 = vsub.f32 -1.4, %v6563_v22  ;;  %v1448_v51 = vsub.f32 -1.0, %v6563_v22  ;;  %4703 = vmatpush.msra.mxu0 %v4168_v12 }
 0x12f   :  { %v3351_v28 = vadd.f32 %v3335_v57, %v3303_v14  ;;  %v6579_v43 = vadd.f32 %v2774_v60, %v2742_v15  ;;  %v4853_v0 = vsel %vm600_vm13, 1.0, %v8474_v63  ;;  %vm680_vm2 = vmand %vm648_vm10, %vm664_vm14  ;;  %v5013_v62 = vadd.f32 1.8, %v6563_v22  ;;  %v4119_v14 = vld [vmem:[#allocation6 + $0x2b8] sm:$0xff] }
 0x130   :  { %v4869_v42 = vsel %vm680_vm2, 1.0, %v8474_v63  ;;  %v1304_v52 = vmul.f32 2.5, %v4997_v58  ;;  %v1352_v53 = vmul.f32 2.5, %v1336_v16  ;;  %v6588_v8 = vadd.f32 1.4, %v6563_v22  ;;  %4509 = vmatpush.msra.mxu1 %v4119_v14 }
 0x131   :  { %8482 = vst [vmem:[#allocation29_spill] sm:$0xff] %v6579_v43  ;;  %4408 = vmatmul.f32.gmra.mxu3 %v3351_v28  ;;  %v3414_v38 = vmul.f32 %v3398_v4, %v6579_v43  ;;  %v1560_v35 = vsub.f32 -0.6, %v6563_v22  ;;  %v1416_v10 = vmul.f32 2.5, %v5013_v62  ;;  %v1464_v46 = vmul.f32 2.5, %v1448_v51 }
 0x132   :  { %v1320_v39 = vmul.f32 %v4821_v54, %v1304_v52  ;;  %v2408_v6 = vmul.f32 1.25, %v4997_v58  ;;  %v1368_v57 = vmul.f32 %v4837_v9, %v1352_v53  ;;  %v1528_v60 = vmul.f32 2.5, %v6588_v8 }
 0x133   :  { %v3430_v15 = vadd.f32 %v3414_v38, %v3382_v48  ;;  %v1576_v28 = vmul.f32 2.5, %v1560_v35  ;;  %v1432_v4 = vmul.f32 %v4837_v9, %v1416_v10  ;;  %v1480_v16 = vmul.f32 %v4853_v0, %v1464_v46 }
 0x134   :  { %v2440_v43 = vmul.f32 1.25, %v1448_v51  ;;  %v2488_v41 = vmul.f32 1.25, %v5013_v62  ;;  %v1384_v29 = vadd.f32 %v1368_v57, %v1320_v39  ;;  %v1544_v54 = vmul.f32 %v4853_v0, %v1528_v60 }
 0x135   :  { %4470 = vmatmul.f32.gmra.mxu0 %v3430_v15  ;;  %v1592_v52 = vmul.f32 %v4869_v42, %v1576_v28  ;;  %v2520_v3 = vmul.f32 1.25, %v1560_v35  ;;  %v1496_v56 = vadd.f32 %v1480_v16, %v1432_v4  ;;  %v3128_v2 = vmul.f32 0.8333333, %v4997_v58 }
 0x136   :  { %vm728_vm3 = vcmp.ge.f32.partialorder %v6563_v22, -0.6  ;;  %v2424_v38 = vmul.f32 %v2408_v6, %v1384_v29  ;;  %vm744_vm5 = vcmp.lt.f32.partialorder %v6563_v22, -0.2  ;;  %v6595_v53 = vadd.f32 1.0, %v6563_v22 }
 0x137   :  { %v1608_v48 = vadd.f32 %v1592_v52, %v1544_v54  ;;  %v2456_v9 = vmul.f32 %v2440_v43, %v1496_v56  ;;  %v2504_v10 = vmul.f32 %v2488_v41, %v1496_v56  ;;  %v3160_v51 = vmul.f32 0.8333333, %v1560_v35  ;;  %vm760_vm0 = vmand %vm728_vm3, %vm744_vm5 }
 0x138   :  { %v1672_v39 = vsub.f32 -0.2, %v6563_v22  ;;  %v4885_v46 = vsel %vm760_vm0, 1.0, %v8474_v63  ;;  %v1640_v58 = vmul.f32 2.5, %v6595_v53  ;;  %v2568_v12 = vmul.f32 1.25, %v6588_v8 }
 0x139   :  { %v2536_v0 = vmul.f32 %v2520_v3, %v1608_v48  ;;  %v2472_v14 = vadd.f32 %v2456_v9, %v2424_v38  ;;  %v3208_v6 = vmul.f32 0.8333333, %v5013_v62  ;;  %vm808_vm6 = vcmp.ge.f32.partialorder %v6563_v22, -0.2 }
 0x13a   :  { %v1688_v29 = vmul.f32 2.5, %v1672_v39  ;;  %v1656_v57 = vmul.f32 %v4869_v42, %v1640_v58  ;;  %v2600_v60 = vmul.f32 1.25, %v1672_v39  ;;  %vm824_vm11 = vcmp.lt.f32.partialorder %v6563_v22, 0.2 }
 0x13b   :  { %v2552_v15 = vadd.f32 %v2536_v0, %v2504_v10  ;;  %v3144_v56 = vmul.f32 %v3128_v2, %v2472_v14  ;;  %v6604_v3 = vadd.f32 0.6, %v6563_v22  ;;  %v2584_v35 = vmul.f32 %v2568_v12, %v1608_v48  ;;  %vm840_vm1 = vmand %vm808_vm6, %vm824_vm11 }
 0x13c   :  { %v1704_v41 = vmul.f32 %v4885_v46, %v1688_v29  ;;  %v1784_v28 = vsub.f32 0.2, %v6563_v22  ;;  %v6608_v62 = vsel %vm840_vm1, 1.0, %v8474_v63  ;;  %v2648_v16 = vmul.f32 1.25, %v6595_v53 }
 0x13d   :  { %8483 = vst [vmem:[#allocation30_spill] sm:$0xff] %v6604_v3  ;;  %v3176_v43 = vmul.f32 %v3160_v51, %v2552_v15  ;;  %v1752_v42 = vmul.f32 2.5, %v6604_v3  ;;  %v3224_v52 = vmul.f32 %v3208_v6, %v2552_v15  ;;  %v3240_v2 = vmul.f32 0.8333333, %v1672_v39 }
 0x13e   :  { %v1720_v4 = vadd.f32 %v1704_v41, %v1656_v57  ;;  %v1800_v38 = vmul.f32 2.5, %v1784_v28  ;;  %v2680_v0 = vmul.f32 1.25, %v1784_v28  ;;  %vm887_vm4 = vcmp.ge.f32.partialorder %v6490_v24, 0.2 }
 0x13f   :  { %v3192_v54 = vadd.f32 %v3176_v43, %v3144_v56  ;;  %v1768_v10 = vmul.f32 %v4885_v46, %v1752_v42  ;;  %vm903_vm7 = vcmp.lt.f32.partialorder %v6490_v24, 0.6  ;;  %v6616_v51 = vadd.f32 0.2, %v6490_v24 }
 0x140   :  { %v2616_v9 = vmul.f32 %v2600_v60, %v1720_v4  ;;  %v1816_v48 = vmul.f32 %v6608_v62, %v1800_v38  ;;  %v1895_v58 = vsub.f32 0.6, %v6490_v24  ;;  %v2664_v14 = vmul.f32 %v2648_v16, %v1720_v4  ;;  %vm919_vm12 = vmand %vm887_vm4, %vm903_vm7  ;;  %v4134_v24 = vld [vmem:[#allocation6 + $0x330] sm:$0xff] }
 0x141   :  { %4281 = vmatmul.f32.gmra.mxu1 %v3192_v54  ;;  %8484 = vst [vmem:[#allocation31_spill] sm:$0xff] %v6616_v51  ;;  %v3288_v39 = vmul.f32 0.8333333, %v6588_v8  ;;  %v2727_v46 = vmul.f32 1.25, %v6531_v13  ;;  %v6624_v6 = vsel %vm919_vm12, 1.0, %v8474_v63  ;;  %v1863_v15 = vmul.f32 2.5, %v6616_v51  ;;  %4575 = vmatpush.msra.mxu2 %v4134_v24 }
 0x142   :  { %v2632_v12 = vadd.f32 %v2616_v9, %v2584_v35  ;;  %v6621_v29 = vadd.f32 %v1816_v48, %v1768_v10  ;;  %v1911_v57 = vmul.f32 2.5, %v1895_v58  ;;  %v3320_v56 = vmul.f32 0.8333333, %v1784_v28  ;;  %v6636_v28 = vld [vmem:[#allocation3 + $0x48] sm:$0xff]  ;;  %v4150_v24 = vld [vmem:[#allocation6 + $0x3b0] sm:$0xff] }
 0x143   :  { %v3367_v41 = vmul.f32 0.8333333, %v6522_v20  ;;  %v1879_v8 = vmul.f32 %v6535_v17, %v1863_v15  ;;  %v2759_v4 = vmul.f32 1.25, %v1895_v58  ;;  %v2743_v54 = vmul.f32 %v2727_v46, %v6548_v44  ;;  %4640 = vmatpush.msra.mxu3 %v4150_v24 }
 0x144   :  { %v3256_v60 = vmul.f32 %v3240_v2, %v2632_v12  ;;  %v2696_v43 = vmul.f32 %v2680_v0, %v6621_v29  ;;  %v1927_v35 = vmul.f32 %v6624_v6, %v1911_v57  ;;  %v3304_v16 = vmul.f32 %v3288_v39, %v2632_v12 }
 0x145   :  { %v3399_v38 = vmul.f32 0.8333333, %v1895_v58  ;;  %vm409_vm15 = vcmp.ge.f32.partialorder %v6636_v28, -2.2  ;;  %vm425_vm8 = vcmp.lt.f32.partialorder %v6636_v28, -1.8  ;;  %v3383_v20 = vmul.f32 %v3367_v41, %v6559_v26 }
 0x146   :  { %v3272_v42 = vadd.f32 %v3256_v60, %v3224_v52  ;;  %v6632_v9 = vadd.f32 %v2696_v43, %v2664_v14  ;;  %v6634_v2 = vadd.f32 %v1927_v35, %v1879_v8  ;;  %vm441_vm9 = vmand %vm409_vm15, %vm425_vm8  ;;  %vm489_vm13 = vcmp.ge.f32.partialorder %v6636_v28, -1.8 }
 0x147   :  { %vm505_vm10 = vcmp.lt.f32.partialorder %v6636_v28, -1.4  ;;  %vm569_vm14 = vcmp.ge.f32.partialorder %v6636_v28, -1.4  ;;  %v4822_v52 = vsel %vm441_vm9, 1.0, %v8474_v63  ;;  %vm585_vm3 = vcmp.lt.f32.partialorder %v6636_v28, -1.0 }
 0x148   :  { %8485 = vst [vmem:[#allocation32_spill] sm:$0xff] %v6634_v2  ;;  %4346 = vmatmul.f32.gmra.mxu2 %v3272_v42  ;;  %v3336_v17 = vmul.f32 %v3320_v56, %v6632_v9  ;;  %v2775_v44 = vmul.f32 %v2759_v4, %v6634_v2  ;;  %vm521_vm2 = vmand %vm489_vm13, %vm505_vm10  ;;  %vm649_vm0 = vcmp.ge.f32.partialorder %v6636_v28, -1.0  ;;  %vm665_vm6 = vcmp.lt.f32.partialorder %v6636_v28, -0.6  ;;  %v4167_v42 = vld [vmem:[#allocation6 + $0x438] sm:$0xff] }
 0x149   :  { %v4838_v10 = vsel %vm521_vm2, 1.0, %v8474_v63  ;;  %vm601_vm5 = vmand %vm569_vm14, %vm585_vm3  ;;  %v4998_v26 = vadd.f32 2.2, %v6636_v28  ;;  %v1337_v12 = vsub.f32 -1.4, %v6636_v28  ;;  %v1449_v15 = vsub.f32 -1.0, %v6636_v28  ;;  %4704 = vmatpush.msra.mxu0 %v4167_v42 }
 0x14a   :  { %v3352_v0 = vadd.f32 %v3336_v17, %v3304_v16  ;;  %v6652_v48 = vadd.f32 %v2775_v44, %v2743_v54  ;;  %v4854_v58 = vsel %vm601_vm5, 1.0, %v8474_v63  ;;  %vm681_vm11 = vmand %vm649_vm0, %vm665_vm6  ;;  %v5014_v46 = vadd.f32 1.8, %v6636_v28  ;;  %v4118_v16 = vld [vmem:[#allocation6 + $0x2b0] sm:$0xff] }
 0x14b   :  { %v4870_v14 = vsel %vm681_vm11, 1.0, %v8474_v63  ;;  %v1305_v39 = vmul.f32 2.5, %v4998_v26  ;;  %v1353_v60 = vmul.f32 2.5, %v1337_v12  ;;  %v6661_v56 = vadd.f32 1.4, %v6636_v28  ;;  %4510 = vmatpush.msra.mxu1 %v4118_v16 }
 0x14c   :  { %8486 = vst [vmem:[#allocation33_spill] sm:$0xff] %v6652_v48  ;;  %4411 = vmatmul.f32.gmra.mxu3 %v3352_v0  ;;  %v3415_v57 = vmul.f32 %v3399_v38, %v6652_v48  ;;  %v1561_v41 = vsub.f32 -0.6, %v6636_v28  ;;  %v1417_v8 = vmul.f32 2.5, %v5014_v46  ;;  %v1465_v35 = vmul.f32 2.5, %v1449_v15 }
 0x14d   :  { %v1321_v43 = vmul.f32 %v4822_v52, %v1305_v39  ;;  %v2409_v4 = vmul.f32 1.25, %v4998_v26  ;;  %v1369_v17 = vmul.f32 %v4838_v10, %v1353_v60  ;;  %v1529_v44 = vmul.f32 2.5, %v6661_v56 }
 0x14e   :  { %v3431_v54 = vadd.f32 %v3415_v57, %v3383_v20  ;;  %v1577_v0 = vmul.f32 2.5, %v1561_v41  ;;  %v1433_v38 = vmul.f32 %v4838_v10, %v1417_v8  ;;  %v1481_v12 = vmul.f32 %v4854_v58, %v1465_v35 }
 0x14f   :  { %v2441_v48 = vmul.f32 1.25, %v1449_v15  ;;  %v2489_v2 = vmul.f32 1.25, %v5014_v46  ;;  %v1385_v13 = vadd.f32 %v1369_v17, %v1321_v43  ;;  %v1545_v52 = vmul.f32 %v4854_v58, %v1529_v44 }
 0x150   :  { %4473 = vmatmul.f32.gmra.mxu0 %v3431_v54  ;;  %v1593_v39 = vmul.f32 %v4870_v14, %v1577_v0  ;;  %v2521_v51 = vmul.f32 1.25, %v1561_v41  ;;  %v1497_v18 = vadd.f32 %v1481_v12, %v1433_v38  ;;  %v3129_v24 = vmul.f32 0.8333333, %v4998_v26 }
 0x151   :  { %vm729_vm1 = vcmp.ge.f32.partialorder %v6636_v28, -0.6  ;;  %v2425_v57 = vmul.f32 %v2409_v4, %v1385_v13  ;;  %vm745_vm4 = vcmp.lt.f32.partialorder %v6636_v28, -0.2  ;;  %v6668_v60 = vadd.f32 1.0, %v6636_v28 }
 0x152   :  { %v1609_v20 = vadd.f32 %v1593_v39, %v1545_v52  ;;  %v2457_v10 = vmul.f32 %v2441_v48, %v1497_v18  ;;  %v2505_v8 = vmul.f32 %v2489_v2, %v1497_v18  ;;  %v3161_v15 = vmul.f32 0.8333333, %v1561_v41  ;;  %vm761_vm7 = vmand %vm729_vm1, %vm745_vm4 }
 0x153   :  { %v1673_v43 = vsub.f32 -0.2, %v6636_v28  ;;  %v4886_v35 = vsel %vm761_vm7, 1.0, %v8474_v63  ;;  %v1641_v26 = vmul.f32 2.5, %v6668_v60  ;;  %v2569_v42 = vmul.f32 1.25, %v6661_v56 }
 0x154   :  { %v2537_v58 = vmul.f32 %v2521_v51, %v1609_v20  ;;  %v2473_v16 = vadd.f32 %v2457_v10, %v2425_v57  ;;  %v3209_v4 = vmul.f32 0.8333333, %v5014_v46  ;;  %vm809_vm12 = vcmp.ge.f32.partialorder %v6636_v28, -0.2 }
 0x155   :  { %v1689_v13 = vmul.f32 2.5, %v1673_v43  ;;  %v1657_v17 = vmul.f32 %v4870_v14, %v1641_v26  ;;  %v2601_v44 = vmul.f32 1.25, %v1673_v43  ;;  %vm825_vm15 = vcmp.lt.f32.partialorder %v6636_v28, 0.2 }
 0x156   :  { %v2553_v54 = vadd.f32 %v2537_v58, %v2505_v8  ;;  %v3145_v18 = vmul.f32 %v3129_v24, %v2473_v16  ;;  %v6677_v51 = vadd.f32 0.6, %v6636_v28  ;;  %v2585_v41 = vmul.f32 %v2569_v42, %v1609_v20  ;;  %vm841_vm8 = vmand %vm809_vm12, %vm825_vm15 }
 0x157   :  { %v1705_v2 = vmul.f32 %v4886_v35, %v1689_v13  ;;  %v1785_v0 = vsub.f32 0.2, %v6636_v28  ;;  %v6681_v46 = vsel %vm841_vm8, 1.0, %v8474_v63  ;;  %v2649_v12 = vmul.f32 1.25, %v6668_v60 }
 0x158   :  { %8487 = vst [vmem:[#allocation34_spill] sm:$0xff] %v6677_v51  ;;  %v3177_v48 = vmul.f32 %v3161_v15, %v2553_v54  ;;  %v1753_v14 = vmul.f32 2.5, %v6677_v51  ;;  %v3225_v39 = vmul.f32 %v3209_v4, %v2553_v54  ;;  %v3241_v24 = vmul.f32 0.8333333, %v1673_v43 }
 0x159   :  { %v1721_v38 = vadd.f32 %v1705_v2, %v1657_v17  ;;  %v1801_v57 = vmul.f32 2.5, %v1785_v0  ;;  %v2681_v58 = vmul.f32 1.25, %v1785_v0  ;;  %vm888_vm9 = vcmp.ge.f32.partialorder %v6563_v22, 0.2 }
 0x15a   :  { %v3193_v52 = vadd.f32 %v3177_v48, %v3145_v18  ;;  %v1769_v8 = vmul.f32 %v4886_v35, %v1753_v14  ;;  %vm904_vm13 = vcmp.lt.f32.partialorder %v6563_v22, 0.6  ;;  %v6689_v15 = vadd.f32 0.2, %v6563_v22 }
 0x15b   :  { %v2617_v10 = vmul.f32 %v2601_v44, %v1721_v38  ;;  %v1817_v20 = vmul.f32 %v6681_v46, %v1801_v57  ;;  %v1896_v26 = vsub.f32 0.6, %v6563_v22  ;;  %v2665_v16 = vmul.f32 %v2649_v12, %v1721_v38  ;;  %vm920_vm10 = vmand %vm888_vm9, %vm904_vm13  ;;  %v4133_v22 = vld [vmem:[#allocation6 + $0x328] sm:$0xff] }
 0x15c   :  { %4284 = vmatmul.f32.gmra.mxu1 %v3193_v52  ;;  %8488 = vst [vmem:[#allocation35_spill] sm:$0xff] %v6689_v15  ;;  %v3289_v43 = vmul.f32 0.8333333, %v6661_v56  ;;  %v2728_v35 = vmul.f32 1.25, %v6604_v3  ;;  %v6697_v4 = vsel %vm920_vm10, 1.0, %v8474_v63  ;;  %v1864_v54 = vmul.f32 2.5, %v6689_v15  ;;  %4576 = vmatpush.msra.mxu2 %v4133_v22 }
 0x15d   :  { %v2633_v42 = vadd.f32 %v2617_v10, %v2585_v41  ;;  %v6694_v13 = vadd.f32 %v1817_v20, %v1769_v8  ;;  %v1912_v17 = vmul.f32 2.5, %v1896_v26  ;;  %v3321_v18 = vmul.f32 0.8333333, %v1785_v0  ;;  %v6709_v0 = vld [vmem:[#allocation3 + $0x50] sm:$0xff]  ;;  %v4149_v22 = vld [vmem:[#allocation6 + $0x3a8] sm:$0xff] }
 0x15e   :  { %v3368_v2 = vmul.f32 0.8333333, %v6595_v53  ;;  %v1880_v56 = vmul.f32 %v6608_v62, %v1864_v54  ;;  %v2760_v38 = vmul.f32 1.25, %v1896_v26  ;;  %v2744_v52 = vmul.f32 %v2728_v35, %v6621_v29  ;;  %4641 = vmatpush.msra.mxu3 %v4149_v22 }
 0x15f   :  { %v3257_v44 = vmul.f32 %v3241_v24, %v2633_v42  ;;  %v2697_v48 = vmul.f32 %v2681_v58, %v6694_v13  ;;  %v1928_v41 = vmul.f32 %v6697_v4, %v1912_v17  ;;  %v3305_v12 = vmul.f32 %v3289_v43, %v2633_v42 }
 0x160   :  { %v3400_v57 = vmul.f32 0.8333333, %v1896_v26  ;;  %vm410_vm14 = vcmp.ge.f32.partialorder %v6709_v0, -2.2  ;;  %vm426_vm2 = vcmp.lt.f32.partialorder %v6709_v0, -1.8  ;;  %v3384_v53 = vmul.f32 %v3368_v2, %v6632_v9 }
 0x161   :  { %v3273_v14 = vadd.f32 %v3257_v44, %v3225_v39  ;;  %v6705_v10 = vadd.f32 %v2697_v48, %v2665_v16  ;;  %v6707_v24 = vadd.f32 %v1928_v41, %v1880_v56  ;;  %vm442_vm3 = vmand %vm410_vm14, %vm426_vm2  ;;  %vm490_vm5 = vcmp.ge.f32.partialorder %v6709_v0, -1.8 }
 0x162   :  { %vm506_vm0 = vcmp.lt.f32.partialorder %v6709_v0, -1.4  ;;  %vm570_vm6 = vcmp.ge.f32.partialorder %v6709_v0, -1.4  ;;  %v4823_v39 = vsel %vm442_vm3, 1.0, %v8474_v63  ;;  %vm586_vm1 = vcmp.lt.f32.partialorder %v6709_v0, -1.0 }
 0x163   :  { %8489 = vst [vmem:[#allocation36_spill] sm:$0xff] %v6707_v24  ;;  %4349 = vmatmul.f32.gmra.mxu2 %v3273_v14  ;;  %v3337_v62 = vmul.f32 %v3321_v18, %v6705_v10  ;;  %v2776_v29 = vmul.f32 %v2760_v38, %v6707_v24  ;;  %vm522_vm11 = vmand %vm490_vm5, %vm506_vm0  ;;  %vm650_vm7 = vcmp.ge.f32.partialorder %v6709_v0, -1.0  ;;  %vm666_vm12 = vcmp.lt.f32.partialorder %v6709_v0, -0.6  ;;  %v4166_v14 = vld [vmem:[#allocation6 + $0x430] sm:$0xff] }
 0x164   :  { %v4839_v8 = vsel %vm522_vm11, 1.0, %v8474_v63  ;;  %vm602_vm4 = vmand %vm570_vm6, %vm586_vm1  ;;  %v4999_v9 = vadd.f32 2.2, %v6709_v0  ;;  %v1338_v42 = vsub.f32 -1.4, %v6709_v0  ;;  %v1450_v54 = vsub.f32 -1.0, %v6709_v0  ;;  %4705 = vmatpush.msra.mxu0 %v4166_v14 }
 0x165   :  { %v3353_v58 = vadd.f32 %v3337_v62, %v3305_v12  ;;  %v6725_v20 = vadd.f32 %v2776_v29, %v2744_v52  ;;  %v4855_v26 = vsel %vm602_vm4, 1.0, %v8474_v63  ;;  %vm682_vm15 = vmand %vm650_vm7, %vm666_vm12  ;;  %v5015_v35 = vadd.f32 1.8, %v6709_v0  ;;  %v4117_v12 = vld [vmem:[#allocation6 + $0x2a8] sm:$0xff] }
 0x166   :  { %v4871_v16 = vsel %vm682_vm15, 1.0, %v8474_v63  ;;  %v1306_v43 = vmul.f32 2.5, %v4999_v9  ;;  %v1354_v44 = vmul.f32 2.5, %v1338_v42  ;;  %v6734_v18 = vadd.f32 1.4, %v6709_v0  ;;  %4511 = vmatpush.msra.mxu1 %v4117_v12 }
 0x167   :  { %8490 = vst [vmem:[#allocation37_spill] sm:$0xff] %v6725_v20  ;;  %4414 = vmatmul.f32.gmra.mxu3 %v3353_v58  ;;  %v3416_v17 = vmul.f32 %v3400_v57, %v6725_v20  ;;  %v1562_v2 = vsub.f32 -0.6, %v6709_v0  ;;  %v1418_v56 = vmul.f32 2.5, %v5015_v35  ;;  %v1466_v41 = vmul.f32 2.5, %v1450_v54 }
 0x168   :  { %v1322_v48 = vmul.f32 %v4823_v39, %v1306_v43  ;;  %v2410_v38 = vmul.f32 1.25, %v4999_v9  ;;  %v1370_v62 = vmul.f32 %v4839_v8, %v1354_v44  ;;  %v1530_v29 = vmul.f32 2.5, %v6734_v18 }
 0x169   :  { %v3432_v52 = vadd.f32 %v3416_v17, %v3384_v53  ;;  %v1578_v58 = vmul.f32 2.5, %v1562_v2  ;;  %v1434_v57 = vmul.f32 %v4839_v8, %v1418_v56  ;;  %v1482_v42 = vmul.f32 %v4855_v26, %v1466_v41 }
 0x16a   :  { %v2442_v20 = vmul.f32 1.25, %v1450_v54  ;;  %v2490_v24 = vmul.f32 1.25, %v5015_v35  ;;  %v1386_v3 = vadd.f32 %v1370_v62, %v1322_v48  ;;  %v1546_v39 = vmul.f32 %v4855_v26, %v1530_v29 }
 0x16b   :  { %4476 = vmatmul.f32.gmra.mxu0 %v3432_v52  ;;  %v1594_v43 = vmul.f32 %v4871_v16, %v1578_v58  ;;  %v2522_v15 = vmul.f32 1.25, %v1562_v2  ;;  %v1498_v55 = vadd.f32 %v1482_v42, %v1434_v57  ;;  %v3130_v22 = vmul.f32 0.8333333, %v4999_v9 }
 0x16c   :  { %vm730_vm8 = vcmp.ge.f32.partialorder %v6709_v0, -0.6  ;;  %v2426_v17 = vmul.f32 %v2410_v38, %v1386_v3  ;;  %vm746_vm9 = vcmp.lt.f32.partialorder %v6709_v0, -0.2  ;;  %v6741_v44 = vadd.f32 1.0, %v6709_v0 }
 0x16d   :  { %v1610_v53 = vadd.f32 %v1594_v43, %v1546_v39  ;;  %v2458_v8 = vmul.f32 %v2442_v20, %v1498_v55  ;;  %v2506_v56 = vmul.f32 %v2490_v24, %v1498_v55  ;;  %v3162_v54 = vmul.f32 0.8333333, %v1562_v2  ;;  %vm762_vm13 = vmand %vm730_vm8, %vm746_vm9 }
 0x16e   :  { %v1674_v48 = vsub.f32 -0.2, %v6709_v0  ;;  %v4887_v41 = vsel %vm762_vm13, 1.0, %v8474_v63  ;;  %v1642_v9 = vmul.f32 2.5, %v6741_v44  ;;  %v2570_v14 = vmul.f32 1.25, %v6734_v18 }
 0x16f   :  { %v2538_v26 = vmul.f32 %v2522_v15, %v1610_v53  ;;  %v2474_v12 = vadd.f32 %v2458_v8, %v2426_v17  ;;  %v3210_v38 = vmul.f32 0.8333333, %v5015_v35  ;;  %vm810_vm10 = vcmp.ge.f32.partialorder %v6709_v0, -0.2 }
 0x170   :  { %v1690_v3 = vmul.f32 2.5, %v1674_v48  ;;  %v1658_v62 = vmul.f32 %v4871_v16, %v1642_v9  ;;  %v2602_v29 = vmul.f32 1.25, %v1674_v48  ;;  %vm826_vm14 = vcmp.lt.f32.partialorder %v6709_v0, 0.2 }
 0x171   :  { %v2554_v52 = vadd.f32 %v2538_v26, %v2506_v56  ;;  %v3146_v55 = vmul.f32 %v3130_v22, %v2474_v12  ;;  %v6750_v15 = vadd.f32 0.6, %v6709_v0  ;;  %v2586_v2 = vmul.f32 %v2570_v14, %v1610_v53  ;;  %vm842_vm2 = vmand %vm810_vm10, %vm826_vm14 }
 0x172   :  { %v1706_v24 = vmul.f32 %v4887_v41, %v1690_v3  ;;  %v1786_v58 = vsub.f32 0.2, %v6709_v0  ;;  %v6754_v35 = vsel %vm842_vm2, 1.0, %v8474_v63  ;;  %v2650_v42 = vmul.f32 1.25, %v6741_v44 }
 0x173   :  { %8491 = vst [vmem:[#allocation38_spill] sm:$0xff] %v6750_v15  ;;  %v3178_v20 = vmul.f32 %v3162_v54, %v2554_v52  ;;  %v1754_v16 = vmul.f32 2.5, %v6750_v15  ;;  %v3226_v43 = vmul.f32 %v3210_v38, %v2554_v52  ;;  %v3242_v22 = vmul.f32 0.8333333, %v1674_v48 }
 0x174   :  { %v1722_v57 = vadd.f32 %v1706_v24, %v1658_v62  ;;  %v1802_v17 = vmul.f32 2.5, %v1786_v58  ;;  %v2682_v26 = vmul.f32 1.25, %v1786_v58  ;;  %vm889_vm3 = vcmp.ge.f32.partialorder %v6636_v28, 0.2 }
 0x175   :  { %v3194_v39 = vadd.f32 %v3178_v20, %v3146_v55  ;;  %v1770_v56 = vmul.f32 %v4887_v41, %v1754_v16  ;;  %vm905_vm5 = vcmp.lt.f32.partialorder %v6636_v28, 0.6  ;;  %v6762_v54 = vadd.f32 0.2, %v6636_v28 }
 0x176   :  { %v2618_v8 = vmul.f32 %v2602_v29, %v1722_v57  ;;  %v1818_v53 = vmul.f32 %v6754_v35, %v1802_v17  ;;  %v1897_v9 = vsub.f32 0.6, %v6636_v28  ;;  %v2666_v12 = vmul.f32 %v2650_v42, %v1722_v57  ;;  %vm921_vm0 = vmand %vm889_vm3, %vm905_vm5  ;;  %v4132_v28 = vld [vmem:[#allocation6 + $0x320] sm:$0xff] }
 0x177   :  { %4287 = vmatmul.f32.gmra.mxu1 %v3194_v39  ;;  %8492 = vst [vmem:[#allocation39_spill] sm:$0xff] %v6762_v54  ;;  %v3290_v48 = vmul.f32 0.8333333, %v6734_v18  ;;  %v2729_v41 = vmul.f32 1.25, %v6677_v51  ;;  %v6770_v38 = vsel %vm921_vm0, 1.0, %v8474_v63  ;;  %v1865_v52 = vmul.f32 2.5, %v6762_v54  ;;  %4577 = vmatpush.msra.mxu2 %v4132_v28 }
 0x178   :  { %v2634_v14 = vadd.f32 %v2618_v8, %v2586_v2  ;;  %v6767_v3 = vadd.f32 %v1818_v53, %v1770_v56  ;;  %v1913_v62 = vmul.f32 2.5, %v1897_v9  ;;  %v3322_v55 = vmul.f32 0.8333333, %v1786_v58  ;;  %v6782_v58 = vld [vmem:[#allocation3 + $0x58] sm:$0xff]  ;;  %v4148_v28 = vld [vmem:[#allocation6 + $0x3a0] sm:$0xff] }
 0x179   :  { %v3369_v24 = vmul.f32 0.8333333, %v6668_v60  ;;  %v1881_v18 = vmul.f32 %v6681_v46, %v1865_v52  ;;  %v2761_v57 = vmul.f32 1.25, %v1897_v9  ;;  %v2745_v39 = vmul.f32 %v2729_v41, %v6694_v13  ;;  %4642 = vmatpush.msra.mxu3 %v4148_v28 }
 0x17a   :  { %v3258_v29 = vmul.f32 %v3242_v22, %v2634_v14  ;;  %v2698_v20 = vmul.f32 %v2682_v26, %v6767_v3  ;;  %v1929_v2 = vmul.f32 %v6770_v38, %v1913_v62  ;;  %v3306_v42 = vmul.f32 %v3290_v48, %v2634_v14 }
 0x17b   :  { %v3401_v17 = vmul.f32 0.8333333, %v1897_v9  ;;  %vm411_vm6 = vcmp.ge.f32.partialorder %v6782_v58, -2.2  ;;  %vm427_vm11 = vcmp.lt.f32.partialorder %v6782_v58, -1.8  ;;  %v3385_v60 = vmul.f32 %v3369_v24, %v6705_v10 }
 0x17c   :  { %v3274_v16 = vadd.f32 %v3258_v29, %v3226_v43  ;;  %v6778_v8 = vadd.f32 %v2698_v20, %v2666_v12  ;;  %v6780_v22 = vadd.f32 %v1929_v2, %v1881_v18  ;;  %vm443_vm1 = vmand %vm411_vm6, %vm427_vm11  ;;  %vm491_vm4 = vcmp.ge.f32.partialorder %v6782_v58, -1.8 }
 0x17d   :  { %vm507_vm7 = vcmp.lt.f32.partialorder %v6782_v58, -1.4  ;;  %vm571_vm12 = vcmp.ge.f32.partialorder %v6782_v58, -1.4  ;;  %v4824_v43 = vsel %vm443_vm1, 1.0, %v8474_v63  ;;  %vm587_vm8 = vcmp.lt.f32.partialorder %v6782_v58, -1.0 }
 0x17e   :  { %8493 = vst [vmem:[#allocation40_spill] sm:$0xff] %v6780_v22  ;;  %4352 = vmatmul.f32.gmra.mxu2 %v3274_v16  ;;  %v3338_v46 = vmul.f32 %v3322_v55, %v6778_v8  ;;  %v2777_v13 = vmul.f32 %v2761_v57, %v6780_v22  ;;  %vm523_vm15 = vmand %vm491_vm4, %vm507_vm7  ;;  %vm651_vm13 = vcmp.ge.f32.partialorder %v6782_v58, -1.0  ;;  %vm667_vm10 = vcmp.lt.f32.partialorder %v6782_v58, -0.6  ;;  %v4165_v16 = vld [vmem:[#allocation6 + $0x428] sm:$0xff] }
 0x17f   :  { %v4840_v56 = vsel %vm523_vm15, 1.0, %v8474_v63  ;;  %vm603_vm9 = vmand %vm571_vm12, %vm587_vm8  ;;  %v5000_v10 = vadd.f32 2.2, %v6782_v58  ;;  %v1339_v14 = vsub.f32 -1.4, %v6782_v58  ;;  %v1451_v52 = vsub.f32 -1.0, %v6782_v58  ;;  %4706 = vmatpush.msra.mxu0 %v4165_v16 }
 0x180   :  { %v3354_v26 = vadd.f32 %v3338_v46, %v3306_v42  ;;  %v6798_v53 = vadd.f32 %v2777_v13, %v2745_v39  ;;  %v4856_v9 = vsel %vm603_vm9, 1.0, %v8474_v63  ;;  %vm683_vm14 = vmand %vm651_vm13, %vm667_vm10  ;;  %v5016_v41 = vadd.f32 1.8, %v6782_v58  ;;  %v4116_v42 = vld [vmem:[#allocation6 + $0x2a0] sm:$0xff] }
 0x181   :  { %v4872_v12 = vsel %vm683_vm14, 1.0, %v8474_v63  ;;  %v1307_v48 = vmul.f32 2.5, %v5000_v10  ;;  %v1355_v29 = vmul.f32 2.5, %v1339_v14  ;;  %v6807_v55 = vadd.f32 1.4, %v6782_v58  ;;  %4512 = vmatpush.msra.mxu1 %v4116_v42 }
 0x182   :  { %8494 = vst [vmem:[#allocation41_spill] sm:$0xff] %v6798_v53  ;;  %4417 = vmatmul.f32.gmra.mxu3 %v3354_v26  ;;  %v3417_v62 = vmul.f32 %v3401_v17, %v6798_v53  ;;  %v1563_v24 = vsub.f32 -0.6, %v6782_v58  ;;  %v1419_v18 = vmul.f32 2.5, %v5016_v41  ;;  %v1467_v2 = vmul.f32 2.5, %v1451_v52 }
 0x183   :  { %v1323_v20 = vmul.f32 %v4824_v43, %v1307_v48  ;;  %v2411_v57 = vmul.f32 1.25, %v5000_v10  ;;  %v1371_v46 = vmul.f32 %v4840_v56, %v1355_v29  ;;  %v1531_v13 = vmul.f32 2.5, %v6807_v55 }
 0x184   :  { %v3433_v39 = vadd.f32 %v3417_v62, %v3385_v60  ;;  %v1579_v26 = vmul.f32 2.5, %v1563_v24  ;;  %v1435_v17 = vmul.f32 %v4840_v56, %v1419_v18  ;;  %v1483_v14 = vmul.f32 %v4856_v9, %v1467_v2 }
 0x185   :  { %v2443_v53 = vmul.f32 1.25, %v1451_v52  ;;  %v2491_v22 = vmul.f32 1.25, %v5016_v41  ;;  %v1387_v51 = vadd.f32 %v1371_v46, %v1323_v20  ;;  %v1547_v43 = vmul.f32 %v4856_v9, %v1531_v13 }
 0x186   :  { %4479 = vmatmul.f32.gmra.mxu0 %v3433_v39  ;;  %v1595_v48 = vmul.f32 %v4872_v12, %v1579_v26  ;;  %v2523_v54 = vmul.f32 1.25, %v1563_v24  ;;  %v1499_v30 = vadd.f32 %v1483_v14, %v1435_v17  ;;  %v3131_v28 = vmul.f32 0.8333333, %v5000_v10 }
 0x187   :  { %vm731_vm2 = vcmp.ge.f32.partialorder %v6782_v58, -0.6  ;;  %v2427_v62 = vmul.f32 %v2411_v57, %v1387_v51  ;;  %vm747_vm3 = vcmp.lt.f32.partialorder %v6782_v58, -0.2  ;;  %v6814_v29 = vadd.f32 1.0, %v6782_v58 }
 0x188   :  { %v1611_v60 = vadd.f32 %v1595_v48, %v1547_v43  ;;  %v2459_v56 = vmul.f32 %v2443_v53, %v1499_v30  ;;  %v2507_v18 = vmul.f32 %v2491_v22, %v1499_v30  ;;  %v3163_v52 = vmul.f32 0.8333333, %v1563_v24  ;;  %vm763_vm5 = vmand %vm731_vm2, %vm747_vm3  ;;  %v5279_v53 = vld [vmem:[#allocation3] sm:$0xff] }
 0x189   :  { %v1675_v20 = vsub.f32 -0.2, %v6782_v58  ;;  %v4888_v2 = vsel %vm763_vm5, 1.0, %v8474_v63  ;;  %v1643_v10 = vmul.f32 2.5, %v6814_v29  ;;  %v2571_v16 = vmul.f32 1.25, %v6807_v55 }
 0x18a   :  { %v2539_v9 = vmul.f32 %v2523_v54, %v1611_v60  ;;  %v2475_v42 = vadd.f32 %v2459_v56, %v2427_v62  ;;  %v3211_v57 = vmul.f32 0.8333333, %v5016_v41  ;;  %vm811_vm0 = vcmp.ge.f32.partialorder %v6782_v58, -0.2 }
 0x18b   :  { %v1691_v51 = vmul.f32 2.5, %v1675_v20  ;;  %v1659_v46 = vmul.f32 %v4872_v12, %v1643_v10  ;;  %v2603_v13 = vmul.f32 1.25, %v1675_v20  ;;  %vm827_vm6 = vcmp.lt.f32.partialorder %v6782_v58, 0.2 }
 0x18c   :  { %v2555_v39 = vadd.f32 %v2539_v9, %v2507_v18  ;;  %v3147_v30 = vmul.f32 %v3131_v28, %v2475_v42  ;;  %v6823_v54 = vadd.f32 0.6, %v6782_v58  ;;  %v6825_v24 = vadd.f32 -0.2, %v5279_v53  ;;  %vm843_vm11 = vmand %vm811_vm0, %vm827_vm6 }
 0x18d   :  { %v1707_v22 = vmul.f32 %v4888_v2, %v1691_v51  ;;  %v2587_v17 = vmul.f32 %v2571_v16, %v1611_v60  ;;  %v1787_v41 = vsub.f32 0.2, %v6782_v58  ;;  %v6829_v12 = vsel %vm843_vm11, 1.0, %v8474_v63 }
 0x18e   :  { %8495 = vst [vmem:[#allocation42_spill] sm:$0xff] %v6823_v54  ;;  %v3179_v26 = vmul.f32 %v3163_v52, %v2555_v39  ;;  %v1755_v43 = vmul.f32 2.5, %v6823_v54  ;;  %v2651_v48 = vmul.f32 1.25, %v6814_v29  ;;  %v3227_v62 = vmul.f32 %v3211_v57, %v2555_v39 }
 0x18f   :  { %v1723_v14 = vadd.f32 %v1707_v22, %v1659_v46  ;;  %v3243_v56 = vmul.f32 0.8333333, %v1675_v20  ;;  %v1803_v18 = vmul.f32 2.5, %v1787_v41  ;;  %v2683_v42 = vmul.f32 1.25, %v1787_v41 }
 0x190   :  { %v3195_v28 = vadd.f32 %v3179_v26, %v3147_v30  ;;  %v1771_v10 = vmul.f32 %v4888_v2, %v1755_v43  ;;  %vm890_vm1 = vcmp.ge.f32.partialorder %v6709_v0, 0.2  ;;  %vm906_vm4 = vcmp.lt.f32.partialorder %v6709_v0, 0.6 }
 0x191   :  { %v2619_v9 = vmul.f32 %v2603_v13, %v1723_v14  ;;  %v1819_v60 = vmul.f32 %v6829_v12, %v1803_v18  ;;  %v6837_v52 = vadd.f32 0.2, %v6709_v0  ;;  %v1898_v16 = vsub.f32 0.6, %v6709_v0  ;;  %vm922_vm7 = vmand %vm890_vm1, %vm906_vm4 }
 0x192   :  { %4290 = vmatmul.f32.gmra.mxu1 %v3195_v28  ;;  %v2667_v46 = vmul.f32 %v2651_v48, %v1723_v14  ;;  %v3291_v20 = vmul.f32 0.8333333, %v6807_v55  ;;  %v2730_v2 = vmul.f32 1.25, %v6750_v15  ;;  %v6845_v39 = vsel %vm922_vm7, 1.0, %v8474_v63 }
 0x193   :  { %8496 = vst [vmem:[#allocation43_spill] sm:$0xff] %v6837_v52  ;;  %v2635_v51 = vadd.f32 %v2619_v9, %v2587_v17  ;;  %v6842_v57 = vadd.f32 %v1819_v60, %v1771_v10  ;;  %v1866_v13 = vmul.f32 2.5, %v6837_v52  ;;  %v1914_v30 = vmul.f32 2.5, %v1898_v16  ;;  %v4131_v17 = vld [vmem:[#allocation6 + $0x318] sm:$0xff] }
 0x194   :  { %v6849_v22 = vmul.f32 2.5, %v6825_v24  ;;  %v3323_v0 = vmul.f32 0.8333333, %v1787_v41  ;;  %v3370_v26 = vmul.f32 0.8333333, %v6741_v44  ;;  %v2762_v48 = vmul.f32 1.25, %v1898_v16  ;;  %4578 = vmatpush.msra.mxu2 %v4131_v17 }
 0x195   :  { %v3259_v53 = vmul.f32 %v3243_v56, %v2635_v51  ;;  %v2699_v55 = vmul.f32 %v2683_v42, %v6842_v57  ;;  %v1882_v14 = vmul.f32 %v6754_v35, %v1866_v13  ;;  %v1930_v43 = vmul.f32 %v6845_v39, %v1914_v30  ;;  %v6860_v41 = vld [vmem:[#allocation3 + $0x60] sm:$0xff] }
 0x196   :  { %v3307_v18 = vmul.f32 %v3291_v20, %v2635_v51  ;;  %v2746_v9 = vmul.f32 %v2730_v2, %v6767_v3  ;;  %v3402_v10 = vmul.f32 0.8333333, %v1898_v16  ;;  %vm412_vm12 = vcmp.ge.f32.partialorder %v6860_v41, -2.2 }
 0x197   :  { %v3275_v28 = vadd.f32 %v3259_v53, %v3227_v62  ;;  %v6856_v60 = vadd.f32 %v2699_v55, %v2667_v46  ;;  %v6858_v56 = vadd.f32 %v1930_v43, %v1882_v14  ;;  %vm428_vm15 = vcmp.lt.f32.partialorder %v6860_v41, -1.8  ;;  %v4147_v14 = vld [vmem:[#allocation6 + $0x398] sm:$0xff] }
 0x198   :  { %v3386_v44 = vmul.f32 %v3370_v26, %v6778_v8  ;;  %vm444_vm8 = vmand %vm412_vm12, %vm428_vm15  ;;  %vm492_vm9 = vcmp.ge.f32.partialorder %v6860_v41, -1.8  ;;  %vm508_vm13 = vcmp.lt.f32.partialorder %v6860_v41, -1.4  ;;  %vm572_vm10 = vcmp.ge.f32.partialorder %v6860_v41, -1.4  ;;  %4643 = vmatpush.msra.mxu3 %v4147_v14 }
 0x199   :  { %8497 = vst [vmem:[#allocation44_spill] sm:$0xff] %v6858_v56  ;;  %4355 = vmatmul.f32.gmra.mxu2 %v3275_v28  ;;  %v3339_v35 = vmul.f32 %v3323_v0, %v6856_v60  ;;  %v2778_v3 = vmul.f32 %v2762_v48, %v6858_v56  ;;  %v4825_v62 = vsel %vm444_vm8, 1.0, %v8474_v63  ;;  %vm524_vm14 = vmand %vm492_vm9, %vm508_vm13  ;;  %vm588_vm2 = vcmp.lt.f32.partialorder %v6860_v41, -1.0 }
 0x19a   :  { %v4841_v42 = vsel %vm524_vm14, 1.0, %v8474_v63  ;;  %vm604_vm3 = vmand %vm572_vm10, %vm588_vm2  ;;  %vm652_vm5 = vcmp.ge.f32.partialorder %v6860_v41, -1.0  ;;  %vm668_vm0 = vcmp.lt.f32.partialorder %v6860_v41, -0.6  ;;  %v5001_v8 = vadd.f32 2.2, %v6860_v41 }
 0x19b   :  { %v3355_v16 = vadd.f32 %v3339_v35, %v3307_v18  ;;  %v6876_v51 = vadd.f32 %v2778_v3, %v2746_v9  ;;  %v4857_v46 = vsel %vm604_vm3, 1.0, %v8474_v63  ;;  %vm684_vm6 = vmand %vm652_vm5, %vm668_vm0  ;;  %v1340_v20 = vsub.f32 -1.4, %v6860_v41  ;;  %v4164_v9 = vld [vmem:[#allocation6 + $0x420] sm:$0xff]  ;;  %v4115_v35 = vld [vmem:[#allocation6 + $0x298] sm:$0xff] }
 0x19c   :  { %v4873_v2 = vsel %vm684_vm6, 1.0, %v8474_v63  ;;  %v1308_v13 = vmul.f32 2.5, %v5001_v8  ;;  %v5017_v30 = vadd.f32 1.8, %v6860_v41  ;;  %v1452_v53 = vsub.f32 -1.0, %v6860_v41  ;;  %4707 = vmatpush.msra.mxu0 %v4164_v9  ;;  %4513 = vmatpush.msra.mxu1 %v4115_v35 }
 0x19d   :  { %8498 = vst [vmem:[#allocation45_spill] sm:$0xff] %v6876_v51  ;;  %4420 = vmatmul.f32.gmra.mxu3 %v3355_v16  ;;  %v3418_v0 = vmul.f32 %v3402_v10, %v6876_v51  ;;  %v1356_v26 = vmul.f32 2.5, %v1340_v20  ;;  %v6885_v17 = vadd.f32 1.4, %v6860_v41  ;;  %v1564_v55 = vsub.f32 -0.6, %v6860_v41 }
 0x19e   :  { %v1324_v43 = vmul.f32 %v4825_v62, %v1308_v13  ;;  %v1420_v48 = vmul.f32 2.5, %v5017_v30  ;;  %v1468_v28 = vmul.f32 2.5, %v1452_v53  ;;  %v2412_v18 = vmul.f32 1.25, %v5001_v8 }
 0x19f   :  { %v3434_v3 = vadd.f32 %v3418_v0, %v3386_v44  ;;  %v1372_v15 = vmul.f32 %v4841_v42, %v1356_v26  ;;  %v1532_v16 = vmul.f32 2.5, %v6885_v17  ;;  %v1580_v56 = vmul.f32 2.5, %v1564_v55 }
 0x1a0   :  { %v1436_v10 = vmul.f32 %v4841_v42, %v1420_v48  ;;  %v1484_v20 = vmul.f32 %v4857_v46, %v1468_v28  ;;  %v2444_v51 = vmul.f32 1.25, %v1452_v53  ;;  %v2492_v52 = vmul.f32 1.25, %v5017_v30 }
 0x1a1   :  { %4482 = vmatmul.f32.gmra.mxu0 %v3434_v3  ;;  %v1388_v7 = vadd.f32 %v1372_v15, %v1324_v43  ;;  %v1548_v62 = vmul.f32 %v4857_v46, %v1532_v16  ;;  %v1596_v13 = vmul.f32 %v4873_v2, %v1580_v56  ;;  %v2524_v34 = vmul.f32 1.25, %v1564_v55 }
 0x1a2   :  { %v6889_v14 = vadd.f32 -0.2, %v5281_v33  ;;  %v1500_v21 = vadd.f32 %v1484_v20, %v1436_v10  ;;  %v3132_v44 = vmul.f32 0.8333333, %v5001_v8  ;;  %vm732_vm11 = vcmp.ge.f32.partialorder %v6860_v41, -0.6 }
 0x1a3   :  { %v1612_v0 = vadd.f32 %v1596_v13, %v1548_v62  ;;  %v2428_v26 = vmul.f32 %v2412_v18, %v1388_v7  ;;  %vm748_vm1 = vcmp.lt.f32.partialorder %v6860_v41, -0.2  ;;  %v6894_v42 = vadd.f32 1.0, %v6860_v41 }
 0x1a4   :  { %8499 = vst [vmem:[#allocation46_spill] sm:$0xff] %v6889_v14  ;;  %v2460_v53 = vmul.f32 %v2444_v51, %v1500_v21  ;;  %v2508_v48 = vmul.f32 %v2492_v52, %v1500_v21  ;;  %v3164_v15 = vmul.f32 0.8333333, %v1564_v55  ;;  %vm764_vm4 = vmand %vm732_vm11, %vm748_vm1  ;;  %v1676_v56 = vsub.f32 -0.2, %v6860_v41 }
 0x1a5   :  { %v2540_v46 = vmul.f32 %v2524_v34, %v1612_v0  ;;  %v4889_v33 = vsel %vm764_vm4, 1.0, %v8474_v63  ;;  %v1644_v8 = vmul.f32 2.5, %v6894_v42  ;;  %v2572_v43 = vmul.f32 1.25, %v6885_v17 }
 0x1a6   :  { %v6902_v7 = vmul.f32 %v6117_v23, %v6849_v22  ;;  %v2476_v28 = vadd.f32 %v2460_v53, %v2428_v26  ;;  %v1692_v18 = vmul.f32 2.5, %v1676_v56  ;;  %v3212_v9 = vmul.f32 0.8333333, %v5017_v30 }
 0x1a7   :  { %v2556_v51 = vadd.f32 %v2540_v46, %v2508_v48  ;;  %v1660_v21 = vmul.f32 %v4873_v2, %v1644_v8  ;;  %v2604_v52 = vmul.f32 1.25, %v1676_v56  ;;  %vm812_vm7 = vcmp.ge.f32.partialorder %v6860_v41, -0.2 }
 0x1a8   :  { %v3148_v55 = vmul.f32 %v3132_v44, %v2476_v28  ;;  %v1708_v34 = vmul.f32 %v4889_v33, %v1692_v18  ;;  %vm828_vm12 = vcmp.lt.f32.partialorder %v6860_v41, 0.2  ;;  %v6907_v35 = vadd.f32 0.6, %v6860_v41 }
 0x1a9   :  { %v1972_v3 = vmul.f32 2.5, %v6889_v14  ;;  %v3180_v16 = vmul.f32 %v3164_v15, %v2556_v51  ;;  %v2588_v23 = vmul.f32 %v2572_v43, %v1612_v0  ;;  %vm844_vm15 = vmand %vm812_vm7, %vm828_vm12  ;;  %v1788_v22 = vsub.f32 0.2, %v6860_v41 }
 0x1aa   :  { %8500 = vst [vmem:[#allocation47_spill] sm:$0xff] %v6907_v35  ;;  %v1724_v30 = vadd.f32 %v1708_v34, %v1660_v21  ;;  %v6912_v2 = vsel %vm844_vm15, 1.0, %v8474_v63  ;;  %v1756_v10 = vmul.f32 2.5, %v6907_v35  ;;  %v2652_v20 = vmul.f32 1.25, %v6894_v42 }
 0x1ab   :  { %v3196_v62 = vadd.f32 %v3180_v16, %v3148_v55  ;;  %v3228_v13 = vmul.f32 %v3212_v9, %v2556_v51  ;;  %v3244_v44 = vmul.f32 0.8333333, %v1676_v56  ;;  %v1804_v26 = vmul.f32 2.5, %v1788_v22  ;;  %v4130_v16 = vld [vmem:[#allocation6 + $0x310] sm:$0xff] }
 0x1ac   :  { %v2620_v53 = vmul.f32 %v2604_v52, %v1724_v30  ;;  %v1772_v48 = vmul.f32 %v4889_v33, %v1756_v10  ;;  %v2684_v46 = vmul.f32 1.25, %v1788_v22  ;;  %vm891_vm8 = vcmp.ge.f32.partialorder %v6782_v58, 0.2  ;;  %4579 = vmatpush.msra.mxu2 %v4130_v16 }
 0x1ad   :  { %4293 = vmatmul.f32.gmra.mxu1 %v3196_v62  ;;  %v1820_v0 = vmul.f32 %v6912_v2, %v1804_v26  ;;  %vm907_vm9 = vcmp.lt.f32.partialorder %v6782_v58, 0.6  ;;  %v6920_v15 = vadd.f32 0.2, %v6782_v58  ;;  %v1899_v8 = vsub.f32 0.6, %v6782_v58 }
 0x1ae   :  { %v2636_v43 = vadd.f32 %v2620_v53, %v2588_v23  ;;  %v2668_v28 = vmul.f32 %v2652_v20, %v1724_v30  ;;  %v3292_v56 = vmul.f32 0.8333333, %v6885_v17  ;;  %vm923_vm13 = vmand %vm891_vm8, %vm907_vm9  ;;  %v2731_v33 = vmul.f32 1.25, %v6823_v54 }
 0x1af   :  { %8501 = vst [vmem:[#allocation48_spill] sm:$0xff] %v6920_v15  ;;  %v6925_v18 = vadd.f32 %v1820_v0, %v1772_v48  ;;  %v6928_v9 = vsel %vm923_vm13, 1.0, %v8474_v63  ;;  %v1867_v51 = vmul.f32 2.5, %v6920_v15  ;;  %v1915_v21 = vmul.f32 2.5, %v1899_v8  ;;  %v5283_v15 = vld [vmem:[#allocation3 + $0x28] sm:$0xff] }
 0x1b0   :  { %v6932_v52 = vmul.f32 %v6405_v37, %v1972_v3  ;;  %v3260_v55 = vmul.f32 %v3244_v44, %v2636_v43  ;;  %v3324_v58 = vmul.f32 0.8333333, %v1788_v22  ;;  %v3371_v34 = vmul.f32 0.8333333, %v6814_v29  ;;  %v6943_v22 = vld [vmem:[#allocation3 + $0x68] sm:$0xff] }
 0x1b1   :  { %v2700_v17 = vmul.f32 %v2684_v46, %v6925_v18  ;;  %v1883_v23 = vmul.f32 %v6829_v12, %v1867_v51  ;;  %v1931_v30 = vmul.f32 %v6928_v9, %v1915_v21  ;;  %v2763_v10 = vmul.f32 1.25, %v1899_v8 }
 0x1b2   :  { %8502 = vst [vmem:[#allocation49_spill] sm:$0xff] %v6932_v52  ;;  %v3276_v20 = vadd.f32 %v3260_v55, %v3228_v13  ;;  %v3308_v62 = vmul.f32 %v3292_v56, %v2636_v43  ;;  %v2747_v26 = vmul.f32 %v2731_v33, %v6842_v57  ;;  %v3403_v53 = vmul.f32 0.8333333, %v1899_v8 }
 0x1b3   :  { %v6939_v37 = vadd.f32 %v2700_v17, %v2668_v28  ;;  %v6941_v3 = vadd.f32 %v1931_v30, %v1883_v23  ;;  %vm413_vm10 = vcmp.ge.f32.partialorder %v6943_v22, -2.2  ;;  %vm429_vm14 = vcmp.lt.f32.partialorder %v6943_v22, -1.8 }
 0x1b4   :  { %4358 = vmatmul.f32.gmra.mxu2 %v3276_v20  ;;  %v3387_v29 = vmul.f32 %v3371_v34, %v6856_v60  ;;  %vm445_vm2 = vmand %vm413_vm10, %vm429_vm14  ;;  %vm493_vm3 = vcmp.ge.f32.partialorder %v6943_v22, -1.8  ;;  %vm509_vm5 = vcmp.lt.f32.partialorder %v6943_v22, -1.4  ;;  %vm573_vm0 = vcmp.ge.f32.partialorder %v6943_v22, -1.4 }
 0x1b5   :  { %8503 = vst [vmem:[#allocation50_spill] sm:$0xff] %v6941_v3  ;;  %v3340_v12 = vmul.f32 %v3324_v58, %v6939_v37  ;;  %v2779_v57 = vmul.f32 %v2763_v10, %v6941_v3  ;;  %v4826_v13 = vsel %vm445_vm2, 1.0, %v8474_v63  ;;  %vm525_vm6 = vmand %vm493_vm3, %vm509_vm5  ;;  %vm589_vm11 = vcmp.lt.f32.partialorder %v6943_v22, -1.0  ;;  %v4146_v34 = vld [vmem:[#allocation6 + $0x390] sm:$0xff]  ;;  %v4163_v10 = vld [vmem:[#allocation6 + $0x418] sm:$0xff] }
 0x1b6   :  { %v4842_v44 = vsel %vm525_vm6, 1.0, %v8474_v63  ;;  %vm605_vm1 = vmand %vm573_vm0, %vm589_vm11  ;;  %vm653_vm4 = vcmp.ge.f32.partialorder %v6943_v22, -1.0  ;;  %vm669_vm7 = vcmp.lt.f32.partialorder %v6943_v22, -0.6  ;;  %v5002_v60 = vadd.f32 2.2, %v6943_v22  ;;  %4644 = vmatpush.msra.mxu3 %v4146_v34  ;;  %4708 = vmatpush.msra.mxu0 %v4163_v10 }
 0x1b7   :  { %v3356_v48 = vadd.f32 %v3340_v12, %v3308_v62  ;;  %v6959_v46 = vadd.f32 %v2779_v57, %v2747_v26  ;;  %v4858_v0 = vsel %vm605_vm1, 1.0, %v8474_v63  ;;  %vm685_vm12 = vmand %vm653_vm4, %vm669_vm7  ;;  %v1341_v8 = vsub.f32 -1.4, %v6943_v22  ;;  %v4114_v20 = vld [vmem:[#allocation6 + $0x290] sm:$0xff] }
 0x1b8   :  { %v4874_v43 = vsel %vm685_vm12, 1.0, %v8474_v63  ;;  %v1309_v28 = vmul.f32 2.5, %v5002_v60  ;;  %v5018_v56 = vadd.f32 1.8, %v6943_v22  ;;  %v1453_v33 = vsub.f32 -1.0, %v6943_v22  ;;  %4514 = vmatpush.msra.mxu1 %v4114_v20 }
 0x1b9   :  { %8504 = vst [vmem:[#allocation51_spill] sm:$0xff] %v6959_v46  ;;  %4423 = vmatmul.f32.gmra.mxu3 %v3356_v48  ;;  %v3419_v51 = vmul.f32 %v3403_v53, %v6959_v46  ;;  %v1357_v21 = vmul.f32 2.5, %v1341_v8  ;;  %v6968_v55 = vadd.f32 1.4, %v6943_v22  ;;  %v1565_v58 = vsub.f32 -0.6, %v6943_v22 }
 0x1ba   :  { %v1325_v16 = vmul.f32 %v4826_v13, %v1309_v28  ;;  %v1421_v17 = vmul.f32 2.5, %v5018_v56  ;;  %v1469_v23 = vmul.f32 2.5, %v1453_v33  ;;  %v2413_v30 = vmul.f32 1.25, %v5002_v60 }
 0x1bb   :  { %v3435_v62 = vadd.f32 %v3419_v51, %v3387_v29  ;;  %v1373_v26 = vmul.f32 %v4842_v44, %v1357_v21  ;;  %v1533_v12 = vmul.f32 2.5, %v6968_v55  ;;  %v1581_v57 = vmul.f32 2.5, %v1565_v58 }
 0x1bc   :  { %v1437_v53 = vmul.f32 %v4842_v44, %v1421_v17  ;;  %v1485_v48 = vmul.f32 %v4858_v0, %v1469_v23  ;;  %v2445_v8 = vmul.f32 1.25, %v1453_v33  ;;  %v2493_v46 = vmul.f32 1.25, %v5018_v56 }
 0x1bd   :  { %4485 = vmatmul.f32.gmra.mxu0 %v3435_v62  ;;  %v1389_v3 = vadd.f32 %v1373_v26, %v1325_v16  ;;  %v1549_v13 = vmul.f32 %v4858_v0, %v1533_v12  ;;  %v1597_v28 = vmul.f32 %v4874_v43, %v1581_v57  ;;  %v2525_v54 = vmul.f32 1.25, %v1565_v58 }
 0x1be   :  { %v6972_v34 = vadd.f32 -0.2, %v5283_v15  ;;  %v1501_v14 = vadd.f32 %v1485_v48, %v1437_v53  ;;  %v3133_v29 = vmul.f32 0.8333333, %v5002_v60  ;;  %vm733_vm15 = vcmp.ge.f32.partialorder %v6943_v22, -0.6 }
 0x1bf   :  { %v1613_v51 = vadd.f32 %v1597_v28, %v1549_v13  ;;  %v2429_v21 = vmul.f32 %v2413_v30, %v1389_v3  ;;  %vm749_vm8 = vcmp.lt.f32.partialorder %v6943_v22, -0.2  ;;  %v6977_v44 = vadd.f32 1.0, %v6943_v22 }
 0x1c0   :  { %8505 = vst [vmem:[#allocation52_spill] sm:$0xff] %v6972_v34  ;;  %v2461_v33 = vmul.f32 %v2445_v8, %v1501_v14  ;;  %v2509_v17 = vmul.f32 %v2493_v46, %v1501_v14  ;;  %v3165_v16 = vmul.f32 0.8333333, %v1565_v58  ;;  %vm765_vm9 = vmand %vm733_vm15, %vm749_vm8  ;;  %v1677_v0 = vsub.f32 -0.2, %v6943_v22  ;;  %v5284_v58 = vld [vmem:[#allocation3 + $0x30] sm:$0xff] }
 0x1c1   :  { %v2541_v23 = vmul.f32 %v2525_v54, %v1613_v51  ;;  %v4890_v15 = vsel %vm765_vm9, 1.0, %v8474_v63  ;;  %v1645_v60 = vmul.f32 2.5, %v6977_v44  ;;  %v2573_v10 = vmul.f32 1.25, %v6968_v55 }
 0x1c2   :  { %v1973_v3 = vmul.f32 2.5, %v6972_v34  ;;  %v2477_v30 = vadd.f32 %v2461_v33, %v2429_v21  ;;  %v1693_v20 = vmul.f32 2.5, %v1677_v0  ;;  %v3213_v62 = vmul.f32 0.8333333, %v5018_v56 }
 0x1c3   :  { %v2557_v26 = vadd.f32 %v2541_v23, %v2509_v17  ;;  %v1661_v12 = vmul.f32 %v4874_v43, %v1645_v60  ;;  %v2605_v57 = vmul.f32 1.25, %v1677_v0  ;;  %vm813_vm13 = vcmp.ge.f32.partialorder %v6943_v22, -0.2 }
 0x1c4   :  { %v3149_v14 = vmul.f32 %v3133_v29, %v2477_v30  ;;  %v1709_v46 = vmul.f32 %v4890_v15, %v1693_v20  ;;  %vm829_vm10 = vcmp.lt.f32.partialorder %v6943_v22, 0.2  ;;  %v6987_v54 = vadd.f32 0.6, %v6943_v22 }
 0x1c5   :  { %v6989_v53 = vadd.f32 -0.2, %v5284_v58  ;;  %v3181_v48 = vmul.f32 %v3165_v16, %v2557_v26  ;;  %v2589_v8 = vmul.f32 %v2573_v10, %v1613_v51  ;;  %vm845_vm14 = vmand %vm813_vm13, %vm829_vm10  ;;  %v1789_v56 = vsub.f32 0.2, %v6943_v22 }
 0x1c6   :  { %8506 = vst [vmem:[#allocation53_spill] sm:$0xff] %v6987_v54  ;;  %v1725_v13 = vadd.f32 %v1709_v46, %v1661_v12  ;;  %v6993_v43 = vsel %vm845_vm14, 1.0, %v8474_v63  ;;  %v1757_v28 = vmul.f32 2.5, %v6987_v54  ;;  %v2653_v29 = vmul.f32 1.25, %v6977_v44 }
 0x1c7   :  { %8507 = vst [vmem:[#allocation54_spill] sm:$0xff] %v6989_v53  ;;  %v3197_v21 = vadd.f32 %v3181_v48, %v3149_v14  ;;  %v3229_v33 = vmul.f32 %v3213_v62, %v2557_v26  ;;  %v3245_v17 = vmul.f32 0.8333333, %v1677_v0  ;;  %v1805_v23 = vmul.f32 2.5, %v1789_v56 }
 0x1c8   :  { %v2621_v60 = vmul.f32 %v2605_v57, %v1725_v13  ;;  %v1773_v30 = vmul.f32 %v4890_v15, %v1757_v28  ;;  %v2685_v20 = vmul.f32 1.25, %v1789_v56  ;;  %vm892_vm2 = vcmp.ge.f32.partialorder %v6860_v41, 0.2 }
 0x1c9   :  { %4296 = vmatmul.f32.gmra.mxu1 %v3197_v21  ;;  %v1821_v51 = vmul.f32 %v6993_v43, %v1805_v23  ;;  %vm908_vm3 = vcmp.lt.f32.partialorder %v6860_v41, 0.6  ;;  %v7001_v16 = vadd.f32 0.2, %v6860_v41  ;;  %v1900_v10 = vsub.f32 0.6, %v6860_v41 }
 0x1ca   :  { %v2637_v12 = vadd.f32 %v2621_v60, %v2589_v8  ;;  %v2669_v14 = vmul.f32 %v2653_v29, %v1725_v13  ;;  %v3293_v0 = vmul.f32 0.8333333, %v6968_v55  ;;  %vm924_vm5 = vmand %vm892_vm2, %vm908_vm3  ;;  %v2732_v15 = vmul.f32 1.25, %v6907_v35  ;;  %v4129_v13 = vld [vmem:[#allocation6 + $0x308] sm:$0xff] }
 0x1cb   :  { %8508 = vst [vmem:[#allocation55_spill] sm:$0xff] %v7001_v16  ;;  %v7006_v62 = vadd.f32 %v1821_v51, %v1773_v30  ;;  %v7009_v26 = vsel %vm924_vm5, 1.0, %v8474_v63  ;;  %v1868_v57 = vmul.f32 2.5, %v7001_v16  ;;  %v1916_v46 = vmul.f32 2.5, %v1900_v10  ;;  %4580 = vmatpush.msra.mxu2 %v4129_v13 }
 0x1cc   :  { %v7013_v58 = vmul.f32 %v6478_v32, %v1973_v3  ;;  %v3261_v48 = vmul.f32 %v3245_v17, %v2637_v12  ;;  %v3325_v41 = vmul.f32 0.8333333, %v1789_v56  ;;  %v3372_v8 = vmul.f32 0.8333333, %v6894_v42  ;;  %v7024_v56 = vld [vmem:[#allocation3 + $0x70] sm:$0xff] }
 0x1cd   :  { %v2701_v55 = vmul.f32 %v2685_v20, %v7006_v62  ;;  %v1884_v28 = vmul.f32 %v6912_v2, %v1868_v57  ;;  %v1932_v29 = vmul.f32 %v7009_v26, %v1916_v46  ;;  %v2764_v21 = vmul.f32 1.25, %v1900_v10 }
 0x1ce   :  { %8509 = vst [vmem:[#allocation56_spill] sm:$0xff] %v7013_v58  ;;  %v3277_v23 = vadd.f32 %v3261_v48, %v3229_v33  ;;  %v3309_v60 = vmul.f32 %v3293_v0, %v2637_v12  ;;  %v2748_v30 = vmul.f32 %v2732_v15, %v6925_v18  ;;  %v3404_v51 = vmul.f32 0.8333333, %v1900_v10 }
 0x1cf   :  { %v7020_v32 = vadd.f32 %v2701_v55, %v2669_v14  ;;  %v7022_v3 = vadd.f32 %v1932_v29, %v1884_v28  ;;  %vm414_vm0 = vcmp.ge.f32.partialorder %v7024_v56, -2.2  ;;  %vm430_vm6 = vcmp.lt.f32.partialorder %v7024_v56, -1.8  ;;  %v4145_v55 = vld [vmem:[#allocation6 + $0x388] sm:$0xff] }
 0x1d0   :  { %4361 = vmatmul.f32.gmra.mxu2 %v3277_v23  ;;  %v3388_v42 = vmul.f32 %v3372_v8, %v6939_v37  ;;  %vm446_vm11 = vmand %vm414_vm0, %vm430_vm6  ;;  %vm494_vm1 = vcmp.ge.f32.partialorder %v7024_v56, -1.8  ;;  %vm510_vm4 = vcmp.lt.f32.partialorder %v7024_v56, -1.4  ;;  %vm574_vm7 = vcmp.ge.f32.partialorder %v7024_v56, -1.4  ;;  %4645 = vmatpush.msra.mxu3 %v4145_v55 }
 0x1d1   :  { %8510 = vst [vmem:[#allocation57_spill] sm:$0xff] %v7022_v3  ;;  %v3341_v2 = vmul.f32 %v3325_v41, %v7020_v32  ;;  %v2780_v18 = vmul.f32 %v2764_v21, %v7022_v3  ;;  %v4827_v33 = vsel %vm446_vm11, 1.0, %v8474_v63  ;;  %vm526_vm12 = vmand %vm494_vm1, %vm510_vm4  ;;  %vm590_vm15 = vcmp.lt.f32.partialorder %v7024_v56, -1.0 }
 0x1d2   :  { %v4843_v17 = vsel %vm526_vm12, 1.0, %v8474_v63  ;;  %vm606_vm8 = vmand %vm574_vm7, %vm590_vm15  ;;  %vm654_vm9 = vcmp.ge.f32.partialorder %v7024_v56, -1.0  ;;  %vm670_vm13 = vcmp.lt.f32.partialorder %v7024_v56, -0.6  ;;  %v5003_v37 = vadd.f32 2.2, %v7024_v56 }
 0x1d3   :  { %v3357_v20 = vadd.f32 %v3341_v2, %v3309_v60  ;;  %v7040_v10 = vadd.f32 %v2780_v18, %v2748_v30  ;;  %v4859_v12 = vsel %vm606_vm8, 1.0, %v8474_v63  ;;  %vm686_vm10 = vmand %vm654_vm9, %vm670_vm13  ;;  %v1342_v14 = vsub.f32 -1.4, %v7024_v56  ;;  %v4162_v60 = vld [vmem:[#allocation6 + $0x410] sm:$0xff]  ;;  %v4113_v30 = vld [vmem:[#allocation6 + $0x288] sm:$0xff] }
 0x1d4   :  { %v4875_v0 = vsel %vm686_vm10, 1.0, %v8474_v63  ;;  %v1310_v15 = vmul.f32 2.5, %v5003_v37  ;;  %v5019_v57 = vadd.f32 1.8, %v7024_v56  ;;  %v1454_v46 = vsub.f32 -1.0, %v7024_v56  ;;  %4709 = vmatpush.msra.mxu0 %v4162_v60  ;;  %4515 = vmatpush.msra.mxu1 %v4113_v30 }
 0x1d5   :  { %8511 = vst [vmem:[#allocation58_spill] sm:$0xff] %v7040_v10  ;;  %4426 = vmatmul.f32.gmra.mxu3 %v3357_v20  ;;  %v3420_v48 = vmul.f32 %v3404_v51, %v7040_v10  ;;  %v1358_v41 = vmul.f32 2.5, %v1342_v14  ;;  %v7049_v8 = vadd.f32 1.4, %v7024_v56  ;;  %v1566_v13 = vsub.f32 -0.6, %v7024_v56 }
 0x1d6   :  { %v1326_v28 = vmul.f32 %v4827_v33, %v1310_v15  ;;  %v1422_v29 = vmul.f32 2.5, %v5019_v57  ;;  %v1470_v21 = vmul.f32 2.5, %v1454_v46  ;;  %v2414_v23 = vmul.f32 1.25, %v5003_v37 }
 0x1d7   :  { %v3436_v2 = vadd.f32 %v3420_v48, %v3388_v42  ;;  %v1374_v18 = vmul.f32 %v4843_v17, %v1358_v41  ;;  %v1534_v20 = vmul.f32 2.5, %v7049_v8  ;;  %v1582_v3 = vmul.f32 2.5, %v1566_v13 }
 0x1d8   :  { %v1438_v51 = vmul.f32 %v4843_v17, %v1422_v29  ;;  %v1486_v14 = vmul.f32 %v4859_v12, %v1470_v21  ;;  %v2446_v10 = vmul.f32 1.25, %v1454_v46  ;;  %v2494_v35 = vmul.f32 1.25, %v5019_v57 }
 0x1d9   :  { %4488 = vmatmul.f32.gmra.mxu0 %v3436_v2  ;;  %v1390_v16 = vadd.f32 %v1374_v18, %v1326_v28  ;;  %v1550_v33 = vmul.f32 %v4859_v12, %v1534_v20  ;;  %v1598_v15 = vmul.f32 %v4875_v0, %v1582_v3  ;;  %v2526_v58 = vmul.f32 1.25, %v1566_v13  ;;  %v5286_v18 = vld [vmem:[#allocation3 + $0x38] sm:$0xff] }
 0x1da   :  { %v1974_v55 = vmul.f32 2.5, %v6989_v53  ;;  %v1502_v34 = vadd.f32 %v1486_v14, %v1438_v51  ;;  %v3134_v52 = vmul.f32 0.8333333, %v5003_v37  ;;  %vm734_vm14 = vcmp.ge.f32.partialorder %v7024_v56, -0.6 }
 0x1db   :  { %v1614_v42 = vadd.f32 %v1598_v15, %v1550_v33  ;;  %v2430_v48 = vmul.f32 %v2414_v23, %v1390_v16  ;;  %vm750_vm2 = vcmp.lt.f32.partialorder %v7024_v56, -0.2  ;;  %v7057_v17 = vadd.f32 1.0, %v7024_v56 }
 0x1dc   :  { %v2462_v46 = vmul.f32 %v2446_v10, %v1502_v34  ;;  %v2510_v41 = vmul.f32 %v2494_v35, %v1502_v34  ;;  %v3166_v29 = vmul.f32 0.8333333, %v1566_v13  ;;  %vm766_vm3 = vmand %vm734_vm14, %vm750_vm2  ;;  %v1678_v3 = vsub.f32 -0.2, %v7024_v56 }
 0x1dd   :  { %v2542_v12 = vmul.f32 %v2526_v58, %v1614_v42  ;;  %v4891_v28 = vsel %vm766_vm3, 1.0, %v8474_v63  ;;  %v1646_v37 = vmul.f32 2.5, %v7057_v17  ;;  %v2574_v21 = vmul.f32 1.25, %v7049_v8 }
 0x1de   :  { %v7064_v16 = vmul.f32 %v6551_v19, %v1974_v55  ;;  %v2478_v23 = vadd.f32 %v2462_v46, %v2430_v48  ;;  %v1694_v60 = vmul.f32 2.5, %v1678_v3  ;;  %v3214_v30 = vmul.f32 0.8333333, %v5019_v57 }
 0x1df   :  { %v2558_v2 = vadd.f32 %v2542_v12, %v2510_v41  ;;  %v1662_v10 = vmul.f32 %v4875_v0, %v1646_v37  ;;  %v2606_v35 = vmul.f32 1.25, %v1678_v3  ;;  %vm814_vm5 = vcmp.ge.f32.partialorder %v7024_v56, -0.2 }
 0x1e0   :  { %8512 = vst [vmem:[#allocation59_spill] sm:$0xff] %v7064_v16  ;;  %v3150_v34 = vmul.f32 %v3134_v52, %v2478_v23  ;;  %v1710_v13 = vmul.f32 %v4891_v28, %v1694_v60  ;;  %vm830_vm0 = vcmp.lt.f32.partialorder %v7024_v56, 0.2  ;;  %v7069_v58 = vadd.f32 0.6, %v7024_v56  ;;  %v5288_v16 = vld [vmem:[#allocation3 + $0x40] sm:$0xff] }
 0x1e1   :  { %v7071_v20 = vadd.f32 -0.2, %v5286_v18  ;;  %v3182_v19 = vmul.f32 %v3166_v29, %v2558_v2  ;;  %v2590_v51 = vmul.f32 %v2574_v21, %v1614_v42  ;;  %vm846_vm6 = vmand %vm814_vm5, %vm830_vm0  ;;  %v1790_v57 = vsub.f32 0.2, %v7024_v56 }
 0x1e2   :  { %8513 = vst [vmem:[#allocation60_spill] sm:$0xff] %v7069_v58  ;;  %v1726_v14 = vadd.f32 %v1710_v13, %v1662_v10  ;;  %v7075_v0 = vsel %vm846_vm6, 1.0, %v8474_v63  ;;  %v1758_v52 = vmul.f32 2.5, %v7069_v58  ;;  %v2654_v33 = vmul.f32 1.25, %v7057_v17 }
 0x1e3   :  { %8514 = vst [vmem:[#allocation61_spill] sm:$0xff] %v7071_v20  ;;  %v3198_v15 = vadd.f32 %v3182_v19, %v3150_v34  ;;  %v3230_v55 = vmul.f32 %v3214_v30, %v2558_v2  ;;  %v3246_v48 = vmul.f32 0.8333333, %v1678_v3  ;;  %v1806_v46 = vmul.f32 2.5, %v1790_v57  ;;  %v4128_v19 = vld [vmem:[#allocation6 + $0x300] sm:$0xff] }
 0x1e4   :  { %v2622_v41 = vmul.f32 %v2606_v35, %v1726_v14  ;;  %v1774_v12 = vmul.f32 %v4891_v28, %v1758_v52  ;;  %v2686_v37 = vmul.f32 1.25, %v1790_v57  ;;  %vm893_vm11 = vcmp.ge.f32.partialorder %v6943_v22, 0.2  ;;  %4581 = vmatpush.msra.mxu2 %v4128_v19 }
 0x1e5   :  { %4299 = vmatmul.f32.gmra.mxu1 %v3198_v15  ;;  %v1822_v42 = vmul.f32 %v7075_v0, %v1806_v46  ;;  %vm909_vm1 = vcmp.lt.f32.partialorder %v6943_v22, 0.6  ;;  %v7083_v29 = vadd.f32 0.2, %v6943_v22  ;;  %v1901_v21 = vsub.f32 0.6, %v6943_v22 }
 0x1e6   :  { %v2638_v23 = vadd.f32 %v2622_v41, %v2590_v51  ;;  %v2670_v60 = vmul.f32 %v2654_v33, %v1726_v14  ;;  %v3294_v3 = vmul.f32 0.8333333, %v7049_v8  ;;  %vm925_vm4 = vmand %vm893_vm11, %vm909_vm1  ;;  %v2733_v28 = vmul.f32 1.25, %v6987_v54 }
 0x1e7   :  { %8515 = vst [vmem:[#allocation62_spill] sm:$0xff] %v7083_v29  ;;  %v7088_v30 = vadd.f32 %v1822_v42, %v1774_v12  ;;  %v7091_v2 = vsel %vm925_vm4, 1.0, %v8474_v63  ;;  %v1869_v10 = vmul.f32 2.5, %v7083_v29  ;;  %v1917_v35 = vmul.f32 2.5, %v1901_v21 }
 0x1e8   :  { %v7095_v34 = vmul.f32 2.5, %v7071_v20  ;;  %v3262_v13 = vmul.f32 %v3246_v48, %v2638_v23  ;;  %v3326_v22 = vmul.f32 0.8333333, %v1790_v57  ;;  %v3373_v18 = vmul.f32 0.8333333, %v6977_v44  ;;  %v7106_v57 = vld [vmem:[#allocation3 + $0x78] sm:$0xff] }
 0x1e9   :  { %v2702_v8 = vmul.f32 %v2686_v37, %v7088_v30  ;;  %v1885_v51 = vmul.f32 %v6993_v43, %v1869_v10  ;;  %v1933_v14 = vmul.f32 %v7091_v2, %v1917_v35  ;;  %v2765_v52 = vmul.f32 1.25, %v1901_v21 }
 0x1ea   :  { %v3278_v33 = vadd.f32 %v3262_v13, %v3230_v55  ;;  %v3310_v15 = vmul.f32 %v3294_v3, %v2638_v23  ;;  %v2749_v46 = vmul.f32 %v2733_v28, %v7006_v62  ;;  %v3405_v41 = vmul.f32 0.8333333, %v1901_v21 }
 0x1eb   :  { %v7102_v12 = vadd.f32 %v2702_v8, %v2670_v60  ;;  %v7104_v48 = vadd.f32 %v1933_v14, %v1885_v51  ;;  %vm415_vm7 = vcmp.ge.f32.partialorder %v7106_v57, -2.2  ;;  %vm431_vm12 = vcmp.lt.f32.partialorder %v7106_v57, -1.8  ;;  %v4144_v8 = vld [vmem:[#allocation6 + $0x380] sm:$0xff] }
 0x1ec   :  { %4364 = vmatmul.f32.gmra.mxu2 %v3278_v33  ;;  %v3389_v44 = vmul.f32 %v3373_v18, %v7020_v32  ;;  %vm447_vm15 = vmand %vm415_vm7, %vm431_vm12  ;;  %vm495_vm8 = vcmp.ge.f32.partialorder %v7106_v57, -1.8  ;;  %vm511_vm9 = vcmp.lt.f32.partialorder %v7106_v57, -1.4  ;;  %vm575_vm13 = vcmp.ge.f32.partialorder %v7106_v57, -1.4  ;;  %4646 = vmatpush.msra.mxu3 %v4144_v8 }
 0x1ed   :  { %8516 = vst [vmem:[#allocation63_spill] sm:$0xff] %v7104_v48  ;;  %v3342_v43 = vmul.f32 %v3326_v22, %v7102_v12  ;;  %v2781_v62 = vmul.f32 %v2765_v52, %v7104_v48  ;;  %v4828_v55 = vsel %vm447_vm15, 1.0, %v8474_v63  ;;  %vm527_vm10 = vmand %vm495_vm8, %vm511_vm9  ;;  %vm591_vm14 = vcmp.lt.f32.partialorder %v7106_v57, -1.0 }
 0x1ee   :  { %v4844_v37 = vsel %vm527_vm10, 1.0, %v8474_v63  ;;  %vm607_vm2 = vmand %vm575_vm13, %vm591_vm14  ;;  %vm655_vm3 = vcmp.ge.f32.partialorder %v7106_v57, -1.0  ;;  %vm671_vm5 = vcmp.lt.f32.partialorder %v7106_v57, -0.6  ;;  %v5004_v32 = vadd.f32 2.2, %v7106_v57 }
 0x1ef   :  { %v3358_v42 = vadd.f32 %v3342_v43, %v3310_v15  ;;  %v7122_v21 = vadd.f32 %v2781_v62, %v2749_v46  ;;  %v4860_v23 = vsel %vm607_vm2, 1.0, %v8474_v63  ;;  %vm687_vm0 = vmand %vm655_vm3, %vm671_vm5  ;;  %v1343_v60 = vsub.f32 -1.4, %v7106_v57  ;;  %v4161_v15 = vld [vmem:[#allocation6 + $0x408] sm:$0xff]  ;;  %v4112_v46 = vld [vmem:[#allocation6 + $0x280] sm:$0xff] }
 0x1f0   :  { %v4876_v3 = vsel %vm687_vm0, 1.0, %v8474_v63  ;;  %v1311_v28 = vmul.f32 2.5, %v5004_v32  ;;  %v5020_v10 = vadd.f32 1.8, %v7106_v57  ;;  %v1455_v35 = vsub.f32 -1.0, %v7106_v57  ;;  %4710 = vmatpush.msra.mxu0 %v4161_v15  ;;  %4516 = vmatpush.msra.mxu1 %v4112_v46 }
 0x1f1   :  { %8517 = vst [vmem:[#allocation64_spill] sm:$0xff] %v7122_v21  ;;  %4429 = vmatmul.f32.gmra.mxu3 %v3358_v42  ;;  %v3421_v13 = vmul.f32 %v3405_v41, %v7122_v21  ;;  %v1359_v22 = vmul.f32 2.5, %v1343_v60  ;;  %v7131_v18 = vadd.f32 1.4, %v7106_v57  ;;  %v1567_v19 = vsub.f32 -0.6, %v7106_v57 }
 0x1f2   :  { %v1327_v51 = vmul.f32 %v4828_v55, %v1311_v28  ;;  %v1423_v14 = vmul.f32 2.5, %v5020_v10  ;;  %v1471_v52 = vmul.f32 2.5, %v1455_v35  ;;  %v2415_v33 = vmul.f32 1.25, %v5004_v32 }
 0x1f3   :  { %v3437_v43 = vadd.f32 %v3421_v13, %v3389_v44  ;;  %v1375_v62 = vmul.f32 %v4844_v37, %v1359_v22  ;;  %v1535_v42 = vmul.f32 2.5, %v7131_v18  ;;  %v1583_v48 = vmul.f32 2.5, %v1567_v19 }
 0x1f4   :  { %v1439_v41 = vmul.f32 %v4844_v37, %v1423_v14  ;;  %v1487_v60 = vmul.f32 %v4860_v23, %v1471_v52  ;;  %v2447_v21 = vmul.f32 1.25, %v1455_v35  ;;  %v2495_v54 = vmul.f32 1.25, %v5020_v10 }
 0x1f5   :  { %4491 = vmatmul.f32.gmra.mxu0 %v3437_v43  ;;  %v1391_v29 = vadd.f32 %v1375_v62, %v1327_v51  ;;  %v1551_v55 = vmul.f32 %v4860_v23, %v1535_v42  ;;  %v1599_v28 = vmul.f32 %v4876_v3, %v1583_v48  ;;  %v2527_v20 = vmul.f32 1.25, %v1567_v19 }
 0x1f6   :  { %v7135_v8 = vadd.f32 -0.2, %v5288_v16  ;;  %v1503_v53 = vadd.f32 %v1487_v60, %v1439_v41  ;;  %v3135_v44 = vmul.f32 0.8333333, %v5004_v32  ;;  %vm735_vm6 = vcmp.ge.f32.partialorder %v7106_v57, -0.6 }
 0x1f7   :  { %v1615_v13 = vadd.f32 %v1599_v28, %v1551_v55  ;;  %v2431_v22 = vmul.f32 %v2415_v33, %v1391_v29  ;;  %vm751_vm11 = vcmp.lt.f32.partialorder %v7106_v57, -0.2  ;;  %v7140_v37 = vadd.f32 1.0, %v7106_v57 }
 0x1f8   :  { %v2463_v35 = vmul.f32 %v2447_v21, %v1503_v53  ;;  %v2511_v14 = vmul.f32 %v2495_v54, %v1503_v53  ;;  %v3167_v51 = vmul.f32 0.8333333, %v1567_v19  ;;  %vm767_vm1 = vmand %vm735_vm6, %vm751_vm11  ;;  %v1679_v48 = vsub.f32 -0.2, %v7106_v57  ;;  %v5289_v19 = vld [vmem:[#allocation3 + $0x48] sm:$0xff] }
 0x1f9   :  { %v2543_v23 = vmul.f32 %v2527_v20, %v1615_v13  ;;  %v4892_v16 = vsel %vm767_vm1, 1.0, %v8474_v63  ;;  %v1647_v32 = vmul.f32 2.5, %v7140_v37  ;;  %v2575_v52 = vmul.f32 1.25, %v7131_v18 }
 0x1fa   :  { %v1976_v29 = vmul.f32 2.5, %v7135_v8  ;;  %v2479_v33 = vadd.f32 %v2463_v35, %v2431_v22  ;;  %v1695_v15 = vmul.f32 2.5, %v1679_v48  ;;  %v3215_v46 = vmul.f32 0.8333333, %v5020_v10 }
 0x1fb   :  { %v2559_v43 = vadd.f32 %v2543_v23, %v2511_v14  ;;  %v1663_v62 = vmul.f32 %v4876_v3, %v1647_v32  ;;  %v2607_v21 = vmul.f32 1.25, %v1679_v48  ;;  %vm815_vm4 = vcmp.ge.f32.partialorder %v7106_v57, -0.2 }
 0x1fc   :  { %v3151_v54 = vmul.f32 %v3135_v44, %v2479_v33  ;;  %v1711_v53 = vmul.f32 %v4892_v16, %v1695_v15  ;;  %vm831_vm7 = vcmp.lt.f32.partialorder %v7106_v57, 0.2  ;;  %v7150_v20 = vadd.f32 0.6, %v7106_v57 }
 0x1fd   :  { %v7152_v42 = vadd.f32 -0.2, %v5289_v19  ;;  %v3183_v41 = vmul.f32 %v3167_v51, %v2559_v43  ;;  %v2591_v60 = vmul.f32 %v2575_v52, %v1615_v13  ;;  %vm847_vm12 = vmand %vm815_vm4, %vm831_vm7  ;;  %v1791_v10 = vsub.f32 0.2, %v7106_v57 }
 0x1fe   :  { %8518 = vst [vmem:[#allocation65_spill] sm:$0xff] %v7150_v20  ;;  %v1727_v55 = vadd.f32 %v1711_v53, %v1663_v62  ;;  %v7156_v3 = vsel %vm847_vm12, 1.0, %v8474_v63  ;;  %v1759_v28 = vmul.f32 2.5, %v7150_v20  ;;  %v2655_v44 = vmul.f32 1.25, %v7140_v37 }
 0x1ff   :  { %v3199_v22 = vadd.f32 %v3183_v41, %v3151_v54  ;;  %v3231_v35 = vmul.f32 %v3215_v46, %v2559_v43  ;;  %v3247_v14 = vmul.f32 0.8333333, %v1679_v48  ;;  %v1807_v23 = vmul.f32 2.5, %v1791_v10 }
 0x200   :  { %v2623_v32 = vmul.f32 %v2607_v21, %v1727_v55  ;;  %v1775_v33 = vmul.f32 %v4892_v16, %v1759_v28  ;;  %v2687_v15 = vmul.f32 1.25, %v1791_v10  ;;  %vm894_vm15 = vcmp.ge.f32.partialorder %v7024_v56, 0.2 }
 0x201   :  { %4302 = vmatmul.f32.gmra.mxu1 %v3199_v22  ;;  %v1823_v13 = vmul.f32 %v7156_v3, %v1807_v23  ;;  %vm910_vm8 = vcmp.lt.f32.partialorder %v7024_v56, 0.6  ;;  %v7164_v51 = vadd.f32 0.2, %v7024_v56  ;;  %v1902_v52 = vsub.f32 0.6, %v7024_v56 }
 0x202   :  { %v2639_v62 = vadd.f32 %v2623_v32, %v2591_v60  ;;  %v2671_v54 = vmul.f32 %v2655_v44, %v1727_v55  ;;  %v3295_v48 = vmul.f32 0.8333333, %v7131_v18  ;;  %vm926_vm9 = vmand %vm894_vm15, %vm910_vm8  ;;  %v2734_v16 = vmul.f32 1.25, %v7069_v58 }
 0x203   :  { %8519 = vst [vmem:[#allocation66_spill] sm:$0xff] %v7164_v51  ;;  %v7169_v46 = vadd.f32 %v1823_v13, %v1775_v33  ;;  %v7172_v43 = vsel %vm926_vm9, 1.0, %v8474_v63  ;;  %v1870_v21 = vmul.f32 2.5, %v7164_v51  ;;  %v1918_v53 = vmul.f32 2.5, %v1902_v52  ;;  %v5291_v13 = vld [vmem:[#allocation3 + $0x50] sm:$0xff] }
 0x204   :  { %v7177_v19 = vmul.f32 %v6624_v6, %v7095_v34  ;;  %v7180_v56 = vmul.f32 %v6697_v4, %v1976_v29  ;;  %v3263_v41 = vmul.f32 %v3247_v14, %v2639_v62  ;;  %v3327_v18 = vmul.f32 0.8333333, %v1791_v10  ;;  %v7192_v29 = vld [vmem:[#allocation3] sm:$0xff] }
 0x205   :  { %v2703_v60 = vmul.f32 %v2687_v15, %v7169_v46  ;;  %v1886_v55 = vmul.f32 %v7075_v0, %v1870_v21  ;;  %v1934_v28 = vmul.f32 %v7172_v43, %v1918_v53  ;;  %v2766_v44 = vmul.f32 1.25, %v1902_v52  ;;  %v4160_v0 = vld [vmem:[#allocation6 + $0x400] sm:$0xff] }
 0x206   :  { %v1977_v22 = vmul.f32 2.5, %v7152_v42  ;;  %v3279_v23 = vadd.f32 %v3263_v41, %v3231_v35  ;;  %v3311_v32 = vmul.f32 %v3295_v48, %v2639_v62  ;;  %v3374_v33 = vmul.f32 0.8333333, %v7057_v17  ;;  %4711 = vmatpush.msra.mxu0 %v4160_v0 }
 0x207   :  { %v7187_v6 = vadd.f32 %v2703_v60, %v2671_v54  ;;  %v7189_v34 = vadd.f32 %v1934_v28, %v1886_v55  ;;  %v2750_v4 = vmul.f32 %v2734_v16, %v7088_v30  ;;  %vm960_vm13 = vcmp.ge.f32.partialorder %v7192_v29, 0.6 }
 0x208   :  { %4367 = vmatmul.f32.gmra.mxu2 %v3279_v23  ;;  %v3406_v10 = vmul.f32 0.8333333, %v1902_v52  ;;  %vm976_vm10 = vcmp.lt.f32.partialorder %v7192_v29, 1.0  ;;  %v2000_v35 = vsub.f32 1.0, %v7192_v29  ;;  %v2800_v14 = vmul.f32 1.25, %v6110_v11 }
 0x209   :  { %8520 = vst [vmem:[#allocation67_spill] sm:$0xff] %v7189_v34  ;;  %v3343_v17 = vmul.f32 %v3327_v18, %v7187_v6  ;;  %v2782_v15 = vmul.f32 %v2766_v44, %v7189_v34  ;;  %vm992_vm14 = vmand %vm960_vm13, %vm976_vm10  ;;  %vm1040_vm2 = vcmp.ge.f32.partialorder %v7192_v29, 1.0  ;;  %vm1056_vm3 = vcmp.lt.f32.partialorder %v7192_v29, 1.4 }
 0x20a   :  { %v7203_v30 = vmul.f32 %v6770_v38, %v1977_v22  ;;  %v7205_v52 = vadd.f32 -0.2, %v5291_v13  ;;  %v4925_v62 = vsel %vm992_vm14, 1.0, %v8474_v63  ;;  %v2016_v54 = vmul.f32 2.5, %v2000_v35  ;;  %vm1072_vm5 = vmand %vm1040_vm2, %vm1056_vm3 }
 0x20b   :  { %v3359_v48 = vadd.f32 %v3343_v17, %v3311_v32  ;;  %v7208_v16 = vadd.f32 %v2782_v15, %v2750_v4  ;;  %v3390_v21 = vmul.f32 %v3374_v33, %v7102_v12  ;;  %v3440_v53 = vmul.f32 0.8333333, %v6020_v61 }
 0x20c   :  { %v2032_v41 = vmul.f32 %v4925_v62, %v2016_v54  ;;  %v2832_v18 = vmul.f32 1.25, %v2000_v35  ;;  %v7213_v60 = vadd.f32 -0.6, %v7192_v29  ;;  %v2112_v38 = vsub.f32 1.4, %v7192_v29 }
 0x20d   :  { %8521 = vst [vmem:[#allocation68_spill] sm:$0xff] %v7208_v16  ;;  %4432 = vmatmul.f32.gmra.mxu3 %v3359_v48  ;;  %v3422_v55 = vmul.f32 %v3406_v10, %v7208_v16  ;;  %v2816_v28 = vmul.f32 %v2800_v14, %v6134_v1  ;;  %v4941_v44 = vsel %vm1072_vm5, 1.0, %v8474_v63  ;;  %vm895_vm0 = vcmp.ge.f32.partialorder %v7106_v57, 0.2 }
 0x20e   :  { %v2048_v12 = vadd.f32 %v2032_v41, %v6902_v7  ;;  %v2080_v61 = vmul.f32 2.5, %v7213_v60  ;;  %v2128_v22 = vmul.f32 2.5, %v2112_v38  ;;  %v2880_v23 = vmul.f32 1.25, %v6825_v24 }
 0x20f   :  { %v3438_v32 = vadd.f32 %v3422_v55, %v3390_v21  ;;  %v3472_v33 = vmul.f32 0.8333333, %v2000_v35  ;;  %vm911_vm6 = vcmp.lt.f32.partialorder %v7106_v57, 0.6  ;;  %v7225_v4 = vadd.f32 0.2, %v7106_v57 }
 0x210   :  { %v2848_v0 = vmul.f32 %v2832_v18, %v2048_v12  ;;  %v2096_v1 = vmul.f32 %v4925_v62, %v2080_v61  ;;  %v2144_v10 = vmul.f32 %v4941_v44, %v2128_v22  ;;  %v2912_v14 = vmul.f32 1.25, %v2112_v38  ;;  %vm927_vm11 = vmand %vm895_vm0, %vm911_vm6 }
 0x211   :  { %8522 = vst [vmem:[#allocation69_spill] sm:$0xff] %v7225_v4  ;;  %4494 = vmatmul.f32.gmra.mxu0 %v3438_v32  ;;  %v3456_v7 = vmul.f32 %v3440_v53, %v6150_v31  ;;  %v3520_v17 = vmul.f32 0.8333333, %v6110_v11  ;;  %v1871_v15 = vmul.f32 2.5, %v7225_v4  ;;  %v1903_v13 = vsub.f32 0.6, %v7106_v57 }
 0x212   :  { %v2864_v35 = vadd.f32 %v2848_v0, %v2816_v28  ;;  %v2160_v54 = vadd.f32 %v2144_v10, %v2096_v1  ;;  %v2896_v48 = vmul.f32 %v2880_v23, %v2048_v12  ;;  %v7232_v21 = vsel %vm927_vm11, 1.0, %v8474_v63  ;;  %v5292_v31 = vld [vmem:[#allocation3 + $0x58] sm:$0xff] }
 0x213   :  { %v1978_v62 = vmul.f32 2.5, %v7205_v52  ;;  %v1887_v41 = vmul.f32 %v7156_v3, %v1871_v15  ;;  %v1919_v18 = vmul.f32 2.5, %v1903_v13  ;;  %v2735_v55 = vmul.f32 1.25, %v7150_v20 }
 0x214   :  { %v7237_v53 = vadd.f32 -0.2, %v5292_v31  ;;  %v3488_v11 = vmul.f32 %v3472_v33, %v2864_v35  ;;  %v2928_v61 = vmul.f32 %v2912_v14, %v2160_v54  ;;  %v3552_v22 = vmul.f32 0.8333333, %v2112_v38 }
 0x215   :  { %v3536_v32 = vmul.f32 %v3520_v17, %v2864_v35  ;;  %v1935_v28 = vmul.f32 %v7232_v21, %v1919_v18  ;;  %v2767_v12 = vmul.f32 1.25, %v1903_v13  ;;  %v3375_v23 = vmul.f32 0.8333333, %v7140_v37 }
 0x216   :  { %v3504_v0 = vadd.f32 %v3488_v11, %v3456_v7  ;;  %v2944_v1 = vadd.f32 %v2928_v61, %v2896_v48  ;;  %vm1120_vm1 = vcmp.ge.f32.partialorder %v7192_v29, 1.4  ;;  %vm1136_vm4 = vcmp.lt.f32.partialorder %v7192_v29, 1.8 }
 0x217   :  { %v7243_v3 = vadd.f32 %v1935_v28, %v1887_v41  ;;  %v2751_v10 = vmul.f32 %v2735_v55, %v7169_v46  ;;  %vm1152_vm7 = vmand %vm1120_vm1, %vm1136_vm4  ;;  %v7247_v33 = vadd.f32 -1.0, %v7192_v29  ;;  %v2224_v38 = vsub.f32 1.8, %v7192_v29 }
 0x218   :  { %v1979_v14 = vmul.f32 2.5, %v7237_v53  ;;  %4517 = vmatmul.f32.vlgmr.msra.gmra.mxu1 %v3504_v0  ;;  %v3568_v37 = vmul.f32 %v3552_v22, %v2944_v1  ;;  %v3407_v7 = vmul.f32 0.8333333, %v1903_v13  ;;  %v7252_v17 = vsel %vm1152_vm7, 1.0, %v8474_v63 }
 0x219   :  { %8523 = vst [vmem:[#allocation70_spill] sm:$0xff] %v7243_v3  ;;  %v2783_v15 = vmul.f32 %v2767_v12, %v7243_v3  ;;  %v2192_v35 = vmul.f32 2.5, %v7247_v33  ;;  %v2240_v48 = vmul.f32 2.5, %v2224_v38  ;;  %v2960_v46 = vmul.f32 1.25, %v7213_v60  ;;  %v7268_v12 = vld [vmem:[#allocation3 + $0x8] sm:$0xff] }
 0x21a   :  { %v7258_v41 = vmul.f32 %v6845_v39, %v1978_v62  ;;  %v3584_v18 = vadd.f32 %v3568_v37, %v3536_v32  ;;  %v3391_v55 = vmul.f32 %v3375_v23, %v7187_v6  ;;  %v3600_v31 = vmul.f32 0.8333333, %v6825_v24 }
 0x21b   :  { %v7262_v11 = vadd.f32 %v2783_v15, %v2751_v10  ;;  %v2208_v13 = vmul.f32 %v4941_v44, %v2192_v35  ;;  %v2256_v61 = vmul.f32 %v7252_v17, %v2240_v48  ;;  %v2992_v22 = vmul.f32 1.25, %v2224_v38  ;;  %v5294_v35 = vld [vmem:[#allocation3 + $0x60] sm:$0xff] }
 0x21c   :  { %v7266_v28 = vmul.f32 %v6928_v9, %v1979_v14  ;;  %4582 = vmatmul.f32.vlgmr.msra.gmra.mxu2 %v3584_v18  ;;  %vm961_vm12 = vcmp.ge.f32.partialorder %v7268_v12, 0.6  ;;  %vm977_vm15 = vcmp.lt.f32.partialorder %v7268_v12, 1.0  ;;  %v5086_v39 = vadd.f32 -0.2, %v7268_v12 }
 0x21d   :  { %8524 = vst [vmem:[#allocation71_spill] sm:$0xff] %v7262_v11  ;;  %v3423_v24 = vmul.f32 %v3407_v7, %v7262_v11  ;;  %v7274_v6 = vadd.f32 %v2256_v61, %v2208_v13  ;;  %v2976_v44 = vmul.f32 %v2960_v46, %v2160_v54  ;;  %vm993_vm8 = vmand %vm961_vm12, %vm977_vm15  ;;  %v2001_v62 = vsub.f32 1.0, %v7268_v12 }
 0x21e   :  { %v3632_v32 = vmul.f32 0.8333333, %v2224_v38  ;;  %v4926_v9 = vsel %vm993_vm8, 1.0, %v8474_v63  ;;  %v1969_v23 = vmul.f32 2.5, %v5086_v39  ;;  %v2801_v0 = vmul.f32 1.25, %v6180_v59 }
 0x21f   :  { %v3439_v10 = vadd.f32 %v3423_v24, %v3391_v55  ;;  %v3008_v14 = vmul.f32 %v2992_v22, %v7274_v6  ;;  %v2017_v37 = vmul.f32 2.5, %v2001_v62  ;;  %v3441_v15 = vmul.f32 0.8333333, %v6096_v45 }
 0x220   :  { %v7281_v7 = vadd.f32 -0.2, %v5294_v35  ;;  %v3616_v48 = vmul.f32 %v3600_v31, %v2944_v1  ;;  %v1985_v54 = vmul.f32 %v6187_v47, %v1969_v23  ;;  %v2833_v46 = vmul.f32 1.25, %v2001_v62 }
 0x221   :  { %4497 = vmatmul.f32.gmra.mxu0 %v3439_v10  ;;  %v7284_v38 = vadd.f32 %v3008_v14, %v2976_v44  ;;  %v2033_v18 = vmul.f32 %v4926_v9, %v2017_v37  ;;  %vm1041_vm9 = vcmp.ge.f32.partialorder %v7268_v12, 1.0  ;;  %vm1057_vm13 = vcmp.lt.f32.partialorder %v7268_v12, 1.4 }
 0x222   :  { %8525 = vst [vmem:[#allocation72_spill] sm:$0xff] %v7281_v7  ;;  %v2817_v55 = vmul.f32 %v2801_v0, %v6204_v25  ;;  %vm1073_vm10 = vmand %vm1041_vm9, %vm1057_vm13  ;;  %v7290_v45 = vadd.f32 -0.6, %v7268_v12  ;;  %v2113_v13 = vsub.f32 1.4, %v7268_v12  ;;  %v7294_v1 = vadd.f32 -1.0, %v7268_v12 }
 0x223   :  { %v3648_v47 = vmul.f32 %v3632_v32, %v7284_v38  ;;  %v2049_v31 = vadd.f32 %v2033_v18, %v1985_v54  ;;  %v3457_v61 = vmul.f32 %v3441_v15, %v6219_v27  ;;  %v4942_v22 = vsel %vm1073_vm10, 1.0, %v8474_v63 }
 0x224   :  { %v3473_v24 = vmul.f32 0.8333333, %v2001_v62  ;;  %v2081_v44 = vmul.f32 2.5, %v7290_v45  ;;  %v2129_v25 = vmul.f32 2.5, %v2113_v13  ;;  %v2881_v23 = vmul.f32 1.25, %v5086_v39 }
 0x225   :  { %v3664_v0 = vadd.f32 %v3648_v47, %v3616_v48  ;;  %v2849_v10 = vmul.f32 %v2833_v46, %v2049_v31  ;;  %v2913_v14 = vmul.f32 1.25, %v2113_v13  ;;  %vm1121_vm14 = vcmp.ge.f32.partialorder %v7268_v12, 1.4 }
 0x226   :  { %v2097_v37 = vmul.f32 %v4926_v9, %v2081_v44  ;;  %v2145_v35 = vmul.f32 %v4942_v22, %v2129_v25  ;;  %vm1137_vm2 = vcmp.lt.f32.partialorder %v7268_v12, 1.8  ;;  %v2193_v32 = vmul.f32 2.5, %v7294_v1 }
 0x227   :  { %4647 = vmatmul.f32.vlgmr.msra.gmra.mxu3 %v3664_v0  ;;  %v2865_v27 = vadd.f32 %v2849_v10, %v2817_v55  ;;  %v3521_v15 = vmul.f32 0.8333333, %v6180_v59  ;;  %v3553_v62 = vmul.f32 0.8333333, %v2113_v13  ;;  %vm1153_vm3 = vmand %vm1121_vm14, %vm1137_vm2  ;;  %v2225_v54 = vsub.f32 1.8, %v7268_v12 }
 0x228   :  { %v2161_v18 = vadd.f32 %v2145_v35, %v2097_v37  ;;  %v2897_v48 = vmul.f32 %v2881_v23, %v2049_v31  ;;  %v7306_v46 = vsel %vm1153_vm3, 1.0, %v8474_v63  ;;  %vm1200_vm5 = vcmp.ge.f32.partialorder %v7192_v29, 1.8 }
 0x229   :  { %v3489_v9 = vmul.f32 %v3473_v24, %v2865_v27  ;;  %v2209_v47 = vmul.f32 %v4942_v22, %v2193_v32  ;;  %v2241_v44 = vmul.f32 2.5, %v2225_v54  ;;  %v2961_v25 = vmul.f32 1.25, %v7290_v45 }
 0x22a   :  { %v2929_v0 = vmul.f32 %v2913_v14, %v2161_v18  ;;  %v2993_v55 = vmul.f32 1.25, %v2225_v54  ;;  %v3601_v10 = vmul.f32 0.8333333, %v5086_v39  ;;  %vm1216_vm0 = vcmp.lt.f32.partialorder %v7192_v29, 2.2 }
 0x22b   :  { %v3505_v59 = vadd.f32 %v3489_v9, %v3457_v61  ;;  %v2257_v13 = vmul.f32 %v7306_v46, %v2241_v44  ;;  %vm1232_vm6 = vmand %vm1200_vm5, %vm1216_vm0  ;;  %v5133_v31 = vadd.f32 -1.4, %v7192_v29  ;;  %v2336_v23 = vsub.f32 2.2, %v7192_v29  ;;  %v5295_v61 = vld [vmem:[#allocation3 + $0x68] sm:$0xff] }
 0x22c   :  { %v2945_v37 = vadd.f32 %v2929_v0, %v2897_v48  ;;  %v3537_v35 = vmul.f32 %v3521_v15, %v2865_v27  ;;  %v4973_v22 = vsel %vm1232_vm6, 1.0, %v8474_v63  ;;  %v3040_v24 = vmul.f32 1.25, %v7247_v33 }
 0x22d   :  { %4520 = vmatmul.f32.gmra.mxu1 %v3505_v59  ;;  %v7316_v14 = vadd.f32 %v2257_v13, %v2209_v47  ;;  %v2977_v39 = vmul.f32 %v2961_v25, %v2161_v18  ;;  %v2304_v32 = vmul.f32 2.5, %v5133_v31  ;;  %v2352_v11 = vmul.f32 2.5, %v2336_v23  ;;  %v7324_v18 = vld [vmem:[#allocation3 + $0x10] sm:$0xff] }
 0x22e   :  { %v7318_v9 = vadd.f32 -0.2, %v5295_v61  ;;  %v3569_v44 = vmul.f32 %v3553_v62, %v2945_v37  ;;  %v3633_v3 = vmul.f32 0.8333333, %v2225_v54  ;;  %v3680_v20 = vmul.f32 0.8333333, %v7213_v60 }
 0x22f   :  { %v3009_v29 = vmul.f32 %v2993_v55, %v7316_v14  ;;  %v2320_v27 = vmul.f32 %v7252_v17, %v2304_v32  ;;  %v2368_v15 = vmul.f32 %v4973_v22, %v2352_v11  ;;  %v3072_v48 = vmul.f32 1.25, %v2336_v23  ;;  %v7334_v55 = vpop.f32.mrf.mxu1 }
 0x230   :  { %8526 = vst [vmem:[#allocation73_spill] sm:$0xff] %v7318_v9  ;;  %v3585_v33 = vadd.f32 %v3569_v44, %v3537_v35  ;;  %v3617_v0 = vmul.f32 %v3601_v10, %v2945_v37  ;;  %v3056_v47 = vmul.f32 %v3040_v24, %v7274_v6  ;;  %vm962_vm11 = vcmp.ge.f32.partialorder %v7324_v18, 0.6  ;;  %v7345_v24 = vpop.f32.mrf.mxu2 }
 0x231   :  { %v7327_v25 = vadd.f32 %v3009_v29, %v2977_v39  ;;  %v2384_v62 = vadd.f32 %v2368_v15, %v2320_v27  ;;  %vm978_vm1 = vcmp.lt.f32.partialorder %v7324_v18, 1.0  ;;  %v5087_v60 = vadd.f32 -0.2, %v7324_v18 }
 0x232   :  { %4585 = vmatmul.f32.gmra.mxu2 %v3585_v33  ;;  %v3712_v54 = vmul.f32 0.8333333, %v2336_v23  ;;  %vm994_vm4 = vmand %vm962_vm11, %vm978_vm1  ;;  %v2002_v17 = vsub.f32 1.0, %v7324_v18  ;;  %v2802_v11 = vmul.f32 1.25, %v6253_v49  ;;  %v3442_v6 = vmul.f32 0.8333333, %v6167_v36 }
 0x233   :  { %v3649_v10 = vmul.f32 %v3633_v3, %v7327_v25  ;;  %v3088_v59 = vmul.f32 %v3072_v48, %v2384_v62  ;;  %v4927_v13 = vsel %vm994_vm4, 1.0, %v8474_v63  ;;  %v1970_v31 = vmul.f32 2.5, %v5087_v60 }
 0x234   :  { %v7339_v37 = vmul.f32 2.5, %v7281_v7  ;;  %v7342_v23 = vmul.f32 2.5, %v7318_v9  ;;  %v3696_v35 = vmul.f32 %v3680_v20, %v7284_v38  ;;  %v2018_v22 = vmul.f32 2.5, %v2002_v17 }
 0x235   :  { %v3665_v36 = vadd.f32 %v3649_v10, %v3617_v0  ;;  %v3104_v39 = vadd.f32 %v3088_v59, %v3056_v47  ;;  %v1986_v32 = vmul.f32 %v6260_v50, %v1970_v31  ;;  %v2818_v3 = vmul.f32 %v2802_v11, %v6279_v5 }
 0x236   :  { %v2034_v61 = vmul.f32 %v4927_v13, %v2018_v22  ;;  %v2834_v44 = vmul.f32 1.25, %v2002_v17  ;;  %vm1042_vm7 = vcmp.ge.f32.partialorder %v7324_v18, 1.0  ;;  %vm1058_vm12 = vcmp.lt.f32.partialorder %v7324_v18, 1.4 }
 0x237   :  { %4650 = vmatmul.f32.gmra.mxu3 %v3665_v36  ;;  %v3728_v29 = vmul.f32 %v3712_v54, %v3104_v39  ;;  %v3458_v27 = vmul.f32 %v3442_v6, %v6294_v40  ;;  %vm1074_vm15 = vmand %vm1042_vm7, %vm1058_vm12  ;;  %v7353_v20 = vadd.f32 -0.6, %v7324_v18  ;;  %v2114_v38 = vsub.f32 1.4, %v7324_v18  ;;  %v7368_v36 = vpop.f32.mrf.mxu1 }
 0x238   :  { %v2050_v15 = vadd.f32 %v2034_v61, %v1986_v32  ;;  %v4943_v50 = vsel %vm1074_vm15, 1.0, %v8474_v63  ;;  %v2882_v5 = vmul.f32 1.25, %v5087_v60  ;;  %vm1122_vm8 = vcmp.ge.f32.partialorder %v7324_v18, 1.4  ;;  %8527 = vst [vmem:[#allocation74_spill] sm:$0xff] %v7368_v36 }
 0x239   :  { %v3744_v48 = vadd.f32 %v3728_v29, %v3696_v35  ;;  %v3474_v33 = vmul.f32 0.8333333, %v2002_v17  ;;  %v2082_v0 = vmul.f32 2.5, %v7353_v20  ;;  %v2130_v47 = vmul.f32 2.5, %v2114_v38 }
 0x23a   :  { %v2850_v62 = vmul.f32 %v2834_v44, %v2050_v15  ;;  %v2914_v54 = vmul.f32 1.25, %v2114_v38  ;;  %v3522_v40 = vmul.f32 0.8333333, %v6253_v49  ;;  %vm1138_vm9 = vcmp.lt.f32.partialorder %v7324_v18, 1.8  ;;  %v7370_v49 = vpop.f32.mrf.mxu3 }
 0x23b   :  { %4712 = vmatmul.f32.vlgmr.msra.gmra.mxu0 %v3744_v48  ;;  %v2098_v11 = vmul.f32 %v4927_v13, %v2082_v0  ;;  %v2146_v6 = vmul.f32 %v4943_v50, %v2130_v47  ;;  %vm1154_vm13 = vmand %vm1122_vm8, %vm1138_vm9  ;;  %v7362_v10 = vadd.f32 -1.0, %v7324_v18  ;;  %v2226_v59 = vsub.f32 1.8, %v7324_v18 }
 0x23c   :  { %v2866_v31 = vadd.f32 %v2850_v62, %v2818_v3  ;;  %v2898_v17 = vmul.f32 %v2882_v5, %v2050_v15  ;;  %v3554_v35 = vmul.f32 0.8333333, %v2114_v38  ;;  %v7366_v22 = vsel %vm1154_vm13, 1.0, %v8474_v63  ;;  %v7375_v3 = vpop.f32.mrf.mxu2 }
 0x23d   :  { %v2162_v39 = vadd.f32 %v2146_v6, %v2098_v11  ;;  %v2194_v13 = vmul.f32 2.5, %v7362_v10  ;;  %v2242_v32 = vmul.f32 2.5, %v2226_v59  ;;  %v2962_v61 = vmul.f32 1.25, %v7353_v20 }
 0x23e   :  { %v3490_v44 = vmul.f32 %v3474_v33, %v2866_v31  ;;  %v2994_v29 = vmul.f32 1.25, %v2226_v59  ;;  %v3602_v48 = vmul.f32 0.8333333, %v5087_v60  ;;  %vm1201_vm10 = vcmp.ge.f32.partialorder %v7268_v12, 1.8 }
 0x23f   :  { %v2930_v38 = vmul.f32 %v2914_v54, %v2162_v39  ;;  %v3538_v15 = vmul.f32 %v3522_v40, %v2866_v31  ;;  %v2210_v5 = vmul.f32 %v4943_v50, %v2194_v13  ;;  %v2258_v0 = vmul.f32 %v7366_v22, %v2242_v32 }
 0x240   :  { %v3506_v47 = vadd.f32 %v3490_v44, %v3458_v27  ;;  %vm1217_vm14 = vcmp.lt.f32.partialorder %v7268_v12, 2.2  ;;  %v5134_v62 = vadd.f32 -1.4, %v7268_v12  ;;  %v2337_v11 = vsub.f32 2.2, %v7268_v12 }
 0x241   :  { %v2946_v6 = vadd.f32 %v2930_v38, %v2898_v17  ;;  %v7381_v33 = vadd.f32 %v2258_v0, %v2210_v5  ;;  %v2978_v60 = vmul.f32 %v2962_v61, %v2162_v39  ;;  %vm1233_vm2 = vmand %vm1201_vm10, %vm1217_vm14  ;;  %v3041_v36 = vmul.f32 1.25, %v7294_v1 }
 0x242   :  { %v7386_v54 = vmul.f32 %v7009_v26, %v7339_v37  ;;  %4523 = vmatmul.f32.gmra.mxu1 %v3506_v47  ;;  %v4974_v27 = vsel %vm1233_vm2, 1.0, %v8474_v63  ;;  %v2305_v50 = vmul.f32 2.5, %v5134_v62  ;;  %v2353_v40 = vmul.f32 2.5, %v2337_v11  ;;  %v7396_v37 = vpop.f32.mrf.mxu0  ;;  %v8532_v62 = vld [vmem:[#allocation12_spill] sm:$0xff] }
 0x243   :  { %v7391_v31 = vmul.f32 %v7091_v2, %v7342_v23  ;;  %v3570_v12 = vmul.f32 %v3554_v35, %v2946_v6  ;;  %v3010_v17 = vmul.f32 %v2994_v29, %v7381_v33  ;;  %v3634_v39 = vmul.f32 0.8333333, %v2226_v59  ;;  %v7401_v23 = vld [vmem:[#allocation3 + $0x18] sm:$0xff]  ;;  %v7408_v59 = vpop.f32.mrf.mxu1 }
 0x244   :  { %v2321_v13 = vmul.f32 %v7306_v46, %v2305_v50  ;;  %v2369_v1 = vmul.f32 %v4974_v27, %v2353_v40  ;;  %v3073_v32 = vmul.f32 1.25, %v2337_v11  ;;  %v3681_v26 = vmul.f32 0.8333333, %v7290_v45  ;;  %8529 = vst [vmem:[#allocation76_spill] sm:$0xff] %v7408_v59  ;;  %v7410_v45 = vpop.f32.mrf.mxu3  ;;  %v5298_v27 = vld [vmem:[#allocation3 + $0x70] sm:$0xff]  ;;  %v8537_v59 = vld [vmem:[#allocation17_spill] sm:$0xff] }
 0x245   :  { %8528 = vst [vmem:[#allocation75_spill] sm:$0xff] %v7391_v31  ;;  %v3586_v61 = vadd.f32 %v3570_v12, %v3538_v15  ;;  %v7398_v44 = vadd.f32 %v3010_v17, %v2978_v60  ;;  %v3618_v38 = vmul.f32 %v3602_v48, %v2946_v6  ;;  %v3057_v5 = vmul.f32 %v3041_v36, %v7316_v14  ;;  %v8531_v36 = vld [vmem:[#allocation14_spill] sm:$0xff]  ;;  %v7418_v60 = vpop.f32.mrf.mxu2 }
 0x246   :  { %v2385_v2 = vadd.f32 %v2369_v1, %v2321_v13  ;;  %vm963_vm3 = vcmp.ge.f32.partialorder %v7401_v23, 0.6  ;;  %vm979_vm5 = vcmp.lt.f32.partialorder %v7401_v23, 1.0  ;;  %v7406_v46 = vadd.f32 -0.2, %v7401_v23  ;;  %8530 = vst [vmem:[#allocation77_spill] sm:$0xff] %v7410_v45 }
 0x247   :  { %4588 = vmatmul.f32.gmra.mxu2 %v3586_v61  ;;  %v3650_v35 = vmul.f32 %v3634_v39, %v7398_v44  ;;  %v3713_v29 = vmul.f32 0.8333333, %v2337_v11  ;;  %vm995_vm0 = vmand %vm963_vm3, %vm979_vm5  ;;  %v2003_v14 = vsub.f32 1.0, %v7401_v23  ;;  %v2803_v48 = vmul.f32 1.25, %v8531_v36  ;;  %v8535_v13 = vld [vmem:[#allocation15_spill] sm:$0xff] }
 0x248   :  { %v3089_v15 = vmul.f32 %v3073_v32, %v2385_v2  ;;  %v4928_v0 = vsel %vm995_vm0, 1.0, %v8474_v63  ;;  %v1971_v47 = vmul.f32 2.5, %v7406_v46  ;;  %v3443_v6 = vmul.f32 0.8333333, %v8532_v62  ;;  %v8536_v32 = vld [vmem:[#allocation16_spill] sm:$0xff] }
 0x249   :  { %v7420_v50 = vadd.f32 -0.2, %v5298_v27  ;;  %v7423_v40 = vadd.f32 -0.2, %v7106_v57  ;;  %v3666_v11 = vadd.f32 %v3650_v35, %v3618_v38  ;;  %v2019_v12 = vmul.f32 2.5, %v2003_v14 }
 0x24a   :  { %v3105_v17 = vadd.f32 %v3089_v15, %v3057_v5  ;;  %v3697_v39 = vmul.f32 %v3681_v26, %v7327_v25  ;;  %v1987_v1 = vmul.f32 %v8535_v13, %v1971_v47  ;;  %v2819_v61 = vmul.f32 %v2803_v48, %v8536_v32 }
 0x24b   :  { %8533 = vst [vmem:[#allocation14_spill] sm:$0xff] %v7420_v50  ;;  %4653 = vmatmul.f32.gmra.mxu3 %v3666_v11  ;;  %v2035_v2 = vmul.f32 %v4928_v0, %v2019_v12  ;;  %v2835_v62 = vmul.f32 1.25, %v2003_v14  ;;  %vm1043_vm6 = vcmp.ge.f32.partialorder %v7401_v23, 1.0  ;;  %vm1059_vm11 = vcmp.lt.f32.partialorder %v7401_v23, 1.4  ;;  %v7439_v11 = vpop.f32.mrf.mxu0 }
 0x24c   :  { %8534 = vst [vmem:[#allocation12_spill] sm:$0xff] %v7423_v40  ;;  %v3729_v27 = vmul.f32 %v3713_v29, %v3105_v17  ;;  %v3459_v57 = vmul.f32 %v3443_v6, %v8537_v59  ;;  %vm1075_vm1 = vmand %vm1043_vm6, %vm1059_vm11  ;;  %v7432_v38 = vadd.f32 -0.6, %v7401_v23  ;;  %v2115_v25 = vsub.f32 1.4, %v7401_v23  ;;  %v7449_v32 = vpop.f32.mrf.mxu3 }
 0x24d   :  { %v2051_v26 = vadd.f32 %v2035_v2, %v1987_v1  ;;  %v4944_v5 = vsel %vm1075_vm1, 1.0, %v8474_v63  ;;  %v2883_v35 = vmul.f32 1.25, %v7406_v46  ;;  %vm1123_vm4 = vcmp.ge.f32.partialorder %v7401_v23, 1.4  ;;  %8539 = vst [vmem:[#allocation16_spill] sm:$0xff] %v7449_v32 }
 0x24e   :  { %v3745_v48 = vadd.f32 %v3729_v27, %v3697_v39  ;;  %v3475_v15 = vmul.f32 0.8333333, %v2003_v14  ;;  %v2083_v47 = vmul.f32 2.5, %v7432_v38  ;;  %v2131_v29 = vmul.f32 2.5, %v2115_v25  ;;  %v7447_v39 = vpop.f32.mrf.mxu1 }
 0x24f   :  { %v2851_v59 = vmul.f32 %v2835_v62, %v2051_v26  ;;  %v2915_v6 = vmul.f32 1.25, %v2115_v25  ;;  %v3523_v12 = vmul.f32 0.8333333, %v8531_v36  ;;  %vm1139_vm7 = vcmp.lt.f32.partialorder %v7401_v23, 1.8  ;;  %8538 = vst [vmem:[#allocation15_spill] sm:$0xff] %v7447_v39 }
 0x250   :  { %4715 = vmatmul.f32.gmra.mxu0 %v3745_v48  ;;  %v2099_v17 = vmul.f32 %v4928_v0, %v2083_v47  ;;  %v2147_v13 = vmul.f32 %v4944_v5, %v2131_v29  ;;  %vm1155_vm12 = vmand %vm1123_vm4, %vm1139_vm7  ;;  %v7444_v1 = vadd.f32 -1.0, %v7401_v23  ;;  %v2227_v14 = vsub.f32 1.8, %v7401_v23  ;;  %v7456_v29 = vpop.f32.mrf.mxu2 }
 0x251   :  { %v2867_v2 = vadd.f32 %v2851_v59, %v2819_v61  ;;  %v2899_v62 = vmul.f32 %v2883_v35, %v2051_v26  ;;  %v3555_v27 = vmul.f32 0.8333333, %v2115_v25  ;;  %v7452_v36 = vsel %vm1155_vm12, 1.0, %v8474_v63 }
 0x252   :  { %v2163_v4 = vadd.f32 %v2147_v13, %v2099_v17  ;;  %v2195_v0 = vmul.f32 2.5, %v7444_v1  ;;  %v2243_v48 = vmul.f32 2.5, %v2227_v14  ;;  %v2963_v47 = vmul.f32 1.25, %v7432_v38 }
 0x253   :  { %v3491_v16 = vmul.f32 %v3475_v15, %v2867_v2  ;;  %v2995_v58 = vmul.f32 1.25, %v2227_v14  ;;  %v3603_v39 = vmul.f32 0.8333333, %v7406_v46  ;;  %vm1202_vm15 = vcmp.ge.f32.partialorder %v7324_v18, 1.8 }
 0x254   :  { %v2931_v61 = vmul.f32 %v2915_v6, %v2163_v4  ;;  %v3539_v26 = vmul.f32 %v3523_v12, %v2867_v2  ;;  %v2211_v25 = vmul.f32 %v4944_v5, %v2195_v0  ;;  %v2259_v35 = vmul.f32 %v7452_v36, %v2243_v48 }
 0x255   :  { %v3507_v59 = vadd.f32 %v3491_v16, %v3459_v57  ;;  %vm1218_vm8 = vcmp.lt.f32.partialorder %v7324_v18, 2.2  ;;  %v5135_v17 = vadd.f32 -1.4, %v7324_v18  ;;  %v2338_v13 = vsub.f32 2.2, %v7324_v18 }
 0x256   :  { %v2947_v34 = vadd.f32 %v2931_v61, %v2899_v62  ;;  %v7464_v32 = vadd.f32 %v2259_v35, %v2211_v25  ;;  %v2979_v15 = vmul.f32 %v2963_v47, %v2163_v4  ;;  %vm1234_vm9 = vmand %vm1202_vm15, %vm1218_vm8  ;;  %v3042_v46 = vmul.f32 1.25, %v7362_v10  ;;  %v7471_v62 = vpop.f32.mrf.mxu0 }
 0x257   :  { %v1982_v6 = vmul.f32 2.5, %v7420_v50  ;;  %4526 = vmatmul.f32.gmra.mxu1 %v3507_v59  ;;  %v4975_v5 = vsel %vm1234_vm9, 1.0, %v8474_v63  ;;  %v2306_v12 = vmul.f32 2.5, %v5135_v17  ;;  %v2354_v16 = vmul.f32 2.5, %v2338_v13  ;;  %v7478_v17 = vpop.f32.mrf.mxu3 }
 0x258   :  { %v1983_v57 = vmul.f32 2.5, %v7423_v40  ;;  %v3571_v2 = vmul.f32 %v3555_v27, %v2947_v34  ;;  %v3011_v0 = vmul.f32 %v2995_v58, %v7464_v32  ;;  %v3635_v18 = vmul.f32 0.8333333, %v2227_v14  ;;  %8540 = vst [vmem:[#allocation17_spill] sm:$0xff] %v7478_v17  ;;  %v4258_v27 = vpop.f32.mrf.mxu1  ;;  %v7480_v58 = vld [vmem:[#allocation3 + $0x20] sm:$0xff] }
 0x259   :  { %v2322_v4 = vmul.f32 %v7366_v22, %v2306_v12  ;;  %v2370_v48 = vmul.f32 %v4975_v5, %v2354_v16  ;;  %v3074_v47 = vmul.f32 1.25, %v2338_v13  ;;  %v3682_v10 = vmul.f32 0.8333333, %v7353_v20  ;;  %v8543_v12 = vld [vmem:[#allocation13_spill] sm:$0xff] }
 0x25a   :  { %v3587_v61 = vadd.f32 %v3571_v2, %v3539_v26  ;;  %v7475_v25 = vadd.f32 %v3011_v0, %v2979_v15  ;;  %v3619_v35 = vmul.f32 %v3603_v39, %v2947_v34  ;;  %v3058_v59 = vmul.f32 %v3042_v46, %v7381_v33  ;;  %v8542_v33 = vld [vmem:[#allocation19_spill] sm:$0xff]  ;;  %v4323_v26 = vpop.f32.mrf.mxu2 }
 0x25b   :  { %v2386_v40 = vadd.f32 %v2370_v48, %v2322_v4  ;;  %vm964_vm13 = vcmp.ge.f32.partialorder %v7480_v58, 0.6  ;;  %vm980_vm10 = vcmp.lt.f32.partialorder %v7480_v58, 1.0  ;;  %v2004_v22 = vsub.f32 1.0, %v7480_v58 }
 0x25c   :  { %v7486_v20 = vmul.f32 %v7172_v43, %v1982_v6  ;;  %4591 = vmatmul.f32.gmra.mxu2 %v3587_v61  ;;  %v3651_v34 = vmul.f32 %v3635_v18, %v7475_v25  ;;  %v3714_v14 = vmul.f32 0.8333333, %v2338_v13  ;;  %vm996_vm14 = vmand %vm964_vm13, %vm980_vm10  ;;  %v2804_v39 = vmul.f32 1.25, %v8542_v33  ;;  %v8546_v61 = vld [vmem:[#allocation20_spill] sm:$0xff] }
 0x25d   :  { %v3090_v15 = vmul.f32 %v3074_v47, %v2386_v40  ;;  %v4929_v46 = vsel %vm996_vm14, 1.0, %v8474_v63  ;;  %v2020_v5 = vmul.f32 2.5, %v2004_v22  ;;  %v3444_v16 = vmul.f32 0.8333333, %v8543_v12 }
 0x25e   :  { %8541 = vst [vmem:[#allocation78_spill] sm:$0xff] %v7486_v20  ;;  %v4259_v2 = vadd.f32 %v4258_v27, %v7396_v37  ;;  %v7494_v0 = vmul.f32 %v7232_v21, %v1983_v57  ;;  %v3667_v43 = vadd.f32 %v3651_v34, %v3619_v35  ;;  %v3698_v6 = vmul.f32 %v3682_v10, %v7398_v44  ;;  %v8545_v21 = vld [vmem:[#allocation49_spill] sm:$0xff] }
 0x25f   :  { %v3106_v18 = vadd.f32 %v3090_v15, %v3058_v59  ;;  %v2036_v13 = vmul.f32 %v4929_v46, %v2020_v5  ;;  %v2836_v4 = vmul.f32 1.25, %v2004_v22  ;;  %vm1044_vm2 = vcmp.ge.f32.partialorder %v7480_v58, 1.0  ;;  %v8547_v44 = vld [vmem:[#allocation21_spill] sm:$0xff]  ;;  %v7509_v5 = vpop.f32.mrf.mxu0 }
 0x260   :  { %8544 = vst [vmem:[#allocation19_spill] sm:$0xff] %v7494_v0  ;;  %v4324_v48 = vadd.f32 %v4323_v26, %v4259_v2  ;;  %4656 = vmatmul.f32.gmra.mxu3 %v3667_v43  ;;  %vm1060_vm3 = vcmp.lt.f32.partialorder %v7480_v58, 1.4  ;;  %v7500_v40 = vadd.f32 -0.6, %v7480_v58  ;;  %v2820_v35 = vmul.f32 %v2804_v39, %v8546_v61  ;;  %v8548_v26 = vld [vmem:[#allocation46_spill] sm:$0xff]  ;;  %v4388_v39 = vpop.f32.mrf.mxu3 }
 0x261   :  { %v2116_v37 = vsub.f32 1.4, %v7480_v58  ;;  %v3730_v47 = vmul.f32 %v3714_v14, %v3106_v18  ;;  %v2052_v57 = vadd.f32 %v2036_v13, %v8545_v21  ;;  %v3460_v10 = vmul.f32 %v3444_v16, %v8547_v44  ;;  %vm1076_vm5 = vmand %vm1044_vm2, %vm1060_vm3 }
 0x262   :  { %v4945_v59 = vsel %vm1076_vm5, 1.0, %v8474_v63  ;;  %v2084_v27 = vmul.f32 2.5, %v7500_v40  ;;  %v2884_v15 = vmul.f32 1.25, %v8548_v26  ;;  %v3476_v43 = vmul.f32 0.8333333, %v2004_v22 }
 0x263   :  { %v2132_v34 = vmul.f32 2.5, %v2116_v37  ;;  %v3746_v12 = vadd.f32 %v3730_v47, %v3698_v6  ;;  %v2852_v2 = vmul.f32 %v2836_v4, %v2052_v57  ;;  %v2916_v14 = vmul.f32 1.25, %v2116_v37  ;;  %v4261_v4 = vpop.f32.mrf.mxu1 }
 0x264   :  { %v2100_v18 = vmul.f32 %v4929_v46, %v2084_v27  ;;  %vm1124_vm0 = vcmp.ge.f32.partialorder %v7480_v58, 1.4  ;;  %vm1140_vm6 = vcmp.lt.f32.partialorder %v7480_v58, 1.8  ;;  %v3524_v21 = vmul.f32 0.8333333, %v8542_v33 }
 0x265   :  { %v2148_v13 = vmul.f32 %v4945_v59, %v2132_v34  ;;  %4718 = vmatmul.f32.gmra.mxu0 %v3746_v12  ;;  %v2868_v16 = vadd.f32 %v2852_v2, %v2820_v35  ;;  %vm1156_vm11 = vmand %vm1124_vm0, %vm1140_vm6  ;;  %v7515_v61 = vadd.f32 -1.0, %v7480_v58  ;;  %v2228_v6 = vsub.f32 1.8, %v7480_v58  ;;  %v7524_v12 = vpop.f32.mrf.mxu2 }
 0x266   :  { %v2900_v47 = vmul.f32 %v2884_v15, %v2052_v57  ;;  %v7519_v46 = vsel %vm1156_vm11, 1.0, %v8474_v63  ;;  %v2964_v44 = vmul.f32 1.25, %v7500_v40  ;;  %vm1203_vm1 = vcmp.ge.f32.partialorder %v7401_v23, 1.8 }
 0x267   :  { %v2164_v22 = vadd.f32 %v2148_v13, %v2100_v18  ;;  %v3492_v27 = vmul.f32 %v3476_v43, %v2868_v16  ;;  %v2196_v34 = vmul.f32 2.5, %v7515_v61  ;;  %v2244_v35 = vmul.f32 2.5, %v2228_v6 }
 0x268   :  { %v4389_v33 = vadd.f32 %v4388_v39, %v4324_v48  ;;  %v3556_v0 = vmul.f32 0.8333333, %v2116_v37  ;;  %v2996_v17 = vmul.f32 1.25, %v2228_v6  ;;  %vm1219_vm4 = vcmp.lt.f32.partialorder %v7401_v23, 2.2 }
 0x269   :  { %v2932_v2 = vmul.f32 %v2916_v14, %v2164_v22  ;;  %v3508_v20 = vadd.f32 %v3492_v27, %v3460_v10  ;;  %v2212_v18 = vmul.f32 %v4945_v59, %v2196_v34  ;;  %v2260_v57 = vmul.f32 %v7519_v46, %v2244_v35  ;;  %vm1235_vm7 = vmand %vm1203_vm1, %vm1219_vm4 }
 0x26a   :  { %v3540_v13 = vmul.f32 %v3524_v21, %v2868_v16  ;;  %v5136_v43 = vadd.f32 -1.4, %v7401_v23  ;;  %v2339_v50 = vsub.f32 2.2, %v7401_v23  ;;  %v2980_v39 = vmul.f32 %v2964_v44, %v2164_v22  ;;  %v4453_v21 = vpop.f32.mrf.mxu0 }
 0x26b   :  { %v2948_v15 = vadd.f32 %v2932_v2, %v2900_v47  ;;  %4529 = vmatmul.f32.gmra.mxu1 %v3508_v20  ;;  %v7530_v48 = vadd.f32 %v2260_v57, %v2212_v18  ;;  %v3604_v37 = vmul.f32 0.8333333, %v8548_v26  ;;  %v4976_v10 = vsel %vm1235_vm7, 1.0, %v8474_v63  ;;  %v7543_v18 = vld [vmem:[#allocation3 + $0x28] sm:$0xff]  ;;  %v8550_v57 = vld [vmem:[#allocation23_spill] sm:$0xff] }
 0x26c   :  { %v2307_v14 = vmul.f32 2.5, %v5136_v43  ;;  %v2355_v27 = vmul.f32 2.5, %v2339_v50  ;;  %v3043_v34 = vmul.f32 1.25, %v7444_v1  ;;  %v7536_v16 = vadd.f32 %v4261_v4, %v7439_v11  ;;  %v7549_v1 = vpop.f32.mrf.mxu1 }
 0x26d   :  { %v3572_v59 = vmul.f32 %v3556_v0, %v2948_v15  ;;  %v3012_v47 = vmul.f32 %v2996_v17, %v7530_v48  ;;  %v3636_v23 = vmul.f32 0.8333333, %v2228_v6  ;;  %v3683_v20 = vmul.f32 0.8333333, %v7432_v38 }
 0x26e   :  { %v2323_v22 = vmul.f32 %v7452_v36, %v2307_v14  ;;  %v2371_v26 = vmul.f32 %v4976_v10, %v2355_v27  ;;  %v3075_v44 = vmul.f32 1.25, %v2339_v50  ;;  %v3620_v0 = vmul.f32 %v3604_v37, %v2948_v15 }
 0x26f   :  { %v3588_v35 = vadd.f32 %v3572_v59, %v3540_v13  ;;  %v7541_v2 = vadd.f32 %v3012_v47, %v2980_v39  ;;  %vm965_vm12 = vcmp.ge.f32.partialorder %v7543_v18, 0.6  ;;  %vm981_vm15 = vcmp.lt.f32.partialorder %v7543_v18, 1.0  ;;  %v7557_v13 = vpop.f32.mrf.mxu2  ;;  %v8551_v59 = vld [vmem:[#allocation18_spill] sm:$0xff] }
 0x270   :  { %v7547_v11 = vadd.f32 %v4453_v21, %v4389_v33  ;;  %v2387_v38 = vadd.f32 %v2371_v26, %v2323_v22  ;;  %v3059_v17 = vmul.f32 %v3043_v34, %v7464_v32  ;;  %vm997_vm8 = vmand %vm965_vm12, %vm981_vm15  ;;  %v2005_v36 = vsub.f32 1.0, %v7543_v18  ;;  %v8554_v26 = vld [vmem:[#allocation56_spill] sm:$0xff] }
 0x271   :  { %4594 = vmatmul.f32.gmra.mxu2 %v3588_v35  ;;  %v3652_v6 = vmul.f32 %v3636_v23, %v7541_v2  ;;  %v4930_v4 = vsel %vm997_vm8, 1.0, %v8474_v63  ;;  %v2805_v15 = vmul.f32 1.25, %v8550_v57  ;;  %vm1045_vm9 = vcmp.ge.f32.partialorder %v7543_v18, 1.0  ;;  %v8552_v23 = vld [vmem:[#allocation24_spill] sm:$0xff] }
 0x272   :  { %8549 = vst [vmem:[#allocation13_spill] sm:$0xff] %v7547_v11  ;;  %v3091_v33 = vmul.f32 %v3075_v44, %v2387_v38  ;;  %v3699_v43 = vmul.f32 %v3683_v20, %v7475_v25  ;;  %v3715_v39 = vmul.f32 0.8333333, %v2339_v50  ;;  %v2021_v37 = vmul.f32 2.5, %v2005_v36  ;;  %v8553_v25 = vld [vmem:[#allocation52_spill] sm:$0xff] }
 0x273   :  { %v3668_v10 = vadd.f32 %v3652_v6, %v3620_v0  ;;  %v2837_v32 = vmul.f32 1.25, %v2005_v36  ;;  %v3445_v14 = vmul.f32 0.8333333, %v8551_v59  ;;  %vm1061_vm13 = vcmp.lt.f32.partialorder %v7543_v18, 1.4 }
 0x274   :  { %v3107_v27 = vadd.f32 %v3091_v33, %v3059_v17  ;;  %v2037_v34 = vmul.f32 %v4930_v4, %v2021_v37  ;;  %vm1077_vm10 = vmand %vm1045_vm9, %vm1061_vm13  ;;  %v7563_v21 = vadd.f32 -0.6, %v7543_v18  ;;  %v2117_v47 = vsub.f32 1.4, %v7543_v18  ;;  %v7572_v17 = vpop.f32.mrf.mxu3  ;;  %v7584_v51 = vpop.f32.mrf.mxu1 }
 0x275   :  { %4659 = vmatmul.f32.gmra.mxu3 %v3668_v10  ;;  %v2821_v35 = vmul.f32 %v2805_v15, %v8552_v23  ;;  %v4946_v50 = vsel %vm1077_vm10, 1.0, %v8474_v63  ;;  %v2885_v20 = vmul.f32 1.25, %v8553_v25  ;;  %vm1125_vm14 = vcmp.ge.f32.partialorder %v7543_v18, 1.4 }
 0x276   :  { %v3731_v22 = vmul.f32 %v3715_v39, %v3107_v27  ;;  %v2053_v44 = vadd.f32 %v2037_v34, %v8554_v26  ;;  %v2085_v0 = vmul.f32 2.5, %v7563_v21  ;;  %v2133_v38 = vmul.f32 2.5, %v2117_v47  ;;  %v7578_v39 = vpop.f32.mrf.mxu0  ;;  %v8555_v27 = vld [vmem:[#allocation25_spill] sm:$0xff] }
 0x277   :  { %v3477_v6 = vmul.f32 0.8333333, %v2005_v36  ;;  %v2917_v33 = vmul.f32 1.25, %v2117_v47  ;;  %vm1141_vm2 = vcmp.lt.f32.partialorder %v7543_v18, 1.8  ;;  %v7576_v15 = vadd.f32 -1.0, %v7543_v18 }
 0x278   :  { %v3747_v37 = vadd.f32 %v3731_v22, %v3699_v43  ;;  %v2853_v10 = vmul.f32 %v2837_v32, %v2053_v44  ;;  %v2101_v59 = vmul.f32 %v4930_v4, %v2085_v0  ;;  %v2149_v23 = vmul.f32 %v4946_v50, %v2133_v38  ;;  %vm1157_vm3 = vmand %vm1125_vm14, %vm1141_vm2  ;;  %v7590_v38 = vpop.f32.mrf.mxu2 }
 0x279   :  { %v3461_v34 = vmul.f32 %v3445_v14, %v8555_v27  ;;  %v3525_v26 = vmul.f32 0.8333333, %v8550_v57  ;;  %v2197_v11 = vmul.f32 2.5, %v7576_v15  ;;  %v2229_v36 = vsub.f32 1.8, %v7543_v18 }
 0x27a   :  { %4721 = vmatmul.f32.gmra.mxu0 %v3747_v37  ;;  %v2869_v45 = vadd.f32 %v2853_v10, %v2821_v35  ;;  %v2165_v31 = vadd.f32 %v2149_v23, %v2101_v59  ;;  %v2901_v43 = vmul.f32 %v2885_v20, %v2053_v44  ;;  %v7587_v4 = vsel %vm1157_vm3, 1.0, %v8474_v63 }
 0x27b   :  { %v3557_v32 = vmul.f32 0.8333333, %v2117_v47  ;;  %v2213_v22 = vmul.f32 %v4946_v50, %v2197_v11  ;;  %v2245_v0 = vmul.f32 2.5, %v2229_v36  ;;  %v2965_v14 = vmul.f32 1.25, %v7563_v21 }
 0x27c   :  { %v3493_v57 = vmul.f32 %v3477_v6, %v2869_v45  ;;  %v2933_v27 = vmul.f32 %v2917_v33, %v2165_v31  ;;  %v2997_v9 = vmul.f32 1.25, %v2229_v36  ;;  %v3605_v7 = vmul.f32 0.8333333, %v8553_v25 }
 0x27d   :  { %v2261_v37 = vmul.f32 %v7587_v4, %v2245_v0  ;;  %vm1204_vm5 = vcmp.ge.f32.partialorder %v7480_v58, 1.8  ;;  %vm1220_vm0 = vcmp.lt.f32.partialorder %v7480_v58, 2.2  ;;  %v5137_v35 = vadd.f32 -1.4, %v7480_v58 }
 0x27e   :  { %v3509_v47 = vadd.f32 %v3493_v57, %v3461_v34  ;;  %v2949_v11 = vadd.f32 %v2933_v27, %v2901_v43  ;;  %v3541_v50 = vmul.f32 %v3525_v26, %v2869_v45  ;;  %vm1236_vm6 = vmand %vm1204_vm5, %vm1220_vm0  ;;  %v2340_v20 = vsub.f32 2.2, %v7480_v58  ;;  %v7604_v34 = vpop.f32.mrf.mxu3  ;;  %v7617_v57 = vld [vmem:[#allocation3 + $0x30] sm:$0xff] }
 0x27f   :  { %v7598_v44 = vadd.f32 %v2261_v37, %v2213_v22  ;;  %v2981_v6 = vmul.f32 %v2965_v14, %v2165_v31  ;;  %v4977_v33 = vsel %vm1236_vm6, 1.0, %v8474_v63  ;;  %v2308_v25 = vmul.f32 2.5, %v5137_v35 }
 0x280   :  { %v4327_v10 = vadd.f32 %v7524_v12, %v7536_v16  ;;  %4532 = vmatmul.f32.gmra.mxu1 %v3509_v47  ;;  %v3573_v59 = vmul.f32 %v3557_v32, %v2949_v11  ;;  %v2356_v23 = vmul.f32 2.5, %v2340_v20  ;;  %v3044_v0 = vmul.f32 1.25, %v7515_v61  ;;  %v7613_v32 = vpop.f32.mrf.mxu0  ;;  %v7632_v47 = vpop.f32.mrf.mxu2 }
 0x281   :  { %v3013_v45 = vmul.f32 %v2997_v9, %v7598_v44  ;;  %v3637_v26 = vmul.f32 0.8333333, %v2229_v36  ;;  %v2324_v58 = vmul.f32 %v7519_v46, %v2308_v25  ;;  %v3684_v31 = vmul.f32 0.8333333, %v7500_v40  ;;  %v7621_v9 = vpop.f32.mrf.mxu1  ;;  %8557 = vst [vmem:[#allocation49_spill] sm:$0xff] %v7632_v47 }
 0x282   :  { %v7611_v43 = vadd.f32 %v7549_v1, %v7471_v62  ;;  %v3589_v22 = vadd.f32 %v3573_v59, %v3541_v50  ;;  %v2372_v12 = vmul.f32 %v4977_v33, %v2356_v23  ;;  %v3076_v16 = vmul.f32 1.25, %v2340_v20  ;;  %v8556_v1 = vld [vmem:[#allocation27_spill] sm:$0xff]  ;;  %v8558_v33 = vld [vmem:[#allocation28_spill] sm:$0xff]  ;;  %v8559_v23 = vld [vmem:[#allocation22_spill] sm:$0xff] }
 0x283   :  { %v7615_v14 = vadd.f32 %v3013_v45, %v2981_v6  ;;  %v3621_v61 = vmul.f32 %v3605_v7, %v2949_v11  ;;  %vm966_vm11 = vcmp.ge.f32.partialorder %v7617_v57, 0.6  ;;  %vm982_vm1 = vcmp.lt.f32.partialorder %v7617_v57, 1.0 }
 0x284   :  { %4597 = vmatmul.f32.gmra.mxu2 %v3589_v22  ;;  %v2388_v40 = vadd.f32 %v2372_v12, %v2324_v58  ;;  %v3060_v62 = vmul.f32 %v3044_v0, %v7530_v48  ;;  %vm998_vm4 = vmand %vm966_vm11, %vm982_vm1  ;;  %v2006_v46 = vsub.f32 1.0, %v7617_v57  ;;  %v2806_v36 = vmul.f32 1.25, %v8556_v1  ;;  %v8561_v12 = vld [vmem:[#allocation59_spill] sm:$0xff] }
 0x285   :  { %v7627_v27 = vadd.f32 %v7572_v17, %v4327_v10  ;;  %v3653_v7 = vmul.f32 %v3637_v26, %v7615_v14  ;;  %v3700_v37 = vmul.f32 %v3684_v31, %v7541_v2  ;;  %v4931_v35 = vsel %vm998_vm4, 1.0, %v8474_v63  ;;  %v8560_v26 = vld [vmem:[#allocation54_spill] sm:$0xff] }
 0x286   :  { %v3092_v11 = vmul.f32 %v3076_v16, %v2388_v40  ;;  %v3716_v50 = vmul.f32 0.8333333, %v2340_v20  ;;  %v2022_v6 = vmul.f32 2.5, %v2006_v46  ;;  %vm1046_vm7 = vcmp.ge.f32.partialorder %v7617_v57, 1.0 }
 0x287   :  { %v3669_v48 = vadd.f32 %v3653_v7, %v3621_v61  ;;  %v2822_v25 = vmul.f32 %v2806_v36, %v8558_v33  ;;  %v2838_v59 = vmul.f32 1.25, %v2006_v46  ;;  %v3446_v17 = vmul.f32 0.8333333, %v8559_v23  ;;  %v8562_v36 = vld [vmem:[#allocation29_spill] sm:$0xff] }
 0x288   :  { %v3108_v10 = vadd.f32 %v3092_v11, %v3060_v62  ;;  %v2038_v0 = vmul.f32 %v4931_v35, %v2022_v6  ;;  %vm1062_vm12 = vcmp.lt.f32.partialorder %v7617_v57, 1.4  ;;  %v7639_v2 = vadd.f32 -0.6, %v7617_v57  ;;  %v7649_v62 = vpop.f32.mrf.mxu3 }
 0x289   :  { %4662 = vmatmul.f32.gmra.mxu3 %v3669_v48  ;;  %v3478_v45 = vmul.f32 0.8333333, %v2006_v46  ;;  %vm1078_vm15 = vmand %vm1046_vm7, %vm1062_vm12  ;;  %v2118_v20 = vsub.f32 1.4, %v7617_v57  ;;  %v2886_v58 = vmul.f32 1.25, %v8560_v26  ;;  %v7644_v31 = vadd.f32 -1.0, %v7617_v57  ;;  %v7659_v47 = vpop.f32.mrf.mxu1 }
 0x28a   :  { %v3732_v22 = vmul.f32 %v3716_v50, %v3108_v10  ;;  %v2054_v16 = vadd.f32 %v2038_v0, %v8561_v12  ;;  %v4947_v61 = vsel %vm1078_vm15, 1.0, %v8474_v63  ;;  %v2086_v40 = vmul.f32 2.5, %v7639_v2  ;;  %v7654_v50 = vpop.f32.mrf.mxu0  ;;  %8563 = vst [vmem:[#allocation20_spill] sm:$0xff] %v7659_v47 }
 0x28b   :  { %v3462_v7 = vmul.f32 %v3446_v17, %v8562_v36  ;;  %v2134_v46 = vmul.f32 2.5, %v2118_v20  ;;  %v3526_v11 = vmul.f32 0.8333333, %v8556_v1  ;;  %vm1126_vm8 = vcmp.ge.f32.partialorder %v7617_v57, 1.4 }
 0x28c   :  { %v3748_v6 = vadd.f32 %v3732_v22, %v3700_v37  ;;  %v2854_v48 = vmul.f32 %v2838_v59, %v2054_v16  ;;  %v2102_v33 = vmul.f32 %v4931_v35, %v2086_v40  ;;  %v2918_v23 = vmul.f32 1.25, %v2118_v20 }
 0x28d   :  { %v2150_v10 = vmul.f32 %v4947_v61, %v2134_v46  ;;  %vm1142_vm9 = vcmp.lt.f32.partialorder %v7617_v57, 1.8  ;;  %v2198_v0 = vmul.f32 2.5, %v7644_v31  ;;  %v2230_v12 = vsub.f32 1.8, %v7617_v57  ;;  %v7668_v46 = vpop.f32.mrf.mxu2 }
 0x28e   :  { %4724 = vmatmul.f32.gmra.mxu0 %v3748_v6  ;;  %v2870_v17 = vadd.f32 %v2854_v48, %v2822_v25  ;;  %v2902_v1 = vmul.f32 %v2886_v58, %v2054_v16  ;;  %vm1158_vm13 = vmand %vm1126_vm8, %vm1142_vm9  ;;  %v2966_v37 = vmul.f32 1.25, %v7639_v2  ;;  %vm1205_vm10 = vcmp.ge.f32.partialorder %v7543_v18, 1.8 }
 0x28f   :  { %v2166_v35 = vadd.f32 %v2150_v10, %v2102_v33  ;;  %v7664_v59 = vsel %vm1158_vm13, 1.0, %v8474_v63  ;;  %v2214_v22 = vmul.f32 %v4947_v61, %v2198_v0  ;;  %v2246_v40 = vmul.f32 2.5, %v2230_v12 }
 0x290   :  { %v4330_v36 = vadd.f32 %v7557_v13, %v7611_v43  ;;  %v3494_v47 = vmul.f32 %v3478_v45, %v2870_v17  ;;  %v3558_v6 = vmul.f32 0.8333333, %v2118_v20  ;;  %v3606_v25 = vmul.f32 0.8333333, %v8560_v26 }
 0x291   :  { %v2934_v58 = vmul.f32 %v2918_v23, %v2166_v35  ;;  %v2262_v16 = vmul.f32 %v7664_v59, %v2246_v40  ;;  %v2998_v48 = vmul.f32 1.25, %v2230_v12  ;;  %vm1221_vm14 = vcmp.lt.f32.partialorder %v7543_v18, 2.2 }
 0x292   :  { %v3510_v33 = vadd.f32 %v3494_v47, %v3462_v7  ;;  %v3542_v10 = vmul.f32 %v3526_v11, %v2870_v17  ;;  %vm1237_vm2 = vmand %vm1205_vm10, %vm1221_vm14  ;;  %v5138_v61 = vadd.f32 -1.4, %v7543_v18  ;;  %v2341_v13 = vsub.f32 2.2, %v7543_v18  ;;  %v7686_v17 = vpop.f32.mrf.mxu3 }
 0x293   :  { %v2950_v43 = vadd.f32 %v2934_v58, %v2902_v1  ;;  %v7677_v45 = vadd.f32 %v2262_v16, %v2214_v22  ;;  %v2982_v20 = vmul.f32 %v2966_v37, %v2166_v35  ;;  %v4978_v26 = vsel %vm1237_vm2, 1.0, %v8474_v63 }
 0x294   :  { %v7682_v23 = vadd.f32 %v7578_v39, %v7627_v27  ;;  %4535 = vmatmul.f32.gmra.mxu1 %v3510_v33  ;;  %v2309_v47 = vmul.f32 2.5, %v5138_v61  ;;  %v2357_v7 = vmul.f32 2.5, %v2341_v13  ;;  %v3045_v11 = vmul.f32 1.25, %v7576_v15  ;;  %v7691_v27 = vpop.f32.mrf.mxu0  ;;  %v7695_v33 = vld [vmem:[#allocation3 + $0x38] sm:$0xff] }
 0x295   :  { %v4395_v0 = vadd.f32 %v7604_v34, %v4330_v36  ;;  %v3574_v18 = vmul.f32 %v3558_v6, %v2950_v43  ;;  %v3014_v1 = vmul.f32 %v2998_v48, %v7677_v45  ;;  %v3638_v22 = vmul.f32 0.8333333, %v2230_v12  ;;  %v7698_v34 = vpop.f32.mrf.mxu1  ;;  %v8564_v48 = vld [vmem:[#allocation31_spill] sm:$0xff] }
 0x296   :  { %v2325_v37 = vmul.f32 %v7587_v4, %v2309_v47  ;;  %v2373_v35 = vmul.f32 %v4978_v26, %v2357_v7  ;;  %v3077_v40 = vmul.f32 1.25, %v2341_v13  ;;  %v3685_v39 = vmul.f32 0.8333333, %v7563_v21 }
 0x297   :  { %v3590_v58 = vadd.f32 %v3574_v18, %v3542_v10  ;;  %v7693_v16 = vadd.f32 %v3014_v1, %v2982_v20  ;;  %v3622_v15 = vmul.f32 %v3606_v25, %v2950_v43  ;;  %vm967_vm3 = vcmp.ge.f32.partialorder %v7695_v33, 0.6  ;;  %v8565_v10 = vld [vmem:[#allocation26_spill] sm:$0xff]  ;;  %v7706_v20 = vpop.f32.mrf.mxu2 }
 0x298   :  { %v2389_v36 = vadd.f32 %v2373_v35, %v2325_v37  ;;  %v3061_v12 = vmul.f32 %v3045_v11, %v7598_v44  ;;  %vm983_vm5 = vcmp.lt.f32.partialorder %v7695_v33, 1.0  ;;  %v2007_v4 = vsub.f32 1.0, %v7695_v33  ;;  %8566 = vst [vmem:[#allocation21_spill] sm:$0xff] %v7706_v20  ;;  %v8567_v37 = vld [vmem:[#allocation32_spill] sm:$0xff] }
 0x299   :  { %4600 = vmatmul.f32.gmra.mxu2 %v3590_v58  ;;  %v3654_v21 = vmul.f32 %v3638_v22, %v7693_v16  ;;  %v3717_v6 = vmul.f32 0.8333333, %v2341_v13  ;;  %vm999_vm0 = vmand %vm967_vm3, %vm983_vm5  ;;  %v2807_v25 = vmul.f32 1.25, %v8564_v48  ;;  %v3447_v61 = vmul.f32 0.8333333, %v8565_v10 }
 0x29a   :  { %v3093_v43 = vmul.f32 %v3077_v40, %v2389_v36  ;;  %v4932_v26 = vsel %vm999_vm0, 1.0, %v8474_v63  ;;  %v2023_v47 = vmul.f32 2.5, %v2007_v4  ;;  %vm1047_vm6 = vcmp.ge.f32.partialorder %v7695_v33, 1.0 }
 0x29b   :  { %v7712_v44 = vadd.f32 %v7584_v51, %v7509_v5  ;;  %v7715_v7 = vadd.f32 %v7613_v32, %v4395_v0  ;;  %v3670_v13 = vadd.f32 %v3654_v21, %v3622_v15  ;;  %v3701_v11 = vmul.f32 %v3685_v39, %v7615_v14  ;;  %v8568_v0 = vld [vmem:[#allocation33_spill] sm:$0xff]  ;;  %v7730_v15 = vpop.f32.mrf.mxu3 }
 0x29c   :  { %v3109_v18 = vadd.f32 %v3093_v43, %v3061_v12  ;;  %v2039_v1 = vmul.f32 %v4932_v26, %v2023_v47  ;;  %v2839_v22 = vmul.f32 1.25, %v2007_v4  ;;  %vm1063_vm11 = vcmp.lt.f32.partialorder %v7695_v33, 1.4 }
 0x29d   :  { %4665 = vmatmul.f32.gmra.mxu3 %v3670_v13  ;;  %v2823_v35 = vmul.f32 %v2807_v25, %v8567_v37  ;;  %vm1079_vm1 = vmand %vm1047_vm6, %vm1063_vm11  ;;  %v7721_v40 = vadd.f32 -0.6, %v7695_v33  ;;  %v2119_v51 = vsub.f32 1.4, %v7695_v33  ;;  %v7725_v5 = vadd.f32 -1.0, %v7695_v33  ;;  %v8569_v25 = vld [vmem:[#allocation61_spill] sm:$0xff] }
 0x29e   :  { %v3733_v32 = vmul.f32 %v3717_v6, %v3109_v18  ;;  %v2055_v14 = vadd.f32 %v2039_v1, %v7177_v19  ;;  %v3463_v39 = vmul.f32 %v3447_v61, %v8568_v0  ;;  %v4948_v58 = vsel %vm1079_vm1, 1.0, %v8474_v63  ;;  %v7735_v6 = vpop.f32.mrf.mxu0 }
 0x29f   :  { %v3479_v36 = vmul.f32 0.8333333, %v2007_v4  ;;  %v2087_v12 = vmul.f32 2.5, %v7721_v40  ;;  %v2135_v21 = vmul.f32 2.5, %v2119_v51  ;;  %v2887_v10 = vmul.f32 1.25, %v8569_v25  ;;  %8570 = vst [vmem:[#allocation46_spill] sm:$0xff] %v7735_v6  ;;  %v7739_v4 = vpop.f32.mrf.mxu1 }
 0x2a0   :  { %v3749_v43 = vadd.f32 %v3733_v32, %v3701_v11  ;;  %v2855_v47 = vmul.f32 %v2839_v22, %v2055_v14  ;;  %v2919_v13 = vmul.f32 1.25, %v2119_v51  ;;  %vm1127_vm4 = vcmp.ge.f32.partialorder %v7695_v33, 1.4  ;;  %8571 = vst [vmem:[#allocation23_spill] sm:$0xff] %v7739_v4  ;;  %v7748_v4 = vpop.f32.mrf.mxu2 }
 0x2a1   :  { %v2103_v19 = vmul.f32 %v4932_v26, %v2087_v12  ;;  %v2151_v18 = vmul.f32 %v4948_v58, %v2135_v21  ;;  %vm1143_vm7 = vcmp.lt.f32.partialorder %v7695_v33, 1.8  ;;  %v2199_v61 = vmul.f32 2.5, %v7725_v5  ;;  %8572 = vst [vmem:[#allocation18_spill] sm:$0xff] %v7748_v4 }
 0x2a2   :  { %4727 = vmatmul.f32.gmra.mxu0 %v3749_v43  ;;  %v2871_v1 = vadd.f32 %v2855_v47, %v2823_v35  ;;  %v3527_v37 = vmul.f32 0.8333333, %v8564_v48  ;;  %v3559_v0 = vmul.f32 0.8333333, %v2119_v51  ;;  %vm1159_vm12 = vmand %vm1127_vm4, %vm1143_vm7  ;;  %v2231_v11 = vsub.f32 1.8, %v7695_v33 }
 0x2a3   :  { %v2167_v22 = vadd.f32 %v2151_v18, %v2103_v19  ;;  %v2903_v32 = vmul.f32 %v2887_v10, %v2055_v14  ;;  %v7744_v20 = vsel %vm1159_vm12, 1.0, %v8474_v63  ;;  %vm1206_vm15 = vcmp.ge.f32.partialorder %v7617_v57, 1.8 }
 0x2a4   :  { %v3495_v26 = vmul.f32 %v3479_v36, %v2871_v1  ;;  %v2215_v12 = vmul.f32 %v4948_v58, %v2199_v61  ;;  %v2247_v21 = vmul.f32 2.5, %v2231_v11  ;;  %v2967_v43 = vmul.f32 1.25, %v7721_v40 }
 0x2a5   :  { %v2935_v35 = vmul.f32 %v2919_v13, %v2167_v22  ;;  %v2999_v48 = vmul.f32 1.25, %v2231_v11  ;;  %v3607_v51 = vmul.f32 0.8333333, %v8569_v25  ;;  %vm1222_vm8 = vcmp.lt.f32.partialorder %v7617_v57, 2.2 }
 0x2a6   :  { %v3511_v47 = vadd.f32 %v3495_v26, %v3463_v39  ;;  %v2263_v14 = vmul.f32 %v7744_v20, %v2247_v21  ;;  %vm1238_vm9 = vmand %vm1206_vm15, %vm1222_vm8  ;;  %v5139_v10 = vadd.f32 -1.4, %v7617_v57  ;;  %v2342_v36 = vsub.f32 2.2, %v7617_v57  ;;  %v7763_v26 = vpop.f32.mrf.mxu3 }
 0x2a7   :  { %v2951_v58 = vadd.f32 %v2935_v35, %v2903_v32  ;;  %v3543_v19 = vmul.f32 %v3527_v37, %v2871_v1  ;;  %v4979_v18 = vsel %vm1238_vm9, 1.0, %v8474_v63  ;;  %v3046_v61 = vmul.f32 1.25, %v7644_v31  ;;  %v7768_v35 = vpop.f32.mrf.mxu0 }
 0x2a8   :  { %4538 = vmatmul.f32.gmra.mxu1 %v3511_v47  ;;  %v7757_v13 = vadd.f32 %v2263_v14, %v2215_v12  ;;  %v2983_v25 = vmul.f32 %v2967_v43, %v2167_v22  ;;  %v2310_v4 = vmul.f32 2.5, %v5139_v10  ;;  %v2358_v6 = vmul.f32 2.5, %v2342_v36 }
 0x2a9   :  { %v7761_v39 = vadd.f32 %v7590_v38, %v7712_v44  ;;  %v3575_v21 = vmul.f32 %v3559_v0, %v2951_v58  ;;  %v3639_v57 = vmul.f32 0.8333333, %v2231_v11  ;;  %v3686_v1 = vmul.f32 0.8333333, %v7639_v2  ;;  %v7771_v38 = vld [vmem:[#allocation3 + $0x40] sm:$0xff]  ;;  %v4282_v2 = vpop.f32.mrf.mxu1 }
 0x2aa   :  { %v3015_v37 = vmul.f32 %v2999_v48, %v7757_v13  ;;  %v2326_v31 = vmul.f32 %v7664_v59, %v2310_v4  ;;  %v2374_v32 = vmul.f32 %v4979_v18, %v2358_v6  ;;  %v3078_v12 = vmul.f32 1.25, %v2342_v36  ;;  %v8574_v48 = vld [vmem:[#allocation30_spill] sm:$0xff]  ;;  %v4347_v18 = vpop.f32.mrf.mxu2 }
 0x2ab   :  { %v3591_v22 = vadd.f32 %v3575_v21, %v3543_v19  ;;  %v3623_v43 = vmul.f32 %v3607_v51, %v2951_v58  ;;  %v3062_v47 = vmul.f32 %v3046_v61, %v7677_v45  ;;  %vm968_vm13 = vcmp.ge.f32.partialorder %v7771_v38, 0.6  ;;  %v8573_v45 = vld [vmem:[#allocation35_spill] sm:$0xff] }
 0x2ac   :  { %v7774_v44 = vadd.f32 %v3015_v37, %v2983_v25  ;;  %v2390_v0 = vadd.f32 %v2374_v32, %v2326_v31  ;;  %vm984_vm10 = vcmp.lt.f32.partialorder %v7771_v38, 1.0  ;;  %v2008_v59 = vsub.f32 1.0, %v7771_v38 }
 0x2ad   :  { %v7780_v6 = vadd.f32 %v7621_v9, %v7334_v55  ;;  %4603 = vmatmul.f32.gmra.mxu2 %v3591_v22  ;;  %v3718_v4 = vmul.f32 0.8333333, %v2342_v36  ;;  %vm1000_vm14 = vmand %vm968_vm13, %vm984_vm10  ;;  %v2808_v11 = vmul.f32 1.25, %v8573_v45  ;;  %v3448_v51 = vmul.f32 0.8333333, %v8574_v48  ;;  %v8575_v55 = vld [vmem:[#allocation36_spill] sm:$0xff] }
 0x2ae   :  { %v3655_v14 = vmul.f32 %v3639_v57, %v7774_v44  ;;  %v3094_v10 = vmul.f32 %v3078_v12, %v2390_v0  ;;  %v4933_v58 = vsel %vm1000_vm14, 1.0, %v8474_v63  ;;  %v2024_v19 = vmul.f32 2.5, %v2008_v59 }
 0x2af   :  { %v3702_v61 = vmul.f32 %v3686_v1, %v7693_v16  ;;  %v4283_v25 = vadd.f32 %v4282_v2, %v7345_v24  ;;  %v2824_v9 = vmul.f32 %v2808_v11, %v8575_v55  ;;  %vm1048_vm2 = vcmp.ge.f32.partialorder %v7771_v38, 1.0  ;;  %v8576_v1 = vld [vmem:[#allocation37_spill] sm:$0xff] }
 0x2b0   :  { %v3671_v36 = vadd.f32 %v3655_v14, %v3623_v43  ;;  %v3110_v21 = vadd.f32 %v3094_v10, %v3062_v47  ;;  %v2040_v37 = vmul.f32 %v4933_v58, %v2024_v19  ;;  %v2840_v31 = vmul.f32 1.25, %v2008_v59  ;;  %v7800_v47 = vpop.f32.mrf.mxu3 }
 0x2b1   :  { %vm1064_vm3 = vcmp.lt.f32.partialorder %v7771_v38, 1.4  ;;  %v7792_v57 = vadd.f32 -0.6, %v7771_v38  ;;  %v2120_v32 = vsub.f32 1.4, %v7771_v38  ;;  %v7795_v12 = vadd.f32 %v4347_v18, %v4283_v25  ;;  %v7805_v18 = vpop.f32.mrf.mxu0 }
 0x2b2   :  { %4668 = vmatmul.f32.gmra.mxu3 %v3671_v36  ;;  %v3734_v16 = vmul.f32 %v3718_v4, %v3110_v21  ;;  %v2056_v24 = vadd.f32 %v2040_v37, %v7180_v56  ;;  %v3464_v22 = vmul.f32 %v3448_v51, %v8576_v1  ;;  %vm1080_vm5 = vmand %vm1048_vm2, %vm1064_vm3  ;;  %v2888_v43 = vmul.f32 1.25, %v7135_v8  ;;  %8577 = vst [vmem:[#allocation24_spill] sm:$0xff] %v7805_v18 }
 0x2b3   :  { %v3480_v0 = vmul.f32 0.8333333, %v2008_v59  ;;  %v4949_v2 = vsel %vm1080_vm5, 1.0, %v8474_v63  ;;  %v2088_v11 = vmul.f32 2.5, %v7792_v57  ;;  %v2136_v48 = vmul.f32 2.5, %v2120_v32 }
 0x2b4   :  { %v3750_v14 = vadd.f32 %v3734_v16, %v3702_v61  ;;  %v2856_v10 = vmul.f32 %v2840_v31, %v2056_v24  ;;  %v2920_v19 = vmul.f32 1.25, %v2120_v32  ;;  %v3528_v4 = vmul.f32 0.8333333, %v8573_v45 }
 0x2b5   :  { %v2104_v56 = vmul.f32 %v4933_v58, %v2088_v11  ;;  %v2152_v51 = vmul.f32 %v4949_v2, %v2136_v48  ;;  %vm1128_vm0 = vcmp.ge.f32.partialorder %v7771_v38, 1.4  ;;  %vm1144_vm6 = vcmp.lt.f32.partialorder %v7771_v38, 1.8 }
 0x2b6   :  { %4730 = vmatmul.f32.gmra.mxu0 %v3750_v14  ;;  %v2872_v59 = vadd.f32 %v2856_v10, %v2824_v9  ;;  %v2904_v25 = vmul.f32 %v2888_v43, %v2056_v24  ;;  %vm1160_vm11 = vmand %vm1128_vm0, %vm1144_vm6  ;;  %v7810_v55 = vadd.f32 -1.0, %v7771_v38  ;;  %v2232_v61 = vsub.f32 1.8, %v7771_v38 }
 0x2b7   :  { %v2168_v36 = vadd.f32 %v2152_v51, %v2104_v56  ;;  %v3560_v21 = vmul.f32 0.8333333, %v2120_v32  ;;  %v7814_v45 = vsel %vm1160_vm11, 1.0, %v8474_v63  ;;  %v2968_v58 = vmul.f32 1.25, %v7792_v57 }
 0x2b8   :  { %v3496_v37 = vmul.f32 %v3480_v0, %v2872_v59  ;;  %v2200_v31 = vmul.f32 2.5, %v7810_v55  ;;  %v2248_v16 = vmul.f32 2.5, %v2232_v61  ;;  %vm1207_vm1 = vcmp.ge.f32.partialorder %v7695_v33, 1.8 }
 0x2b9   :  { %v2936_v9 = vmul.f32 %v2920_v19, %v2168_v36  ;;  %v3544_v24 = vmul.f32 %v3528_v4, %v2872_v59  ;;  %v3000_v1 = vmul.f32 1.25, %v2232_v61  ;;  %v3608_v43 = vmul.f32 0.8333333, %v7135_v8 }
 0x2ba   :  { %v3512_v11 = vadd.f32 %v3496_v37, %v3464_v22  ;;  %v2216_v48 = vmul.f32 %v4949_v2, %v2200_v31  ;;  %v2264_v32 = vmul.f32 %v7814_v45, %v2248_v16  ;;  %vm1223_vm4 = vcmp.lt.f32.partialorder %v7695_v33, 2.2 }
 0x2bb   :  { %v2952_v14 = vadd.f32 %v2936_v9, %v2904_v25  ;;  %vm1239_vm7 = vmand %vm1207_vm1, %vm1223_vm4  ;;  %v5140_v0 = vadd.f32 -1.4, %v7695_v33  ;;  %v2343_v10 = vsub.f32 2.2, %v7695_v33  ;;  %v3047_v56 = vmul.f32 1.25, %v7725_v5  ;;  %v4412_v25 = vpop.f32.mrf.mxu3 }
 0x2bc   :  { %4541 = vmatmul.f32.gmra.mxu1 %v3512_v11  ;;  %v7825_v19 = vadd.f32 %v2264_v32, %v2216_v48  ;;  %v2984_v4 = vmul.f32 %v2968_v58, %v2168_v36  ;;  %v4980_v8 = vsel %vm1239_vm7, 1.0, %v8474_v63  ;;  %v3687_v22 = vmul.f32 0.8333333, %v7721_v40  ;;  %v4477_v58 = vpop.f32.mrf.mxu0 }
 0x2bd   :  { %v3576_v2 = vmul.f32 %v3560_v21, %v2952_v14  ;;  %v3640_v51 = vmul.f32 0.8333333, %v2232_v61  ;;  %v2311_v59 = vmul.f32 2.5, %v5140_v0  ;;  %v2359_v37 = vmul.f32 2.5, %v2343_v10  ;;  %v7836_v61 = vld [vmem:[#allocation3 + $0x48] sm:$0xff] }
 0x2be   :  { %v3016_v31 = vmul.f32 %v3000_v1, %v7825_v19  ;;  %v3624_v16 = vmul.f32 %v3608_v43, %v2952_v14  ;;  %v3063_v33 = vmul.f32 %v3047_v56, %v7757_v13  ;;  %v3079_v9 = vmul.f32 1.25, %v2343_v10  ;;  %v8579_v1 = vld [vmem:[#allocation34_spill] sm:$0xff] }
 0x2bf   :  { %v3592_v5 = vadd.f32 %v3576_v2, %v3544_v24  ;;  %v2327_v11 = vmul.f32 %v7744_v20, %v2311_v59  ;;  %v2375_v48 = vmul.f32 %v4980_v8, %v2359_v37  ;;  %v3703_v36 = vmul.f32 %v3687_v22, %v7774_v44  ;;  %v8578_v20 = vld [vmem:[#allocation39_spill] sm:$0xff]  ;;  %v8581_v8 = vld [vmem:[#allocation40_spill] sm:$0xff]  ;;  %v8582_v37 = vld [vmem:[#allocation41_spill] sm:$0xff] }
 0x2c0   :  { %v7833_v32 = vadd.f32 %v3016_v31, %v2984_v4  ;;  %v4413_v40 = vadd.f32 %v4412_v25, %v7795_v12  ;;  %vm969_vm12 = vcmp.ge.f32.partialorder %v7836_v61, 0.6  ;;  %vm985_vm15 = vcmp.lt.f32.partialorder %v7836_v61, 1.0 }
 0x2c1   :  { %4606 = vmatmul.f32.gmra.mxu2 %v3592_v5  ;;  %v2391_v13 = vadd.f32 %v2375_v48, %v2327_v11  ;;  %vm1001_vm8 = vmand %vm969_vm12, %vm985_vm15  ;;  %v2009_v21 = vsub.f32 1.0, %v7836_v61  ;;  %v2809_v24 = vmul.f32 1.25, %v8578_v20  ;;  %v3449_v44 = vmul.f32 0.8333333, %v8579_v1 }
 0x2c2   :  { %v3656_v43 = vmul.f32 %v3640_v51, %v7833_v32  ;;  %v7844_v14 = vadd.f32 %v4477_v58, %v4413_v40  ;;  %v4934_v12 = vsel %vm1001_vm8, 1.0, %v8474_v63  ;;  %vm1049_vm9 = vcmp.ge.f32.partialorder %v7836_v61, 1.0 }
 0x2c3   :  { %v3095_v0 = vmul.f32 %v3079_v9, %v2391_v13  ;;  %v3719_v56 = vmul.f32 0.8333333, %v2343_v10  ;;  %v2025_v4 = vmul.f32 2.5, %v2009_v21  ;;  %v2825_v22 = vmul.f32 %v2809_v24, %v8581_v8 }
 0x2c4   :  { %8580 = vst [vmem:[#allocation52_spill] sm:$0xff] %v7844_v14  ;;  %v3672_v2 = vadd.f32 %v3656_v43, %v3624_v16  ;;  %v2841_v59 = vmul.f32 1.25, %v2009_v21  ;;  %v3465_v25 = vmul.f32 %v3449_v44, %v8582_v37  ;;  %vm1065_vm13 = vcmp.lt.f32.partialorder %v7836_v61, 1.4  ;;  %v4285_v44 = vpop.f32.mrf.mxu1 }
 0x2c5   :  { %v3111_v31 = vadd.f32 %v3095_v0, %v3063_v33  ;;  %v2041_v5 = vmul.f32 %v4934_v12, %v2025_v4  ;;  %vm1081_vm10 = vmand %vm1049_vm9, %vm1065_vm13  ;;  %v7852_v51 = vadd.f32 -0.6, %v7836_v61  ;;  %v2121_v11 = vsub.f32 1.4, %v7836_v61 }
 0x2c6   :  { %4671 = vmatmul.f32.gmra.mxu3 %v3672_v2  ;;  %v3481_v9 = vmul.f32 0.8333333, %v2009_v21  ;;  %v4950_v10 = vsel %vm1081_vm10, 1.0, %v8474_v63  ;;  %v2889_v48 = vmul.f32 1.25, %v7152_v42  ;;  %vm1129_vm14 = vcmp.ge.f32.partialorder %v7836_v61, 1.4 }
 0x2c7   :  { %v3735_v16 = vmul.f32 %v3719_v56, %v3111_v31  ;;  %v2057_v58 = vadd.f32 %v2041_v5, %v7203_v30  ;;  %v2089_v33 = vmul.f32 2.5, %v7852_v51  ;;  %v2137_v40 = vmul.f32 2.5, %v2121_v11 }
 0x2c8   :  { %v2921_v13 = vmul.f32 1.25, %v2121_v11  ;;  %v3529_v24 = vmul.f32 0.8333333, %v8578_v20  ;;  %vm1145_vm2 = vcmp.lt.f32.partialorder %v7836_v61, 1.8  ;;  %v7863_v1 = vadd.f32 -1.0, %v7836_v61 }
 0x2c9   :  { %v3751_v21 = vadd.f32 %v3735_v16, %v3703_v36  ;;  %v2857_v43 = vmul.f32 %v2841_v59, %v2057_v58  ;;  %v2105_v0 = vmul.f32 %v4934_v12, %v2089_v33  ;;  %v2153_v4 = vmul.f32 %v4950_v10, %v2137_v40  ;;  %vm1161_vm3 = vmand %vm1129_vm14, %vm1145_vm2 }
 0x2ca   :  { %v2905_v56 = vmul.f32 %v2889_v48, %v2057_v58  ;;  %v3561_v8 = vmul.f32 0.8333333, %v2121_v11  ;;  %v2201_v30 = vmul.f32 2.5, %v7863_v1  ;;  %v2233_v2 = vsub.f32 1.8, %v7836_v61 }
 0x2cb   :  { %4733 = vmatmul.f32.gmra.mxu0 %v3751_v21  ;;  %v2873_v37 = vadd.f32 %v2857_v43, %v2825_v22  ;;  %v2169_v20 = vadd.f32 %v2153_v4, %v2105_v0  ;;  %v7868_v31 = vsel %vm1161_vm3, 1.0, %v8474_v63  ;;  %v2969_v5 = vmul.f32 1.25, %v7852_v51  ;;  %v4350_v4 = vpop.f32.mrf.mxu2 }
 0x2cc   :  { %v2217_v36 = vmul.f32 %v4950_v10, %v2201_v30  ;;  %v2249_v16 = vmul.f32 2.5, %v2233_v2  ;;  %v3001_v59 = vmul.f32 1.25, %v2233_v2  ;;  %v3609_v12 = vmul.f32 0.8333333, %v7152_v42 }
 0x2cd   :  { %v3497_v33 = vmul.f32 %v3481_v9, %v2873_v37  ;;  %v2937_v48 = vmul.f32 %v2921_v13, %v2169_v20  ;;  %v3545_v11 = vmul.f32 %v3529_v24, %v2873_v37  ;;  %v2985_v58 = vmul.f32 %v2969_v5, %v2169_v20 }
 0x2ce   :  { %v2265_v40 = vmul.f32 %v7868_v31, %v2249_v16  ;;  %vm1208_vm5 = vcmp.ge.f32.partialorder %v7771_v38, 1.8  ;;  %vm1224_vm0 = vcmp.lt.f32.partialorder %v7771_v38, 2.2  ;;  %v5141_v22 = vadd.f32 -1.4, %v7771_v38 }
 0x2cf   :  { %v3513_v21 = vadd.f32 %v3497_v33, %v3465_v25  ;;  %v2953_v43 = vadd.f32 %v2937_v48, %v2905_v56  ;;  %vm1240_vm6 = vmand %vm1208_vm5, %vm1224_vm0  ;;  %v2344_v10 = vsub.f32 2.2, %v7771_v38  ;;  %v3048_v0 = vmul.f32 1.25, %v7810_v55 }
 0x2d0   :  { %v7878_v42 = vadd.f32 %v2265_v40, %v2217_v36  ;;  %v4981_v9 = vsel %vm1240_vm6, 1.0, %v8474_v63  ;;  %v2312_v13 = vmul.f32 2.5, %v5141_v22  ;;  %v3688_v24 = vmul.f32 0.8333333, %v7792_v57  ;;  %v4415_v36 = vpop.f32.mrf.mxu3  ;;  %v4288_v57 = vpop.f32.mrf.mxu1 }
 0x2d1   :  { %v4286_v30 = vadd.f32 %v4285_v44, %v7375_v3  ;;  %4544 = vmatmul.f32.gmra.mxu1 %v3513_v21  ;;  %v3577_v37 = vmul.f32 %v3561_v8, %v2953_v43  ;;  %v3641_v20 = vmul.f32 0.8333333, %v2233_v2  ;;  %v2360_v25 = vmul.f32 2.5, %v2344_v10  ;;  %v4480_v44 = vpop.f32.mrf.mxu0  ;;  %v7889_v8 = vld [vmem:[#allocation3 + $0x50] sm:$0xff] }
 0x2d2   :  { %v3017_v56 = vmul.f32 %v3001_v59, %v7878_v42  ;;  %v3625_v5 = vmul.f32 %v3609_v12, %v2953_v43  ;;  %v2328_v38 = vmul.f32 %v7814_v45, %v2312_v13  ;;  %v3064_v55 = vmul.f32 %v3048_v0, %v7825_v19  ;;  %v8583_v59 = vld [vmem:[#allocation43_spill] sm:$0xff] }
 0x2d3   :  { %v3593_v16 = vadd.f32 %v3577_v37, %v3545_v11  ;;  %v2376_v33 = vmul.f32 %v4981_v9, %v2360_v25  ;;  %v3080_v48 = vmul.f32 1.25, %v2344_v10  ;;  %v4351_v40 = vadd.f32 %v4350_v4, %v4286_v30  ;;  %v8586_v37 = vld [vmem:[#allocation38_spill] sm:$0xff] }
 0x2d4   :  { %v7886_v22 = vadd.f32 %v3017_v56, %v2985_v58  ;;  %v3704_v3 = vmul.f32 %v3688_v24, %v7833_v32  ;;  %vm970_vm11 = vcmp.ge.f32.partialorder %v7889_v8, 0.6  ;;  %vm986_vm1 = vcmp.lt.f32.partialorder %v7889_v8, 1.0  ;;  %v8585_v24 = vld [vmem:[#allocation44_spill] sm:$0xff] }
 0x2d5   :  { %4609 = vmatmul.f32.gmra.mxu2 %v3593_v16  ;;  %v2392_v45 = vadd.f32 %v2376_v33, %v2328_v38  ;;  %v4416_v19 = vadd.f32 %v4415_v36, %v4351_v40  ;;  %vm1002_vm4 = vmand %vm970_vm11, %vm986_vm1  ;;  %v2010_v2 = vsub.f32 1.0, %v7889_v8  ;;  %v2810_v12 = vmul.f32 1.25, %v8583_v59  ;;  %v8587_v40 = vld [vmem:[#allocation45_spill] sm:$0xff] }
 0x2d6   :  { %v3657_v11 = vmul.f32 %v3641_v20, %v7886_v22  ;;  %v3720_v58 = vmul.f32 0.8333333, %v2344_v10  ;;  %v7897_v32 = vadd.f32 %v4288_v57, %v7418_v60  ;;  %v4935_v21 = vsel %vm1002_vm4, 1.0, %v8474_v63 }
 0x2d7   :  { %v3096_v43 = vmul.f32 %v3080_v48, %v2392_v45  ;;  %v7900_v0 = vadd.f32 %v4480_v44, %v4416_v19  ;;  %v2026_v9 = vmul.f32 2.5, %v2010_v2  ;;  %vm1050_vm7 = vcmp.ge.f32.partialorder %v7889_v8, 1.0 }
 0x2d8   :  { %v3673_v13 = vadd.f32 %v3657_v11, %v3625_v5  ;;  %v2826_v4 = vmul.f32 %v2810_v12, %v8585_v24  ;;  %v2842_v30 = vmul.f32 1.25, %v2010_v2  ;;  %v3450_v25 = vmul.f32 0.8333333, %v8586_v37 }
 0x2d9   :  { %8584 = vst [vmem:[#allocation56_spill] sm:$0xff] %v7900_v0  ;;  %v3112_v56 = vadd.f32 %v3096_v43, %v3064_v55  ;;  %v2042_v20 = vmul.f32 %v4935_v21, %v2026_v9  ;;  %vm1066_vm12 = vcmp.lt.f32.partialorder %v7889_v8, 1.4  ;;  %v7907_v60 = vadd.f32 -0.6, %v7889_v8 }
 0x2da   :  { %4674 = vmatmul.f32.gmra.mxu3 %v3673_v13  ;;  %v3482_v10 = vmul.f32 0.8333333, %v2010_v2  ;;  %vm1082_vm15 = vmand %vm1050_vm7, %vm1066_vm12  ;;  %v2122_v38 = vsub.f32 1.4, %v7889_v8  ;;  %v2890_v36 = vmul.f32 1.25, %v7205_v52  ;;  %v7912_v5 = vadd.f32 -1.0, %v7889_v8 }
 0x2db   :  { %v3736_v16 = vmul.f32 %v3720_v58, %v3112_v56  ;;  %v2058_v33 = vadd.f32 %v2042_v20, %v7258_v41  ;;  %v4951_v55 = vsel %vm1082_vm15, 1.0, %v8474_v63  ;;  %v2090_v48 = vmul.f32 2.5, %v7907_v60 }
 0x2dc   :  { %v3466_v57 = vmul.f32 %v3450_v25, %v8587_v40  ;;  %v2138_v44 = vmul.f32 2.5, %v2122_v38  ;;  %v3530_v45 = vmul.f32 0.8333333, %v8583_v59  ;;  %vm1130_vm8 = vcmp.ge.f32.partialorder %v7889_v8, 1.4 }
 0x2dd   :  { %v3752_v19 = vadd.f32 %v3736_v16, %v3704_v3  ;;  %v2858_v2 = vmul.f32 %v2842_v30, %v2058_v33  ;;  %v2106_v12 = vmul.f32 %v4935_v21, %v2090_v48  ;;  %v2922_v11 = vmul.f32 1.25, %v2122_v38 }
 0x2de   :  { %v2154_v43 = vmul.f32 %v4951_v55, %v2138_v44  ;;  %vm1146_vm9 = vcmp.lt.f32.partialorder %v7889_v8, 1.8  ;;  %v2202_v41 = vmul.f32 2.5, %v7912_v5  ;;  %v2234_v58 = vsub.f32 1.8, %v7889_v8 }
 0x2df   :  { %4736 = vmatmul.f32.gmra.mxu0 %v3752_v19  ;;  %v2874_v9 = vadd.f32 %v2858_v2, %v2826_v4  ;;  %v2906_v13 = vmul.f32 %v2890_v36, %v2058_v33  ;;  %vm1162_vm13 = vmand %vm1130_vm8, %vm1146_vm9  ;;  %v2970_v24 = vmul.f32 1.25, %v7907_v60  ;;  %vm1209_vm10 = vcmp.ge.f32.partialorder %v7836_v61, 1.8 }
 0x2e0   :  { %v2170_v59 = vadd.f32 %v2154_v43, %v2106_v12  ;;  %v7926_v3 = vsel %vm1162_vm13, 1.0, %v8474_v63  ;;  %v2218_v21 = vmul.f32 %v4951_v55, %v2202_v41  ;;  %v2250_v30 = vmul.f32 2.5, %v2234_v58 }
 0x2e1   :  { %v3498_v37 = vmul.f32 %v3482_v10, %v2874_v9  ;;  %v3546_v25 = vmul.f32 %v3530_v45, %v2874_v9  ;;  %v3562_v56 = vmul.f32 0.8333333, %v2122_v38  ;;  %v3610_v20 = vmul.f32 0.8333333, %v7205_v52  ;;  %v4353_v45 = vpop.f32.mrf.mxu2 }
 0x2e2   :  { %v2938_v16 = vmul.f32 %v2922_v11, %v2170_v59  ;;  %v2266_v4 = vmul.f32 %v7926_v3, %v2250_v30  ;;  %v3002_v36 = vmul.f32 1.25, %v2234_v58  ;;  %vm1225_vm14 = vcmp.lt.f32.partialorder %v7836_v61, 2.2 }
 0x2e3   :  { %v3514_v33 = vadd.f32 %v3498_v37, %v3466_v57  ;;  %vm1241_vm2 = vmand %vm1209_vm10, %vm1225_vm14  ;;  %v5142_v48 = vadd.f32 -1.4, %v7836_v61  ;;  %v2345_v40 = vsub.f32 2.2, %v7836_v61  ;;  %v3049_v55 = vmul.f32 1.25, %v7863_v1  ;;  %v4418_v1 = vpop.f32.mrf.mxu3  ;;  %v4483_v37 = vpop.f32.mrf.mxu0 }
 0x2e4   :  { %v2954_v44 = vadd.f32 %v2938_v16, %v2906_v13  ;;  %v7934_v10 = vadd.f32 %v2266_v4, %v2218_v21  ;;  %v2986_v38 = vmul.f32 %v2970_v24, %v2170_v59  ;;  %v4982_v52 = vsel %vm1241_vm2, 1.0, %v8474_v63  ;;  %v7944_v16 = vld [vmem:[#allocation3 + $0x58] sm:$0xff]  ;;  %v8589_v4 = vld [vmem:[#allocation42_spill] sm:$0xff] }
 0x2e5   :  { %4547 = vmatmul.f32.gmra.mxu1 %v3514_v33  ;;  %v3642_v19 = vmul.f32 0.8333333, %v2234_v58  ;;  %v2313_v2 = vmul.f32 2.5, %v5142_v48  ;;  %v2361_v12 = vmul.f32 2.5, %v2345_v40  ;;  %v3689_v57 = vmul.f32 0.8333333, %v7852_v51 }
 0x2e6   :  { %v3578_v11 = vmul.f32 %v3562_v56, %v2954_v44  ;;  %v3018_v43 = vmul.f32 %v3002_v36, %v7934_v10  ;;  %v3065_v61 = vmul.f32 %v3049_v55, %v7878_v42  ;;  %v3081_v41 = vmul.f32 1.25, %v2345_v40  ;;  %v4291_v56 = vpop.f32.mrf.mxu1 }
 0x2e7   :  { %v3626_v9 = vmul.f32 %v3610_v20, %v2954_v44  ;;  %v2329_v13 = vmul.f32 %v7868_v31, %v2313_v2  ;;  %v2377_v24 = vmul.f32 %v4982_v52, %v2361_v12  ;;  %v4354_v59 = vadd.f32 %v4353_v45, %v7897_v32  ;;  %v8588_v32 = vld [vmem:[#allocation48_spill] sm:$0xff]  ;;  %v8591_v45 = vld [vmem:[#allocation50_spill] sm:$0xff] }
 0x2e8   :  { %v3594_v21 = vadd.f32 %v3578_v11, %v3546_v25  ;;  %v7942_v30 = vadd.f32 %v3018_v43, %v2986_v38  ;;  %v3721_v58 = vmul.f32 0.8333333, %v2345_v40  ;;  %vm971_vm3 = vcmp.ge.f32.partialorder %v7944_v16, 0.6  ;;  %v8592_v43 = vld [vmem:[#allocation51_spill] sm:$0xff] }
 0x2e9   :  { %v2393_v51 = vadd.f32 %v2377_v24, %v2329_v13  ;;  %v4419_v42 = vadd.f32 %v4418_v1, %v4354_v59  ;;  %vm987_vm5 = vcmp.lt.f32.partialorder %v7944_v16, 1.0  ;;  %v2011_v20 = vsub.f32 1.0, %v7944_v16 }
 0x2ea   :  { %4612 = vmatmul.f32.gmra.mxu2 %v3594_v21  ;;  %v3658_v31 = vmul.f32 %v3642_v19, %v7942_v30  ;;  %vm1003_vm0 = vmand %vm971_vm3, %vm987_vm5  ;;  %v2811_v25 = vmul.f32 1.25, %v8588_v32  ;;  %v3451_v36 = vmul.f32 0.8333333, %v8589_v4  ;;  %vm1051_vm6 = vcmp.ge.f32.partialorder %v7944_v16, 1.0 }
 0x2eb   :  { %v3097_v33 = vmul.f32 %v3081_v41, %v2393_v51  ;;  %v7953_v48 = vadd.f32 %v4483_v37, %v4419_v42  ;;  %v4936_v40 = vsel %vm1003_vm0, 1.0, %v8474_v63  ;;  %v2027_v55 = vmul.f32 2.5, %v2011_v20 }
 0x2ec   :  { %v3674_v44 = vadd.f32 %v3658_v31, %v3626_v9  ;;  %v3705_v38 = vmul.f32 %v3689_v57, %v7886_v22  ;;  %v7958_v52 = vadd.f32 %v4291_v56, %v7456_v29  ;;  %v2827_v19 = vmul.f32 %v2811_v25, %v8591_v45 }
 0x2ed   :  { %8590 = vst [vmem:[#allocation25_spill] sm:$0xff] %v7953_v48  ;;  %v3113_v2 = vadd.f32 %v3097_v33, %v3065_v61  ;;  %v2043_v12 = vmul.f32 %v4936_v40, %v2027_v55  ;;  %v2843_v11 = vmul.f32 1.25, %v2011_v20  ;;  %vm1067_vm11 = vcmp.lt.f32.partialorder %v7944_v16, 1.4 }
 0x2ee   :  { %4677 = vmatmul.f32.gmra.mxu3 %v3674_v44  ;;  %v3467_v41 = vmul.f32 %v3451_v36, %v8592_v43  ;;  %vm1083_vm1 = vmand %vm1051_vm6, %vm1067_vm11  ;;  %v7966_v1 = vadd.f32 -0.6, %v7944_v16  ;;  %v2123_v22 = vsub.f32 1.4, %v7944_v16  ;;  %v7970_v29 = vadd.f32 -1.0, %v7944_v16 }
 0x2ef   :  { %v3737_v57 = vmul.f32 %v3721_v58, %v3113_v2  ;;  %v2059_v61 = vadd.f32 %v2043_v12, %v7266_v28  ;;  %v4952_v9 = vsel %vm1083_vm1, 1.0, %v8474_v63  ;;  %v2891_v13 = vmul.f32 1.25, %v7237_v53  ;;  %v4356_v2 = vpop.f32.mrf.mxu2 }
 0x2f0   :  { %v3483_v24 = vmul.f32 0.8333333, %v2011_v20  ;;  %v2091_v59 = vmul.f32 2.5, %v7966_v1  ;;  %v2139_v21 = vmul.f32 2.5, %v2123_v22  ;;  %v3531_v37 = vmul.f32 0.8333333, %v8588_v32 }
 0x2f1   :  { %v3753_v51 = vadd.f32 %v3737_v57, %v3705_v38  ;;  %v2859_v56 = vmul.f32 %v2843_v11, %v2059_v61  ;;  %v2923_v42 = vmul.f32 1.25, %v2123_v22  ;;  %vm1131_vm4 = vcmp.ge.f32.partialorder %v7944_v16, 1.4 }
 0x2f2   :  { %v2107_v31 = vmul.f32 %v4936_v40, %v2091_v59  ;;  %v2155_v25 = vmul.f32 %v4952_v9, %v2139_v21  ;;  %vm1147_vm7 = vcmp.lt.f32.partialorder %v7944_v16, 1.8  ;;  %v2203_v28 = vmul.f32 2.5, %v7970_v29 }
 0x2f3   :  { %4739 = vmatmul.f32.gmra.mxu0 %v3753_v51  ;;  %v2875_v58 = vadd.f32 %v2859_v56, %v2827_v19  ;;  %v2907_v4 = vmul.f32 %v2891_v13, %v2059_v61  ;;  %v3563_v20 = vmul.f32 0.8333333, %v2123_v22  ;;  %vm1163_vm12 = vmand %vm1131_vm4, %vm1147_vm7  ;;  %v2235_v36 = vsub.f32 1.8, %v7944_v16 }
 0x2f4   :  { %v2171_v33 = vadd.f32 %v2155_v25, %v2107_v31  ;;  %v7982_v32 = vsel %vm1163_vm12, 1.0, %v8474_v63  ;;  %v2971_v55 = vmul.f32 1.25, %v7966_v1  ;;  %vm1210_vm15 = vcmp.ge.f32.partialorder %v7889_v8, 1.8 }
 0x2f5   :  { %v3499_v40 = vmul.f32 %v3483_v24, %v2875_v58  ;;  %v2219_v44 = vmul.f32 %v4952_v9, %v2203_v28  ;;  %v2251_v38 = vmul.f32 2.5, %v2235_v36  ;;  %v3611_v45 = vmul.f32 0.8333333, %v7237_v53 }
 0x2f6   :  { %v2939_v19 = vmul.f32 %v2923_v42, %v2171_v33  ;;  %v3547_v12 = vmul.f32 %v3531_v37, %v2875_v58  ;;  %v3003_v11 = vmul.f32 1.25, %v2235_v36  ;;  %vm1226_vm8 = vcmp.lt.f32.partialorder %v7889_v8, 2.2 }
 0x2f7   :  { %v3515_v43 = vadd.f32 %v3499_v40, %v3467_v41  ;;  %v2267_v22 = vmul.f32 %v7982_v32, %v2251_v38  ;;  %vm1242_vm9 = vmand %vm1210_vm15, %vm1226_vm8  ;;  %v5143_v57 = vadd.f32 -1.4, %v7889_v8  ;;  %v2346_v61 = vsub.f32 2.2, %v7889_v8 }
 0x2f8   :  { %v2955_v13 = vadd.f32 %v2939_v19, %v2907_v4  ;;  %v4983_v9 = vsel %vm1242_vm9, 1.0, %v8474_v63  ;;  %v3050_v24 = vmul.f32 1.25, %v7912_v5  ;;  %v3690_v53 = vmul.f32 0.8333333, %v7907_v60  ;;  %v4421_v5 = vpop.f32.mrf.mxu3 }
 0x2f9   :  { %4550 = vmatmul.f32.gmra.mxu1 %v3515_v43  ;;  %v7994_v59 = vadd.f32 %v2267_v22, %v2219_v44  ;;  %v2987_v21 = vmul.f32 %v2971_v55, %v2171_v33  ;;  %v2314_v37 = vmul.f32 2.5, %v5143_v57  ;;  %v2362_v41 = vmul.f32 2.5, %v2346_v61  ;;  %v8001_v33 = vld [vmem:[#allocation3 + $0x60] sm:$0xff]  ;;  %v4294_v55 = vpop.f32.mrf.mxu1  ;;  %v4486_v44 = vpop.f32.mrf.mxu0 }
 0x2fa   :  { %v3579_v51 = vmul.f32 %v3563_v20, %v2955_v13  ;;  %v3627_v56 = vmul.f32 %v3611_v45, %v2955_v13  ;;  %v3643_v42 = vmul.f32 0.8333333, %v2235_v36  ;;  %v3082_v31 = vmul.f32 1.25, %v2346_v61  ;;  %v4359_v22 = vpop.f32.mrf.mxu2 }
 0x2fb   :  { %v3019_v25 = vmul.f32 %v3003_v11, %v7994_v59  ;;  %v2330_v8 = vmul.f32 %v7926_v3, %v2314_v37  ;;  %v2378_v28 = vmul.f32 %v4983_v9, %v2362_v41  ;;  %v3066_v58 = vmul.f32 %v3050_v24, %v7934_v10  ;;  %v8596_v9 = vld [vmem:[#allocation57_spill] sm:$0xff] }
 0x2fc   :  { %v3595_v4 = vadd.f32 %v3579_v51, %v3547_v12  ;;  %v3706_v60 = vmul.f32 %v3690_v53, %v7942_v30  ;;  %v4357_v40 = vadd.f32 %v4356_v2, %v7958_v52  ;;  %vm972_vm13 = vcmp.ge.f32.partialorder %v8001_v33, 0.6  ;;  %v8593_v30 = vld [vmem:[#allocation55_spill] sm:$0xff] }
 0x2fd   :  { %v8004_v20 = vadd.f32 %v3019_v25, %v2987_v21  ;;  %v2394_v36 = vadd.f32 %v2378_v28, %v2330_v8  ;;  %vm988_vm10 = vcmp.lt.f32.partialorder %v8001_v33, 1.0  ;;  %v2012_v3 = vsub.f32 1.0, %v8001_v33  ;;  %v8594_v52 = vld [vmem:[#allocation47_spill] sm:$0xff]  ;;  %v8597_v25 = vld [vmem:[#allocation58_spill] sm:$0xff] }
 0x2fe   :  { %4615 = vmatmul.f32.gmra.mxu2 %v3595_v4  ;;  %v3722_v10 = vmul.f32 0.8333333, %v2346_v61  ;;  %v4422_v38 = vadd.f32 %v4421_v5, %v4357_v40  ;;  %vm1004_vm14 = vmand %vm972_vm13, %vm988_vm10  ;;  %v2812_v45 = vmul.f32 1.25, %v8593_v30  ;;  %v3452_v2 = vmul.f32 0.8333333, %v8594_v52 }
 0x2ff   :  { %v3659_v19 = vmul.f32 %v3643_v42, %v8004_v20  ;;  %v3098_v12 = vmul.f32 %v3082_v31, %v2394_v36  ;;  %v4937_v11 = vsel %vm1004_vm14, 1.0, %v8474_v63  ;;  %v2028_v43 = vmul.f32 2.5, %v2012_v3 }
 0x300   :  { %v4295_v57 = vadd.f32 %v4294_v55, %v7370_v49  ;;  %v8013_v13 = vadd.f32 %v4486_v44, %v4422_v38  ;;  %v2828_v24 = vmul.f32 %v2812_v45, %v8596_v9  ;;  %vm1052_vm2 = vcmp.ge.f32.partialorder %v8001_v33, 1.0 }
 0x301   :  { %v3675_v61 = vadd.f32 %v3659_v19, %v3627_v56  ;;  %v3114_v53 = vadd.f32 %v3098_v12, %v3066_v58  ;;  %v2044_v21 = vmul.f32 %v4937_v11, %v2028_v43  ;;  %v2844_v37 = vmul.f32 1.25, %v2012_v3  ;;  %v8598_v56 = vld [vmem:[#allocation72_spill] sm:$0xff] }
 0x302   :  { %8595 = vst [vmem:[#allocation27_spill] sm:$0xff] %v8013_v13  ;;  %vm1068_vm3 = vcmp.lt.f32.partialorder %v8001_v33, 1.4  ;;  %v8019_v41 = vadd.f32 -0.6, %v8001_v33  ;;  %v8022_v42 = vadd.f32 %v4359_v22, %v4295_v57  ;;  %v3468_v8 = vmul.f32 %v3452_v2, %v8597_v25 }
 0x303   :  { %v2124_v51 = vsub.f32 1.4, %v8001_v33  ;;  %4680 = vmatmul.f32.gmra.mxu3 %v3675_v61  ;;  %v3738_v49 = vmul.f32 %v3722_v10, %v3114_v53  ;;  %v2060_v31 = vadd.f32 %v2044_v21, %v7386_v54  ;;  %vm1084_vm5 = vmand %vm1052_vm2, %vm1068_vm3  ;;  %v2892_v28 = vmul.f32 1.25, %v8598_v56 }
 0x304   :  { %v3484_v58 = vmul.f32 0.8333333, %v2012_v3  ;;  %v4953_v5 = vsel %vm1084_vm5, 1.0, %v8474_v63  ;;  %v2092_v4 = vmul.f32 2.5, %v8019_v41  ;;  %v3532_v38 = vmul.f32 0.8333333, %v8593_v30 }
 0x305   :  { %v2140_v40 = vmul.f32 2.5, %v2124_v51  ;;  %v3754_v36 = vadd.f32 %v3738_v49, %v3706_v60  ;;  %v2860_v55 = vmul.f32 %v2844_v37, %v2060_v31  ;;  %v2924_v44 = vmul.f32 1.25, %v2124_v51 }
 0x306   :  { %v2108_v45 = vmul.f32 %v4937_v11, %v2092_v4  ;;  %vm1132_vm0 = vcmp.ge.f32.partialorder %v8001_v33, 1.4  ;;  %vm1148_vm6 = vcmp.lt.f32.partialorder %v8001_v33, 1.8  ;;  %v2908_v52 = vmul.f32 %v2892_v28, %v2060_v31 }
 0x307   :  { %v2156_v10 = vmul.f32 %v4953_v5, %v2140_v40  ;;  %4742 = vmatmul.f32.gmra.mxu0 %v3754_v36  ;;  %v2876_v54 = vadd.f32 %v2860_v55, %v2828_v24  ;;  %vm1164_vm11 = vmand %vm1132_vm0, %vm1148_vm6  ;;  %v8033_v3 = vadd.f32 -1.0, %v8001_v33  ;;  %v2236_v2 = vsub.f32 1.8, %v8001_v33  ;;  %v4424_v55 = vpop.f32.mrf.mxu3 }
 0x308   :  { %v3564_v19 = vmul.f32 0.8333333, %v2124_v51  ;;  %v8037_v12 = vsel %vm1164_vm11, 1.0, %v8474_v63  ;;  %v2972_v30 = vmul.f32 1.25, %v8019_v41  ;;  %vm1211_vm1 = vcmp.ge.f32.partialorder %v7944_v16, 1.8 }
 0x309   :  { %v2172_v60 = vadd.f32 %v2156_v10, %v2108_v45  ;;  %v3500_v11 = vmul.f32 %v3484_v58, %v2876_v54  ;;  %v2204_v43 = vmul.f32 2.5, %v8033_v3  ;;  %v2252_v22 = vmul.f32 2.5, %v2236_v2 }
 0x30a   :  { %v3548_v9 = vmul.f32 %v3532_v38, %v2876_v54  ;;  %v3004_v24 = vmul.f32 1.25, %v2236_v2  ;;  %v3612_v61 = vmul.f32 0.8333333, %v8598_v56  ;;  %vm1227_vm4 = vcmp.lt.f32.partialorder %v7944_v16, 2.2 }
 0x30b   :  { %v2940_v57 = vmul.f32 %v2924_v44, %v2172_v60  ;;  %v3516_v53 = vadd.f32 %v3500_v11, %v3468_v8  ;;  %v2220_v21 = vmul.f32 %v4953_v5, %v2204_v43  ;;  %v2268_v37 = vmul.f32 %v8037_v12, %v2252_v22  ;;  %vm1243_vm7 = vmand %vm1211_vm1, %vm1227_vm4  ;;  %v8600_v43 = vld [vmem:[#allocation53_spill] sm:$0xff] }
 0x30c   :  { %v5144_v49 = vadd.f32 -1.4, %v7944_v16  ;;  %v2347_v31 = vsub.f32 2.2, %v7944_v16  ;;  %v3051_v25 = vmul.f32 1.25, %v7970_v29  ;;  %v2988_v58 = vmul.f32 %v2972_v30, %v2172_v60  ;;  %v4489_v60 = vpop.f32.mrf.mxu0 }
 0x30d   :  { %v2956_v51 = vadd.f32 %v2940_v57, %v2908_v52  ;;  %4553 = vmatmul.f32.gmra.mxu1 %v3516_v53  ;;  %v8048_v28 = vadd.f32 %v2268_v37, %v2220_v21  ;;  %v4984_v56 = vsel %vm1243_vm7, 1.0, %v8474_v63  ;;  %v3691_v8 = vmul.f32 0.8333333, %v7966_v1  ;;  %v8602_v53 = vld [vmem:[#allocation63_spill] sm:$0xff] }
 0x30e   :  { %v3644_v4 = vmul.f32 0.8333333, %v2236_v2  ;;  %v2315_v40 = vmul.f32 2.5, %v5144_v49  ;;  %v2363_v36 = vmul.f32 2.5, %v2347_v31  ;;  %v3067_v16 = vmul.f32 %v3051_v25, %v7994_v59  ;;  %v8059_v2 = vld [vmem:[#allocation3 + $0x68] sm:$0xff]  ;;  %v8603_v49 = vld [vmem:[#allocation64_spill] sm:$0xff] }
 0x30f   :  { %v3580_v5 = vmul.f32 %v3564_v19, %v2956_v51  ;;  %v3020_v44 = vmul.f32 %v3004_v24, %v8048_v28  ;;  %v3628_v38 = vmul.f32 %v3612_v61, %v2956_v51  ;;  %v3083_v45 = vmul.f32 1.25, %v2347_v31 }
 0x310   :  { %v2331_v10 = vmul.f32 %v7982_v32, %v2315_v40  ;;  %v2379_v54 = vmul.f32 %v4984_v56, %v2363_v36  ;;  %v3707_v52 = vmul.f32 %v3691_v8, %v8004_v20  ;;  %v4425_v1 = vadd.f32 %v4424_v55, %v8022_v42  ;;  %v8599_v32 = vld [vmem:[#allocation62_spill] sm:$0xff]  ;;  %v8604_v40 = vld [vmem:[#allocation73_spill] sm:$0xff] }
 0x311   :  { %v3596_v29 = vadd.f32 %v3580_v5, %v3548_v9  ;;  %v8056_v30 = vadd.f32 %v3020_v44, %v2988_v58  ;;  %vm973_vm12 = vcmp.ge.f32.partialorder %v8059_v2, 0.6  ;;  %vm989_vm15 = vcmp.lt.f32.partialorder %v8059_v2, 1.0  ;;  %v8605_v44 = vld [vmem:[#allocation75_spill] sm:$0xff] }
 0x312   :  { %v2395_v59 = vadd.f32 %v2379_v54, %v2331_v10  ;;  %vm1005_vm8 = vmand %vm973_vm12, %vm989_vm15  ;;  %v2013_v19 = vsub.f32 1.0, %v8059_v2  ;;  %v2813_v11 = vmul.f32 1.25, %v8599_v32  ;;  %v3453_v20 = vmul.f32 0.8333333, %v8600_v43 }
 0x313   :  { %4618 = vmatmul.f32.gmra.mxu2 %v3596_v29  ;;  %v3660_v22 = vmul.f32 %v3644_v4, %v8056_v30  ;;  %v8067_v57 = vadd.f32 %v4489_v60, %v4425_v1  ;;  %v4938_v42 = vsel %vm1005_vm8, 1.0, %v8474_v63  ;;  %vm1053_vm9 = vcmp.ge.f32.partialorder %v8059_v2, 1.0  ;;  %v4297_v1 = vpop.f32.mrf.mxu1 }
 0x314   :  { %v3099_v9 = vmul.f32 %v3083_v45, %v2395_v59  ;;  %v3723_v24 = vmul.f32 0.8333333, %v2347_v31  ;;  %v2029_v61 = vmul.f32 2.5, %v2013_v19  ;;  %v2829_v21 = vmul.f32 %v2813_v11, %v8602_v53 }
 0x315   :  { %8601 = vst [vmem:[#allocation28_spill] sm:$0xff] %v8067_v57  ;;  %v3676_v37 = vadd.f32 %v3660_v22, %v3628_v38  ;;  %v2845_v51 = vmul.f32 1.25, %v2013_v19  ;;  %v3469_v25 = vmul.f32 %v3453_v20, %v8603_v49  ;;  %vm1069_vm13 = vcmp.lt.f32.partialorder %v8059_v2, 1.4 }
 0x316   :  { %v3115_v58 = vadd.f32 %v3099_v9, %v3067_v16  ;;  %v2045_v56 = vmul.f32 %v4938_v42, %v2029_v61  ;;  %vm1085_vm10 = vmand %vm1053_vm9, %vm1069_vm13  ;;  %v8075_v8 = vadd.f32 -0.6, %v8059_v2  ;;  %v2125_v5 = vsub.f32 1.4, %v8059_v2 }
 0x317   :  { %4683 = vmatmul.f32.gmra.mxu3 %v3676_v37  ;;  %v3485_v4 = vmul.f32 0.8333333, %v2013_v19  ;;  %v4954_v31 = vsel %vm1085_vm10, 1.0, %v8474_v63  ;;  %v2893_v36 = vmul.f32 1.25, %v8604_v40  ;;  %vm1133_vm14 = vcmp.ge.f32.partialorder %v8059_v2, 1.4 }
 0x318   :  { %v3739_v55 = vmul.f32 %v3723_v24, %v3115_v58  ;;  %v2061_v38 = vadd.f32 %v2045_v56, %v8605_v44  ;;  %v2093_v16 = vmul.f32 2.5, %v8075_v8  ;;  %v2141_v45 = vmul.f32 2.5, %v2125_v5 }
 0x319   :  { %v2925_v29 = vmul.f32 1.25, %v2125_v5  ;;  %v3533_v10 = vmul.f32 0.8333333, %v8599_v32  ;;  %vm1149_vm2 = vcmp.lt.f32.partialorder %v8059_v2, 1.8  ;;  %v8086_v54 = vadd.f32 -1.0, %v8059_v2 }
 0x31a   :  { %v3755_v60 = vadd.f32 %v3739_v55, %v3707_v52  ;;  %v2861_v59 = vmul.f32 %v2845_v51, %v2061_v38  ;;  %v2109_v19 = vmul.f32 %v4938_v42, %v2093_v16  ;;  %v2157_v11 = vmul.f32 %v4954_v31, %v2141_v45  ;;  %vm1165_vm3 = vmand %vm1133_vm14, %vm1149_vm2 }
 0x31b   :  { %v2909_v43 = vmul.f32 %v2893_v36, %v2061_v38  ;;  %v3565_v20 = vmul.f32 0.8333333, %v2125_v5  ;;  %v2205_v22 = vmul.f32 2.5, %v8086_v54  ;;  %v2237_v9 = vsub.f32 1.8, %v8059_v2 }
 0x31c   :  { %4745 = vmatmul.f32.gmra.mxu0 %v3755_v60  ;;  %v2877_v24 = vadd.f32 %v2861_v59, %v2829_v21  ;;  %v2173_v32 = vadd.f32 %v2157_v11, %v2109_v19  ;;  %v8091_v61 = vsel %vm1165_vm3, 1.0, %v8474_v63  ;;  %v2973_v53 = vmul.f32 1.25, %v8075_v8 }
 0x31d   :  { %v2221_v52 = vmul.f32 %v4954_v31, %v2205_v22  ;;  %v2253_v37 = vmul.f32 2.5, %v2237_v9  ;;  %v3005_v51 = vmul.f32 1.25, %v2237_v9  ;;  %v3613_v42 = vmul.f32 0.8333333, %v8604_v40  ;;  %v4427_v22 = vpop.f32.mrf.mxu3 }
 0x31e   :  { %v3501_v49 = vmul.f32 %v3485_v4, %v2877_v24  ;;  %v2941_v58 = vmul.f32 %v2925_v29, %v2173_v32  ;;  %v3549_v56 = vmul.f32 %v3533_v10, %v2877_v24  ;;  %v2989_v5 = vmul.f32 %v2973_v53, %v2173_v32  ;;  %v4362_v29 = vpop.f32.mrf.mxu2  ;;  %v8606_v10 = vld [vmem:[#allocation77_spill] sm:$0xff] }
 0x31f   :  { %v2269_v36 = vmul.f32 %v8091_v61, %v2253_v37  ;;  %vm1212_vm5 = vcmp.ge.f32.partialorder %v8001_v33, 1.8  ;;  %vm1228_vm0 = vcmp.lt.f32.partialorder %v8001_v33, 2.2  ;;  %v5145_v21 = vadd.f32 -1.4, %v8001_v33 }
 0x320   :  { %v3517_v55 = vadd.f32 %v3501_v49, %v3469_v25  ;;  %v2957_v44 = vadd.f32 %v2941_v58, %v2909_v43  ;;  %vm1244_vm6 = vmand %vm1212_vm5, %vm1228_vm0  ;;  %v2348_v31 = vsub.f32 2.2, %v8001_v33  ;;  %v3052_v38 = vmul.f32 1.25, %v8033_v3 }
 0x321   :  { %v8101_v40 = vadd.f32 %v2269_v36, %v2221_v52  ;;  %v4985_v4 = vsel %vm1244_vm6, 1.0, %v8474_v63  ;;  %v2316_v16 = vmul.f32 2.5, %v5145_v21  ;;  %v3692_v45 = vmul.f32 0.8333333, %v8019_v41  ;;  %v4300_v41 = vpop.f32.mrf.mxu1 }
 0x322   :  { %v4298_v60 = vadd.f32 %v4297_v1, %v8606_v10  ;;  %4556 = vmatmul.f32.gmra.mxu1 %v3517_v55  ;;  %v3581_v59 = vmul.f32 %v3565_v20, %v2957_v44  ;;  %v3645_v19 = vmul.f32 0.8333333, %v2237_v9  ;;  %v2364_v25 = vmul.f32 2.5, %v2348_v31  ;;  %v4492_v20 = vpop.f32.mrf.mxu0  ;;  %v8112_v9 = vld [vmem:[#allocation3 + $0x70] sm:$0xff] }
 0x323   :  { %v3021_v11 = vmul.f32 %v3005_v51, %v8101_v40  ;;  %v3629_v43 = vmul.f32 %v3613_v42, %v2957_v44  ;;  %v2332_v33 = vmul.f32 %v8037_v12, %v2316_v16  ;;  %v3068_v3 = vmul.f32 %v3052_v38, %v8048_v28  ;;  %v8607_v42 = vld [vmem:[#allocation66_spill] sm:$0xff] }
 0x324   :  { %v3597_v24 = vadd.f32 %v3581_v59, %v3549_v56  ;;  %v2380_v32 = vmul.f32 %v4985_v4, %v2364_v25  ;;  %v3084_v53 = vmul.f32 1.25, %v2348_v31  ;;  %v4363_v52 = vadd.f32 %v4362_v29, %v4298_v60  ;;  %v8610_v4 = vld [vmem:[#allocation67_spill] sm:$0xff]  ;;  %v8611_v29 = vld [vmem:[#allocation60_spill] sm:$0xff] }
 0x325   :  { %v8109_v37 = vadd.f32 %v3021_v11, %v2989_v5  ;;  %v3708_v1 = vmul.f32 %v3692_v45, %v8056_v30  ;;  %vm974_vm11 = vcmp.ge.f32.partialorder %v8112_v9, 0.6  ;;  %vm990_vm1 = vcmp.lt.f32.partialorder %v8112_v9, 1.0  ;;  %v8608_v5 = vld [vmem:[#allocation16_spill] sm:$0xff]  ;;  %v8612_v11 = vld [vmem:[#allocation14_spill] sm:$0xff] }
 0x326   :  { %4621 = vmatmul.f32.gmra.mxu2 %v3597_v24  ;;  %v2396_v12 = vadd.f32 %v2380_v32, %v2332_v33  ;;  %v4428_v28 = vadd.f32 %v4427_v22, %v4363_v52  ;;  %vm1006_vm4 = vmand %vm974_vm11, %vm990_vm1  ;;  %v2014_v51 = vsub.f32 1.0, %v8112_v9  ;;  %v2814_v49 = vmul.f32 1.25, %v8607_v42  ;;  %v8613_v24 = vld [vmem:[#allocation78_spill] sm:$0xff]  ;;  %v8614_v52 = vld [vmem:[#allocation68_spill] sm:$0xff] }
 0x327   :  { %v3661_v58 = vmul.f32 %v3645_v19, %v8109_v37  ;;  %v3724_v56 = vmul.f32 0.8333333, %v2348_v31  ;;  %v8120_v30 = vadd.f32 %v4300_v41, %v8608_v5  ;;  %v4939_v36 = vsel %vm1006_vm4, 1.0, %v8474_v63  ;;  %v4365_v5 = vpop.f32.mrf.mxu2 }
 0x328   :  { %v3100_v21 = vmul.f32 %v3084_v53, %v2396_v12  ;;  %v8123_v55 = vadd.f32 %v4492_v20, %v4428_v28  ;;  %v2030_v44 = vmul.f32 2.5, %v2014_v51  ;;  %vm1054_vm7 = vcmp.ge.f32.partialorder %v8112_v9, 1.0 }
 0x329   :  { %v3677_v38 = vadd.f32 %v3661_v58, %v3629_v43  ;;  %v2830_v16 = vmul.f32 %v2814_v49, %v8610_v4  ;;  %v2846_v45 = vmul.f32 1.25, %v2014_v51  ;;  %v3454_v10 = vmul.f32 0.8333333, %v8611_v29  ;;  %v8146_v4 = vpop.f32.mrf.mxu1 }
 0x32a   :  { %8609 = vst [vmem:[#allocation22_spill] sm:$0xff] %v8123_v55  ;;  %v3116_v60 = vadd.f32 %v3100_v21, %v3068_v3  ;;  %v2046_v59 = vmul.f32 %v4939_v36, %v2030_v44  ;;  %vm1070_vm12 = vcmp.lt.f32.partialorder %v8112_v9, 1.4  ;;  %v8130_v31 = vadd.f32 -0.6, %v8112_v9  ;;  %v4430_v21 = vpop.f32.mrf.mxu3  ;;  %v4495_v29 = vpop.f32.mrf.mxu0 }
 0x32b   :  { %4686 = vmatmul.f32.gmra.mxu3 %v3677_v38  ;;  %v3486_v19 = vmul.f32 0.8333333, %v2014_v51  ;;  %vm1086_vm15 = vmand %vm1054_vm7, %vm1070_vm12  ;;  %v2126_v25 = vsub.f32 1.4, %v8112_v9  ;;  %v2894_v33 = vmul.f32 1.25, %v8612_v11  ;;  %v8135_v43 = vadd.f32 -1.0, %v8112_v9 }
 0x32c   :  { %v3740_v22 = vmul.f32 %v3724_v56, %v3116_v60  ;;  %v2062_v32 = vadd.f32 %v2046_v59, %v8613_v24  ;;  %v4955_v3 = vsel %vm1086_vm15, 1.0, %v8474_v63  ;;  %v2094_v53 = vmul.f32 2.5, %v8130_v31 }
 0x32d   :  { %v3470_v41 = vmul.f32 %v3454_v10, %v8614_v52  ;;  %v2142_v20 = vmul.f32 2.5, %v2126_v25  ;;  %v3534_v12 = vmul.f32 0.8333333, %v8607_v42  ;;  %vm1134_vm8 = vcmp.ge.f32.partialorder %v8112_v9, 1.4 }
 0x32e   :  { %v3756_v28 = vadd.f32 %v3740_v22, %v3708_v1  ;;  %v2862_v51 = vmul.f32 %v2846_v45, %v2062_v32  ;;  %v2110_v49 = vmul.f32 %v4939_v36, %v2094_v53  ;;  %v2926_v58 = vmul.f32 1.25, %v2126_v25 }
 0x32f   :  { %v2158_v56 = vmul.f32 %v4955_v3, %v2142_v20  ;;  %vm1150_vm9 = vcmp.lt.f32.partialorder %v8112_v9, 1.8  ;;  %v2206_v44 = vmul.f32 2.5, %v8135_v43  ;;  %v2238_v38 = vsub.f32 1.8, %v8112_v9 }
 0x330   :  { %4748 = vmatmul.f32.gmra.mxu0 %v3756_v28  ;;  %v2878_v42 = vadd.f32 %v2862_v51, %v2830_v16  ;;  %v2910_v10 = vmul.f32 %v2894_v33, %v2062_v32  ;;  %vm1166_vm13 = vmand %vm1134_vm8, %vm1150_vm9  ;;  %v2974_v1 = vmul.f32 1.25, %v8130_v31  ;;  %vm1213_vm10 = vcmp.ge.f32.partialorder %v8059_v2, 1.8 }
 0x331   :  { %v2174_v36 = vadd.f32 %v2158_v56, %v2110_v49  ;;  %v8153_v45 = vsel %vm1166_vm13, 1.0, %v8474_v63  ;;  %v2222_v60 = vmul.f32 %v4955_v3, %v2206_v44  ;;  %v2254_v59 = vmul.f32 2.5, %v2238_v38 }
 0x332   :  { %v3502_v22 = vmul.f32 %v3486_v19, %v2878_v42  ;;  %v3550_v24 = vmul.f32 %v3534_v12, %v2878_v42  ;;  %v3566_v53 = vmul.f32 0.8333333, %v2126_v25  ;;  %v3614_v52 = vmul.f32 0.8333333, %v8612_v11 }
 0x333   :  { %v2942_v16 = vmul.f32 %v2926_v58, %v2174_v36  ;;  %v2270_v33 = vmul.f32 %v8153_v45, %v2254_v59  ;;  %v3006_v32 = vmul.f32 1.25, %v2238_v38  ;;  %vm1229_vm14 = vcmp.lt.f32.partialorder %v8059_v2, 2.2 }
 0x334   :  { %v3518_v20 = vadd.f32 %v3502_v22, %v3470_v41  ;;  %vm1245_vm2 = vmand %vm1213_vm10, %vm1229_vm14  ;;  %v5146_v28 = vadd.f32 -1.4, %v8059_v2  ;;  %v2349_v51 = vsub.f32 2.2, %v8059_v2  ;;  %v3053_v3 = vmul.f32 1.25, %v8086_v54 }
 0x335   :  { %v2958_v49 = vadd.f32 %v2942_v16, %v2910_v10  ;;  %v8161_v19 = vadd.f32 %v2270_v33, %v2222_v60  ;;  %v2990_v25 = vmul.f32 %v2974_v1, %v2174_v36  ;;  %v4986_v11 = vsel %vm1245_vm2, 1.0, %v8474_v63  ;;  %v8169_v36 = vpop.f32.mrf.mxu2  ;;  %v8171_v60 = vpop.f32.mrf.mxu3 }
 0x336   :  { %4559 = vmatmul.f32.gmra.mxu1 %v3518_v20  ;;  %v3646_v12 = vmul.f32 0.8333333, %v2238_v38  ;;  %v2317_v58 = vmul.f32 2.5, %v5146_v28  ;;  %v2365_v56 = vmul.f32 2.5, %v2349_v51  ;;  %v3693_v44 = vmul.f32 0.8333333, %v8075_v8 }
 0x337   :  { %v3582_v41 = vmul.f32 %v3566_v53, %v2958_v49  ;;  %v3022_v42 = vmul.f32 %v3006_v32, %v8161_v19  ;;  %v3069_v59 = vmul.f32 %v3053_v3, %v8101_v40  ;;  %v3085_v2 = vmul.f32 1.25, %v2349_v51  ;;  %v8175_v53 = vld [vmem:[#allocation3 + $0x78] sm:$0xff]  ;;  %v8178_v40 = vpop.f32.mrf.mxu1  ;;  %v8616_v20 = vld [vmem:[#allocation65_spill] sm:$0xff] }
 0x338   :  { %v3630_v22 = vmul.f32 %v3614_v52, %v2958_v49  ;;  %v2333_v54 = vmul.f32 %v8091_v61, %v2317_v58  ;;  %v2381_v10 = vmul.f32 %v4986_v11, %v2365_v56  ;;  %v4366_v1 = vadd.f32 %v4365_v5, %v8120_v30  ;;  %v8180_v52 = vpop.f32.mrf.mxu0  ;;  %v8618_v58 = vld [vmem:[#allocation17_spill] sm:$0xff] }
 0x339   :  { %v3598_v38 = vadd.f32 %v3582_v41, %v3550_v24  ;;  %v8173_v16 = vadd.f32 %v3022_v42, %v2990_v25  ;;  %v3725_v8 = vmul.f32 0.8333333, %v2349_v51  ;;  %vm975_vm3 = vcmp.ge.f32.partialorder %v8175_v53, 0.6  ;;  %v8615_v24 = vld [vmem:[#allocation69_spill] sm:$0xff] }
 0x33a   :  { %v2397_v61 = vadd.f32 %v2381_v10, %v2333_v54  ;;  %v4431_v33 = vadd.f32 %v4430_v21, %v4366_v1  ;;  %vm991_vm5 = vcmp.lt.f32.partialorder %v8175_v53, 1.0  ;;  %v2015_v30 = vsub.f32 1.0, %v8175_v53 }
 0x33b   :  { %4624 = vmatmul.f32.gmra.mxu2 %v3598_v38  ;;  %v3662_v5 = vmul.f32 %v3646_v12, %v8173_v16  ;;  %vm1007_vm0 = vmand %vm975_vm3, %vm991_vm5  ;;  %v2815_v32 = vmul.f32 1.25, %v8615_v24  ;;  %v3455_v28 = vmul.f32 0.8333333, %v8616_v20  ;;  %vm1055_vm6 = vcmp.ge.f32.partialorder %v8175_v53, 1.0  ;;  %v8622_v20 = vld [vmem:[#allocation12_spill] sm:$0xff] }
 0x33c   :  { %v3101_v51 = vmul.f32 %v3085_v2, %v2397_v61  ;;  %v8188_v3 = vadd.f32 %v4495_v29, %v4431_v33  ;;  %v4940_v49 = vsel %vm1007_vm0, 1.0, %v8474_v63  ;;  %v2031_v21 = vmul.f32 2.5, %v2015_v30  ;;  %v8619_v29 = vld [vmem:[#allocation70_spill] sm:$0xff] }
 0x33d   :  { %v8193_v25 = vadd.f32 %v7649_v62, %v7761_v39  ;;  %v3678_v11 = vadd.f32 %v3662_v5, %v3630_v22  ;;  %v3709_v12 = vmul.f32 %v3693_v44, %v8109_v37  ;;  %v8198_v56 = vadd.f32 %v8146_v4, %v8618_v58  ;;  %v8620_v44 = vld [vmem:[#allocation19_spill] sm:$0xff]  ;;  %v8214_v38 = vpop.f32.mrf.mxu2  ;;  %v8216_v61 = vpop.f32.mrf.mxu3 }
 0x33e   :  { %8617 = vst [vmem:[#allocation54_spill] sm:$0xff] %v8188_v3  ;;  %v3117_v41 = vadd.f32 %v3101_v51, %v3069_v59  ;;  %v2047_v42 = vmul.f32 %v4940_v49, %v2031_v21  ;;  %v2847_v54 = vmul.f32 1.25, %v2015_v30  ;;  %vm1071_vm11 = vcmp.lt.f32.partialorder %v8175_v53, 1.4  ;;  %v8621_v22 = vld [vmem:[#allocation71_spill] sm:$0xff] }
 0x33f   :  { %4689 = vmatmul.f32.gmra.mxu3 %v3678_v11  ;;  %v2831_v2 = vmul.f32 %v2815_v32, %v8619_v29  ;;  %vm1087_vm1 = vmand %vm1055_vm6, %vm1071_vm11  ;;  %v8205_v62 = vadd.f32 -0.6, %v8175_v53  ;;  %v2127_v39 = vsub.f32 1.4, %v8175_v53  ;;  %v8209_v37 = vadd.f32 -1.0, %v8175_v53  ;;  %v8220_v21 = vpop.f32.mrf.mxu1 }
 0x340   :  { %v3741_v4 = vmul.f32 %v3725_v8, %v3117_v41  ;;  %v2063_v59 = vadd.f32 %v2047_v42, %v8620_v44  ;;  %v3471_v10 = vmul.f32 %v3455_v28, %v8621_v22  ;;  %v4956_v1 = vsel %vm1087_vm1, 1.0, %v8474_v63  ;;  %v8222_v11 = vpop.f32.mrf.mxu0 }
 0x341   :  { %v3487_v33 = vmul.f32 0.8333333, %v2015_v30  ;;  %v2095_v5 = vmul.f32 2.5, %v8205_v62  ;;  %v2143_v32 = vmul.f32 2.5, %v2127_v39  ;;  %v2895_v51 = vmul.f32 1.25, %v8622_v20 }
 0x342   :  { %v3757_v8 = vadd.f32 %v3741_v4, %v3709_v12  ;;  %v2863_v58 = vmul.f32 %v2847_v54, %v2063_v59  ;;  %v2927_v41 = vmul.f32 1.25, %v2127_v39  ;;  %vm1135_vm4 = vcmp.ge.f32.partialorder %v8175_v53, 1.4 }
 0x343   :  { %v2111_v28 = vmul.f32 %v4940_v49, %v2095_v5  ;;  %v2159_v42 = vmul.f32 %v4956_v1, %v2143_v32  ;;  %vm1151_vm7 = vcmp.lt.f32.partialorder %v8175_v53, 1.8  ;;  %v2207_v30 = vmul.f32 2.5, %v8209_v37 }
 0x344   :  { %4751 = vmatmul.f32.gmra.mxu0 %v3757_v8  ;;  %v2879_v29 = vadd.f32 %v2863_v58, %v2831_v2  ;;  %v3535_v44 = vmul.f32 0.8333333, %v8615_v24  ;;  %v3567_v22 = vmul.f32 0.8333333, %v2127_v39  ;;  %vm1167_vm12 = vmand %vm1135_vm4, %vm1151_vm7  ;;  %v2239_v3 = vsub.f32 1.8, %v8175_v53 }
 0x345   :  { %v2175_v55 = vadd.f32 %v2159_v42, %v2111_v28  ;;  %v2911_v12 = vmul.f32 %v2895_v51, %v2063_v59  ;;  %v8230_v54 = vsel %vm1167_vm12, 1.0, %v8474_v63  ;;  %vm1214_vm15 = vcmp.ge.f32.partialorder %v8112_v9, 1.8  ;;  %v8239_v28 = vpop.f32.mrf.mxu2 }
 0x346   :  { %v3503_v49 = vmul.f32 %v3487_v33, %v2879_v29  ;;  %v2223_v4 = vmul.f32 %v4956_v1, %v2207_v30  ;;  %v2255_v5 = vmul.f32 2.5, %v2239_v3  ;;  %v2975_v32 = vmul.f32 1.25, %v8205_v62  ;;  %v8241_v1 = vpop.f32.mrf.mxu3 }
 0x347   :  { %v2943_v8 = vmul.f32 %v2927_v41, %v2175_v55  ;;  %v3007_v2 = vmul.f32 1.25, %v2239_v3  ;;  %v3615_v24 = vmul.f32 0.8333333, %v8622_v20  ;;  %vm1230_vm8 = vcmp.lt.f32.partialorder %v8112_v9, 2.2  ;;  %v4524_v30 = vpop.f32.mrf.mxu1 }
 0x348   :  { %v3519_v39 = vadd.f32 %v3503_v49, %v3471_v10  ;;  %v2271_v58 = vmul.f32 %v8230_v54, %v2255_v5  ;;  %vm1246_vm9 = vmand %vm1214_vm15, %vm1230_vm8  ;;  %v5147_v59 = vadd.f32 -1.4, %v8112_v9  ;;  %v2350_v51 = vsub.f32 2.2, %v8112_v9  ;;  %v8245_v57 = vpop.f32.mrf.mxu0 }
 0x349   :  { %v2959_v33 = vadd.f32 %v2943_v8, %v2911_v12  ;;  %v3551_v42 = vmul.f32 %v3535_v44, %v2879_v29  ;;  %v4987_v41 = vsel %vm1246_vm9, 1.0, %v8474_v63  ;;  %v3054_v20 = vmul.f32 1.25, %v8135_v43 }
 0x34a   :  { %4562 = vmatmul.f32.gmra.mxu1 %v3519_v39  ;;  %v2287_v10 = vadd.f32 %v2271_v58, %v2223_v4  ;;  %v2991_v49 = vmul.f32 %v2975_v32, %v2175_v55  ;;  %v2318_v5 = vmul.f32 2.5, %v5147_v59  ;;  %v2366_v13 = vmul.f32 2.5, %v2350_v51 }
 0x34b   :  { %v3583_v48 = vmul.f32 %v3567_v22, %v2959_v33  ;;  %v3647_v9 = vmul.f32 0.8333333, %v2239_v3  ;;  %v3086_v0 = vmul.f32 1.25, %v2350_v51  ;;  %v3694_v14 = vmul.f32 0.8333333, %v8130_v31 }
 0x34c   :  { %v3023_v18 = vmul.f32 %v3007_v2, %v2287_v10  ;;  %v3631_v12 = vmul.f32 %v3615_v24, %v2959_v33  ;;  %v2334_v29 = vmul.f32 %v8153_v45, %v2318_v5  ;;  %v2382_v44 = vmul.f32 %v4987_v41, %v2366_v13  ;;  %v8623_v2 = vld [vmem:[#allocation13_spill] sm:$0xff] }
 0x34d   :  { %v3599_v8 = vadd.f32 %v3583_v48, %v3551_v42  ;;  %v3070_v43 = vmul.f32 %v3054_v20, %v8161_v19  ;;  %v4369_v39 = vadd.f32 %v8169_v36, %v8198_v56  ;;  %vm1215_vm13 = vcmp.ge.f32.partialorder %v8175_v53, 1.8  ;;  %v4589_v22 = vpop.f32.mrf.mxu2 }
 0x34e   :  { %v3039_v55 = vadd.f32 %v3023_v18, %v2991_v49  ;;  %v2398_v4 = vadd.f32 %v2382_v44, %v2334_v29  ;;  %vm1231_vm10 = vcmp.lt.f32.partialorder %v8175_v53, 2.2  ;;  %v5148_v3 = vadd.f32 -1.4, %v8175_v53  ;;  %v4654_v32 = vpop.f32.mrf.mxu3 }
 0x34f   :  { %v4463_v31 = vadd.f32 %v7654_v50, %v8193_v25  ;;  %4627 = vmatmul.f32.gmra.mxu2 %v3599_v8  ;;  %v3726_v45 = vmul.f32 0.8333333, %v2350_v51  ;;  %v4434_v48 = vadd.f32 %v8171_v60, %v4369_v39  ;;  %vm1247_vm14 = vmand %vm1215_vm13, %vm1231_vm10  ;;  %v2351_v13 = vsub.f32 2.2, %v8175_v53  ;;  %v4527_v60 = vpop.f32.mrf.mxu1 }
 0x350   :  { %v3663_v19 = vmul.f32 %v3647_v9, %v3039_v55  ;;  %v3102_v36 = vmul.f32 %v3086_v0, %v2398_v4  ;;  %v4988_v56 = vsel %vm1247_vm14, 1.0, %v8474_v63  ;;  %v2319_v18 = vmul.f32 2.5, %v5148_v3  ;;  %v4719_v59 = vpop.f32.mrf.mxu0 }
 0x351   :  { %v4519_v24 = vadd.f32 %v8178_v40, %v8623_v2  ;;  %v8263_v58 = vadd.f32 %v8180_v52, %v4434_v48  ;;  %v2367_v50 = vmul.f32 2.5, %v2351_v13  ;;  %v3055_v25 = vmul.f32 1.25, %v8209_v37  ;;  %v8624_v52 = vld [vmem:[#allocation49_spill] sm:$0xff] }
 0x352   :  { %v3679_v51 = vadd.f32 %v3663_v19, %v3631_v12  ;;  %v3118_v53 = vadd.f32 %v3102_v36, %v3070_v43  ;;  %v3710_v0 = vmul.f32 %v3694_v14, %v8173_v16  ;;  %v2335_v63 = vmul.f32 %v8230_v54, %v2319_v18 }
 0x353   :  { %v2383_v33 = vmul.f32 %v4988_v56, %v2367_v50  ;;  %v3087_v42 = vmul.f32 1.25, %v2351_v13  ;;  %v4584_v41 = vadd.f32 %v8214_v38, %v4519_v24  ;;  %v4522_v40 = vadd.f32 %v8220_v21, %v7682_v23  ;;  %v8627_v24 = vld [vmem:[#allocation76_spill] sm:$0xff] }
 0x354   :  { %v4336_v20 = vadd.f32 %v8624_v52, %v7780_v6  ;;  %4692 = vmatmul.f32.gmra.mxu3 %v3679_v51  ;;  %v3742_v37 = vmul.f32 %v3726_v45, %v3118_v53  ;;  %v3695_v49 = vmul.f32 0.8333333, %v8205_v62  ;;  %v4525_v5 = vadd.f32 %v4524_v30, %v7715_v7  ;;  %v8625_v45 = vld [vmem:[#allocation74_spill] sm:$0xff]  ;;  %v8631_v52 = vld [vmem:[#allocation23_spill] sm:$0xff] }
 0x355   :  { %v2399_v9 = vadd.f32 %v2383_v33, %v2335_v63  ;;  %v3071_v14 = vmul.f32 %v3055_v25, %v2287_v10  ;;  %v4649_v16 = vadd.f32 %v8216_v61, %v4584_v41  ;;  %v4587_v54 = vadd.f32 %v8239_v28, %v4522_v40  ;;  %v4592_v7 = vpop.f32.mrf.mxu2  ;;  %v8630_v40 = vld [vmem:[#allocation15_spill] sm:$0xff] }
 0x356   :  { %v3758_v12 = vadd.f32 %v3742_v37, %v3710_v0  ;;  %v3727_v38 = vmul.f32 0.8333333, %v2351_v13  ;;  %v4590_v29 = vadd.f32 %v4589_v22, %v4525_v5  ;;  %v4528_v21 = vadd.f32 %v4527_v60, %v4463_v31  ;;  %v4657_v30 = vpop.f32.mrf.mxu3  ;;  %v8628_v60 = vld [vmem:[#allocation46_spill] sm:$0xff] }
 0x357   :  { %v3103_v44 = vmul.f32 %v3087_v42, %v2399_v9  ;;  %v4714_v23 = vadd.f32 %v8222_v11, %v4649_v16  ;;  %v4652_v6 = vadd.f32 %v8241_v1, %v4587_v54  ;;  %v4401_v8 = vadd.f32 %v7686_v17, %v4336_v20  ;;  %v4530_v39 = vpop.f32.mrf.mxu1  ;;  %v8626_v11 = vld [vmem:[#allocation20_spill] sm:$0xff] }
 0x358   :  { %4754 = vmatmul.f32.gmra.mxu0 %v3758_v12  ;;  %v4655_v62 = vadd.f32 %v4654_v32, %v4590_v29  ;;  %v3711_v43 = vmul.f32 %v3695_v49, %v3039_v55  ;;  %v4593_v28 = vadd.f32 %v4592_v7, %v4528_v21  ;;  %v4722_v4 = vpop.f32.mrf.mxu0  ;;  %v4274_v48 = vadd.f32 %v8626_v11, %v8625_v45  ;;  %v8632_v49 = vld [vmem:[#allocation18_spill] sm:$0xff] }
 0x359   :  { %v3119_v10 = vadd.f32 %v3103_v44, %v3071_v14  ;;  %4761 = vst [vmem:[#allocation8] sm:$0xff] %v4714_v23  ;;  %v4717_v61 = vadd.f32 %v8245_v57, %v4652_v6  ;;  %v4466_v17 = vadd.f32 %v7691_v27, %v4401_v8  ;;  %v4277_v50 = vadd.f32 %v7698_v34, %v8627_v24  ;;  %v8633_v23 = vld [vmem:[#allocation24_spill] sm:$0xff] }
 0x35a   :  { %v4720_v3 = vadd.f32 %v4719_v59, %v4655_v62  ;;  %v4658_v31 = vadd.f32 %v4657_v30, %v4593_v28  ;;  %v4339_v13 = vadd.f32 %v7668_v46, %v4274_v48  ;;  %v8629_v59 = vld [vmem:[#allocation21_spill] sm:$0xff]  ;;  %v4280_v20 = vadd.f32 %v8631_v52, %v8630_v40  ;;  %v8634_v28 = vld [vmem:[#allocation52_spill] sm:$0xff] }
 0x35b   :  { %v3743_v1 = vmul.f32 %v3727_v38, %v3119_v10  ;;  %4762 = vst [vmem:[#allocation8 + $0x8] sm:$0xff] %v4717_v61  ;;  %v4531_v36 = vadd.f32 %v4530_v39, %v4466_v17  ;;  %v4342_v46 = vadd.f32 %v8629_v59, %v4277_v50  ;;  %v8638_v52 = vld [vmem:[#allocation28_spill] sm:$0xff] }
 0x35c   :  { %4763 = vst [vmem:[#allocation8 + $0x10] sm:$0xff] %v4720_v3  ;;  %v4723_v55 = vadd.f32 %v4722_v4, %v4658_v31  ;;  %v4404_v18 = vadd.f32 %v7730_v15, %v4339_v13  ;;  %v4345_v5 = vadd.f32 %v8632_v49, %v4280_v20  ;;  %v8635_v31 = vld [vmem:[#allocation56_spill] sm:$0xff] }
 0x35d   :  { %v3759_v19 = vadd.f32 %v3743_v1, %v3711_v43  ;;  %v4595_v57 = vpop.f32.mrf.mxu2  ;;  %v4407_v33 = vadd.f32 %v7763_v26, %v4342_v46  ;;  %v8637_v46 = vld [vmem:[#allocation27_spill] sm:$0xff] }
 0x35e   :  { %4764 = vst [vmem:[#allocation8 + $0x18] sm:$0xff] %v4723_v55  ;;  %v4660_v56 = vpop.f32.mrf.mxu3  ;;  %v4596_v22 = vadd.f32 %v4595_v57, %v4531_v36  ;;  %v4469_v27 = vadd.f32 %v8628_v60, %v4404_v18  ;;  %v4410_v12 = vadd.f32 %v7800_v47, %v4345_v5 }
 0x35f   :  { %v4533_v32 = vpop.f32.mrf.mxu1  ;;  %v4472_v34 = vadd.f32 %v7768_v35, %v4407_v33 }
 0x360   :  { %4757 = vmatmul.f32.gmra.mxu0 %v3759_v19  ;;  %v4725_v2 = vpop.f32.mrf.mxu0  ;;  %v4661_v25 = vadd.f32 %v4660_v56, %v4596_v22  ;;  %v4534_v53 = vadd.f32 %v4533_v32, %v4469_v27  ;;  %v4475_v6 = vadd.f32 %v8633_v23, %v4410_v12  ;;  %v8636_v22 = vld [vmem:[#allocation25_spill] sm:$0xff] }
 0x362   :  { %v4726_v51 = vadd.f32 %v4725_v2, %v4661_v25 }
 0x364   :  { %4765 = vst [vmem:[#allocation8 + $0x20] sm:$0xff] %v4726_v51 }
 0x365   :  { %v4598_v0 = vpop.f32.mrf.mxu2 }
 0x366   :  { %v4663_v63 = vpop.f32.mrf.mxu3  ;;  %v4599_v42 = vadd.f32 %v4598_v0, %v4534_v53 }
 0x367   :  { %v4536_v15 = vpop.f32.mrf.mxu1 }
 0x368   :  { %v4728_v41 = vpop.f32.mrf.mxu0  ;;  %v4664_v37 = vadd.f32 %v4663_v63, %v4599_v42  ;;  %v4537_v14 = vadd.f32 %v4536_v15, %v4472_v34 }
 0x36a   :  { %v4729_v9 = vadd.f32 %v4728_v41, %v4664_v37 }
 0x36c   :  { %4766 = vst [vmem:[#allocation8 + $0x28] sm:$0xff] %v4729_v9 }
 0x36d   :  { %v4601_v16 = vpop.f32.mrf.mxu2 }
 0x36e   :  { %v4666_v54 = vpop.f32.mrf.mxu3  ;;  %v4602_v38 = vadd.f32 %v4601_v16, %v4537_v14 }
 0x36f   :  { %v4539_v26 = vpop.f32.mrf.mxu1 }
 0x370   :  { %v4731_v29 = vpop.f32.mrf.mxu0  ;;  %v4667_v44 = vadd.f32 %v4666_v54, %v4602_v38  ;;  %v4540_v8 = vadd.f32 %v4539_v26, %v4475_v6  ;;  %v8639_v54 = vld [vmem:[#allocation22_spill] sm:$0xff] }
 0x372   :  { %v4732_v21 = vadd.f32 %v4731_v29, %v4667_v44 }
 0x374   :  { %4767 = vst [vmem:[#allocation8 + $0x30] sm:$0xff] %v4732_v21 }
 0x375   :  { %v4604_v62 = vpop.f32.mrf.mxu2 }
 0x376   :  { %v4669_v35 = vpop.f32.mrf.mxu3  ;;  %v4605_v7 = vadd.f32 %v4604_v62, %v4540_v8  ;;  %v8640_v8 = vld [vmem:[#allocation54_spill] sm:$0xff] }
 0x377   :  { %v4542_v30 = vpop.f32.mrf.mxu1 }
 0x378   :  { %v4734_v10 = vpop.f32.mrf.mxu0  ;;  %v4670_v43 = vadd.f32 %v4669_v35, %v4605_v7  ;;  %v4543_v39 = vadd.f32 %v4542_v30, %v8634_v28 }
 0x37a   :  { %v4735_v61 = vadd.f32 %v4734_v10, %v4670_v43 }
 0x37c   :  { %4768 = vst [vmem:[#allocation8 + $0x38] sm:$0xff] %v4735_v61 }
 0x37d   :  { %v4607_v47 = vpop.f32.mrf.mxu2 }
 0x37e   :  { %v4672_v4 = vpop.f32.mrf.mxu3  ;;  %v4608_v3 = vadd.f32 %v4607_v47, %v4543_v39 }
 0x37f   :  { %v4545_v45 = vpop.f32.mrf.mxu1 }
 0x380   :  { %v4737_v11 = vpop.f32.mrf.mxu0  ;;  %v4673_v48 = vadd.f32 %v4672_v4, %v4608_v3  ;;  %v4546_v17 = vadd.f32 %v4545_v45, %v8635_v31 }
 0x382   :  { %v4738_v1 = vadd.f32 %v4737_v11, %v4673_v48 }
 0x384   :  { %4769 = vst [vmem:[#allocation8 + $0x40] sm:$0xff] %v4738_v1 }
 0x385   :  { %v4610_v13 = vpop.f32.mrf.mxu2 }
 0x386   :  { %v4675_v19 = vpop.f32.mrf.mxu3  ;;  %v4611_v55 = vadd.f32 %v4610_v13, %v4546_v17 }
 0x387   :  { %v4548_v57 = vpop.f32.mrf.mxu1 }
 0x388   :  { %v4740_v36 = vpop.f32.mrf.mxu0  ;;  %v4676_v56 = vadd.f32 %v4675_v19, %v4611_v55  ;;  %v4549_v32 = vadd.f32 %v4548_v57, %v8636_v22 }
 0x38a   :  { %v4741_v18 = vadd.f32 %v4740_v36, %v4676_v56 }
 0x38c   :  { %4770 = vst [vmem:[#allocation8 + $0x48] sm:$0xff] %v4741_v18 }
 0x38d   :  { %v4613_v2 = vpop.f32.mrf.mxu2 }
 0x38e   :  { %v4678_v24 = vpop.f32.mrf.mxu3  ;;  %v4614_v50 = vadd.f32 %v4613_v2, %v4549_v32 }
 0x38f   :  { %v4551_v27 = vpop.f32.mrf.mxu1 }
 0x390   :  { %v4743_v25 = vpop.f32.mrf.mxu0  ;;  %v4679_v60 = vadd.f32 %v4678_v24, %v4614_v50  ;;  %v4552_v51 = vadd.f32 %v4551_v27, %v8637_v46 }
 0x392   :  { %v4744_v59 = vadd.f32 %v4743_v25, %v4679_v60 }
 0x394   :  { %4771 = vst [vmem:[#allocation8 + $0x50] sm:$0xff] %v4744_v59 }
 0x395   :  { %v4616_v53 = vpop.f32.mrf.mxu2 }
 0x396   :  { %v4681_v0 = vpop.f32.mrf.mxu3  ;;  %v4617_v63 = vadd.f32 %v4616_v53, %v4552_v51 }
 0x397   :  { %v4554_v41 = vpop.f32.mrf.mxu1 }
 0x398   :  { %v4682_v42 = vadd.f32 %v4681_v0, %v4617_v63  ;;  %v4555_v20 = vadd.f32 %v4554_v41, %v8638_v52 }
 0x399   :  { %v4746_v33 = vpop.f32.mrf.mxu0 }
 0x39a   :  { %v4747_v15 = vadd.f32 %v4746_v33, %v4682_v42 }
 0x39c   :  { %4772 = vst [vmem:[#allocation8 + $0x58] sm:$0xff] %v4747_v15 }
 0x39d   :  { %v4619_v40 = vpop.f32.mrf.mxu2 }
 0x39e   :  { %v4620_v37 = vadd.f32 %v4619_v40, %v4555_v20  ;;  %v4684_v34 = vpop.f32.mrf.mxu3 }
 0x39f   :  { %v4557_v14 = vpop.f32.mrf.mxu1 }
 0x3a0   :  { %v4685_v49 = vadd.f32 %v4684_v34, %v4620_v37  ;;  %v4558_v12 = vadd.f32 %v4557_v14, %v8639_v54 }
 0x3a9   :  { %v4622_v16 = vpop.f32.mrf.mxu2 }
 0x3aa   :  { %v4623_v38 = vadd.f32 %v4622_v16, %v4558_v12 }
 0x3ad   :  { %v4749_v5 = vpop.f32.mrf.mxu0 }
 0x3ae   :  { %v4750_v9 = vadd.f32 %v4749_v5, %v4685_v49  ;;  %v4687_v26 = vpop.f32.mrf.mxu3 }
 0x3af   :  { %v4688_v29 = vadd.f32 %v4687_v26, %v4623_v38 }
 0x3b0   :  { %4773 = vst [vmem:[#allocation8 + $0x60] sm:$0xff] %v4750_v9 }
 0x3b3   :  { %v4560_v6 = vpop.f32.mrf.mxu1 }
 0x3b4   :  { %v4561_v62 = vadd.f32 %v4560_v6, %v8640_v8 }
 0x3be   :  { %v4625_v21 = vpop.f32.mrf.mxu2 }
 0x3bf   :  { %v4626_v7 = vadd.f32 %v4625_v21, %v4561_v62 }
 0x3c1   :  { %v4752_v44 = vpop.f32.mrf.mxu0 }
 0x3c2   :  { %v4753_v23 = vadd.f32 %v4752_v44, %v4688_v29  ;;  %v4690_v35 = vpop.f32.mrf.mxu3 }
 0x3c3   :  { %v4691_v10 = vadd.f32 %v4690_v35, %v4626_v7 }
 0x3c4   :  { %4774 = vst [vmem:[#allocation8 + $0x68] sm:$0xff] %v4753_v23 }
 0x3c7   :  { %v4563_v30 = vpop.f32.mrf.mxu1 }
 0x3c8   :  { %v4564_v61 = vadd.f32 %v4563_v30, %v8263_v58 }
 0x3d2   :  { %v4628_v43 = vpop.f32.mrf.mxu2 }
 0x3d3   :  { %v4629_v47 = vadd.f32 %v4628_v43, %v4564_v61 }
 0x3d5   :  { %v4755_v28 = vpop.f32.mrf.mxu0 }
 0x3d6   :  { %v4756_v39 = vadd.f32 %v4755_v28, %v4691_v10 }
 0x3d7   :  { %v4693_v4 = vpop.f32.mrf.mxu3 }
 0x3d8   :  { %4775 = vst [vmem:[#allocation8 + $0x70] sm:$0xff] %v4756_v39  ;;  %v4694_v3 = vadd.f32 %v4693_v4, %v4629_v47 }
 0x3dd   :  { %v4758_v45 = vpop.f32.mrf.mxu0 }
 0x3de   :  { %v4759_v11 = vadd.f32 %v4758_v45, %v4694_v3 }
 0x3e0   :  { %4776 = vst [vmem:[#allocation8 + $0x78] sm:$0xff] %v4759_v11 }
 0x3e1   :  { %4789 = dma.vmem_to_hbm [thread:$0]  %s4782_s1, 2048, %s4784_s23, [#allocation5], %s5390_s17, %s5390_s17, %s5391_s18  }
 0x3e2   :  { %5387 = dma.done.wait [#allocation5], 2048  }
 0x3e3   :  { %5388 = vsyncadd [#allocation5], 4294965248 }
 0x3e4   :  { %4794 = vsyncpa [#allocation4], 1 }
 0x3e5   :  { %4795 = vsyncpa [#allocation7], 1 }
 0x3e6   :  { %4796 = vsyncpa [#allocation5], 1 }

</bundles_post_ra>
